<compile_context>
chip_gen: v7x
topology: tpu7x:2x2x1
jax: 0.10.0
libtpu: 0.0.40
codegen_flags: <defaults>
</compile_context>

<pallas_src>
import numpy as np
import jax
import jax.numpy as jnp
from jax import lax
from jax.experimental import pallas as pl
from jax.experimental.pallas import tpu as pltpu

EPS = 1e-5
_N = 1.0 / 8.0
_WARP_KERNELS = np.array([
    [[0, 0, 0, 0, 0], [0, 0, _N, _N, _N], [0, _N, _N, _N, 0], [_N, _N, _N, 0, 0], [0, 0, 0, 0, 0]],
    [[0, 0, 0, _N, 0], [0, 0, _N, _N, 0], [0, _N, _N, _N, 0], [0, _N, _N, 0, 0], [0, _N, 0, 0, 0]],
    [[0, _N, 0, 0, 0], [0, _N, _N, 0, 0], [0, _N, _N, _N, 0], [0, 0, _N, _N, 0], [0, 0, 0, _N, 0]],
    [[0, 0, 0, 0, 0], [_N, _N, _N, 0, 0], [0, _N, _N, _N, 0], [0, 0, _N, _N, _N], [0, 0, 0, 0, 0]],
], dtype=np.float32)
# Sum of the four fixed WarpConv filters.  Every WarpConv uses the same 5x5 filter for
# every (out, in) channel pair, so parts 2..5 only see the channel sum of their input.
_KSUM = _WARP_KERNELS.sum(axis=0)


# ----------------------------------------------------------------------------
# Fused Bottleneck kernel
# ----------------------------------------------------------------------------
def _make_bottleneck_kernel(n, h, w, cin, planes, warp, eps):
    m = n * h * w
    p = planes

    def bn_relu6(y, gamma, relu6=True):
        # F.batch_norm in training mode (batch stats over N,H,W, biased variance,
        # weight=1, bias=0) followed by FixGammaBN's `* gamma`.  Two-pass variance,
        # folded to a single per-channel FMA.
        mean = jnp.mean(y, axis=0, keepdims=True)                  # [1, C]
        d = y - mean
        var = jnp.mean(d * d, axis=0, keepdims=True)               # biased, f32, >= 0
        out = d * (gamma * lax.rsqrt(var + eps))
        return jnp.clip(out, 0.0, 6.0) if relu6 else out           # nn.ReLU6

    def kernel(x_ref, w1_ref, g1_ref, w2_ref, g2_ref, w3_ref, g3_ref, out_ref, *scratch):
        if warp:
            ypad_ref, midpad_ref = scratch
        else:
            (midpad_ref,) = scratch

        # ---- stage 1: conv1x1 (MXU: bf16 operands, f32 accumulation) -------------------
        # x is only materialized as a short-lived bf16 cast here; the f32 identity is
        # re-read from VMEM at the residual add (narrow vreg live range).
        y = jnp.dot(x_ref[...].astype(jnp.bfloat16), w1_ref[...],
                    preferred_element_type=jnp.float32)            # [M, P] f32

        # ---- WarpLayer applied directly to the 32-channel y ----------------------------
        if warp:
            zr = jnp.zeros((n, 2, w + 4, p), jnp.bfloat16)         # zero only the 2-px halo
            ypad_ref[:, 0:2, :, :] = zr
            ypad_ref[:, h + 2:h + 4, :, :] = zr
            zc = jnp.zeros((n, h + 4, 2, p), jnp.bfloat16)
            ypad_ref[:, :, 0:2, :] = zc
            ypad_ref[:, :, w + 2:w + 4, :] = zc
            ypad_ref[:, 2:2 + h, 2:2 + w, :] = y.astype(jnp.bfloat16).reshape(n, h, w, p)

            box = jnp.zeros((m, p), jnp.float32)                   # 3x3 box sum (per channel)
            dks = jnp.zeros((m, p), jnp.float32)                   # depthwise Ksum accumulation
            for dy in range(5):
                for dx in range(5):
                    kc = float(_KSUM[dy, dx])
                    in_box = (1 <= dy <= 3) and (1 <= dx <= 3)
                    if kc == 0.0 and not in_box:
                        continue                                   # 17 taps total, each read once
                    tap = ypad_ref[:, dy:dy + h, dx:dx + w, :].reshape(m, p).astype(jnp.float32)
                    if in_box:
                        box = box + tap
                    if kc != 0.0:
                        dks = dks + kc * tap
            extra = jnp.sum(dks, axis=1, keepdims=True)            # conv5x5(Ksum) of sum_c(y), [M,1]
            # part0 (9/8*y, exact f32) + part1 (avg_pool2d(3,1,1)*9/8 == box-sum/8)
            # + parts2..5 (identical for every output channel -> lane broadcast of `extra`)
            y = 1.125 * y + 0.125 * box + extra

        y = bn_relu6(y, g1_ref[...])                               # bn1 * gamma1, ReLU6

        # ---- conv2: 3x3, pad=1, stride=1 ------------------------------------------------
        # bf16 1-halo padded buffer (halo-only zeroing); 9 shifted-tap matmuls accumulated
        # in registers (no acc_ref read-modify-write).
        zr = jnp.zeros((n, 1, w + 2, p), jnp.bfloat16)
        midpad_ref[:, 0:1, :, :] = zr
        midpad_ref[:, h + 1:h + 2, :, :] = zr
        zc = jnp.zeros((n, h + 2, 1, p), jnp.bfloat16)
        midpad_ref[:, :, 0:1, :] = zc
        midpad_ref[:, :, w + 1:w + 2, :] = zc
        midpad_ref[:, 1:1 + h, 1:1 + w, :] = y.astype(jnp.bfloat16).reshape(n, h, w, p)

        # TODO(synk): on v6e/v7x a lane-dense [M, 9P] im2col + single [9P, P] matmul would
        #             raise MXU occupancy (K=32 underfills the 256-deep MXU); kept as 9
        #             register-accumulated dots since this kernel is vld/vst-bound here.
        acc = None
        for t in range(9):
            dy, dx = divmod(t, 3)
            tap = midpad_ref[:, dy:dy + h, dx:dx + w, :].reshape(m, p)   # bf16, no cast
            d = jnp.dot(tap, w2_ref[t], preferred_element_type=jnp.float32)
            acc = d if acc is None else acc + d
        y = bn_relu6(acc, g2_ref[...])                             # bn2 * gamma2, ReLU6

        # ---- conv3: 1x1 -> 4P, bn3 * gamma3 (gamma3 == 0 at module init, no ReLU),
        #      residual add (f32 identity re-read), final ReLU6 ---------------------------
        y = jnp.dot(y.astype(jnp.bfloat16), w3_ref[...],
                    preferred_element_type=jnp.float32)            # [M, 4P]
        y = bn_relu6(y, g3_ref[...], relu6=False)
        out_ref[...] = jnp.clip(y + x_ref[...], 0.0, 6.0)          # out += identity; ReLU6

    return kernel


# ----------------------------------------------------------------------------
# Weight prep + pallas_call wrappers
# ----------------------------------------------------------------------------
def bottleneck_forward_nhwc(x_nhwc, params, *, warp=False):
    """Fused Pallas forward of Bottleneck on NHWC input (stride=1, downsample=None,
    training-mode BN).  Returns NHWC output."""
    conv1_w, conv2_w, conv3_w = params["conv1_w"], params["conv2_w"], params["conv3_w"]
    n, h, w, cin = x_nhwc.shape
    p = conv1_w.shape[0]
    c4 = 4 * p
    assert conv3_w.shape[0] == c4 and cin == c4, "identity add needs inplanes == planes * 4"
    m = n * h * w

    x2d = x_nhwc.reshape(m, cin).astype(jnp.float32)
    w1 = jnp.transpose(conv1_w.reshape(p, cin)).astype(jnp.bfloat16)       # [Cin, P]
    w2 = jnp.transpose(conv2_w, (2, 3, 1, 0)).reshape(9, p, p).astype(jnp.bfloat16)
    w3 = jnp.transpose(conv3_w.reshape(c4, p)).astype(jnp.bfloat16)        # [P, 4P]
    g1 = params["bn1_gamma"].reshape(1, p).astype(jnp.float32)
    g2 = params["bn2_gamma"].reshape(1, p).astype(jnp.float32)
    g3 = params["bn3_gamma"].reshape(1, c4).astype(jnp.float32)

    scratch = []
    if warp:
        scratch.append(pltpu.VMEM((n, h + 4, w + 4, p), jnp.bfloat16))     # 2-halo y (warp taps)
    scratch.append(pltpu.VMEM((n, h + 2, w + 2, p), jnp.bfloat16))         # 1-halo bn1/ReLU6 out

    kernel = _make_bottleneck_kernel(n, h, w, cin, p, warp, EPS)
    out2d = pl.pallas_call(
        kernel,
        out_shape=jax.ShapeDtypeStruct((m, c4), jnp.float32),
        in_specs=[pl.BlockSpec(memory_space=pltpu.MemorySpace.VMEM)] * 7,
        out_specs=pl.BlockSpec(memory_space=pltpu.MemorySpace.VMEM),
        scratch_shapes=scratch,
        # Grid-less; total VMEM footprint ~1 MB, well under the default scoped limit on
        # every generation (no vmem_limit override needed).
    )(x2d, w1, g1, w2, g2, w3, g3)
    return out2d.reshape(n, h, w, c4)


def bottleneck_forward(x_nchw, params, *, warp=False):
    """NCHW wrapper matching the PyTorch module's layout.  Prefer the NHWC entry point
    end-to-end to avoid the two wrapper-side transposes (they cost about as much HBM
    traffic as the kernel's own I/O at this size)."""
    out = bottleneck_forward_nhwc(jnp.transpose(x_nchw, (0, 2, 3, 1)), params, warp=warp)
    return jnp.transpose(out, (0, 3, 1, 2))


# ----------------------------------------------------------------------------
# Pure-JAX reference (mirrors the PyTorch module; bf16 conv operands like the kernel)
# ----------------------------------------------------------------------------
def _conv_ref(x_nhwc, w_oihw, padding=0):
    return lax.conv_general_dilated(
        x_nhwc.astype(jnp.bfloat16),
        jnp.transpose(w_oihw, (2, 3, 1, 0)).astype(jnp.bfloat16),          # HWIO
        window_strides=(1, 1),
        padding=((padding, padding), (padding, padding)),
        dimension_numbers=("NHWC", "HWIO", "NHWC"),
        preferred_element_type=jnp.float32)


def _bn_gamma_ref(y, gamma, eps=EPS):
    mean = jnp.mean(y, axis=(0, 1, 2), keepdims=True)
    var = jnp.mean(jnp.square(y - mean), axis=(0, 1, 2), keepdims=True)    # biased (training mode)
    return (y - mean) * lax.rsqrt(var + eps) * gamma.reshape(1, 1, 1, -1)


def _warp_ref(y):
    c = y.shape[-1]
    out = y * (9.0 / 8.0)
    box = lax.reduce_window(y, 0.0, lax.add, (1, 3, 3, 1), (1, 1, 1, 1),
                            ((0, 0), (1, 1), (1, 1), (0, 0)))
    out = out + box / 9.0 * (9.0 / 8.0)                                    # avg_pool2d(3,1,1)*9/8
    for mode in range(4):
        k = jnp.broadcast_to(jnp.asarray(_WARP_KERNELS[mode])[None, None], (c, c, 5, 5))
        out = out + _conv_ref(y, k, padding=2)
    return out


def bottleneck_ref(x_nchw, params, *, warp=False):
    relu6 = lambda t: jnp.clip(t, 0.0, 6.0)
    x = jnp.transpose(x_nchw, (0, 2, 3, 1)).astype(jnp.float32)
    out = _conv_ref(x, params["conv1_w"])
    if warp:
        out = _warp_ref(out)
    out = relu6(_bn_gamma_ref(out, params["bn1_gamma"]))
    out = relu6(_bn_gamma_ref(_conv_ref(out, params["conv2_w"], padding=1), params["bn2_gamma"]))
    out = _bn_gamma_ref(_conv_ref(out, params["conv3_w"]), params["bn3_gamma"])
    out = relu6(out + x)
    return jnp.transpose(out, (0, 3, 1, 2))


# ----------------------------------------------------------------------------
# Deterministic parameter init (matches Bottleneck(inplanes=4*planes, planes) structure)
# ----------------------------------------------------------------------------
def init_params(key, inplanes=128, planes=32):
    c4 = 4 * planes
    assert inplanes == c4
    k1, k2, k3 = jax.random.split(key, 3)
    return {
        "conv1_w": jax.random.normal(k1, (planes, inplanes, 1, 1), jnp.float32) * (2.0 / inplanes) ** 0.5,
        "conv2_w": jax.random.normal(k2, (planes, planes, 3, 3), jnp.float32) * (2.0 / (9 * planes)) ** 0.5,
        "conv3_w": jax.random.normal(k3, (c4, planes, 1, 1), jnp.float32) * (2.0 / planes) ** 0.5,
        # FixGammaBN: weight=1 (fixed), bias=0; gamma init: mode 9 -> 1.0, mode 10 -> 0.0
        "bn1_gamma": jnp.ones((planes,), jnp.float32),
        "bn2_gamma": jnp.ones((planes,), jnp.float32),
        "bn3_gamma": jnp.zeros((c4,), jnp.float32),
    }


if __name__ == "__main__":
    key = jax.random.PRNGKey(0)
    pkey, xkey = jax.random.split(key)
    params = init_params(pkey, inplanes=128, planes=32)
    x = jax.random.normal(xkey, (2, 128, 16, 16), jnp.float32)             # NCHW, inplanes = planes*4

    fwd = jax.jit(bottleneck_forward, static_argnames=("warp",))

    # (A) faithful module init: bn3.gamma == 0 (mode=10)  =>  output == ReLU6(identity).
    out = fwd(x, params, warp=False)
    jax.block_until_ready(out)
    assert out.shape == (2, 128, 16, 16) and out.dtype == jnp.float32
    ref = bottleneck_ref(x, params, warp=False)
    assert jnp.allclose(out, ref, atol=1e-5, rtol=1e-5), float(jnp.max(jnp.abs(out - ref)))
    assert jnp.allclose(out, jnp.clip(x, 0.0, 6.0), atol=1e-5)

    # (B) exercise the full conv/BN datapath numerically: set bn3.gamma to 1.
    params_b = dict(params, bn3_gamma=jnp.ones((128,), jnp.float32))
    out_b = fwd(x, params_b, warp=False)
    ref_b = bottleneck_ref(x, params_b, warp=False)
    assert jnp.allclose(out_b, ref_b, atol=1e-1, rtol=1e-1), float(jnp.max(jnp.abs(out_b - ref_b)))

    # (C) same, with WarpLayer enabled (applied in-kernel to the 32-channel conv1 output).
    out_c = fwd(x, params_b, warp=True)
    ref_c = bottleneck_ref(x, params_b, warp=True)
    assert jnp.allclose(out_c, ref_c, atol=1e-1, rtol=1e-1), float(jnp.max(jnp.abs(out_c - ref_c)))

    jax.block_until_ready((out, out_b, out_c))
    print("KERNEL_OK")
</pallas_src>

<mosaic_0001>
module attributes {stable_mosaic.version = 11 : i64} {
  func.func @kernel(%arg0: memref<512x128xf32, #tpu.memory_space<vmem>>, %arg1: memref<128x32xbf16, #tpu.memory_space<vmem>>, %arg2: memref<1x32xf32, #tpu.memory_space<vmem>>, %arg3: memref<9x32x32xbf16, #tpu.memory_space<vmem>>, %arg4: memref<1x32xf32, #tpu.memory_space<vmem>>, %arg5: memref<32x128xbf16, #tpu.memory_space<vmem>>, %arg6: memref<1x128xf32, #tpu.memory_space<vmem>>, %arg7: memref<512x128xf32, #tpu.memory_space<vmem>>, %arg8: memref<2x18x18x32xbf16, #tpu.memory_space<vmem>>) attributes {dimension_semantics = [], scalar_prefetch = 0 : i64, scratch_operands = 1 : i64, tpu.core_type = #tpu.core_type<tc>} {
    %c0 = arith.constant 0 : index
    %c0_0 = arith.constant 0 : index
    %0 = vector.load %arg0[%c0, %c0_0] : memref<512x128xf32, #tpu.memory_space<vmem>>, vector<512x128xf32>
    %1 = arith.truncf %0 : vector<512x128xf32> to vector<512x128xbf16>
    %c0_1 = arith.constant 0 : index
    %c0_2 = arith.constant 0 : index
    %2 = vector.load %arg1[%c0_1, %c0_2] : memref<128x32xbf16, #tpu.memory_space<vmem>>, vector<128x32xbf16>
    %cst = arith.constant dense<0.000000e+00> : vector<512x32xf32>
    %3 = tpu.matmul %1, %2, %cst {dimension_numbers = #tpu.dot_dimension_numbers<[1], [0], [0], [1], [0, 0, 1, 1], [], []>} : vector<512x128xbf16>, vector<128x32xbf16>, vector<512x32xf32> -> vector<512x32xf32>
    %c0_3 = arith.constant 0 : index
    %c0_4 = arith.constant 0 : index
    %4 = vector.load %arg2[%c0_3, %c0_4] : memref<1x32xf32, #tpu.memory_space<vmem>>, vector<1x32xf32>
    %cst_5 = arith.constant dense<0.000000e+00> : vector<32xf32>
    %5 = vector.multi_reduction <add>, %3, %cst_5 [0] : vector<512x32xf32> to vector<32xf32>
    %6 = vector.shape_cast %5 : vector<32xf32> to vector<1x32xf32>
    %cst_6 = arith.constant 5.120000e+02 : f32
    %7 = vector.broadcast %cst_6 : f32 to vector<1x32xf32>
    %8 = arith.divf %6, %7 : vector<1x32xf32>
    %9 = vector.broadcast %8 : vector<1x32xf32> to vector<512x32xf32>
    %10 = arith.subf %3, %9 : vector<512x32xf32>
    %11 = arith.mulf %10, %10 : vector<512x32xf32>
    %cst_7 = arith.constant dense<0.000000e+00> : vector<32xf32>
    %12 = vector.multi_reduction <add>, %11, %cst_7 [0] : vector<512x32xf32> to vector<32xf32>
    %13 = vector.shape_cast %12 : vector<32xf32> to vector<1x32xf32>
    %cst_8 = arith.constant 5.120000e+02 : f32
    %14 = vector.broadcast %cst_8 : f32 to vector<1x32xf32>
    %15 = arith.divf %13, %14 : vector<1x32xf32>
    %cst_9 = arith.constant 9.99999974E-6 : f32
    %16 = vector.broadcast %cst_9 : f32 to vector<1x32xf32>
    %17 = arith.addf %15, %16 : vector<1x32xf32>
    %18 = math.rsqrt %17 : vector<1x32xf32>
    %19 = arith.mulf %4, %18 : vector<1x32xf32>
    %20 = vector.broadcast %19 : vector<1x32xf32> to vector<512x32xf32>
    %21 = arith.mulf %10, %20 : vector<512x32xf32>
    %cst_10 = arith.constant 0.000000e+00 : f32
    %cst_11 = arith.constant 6.000000e+00 : f32
    %22 = vector.broadcast %cst_10 : f32 to vector<512x32xf32>
    %23 = arith.maximumf %22, %21 : vector<512x32xf32>
    %24 = vector.broadcast %cst_11 : f32 to vector<512x32xf32>
    %25 = arith.minimumf %24, %23 : vector<512x32xf32>
    %cst_12 = arith.constant 0.000000e+00 : bf16
    %26 = vector.broadcast %cst_12 : bf16 to vector<2x1x18x32xbf16>
    %c0_13 = arith.constant 0 : index
    %c0_14 = arith.constant 0 : index
    %c0_15 = arith.constant 0 : index
    %c0_16 = arith.constant 0 : index
    %27 = vector.load %arg8[%c0_13, %c0_14, %c0_15, %c0_16] : memref<2x18x18x32xbf16, #tpu.memory_space<vmem>>, vector<2x1x18x32xbf16>
    tpu.vector_store %arg8[%c0_13, %c0_14, %c0_15, %c0_16], %26 {strides = array<i32>} : memref<2x18x18x32xbf16, #tpu.memory_space<vmem>>, vector<2x1x18x32xbf16>,
    %c0_17 = arith.constant 0 : index
    %c17 = arith.constant 17 : index
    %c0_18 = arith.constant 0 : index
    %c0_19 = arith.constant 0 : index
    %28 = vector.load %arg8[%c0_17, %c17, %c0_18, %c0_19] : memref<2x18x18x32xbf16, #tpu.memory_space<vmem>>, vector<2x1x18x32xbf16>
    tpu.vector_store %arg8[%c0_17, %c17, %c0_18, %c0_19], %26 {strides = array<i32>} : memref<2x18x18x32xbf16, #tpu.memory_space<vmem>>, vector<2x1x18x32xbf16>,
    %cst_20 = arith.constant 0.000000e+00 : bf16
    %29 = vector.broadcast %cst_20 : bf16 to vector<2x18x1x32xbf16>
    %c0_21 = arith.constant 0 : index
    %c0_22 = arith.constant 0 : index
    %c0_23 = arith.constant 0 : index
    %c0_24 = arith.constant 0 : index
    %30 = vector.load %arg8[%c0_21, %c0_22, %c0_23, %c0_24] : memref<2x18x18x32xbf16, #tpu.memory_space<vmem>>, vector<2x18x1x32xbf16>
    tpu.vector_store %arg8[%c0_21, %c0_22, %c0_23, %c0_24], %29 {strides = array<i32>} : memref<2x18x18x32xbf16, #tpu.memory_space<vmem>>, vector<2x18x1x32xbf16>,
    %c0_25 = arith.constant 0 : index
    %c0_26 = arith.constant 0 : index
    %c17_27 = arith.constant 17 : index
    %c0_28 = arith.constant 0 : index
    %31 = vector.load %arg8[%c0_25, %c0_26, %c17_27, %c0_28] : memref<2x18x18x32xbf16, #tpu.memory_space<vmem>>, vector<2x18x1x32xbf16>
    tpu.vector_store %arg8[%c0_25, %c0_26, %c17_27, %c0_28], %29 {strides = array<i32>} : memref<2x18x18x32xbf16, #tpu.memory_space<vmem>>, vector<2x18x1x32xbf16>,
    %32 = arith.truncf %25 : vector<512x32xf32> to vector<512x32xbf16>
    %33 = vector.shape_cast %32 : vector<512x32xbf16> to vector<2x16x16x32xbf16>
    %c0_29 = arith.constant 0 : index
    %c1 = arith.constant 1 : index
    %c1_30 = arith.constant 1 : index
    %c0_31 = arith.constant 0 : index
    %34 = vector.load %arg8[%c0_29, %c1, %c1_30, %c0_31] : memref<2x18x18x32xbf16, #tpu.memory_space<vmem>>, vector<2x16x16x32xbf16>
    tpu.vector_store %arg8[%c0_29, %c1, %c1_30, %c0_31], %33 {strides = array<i32>} : memref<2x18x18x32xbf16, #tpu.memory_space<vmem>>, vector<2x16x16x32xbf16>,
    %c0_32 = arith.constant 0 : index
    %c0_33 = arith.constant 0 : index
    %c0_34 = arith.constant 0 : index
    %c0_35 = arith.constant 0 : index
    %35 = vector.load %arg8[%c0_32, %c0_33, %c0_34, %c0_35] : memref<2x18x18x32xbf16, #tpu.memory_space<vmem>>, vector<2x16x16x32xbf16>
    %36 = vector.shape_cast %35 : vector<2x16x16x32xbf16> to vector<512x32xbf16>
    %c0_36 = arith.constant 0 : index
    %c0_37 = arith.constant 0 : index
    %c0_38 = arith.constant 0 : index
    %37 = vector.load %arg3[%c0_36, %c0_37, %c0_38] : memref<9x32x32xbf16, #tpu.memory_space<vmem>>, vector<1x32x32xbf16>
    %38 = vector.shape_cast %37 : vector<1x32x32xbf16> to vector<32x32xbf16>
    %cst_39 = arith.constant dense<0.000000e+00> : vector<512x32xf32>
    %39 = tpu.matmul %36, %38, %cst_39 {dimension_numbers = #tpu.dot_dimension_numbers<[1], [0], [0], [1], [0, 0, 1, 1], [], []>} : vector<512x32xbf16>, vector<32x32xbf16>, vector<512x32xf32> -> vector<512x32xf32>
    %c0_40 = arith.constant 0 : index
    %c0_41 = arith.constant 0 : index
    %c1_42 = arith.constant 1 : index
    %c0_43 = arith.constant 0 : index
    %40 = vector.load %arg8[%c0_40, %c0_41, %c1_42, %c0_43] : memref<2x18x18x32xbf16, #tpu.memory_space<vmem>>, vector<2x16x16x32xbf16>
    %41 = vector.shape_cast %40 : vector<2x16x16x32xbf16> to vector<512x32xbf16>
    %c1_44 = arith.constant 1 : index
    %c0_45 = arith.constant 0 : index
    %c0_46 = arith.constant 0 : index
    %42 = vector.load %arg3[%c1_44, %c0_45, %c0_46] : memref<9x32x32xbf16, #tpu.memory_space<vmem>>, vector<1x32x32xbf16>
    %43 = vector.shape_cast %42 : vector<1x32x32xbf16> to vector<32x32xbf16>
    %cst_47 = arith.constant dense<0.000000e+00> : vector<512x32xf32>
    %44 = tpu.matmul %41, %43, %cst_47 {dimension_numbers = #tpu.dot_dimension_numbers<[1], [0], [0], [1], [0, 0, 1, 1], [], []>} : vector<512x32xbf16>, vector<32x32xbf16>, vector<512x32xf32> -> vector<512x32xf32>
    %45 = arith.addf %39, %44 : vector<512x32xf32>
    %c0_48 = arith.constant 0 : index
    %c0_49 = arith.constant 0 : index
    %c2 = arith.constant 2 : index
    %c0_50 = arith.constant 0 : index
    %46 = vector.load %arg8[%c0_48, %c0_49, %c2, %c0_50] : memref<2x18x18x32xbf16, #tpu.memory_space<vmem>>, vector<2x16x16x32xbf16>
    %47 = vector.shape_cast %46 : vector<2x16x16x32xbf16> to vector<512x32xbf16>
    %c2_51 = arith.constant 2 : index
    %c0_52 = arith.constant 0 : index
    %c0_53 = arith.constant 0 : index
    %48 = vector.load %arg3[%c2_51, %c0_52, %c0_53] : memref<9x32x32xbf16, #tpu.memory_space<vmem>>, vector<1x32x32xbf16>
    %49 = vector.shape_cast %48 : vector<1x32x32xbf16> to vector<32x32xbf16>
    %cst_54 = arith.constant dense<0.000000e+00> : vector<512x32xf32>
    %50 = tpu.matmul %47, %49, %cst_54 {dimension_numbers = #tpu.dot_dimension_numbers<[1], [0], [0], [1], [0, 0, 1, 1], [], []>} : vector<512x32xbf16>, vector<32x32xbf16>, vector<512x32xf32> -> vector<512x32xf32>
    %51 = arith.addf %45, %50 : vector<512x32xf32>
    %c0_55 = arith.constant 0 : index
    %c1_56 = arith.constant 1 : index
    %c0_57 = arith.constant 0 : index
    %c0_58 = arith.constant 0 : index
    %52 = vector.load %arg8[%c0_55, %c1_56, %c0_57, %c0_58] : memref<2x18x18x32xbf16, #tpu.memory_space<vmem>>, vector<2x16x16x32xbf16>
    %53 = vector.shape_cast %52 : vector<2x16x16x32xbf16> to vector<512x32xbf16>
    %c3 = arith.constant 3 : index
    %c0_59 = arith.constant 0 : index
    %c0_60 = arith.constant 0 : index
    %54 = vector.load %arg3[%c3, %c0_59, %c0_60] : memref<9x32x32xbf16, #tpu.memory_space<vmem>>, vector<1x32x32xbf16>
    %55 = vector.shape_cast %54 : vector<1x32x32xbf16> to vector<32x32xbf16>
    %cst_61 = arith.constant dense<0.000000e+00> : vector<512x32xf32>
    %56 = tpu.matmul %53, %55, %cst_61 {dimension_numbers = #tpu.dot_dimension_numbers<[1], [0], [0], [1], [0, 0, 1, 1], [], []>} : vector<512x32xbf16>, vector<32x32xbf16>, vector<512x32xf32> -> vector<512x32xf32>
    %57 = arith.addf %51, %56 : vector<512x32xf32>
    %c0_62 = arith.constant 0 : index
    %c1_63 = arith.constant 1 : index
    %c1_64 = arith.constant 1 : index
    %c0_65 = arith.constant 0 : index
    %58 = vector.load %arg8[%c0_62, %c1_63, %c1_64, %c0_65] : memref<2x18x18x32xbf16, #tpu.memory_space<vmem>>, vector<2x16x16x32xbf16>
    %59 = vector.shape_cast %58 : vector<2x16x16x32xbf16> to vector<512x32xbf16>
    %c4 = arith.constant 4 : index
    %c0_66 = arith.constant 0 : index
    %c0_67 = arith.constant 0 : index
    %60 = vector.load %arg3[%c4, %c0_66, %c0_67] : memref<9x32x32xbf16, #tpu.memory_space<vmem>>, vector<1x32x32xbf16>
    %61 = vector.shape_cast %60 : vector<1x32x32xbf16> to vector<32x32xbf16>
    %cst_68 = arith.constant dense<0.000000e+00> : vector<512x32xf32>
    %62 = tpu.matmul %59, %61, %cst_68 {dimension_numbers = #tpu.dot_dimension_numbers<[1], [0], [0], [1], [0, 0, 1, 1], [], []>} : vector<512x32xbf16>, vector<32x32xbf16>, vector<512x32xf32> -> vector<512x32xf32>
    %63 = arith.addf %57, %62 : vector<512x32xf32>
    %c0_69 = arith.constant 0 : index
    %c1_70 = arith.constant 1 : index
    %c2_71 = arith.constant 2 : index
    %c0_72 = arith.constant 0 : index
    %64 = vector.load %arg8[%c0_69, %c1_70, %c2_71, %c0_72] : memref<2x18x18x32xbf16, #tpu.memory_space<vmem>>, vector<2x16x16x32xbf16>
    %65 = vector.shape_cast %64 : vector<2x16x16x32xbf16> to vector<512x32xbf16>
    %c5 = arith.constant 5 : index
    %c0_73 = arith.constant 0 : index
    %c0_74 = arith.constant 0 : index
    %66 = vector.load %arg3[%c5, %c0_73, %c0_74] : memref<9x32x32xbf16, #tpu.memory_space<vmem>>, vector<1x32x32xbf16>
    %67 = vector.shape_cast %66 : vector<1x32x32xbf16> to vector<32x32xbf16>
    %cst_75 = arith.constant dense<0.000000e+00> : vector<512x32xf32>
    %68 = tpu.matmul %65, %67, %cst_75 {dimension_numbers = #tpu.dot_dimension_numbers<[1], [0], [0], [1], [0, 0, 1, 1], [], []>} : vector<512x32xbf16>, vector<32x32xbf16>, vector<512x32xf32> -> vector<512x32xf32>
    %69 = arith.addf %63, %68 : vector<512x32xf32>
    %c0_76 = arith.constant 0 : index
    %c2_77 = arith.constant 2 : index
    %c0_78 = arith.constant 0 : index
    %c0_79 = arith.constant 0 : index
    %70 = vector.load %arg8[%c0_76, %c2_77, %c0_78, %c0_79] : memref<2x18x18x32xbf16, #tpu.memory_space<vmem>>, vector<2x16x16x32xbf16>
    %71 = vector.shape_cast %70 : vector<2x16x16x32xbf16> to vector<512x32xbf16>
    %c6 = arith.constant 6 : index
    %c0_80 = arith.constant 0 : index
    %c0_81 = arith.constant 0 : index
    %72 = vector.load %arg3[%c6, %c0_80, %c0_81] : memref<9x32x32xbf16, #tpu.memory_space<vmem>>, vector<1x32x32xbf16>
    %73 = vector.shape_cast %72 : vector<1x32x32xbf16> to vector<32x32xbf16>
    %cst_82 = arith.constant dense<0.000000e+00> : vector<512x32xf32>
    %74 = tpu.matmul %71, %73, %cst_82 {dimension_numbers = #tpu.dot_dimension_numbers<[1], [0], [0], [1], [0, 0, 1, 1], [], []>} : vector<512x32xbf16>, vector<32x32xbf16>, vector<512x32xf32> -> vector<512x32xf32>
    %75 = arith.addf %69, %74 : vector<512x32xf32>
    %c0_83 = arith.constant 0 : index
    %c2_84 = arith.constant 2 : index
    %c1_85 = arith.constant 1 : index
    %c0_86 = arith.constant 0 : index
    %76 = vector.load %arg8[%c0_83, %c2_84, %c1_85, %c0_86] : memref<2x18x18x32xbf16, #tpu.memory_space<vmem>>, vector<2x16x16x32xbf16>
    %77 = vector.shape_cast %76 : vector<2x16x16x32xbf16> to vector<512x32xbf16>
    %c7 = arith.constant 7 : index
    %c0_87 = arith.constant 0 : index
    %c0_88 = arith.constant 0 : index
    %78 = vector.load %arg3[%c7, %c0_87, %c0_88] : memref<9x32x32xbf16, #tpu.memory_space<vmem>>, vector<1x32x32xbf16>
    %79 = vector.shape_cast %78 : vector<1x32x32xbf16> to vector<32x32xbf16>
    %cst_89 = arith.constant dense<0.000000e+00> : vector<512x32xf32>
    %80 = tpu.matmul %77, %79, %cst_89 {dimension_numbers = #tpu.dot_dimension_numbers<[1], [0], [0], [1], [0, 0, 1, 1], [], []>} : vector<512x32xbf16>, vector<32x32xbf16>, vector<512x32xf32> -> vector<512x32xf32>
    %81 = arith.addf %75, %80 : vector<512x32xf32>
    %c0_90 = arith.constant 0 : index
    %c2_91 = arith.constant 2 : index
    %c2_92 = arith.constant 2 : index
    %c0_93 = arith.constant 0 : index
    %82 = vector.load %arg8[%c0_90, %c2_91, %c2_92, %c0_93] : memref<2x18x18x32xbf16, #tpu.memory_space<vmem>>, vector<2x16x16x32xbf16>
    %83 = vector.shape_cast %82 : vector<2x16x16x32xbf16> to vector<512x32xbf16>
    %c8 = arith.constant 8 : index
    %c0_94 = arith.constant 0 : index
    %c0_95 = arith.constant 0 : index
    %84 = vector.load %arg3[%c8, %c0_94, %c0_95] : memref<9x32x32xbf16, #tpu.memory_space<vmem>>, vector<1x32x32xbf16>
    %85 = vector.shape_cast %84 : vector<1x32x32xbf16> to vector<32x32xbf16>
    %cst_96 = arith.constant dense<0.000000e+00> : vector<512x32xf32>
    %86 = tpu.matmul %83, %85, %cst_96 {dimension_numbers = #tpu.dot_dimension_numbers<[1], [0], [0], [1], [0, 0, 1, 1], [], []>} : vector<512x32xbf16>, vector<32x32xbf16>, vector<512x32xf32> -> vector<512x32xf32>
    %87 = arith.addf %81, %86 : vector<512x32xf32>
    %c0_97 = arith.constant 0 : index
    %c0_98 = arith.constant 0 : index
    %88 = vector.load %arg4[%c0_97, %c0_98] : memref<1x32xf32, #tpu.memory_space<vmem>>, vector<1x32xf32>
    %cst_99 = arith.constant dense<0.000000e+00> : vector<32xf32>
    %89 = vector.multi_reduction <add>, %87, %cst_99 [0] : vector<512x32xf32> to vector<32xf32>
    %90 = vector.shape_cast %89 : vector<32xf32> to vector<1x32xf32>
    %cst_100 = arith.constant 5.120000e+02 : f32
    %91 = vector.broadcast %cst_100 : f32 to vector<1x32xf32>
    %92 = arith.divf %90, %91 : vector<1x32xf32>
    %93 = vector.broadcast %92 : vector<1x32xf32> to vector<512x32xf32>
    %94 = arith.subf %87, %93 : vector<512x32xf32>
    %95 = arith.mulf %94, %94 : vector<512x32xf32>
    %cst_101 = arith.constant dense<0.000000e+00> : vector<32xf32>
    %96 = vector.multi_reduction <add>, %95, %cst_101 [0] : vector<512x32xf32> to vector<32xf32>
    %97 = vector.shape_cast %96 : vector<32xf32> to vector<1x32xf32>
    %cst_102 = arith.constant 5.120000e+02 : f32
    %98 = vector.broadcast %cst_102 : f32 to vector<1x32xf32>
    %99 = arith.divf %97, %98 : vector<1x32xf32>
    %cst_103 = arith.constant 9.99999974E-6 : f32
    %100 = vector.broadcast %cst_103 : f32 to vector<1x32xf32>
    %101 = arith.addf %99, %100 : vector<1x32xf32>
    %102 = math.rsqrt %101 : vector<1x32xf32>
    %103 = arith.mulf %88, %102 : vector<1x32xf32>
    %104 = vector.broadcast %103 : vector<1x32xf32> to vector<512x32xf32>
    %105 = arith.mulf %94, %104 : vector<512x32xf32>
    %cst_104 = arith.constant 0.000000e+00 : f32
    %cst_105 = arith.constant 6.000000e+00 : f32
    %106 = vector.broadcast %cst_104 : f32 to vector<512x32xf32>
    %107 = arith.maximumf %106, %105 : vector<512x32xf32>
    %108 = vector.broadcast %cst_105 : f32 to vector<512x32xf32>
    %109 = arith.minimumf %108, %107 : vector<512x32xf32>
    %110 = arith.truncf %109 : vector<512x32xf32> to vector<512x32xbf16>
    %c0_106 = arith.constant 0 : index
    %c0_107 = arith.constant 0 : index
    %111 = vector.load %arg5[%c0_106, %c0_107] : memref<32x128xbf16, #tpu.memory_space<vmem>>, vector<32x128xbf16>
    %cst_108 = arith.constant dense<0.000000e+00> : vector<512x128xf32>
    %112 = tpu.matmul %110, %111, %cst_108 {dimension_numbers = #tpu.dot_dimension_numbers<[1], [0], [0], [1], [0, 0, 1, 1], [], []>} : vector<512x32xbf16>, vector<32x128xbf16>, vector<512x128xf32> -> vector<512x128xf32>
    %c0_109 = arith.constant 0 : index
    %c0_110 = arith.constant 0 : index
    %113 = vector.load %arg6[%c0_109, %c0_110] : memref<1x128xf32, #tpu.memory_space<vmem>>, vector<1x128xf32>
    %cst_111 = arith.constant dense<0.000000e+00> : vector<128xf32>
    %114 = vector.multi_reduction <add>, %112, %cst_111 [0] : vector<512x128xf32> to vector<128xf32>
    %115 = vector.shape_cast %114 : vector<128xf32> to vector<1x128xf32>
    %cst_112 = arith.constant 5.120000e+02 : f32
    %116 = vector.broadcast %cst_112 : f32 to vector<1x128xf32>
    %117 = arith.divf %115, %116 : vector<1x128xf32>
    %118 = vector.broadcast %117 : vector<1x128xf32> to vector<512x128xf32>
    %119 = arith.subf %112, %118 : vector<512x128xf32>
    %120 = arith.mulf %119, %119 : vector<512x128xf32>
    %cst_113 = arith.constant dense<0.000000e+00> : vector<128xf32>
    %121 = vector.multi_reduction <add>, %120, %cst_113 [0] : vector<512x128xf32> to vector<128xf32>
    %122 = vector.shape_cast %121 : vector<128xf32> to vector<1x128xf32>
    %cst_114 = arith.constant 5.120000e+02 : f32
    %123 = vector.broadcast %cst_114 : f32 to vector<1x128xf32>
    %124 = arith.divf %122, %123 : vector<1x128xf32>
    %cst_115 = arith.constant 9.99999974E-6 : f32
    %125 = vector.broadcast %cst_115 : f32 to vector<1x128xf32>
    %126 = arith.addf %124, %125 : vector<1x128xf32>
    %127 = math.rsqrt %126 : vector<1x128xf32>
    %128 = arith.mulf %113, %127 : vector<1x128xf32>
    %129 = vector.broadcast %128 : vector<1x128xf32> to vector<512x128xf32>
    %130 = arith.mulf %119, %129 : vector<512x128xf32>
    %c0_116 = arith.constant 0 : index
    %c0_117 = arith.constant 0 : index
    %131 = vector.load %arg0[%c0_116, %c0_117] : memref<512x128xf32, #tpu.memory_space<vmem>>, vector<512x128xf32>
    %132 = arith.addf %130, %131 : vector<512x128xf32>
    %cst_118 = arith.constant 0.000000e+00 : f32
    %cst_119 = arith.constant 6.000000e+00 : f32
    %133 = vector.broadcast %cst_118 : f32 to vector<512x128xf32>
    %134 = arith.maximumf %133, %132 : vector<512x128xf32>
    %135 = vector.broadcast %cst_119 : f32 to vector<512x128xf32>
    %136 = arith.minimumf %135, %134 : vector<512x128xf32>
    %c0_120 = arith.constant 0 : index
    %c0_121 = arith.constant 0 : index
    %137 = vector.load %arg7[%c0_120, %c0_121] : memref<512x128xf32, #tpu.memory_space<vmem>>, vector<512x128xf32>
    tpu.vector_store %arg7[%c0_120, %c0_121], %136 {strides = array<i32>} : memref<512x128xf32, #tpu.memory_space<vmem>>, vector<512x128xf32>,
    return
  }
}

</mosaic_0001>

<bundles_post_ra>
// kernel: bottleneck_forward.1
= control target key start
LH: loop header
LB: loop body
LE: loop exit
PB: predicated region body
PF: predicated region fallthrough
CT: control target
= control target key end

     0   :  { %s23143_s0 = inlined_call_operand.vmem [shape: f32[512,128], index: 0, kind: input, shape index: {}]   ;;  %s23144_s1 = inlined_call_operand.vmem [shape: bf16[128,32], index: 1, kind: input, shape index: {}]   ;;  %s23145_s2 = inlined_call_operand.vmem [shape: f32[1,32], index: 2, kind: input, shape index: {}]   ;;  %s23146_s3 = inlined_call_operand.vmem [shape: bf16[9,32,32], index: 3, kind: input, shape index: {}]   ;;  %s23147_s4 = inlined_call_operand.vmem [shape: f32[1,32], index: 4, kind: input, shape index: {}]   ;;  %s23148_s5 = inlined_call_operand.vmem [shape: bf16[32,128], index: 5, kind: input, shape index: {}]   ;;  %s23149_s6 = inlined_call_operand.vmem [shape: f32[1,128], index: 6, kind: input, shape index: {}]   ;;  %s23150_s7 = inlined_call_operand.hbm [shape: f32[512,128], index: 7, kind: output, shape index: {}]  }
   0x1   :  { %v15507_v0 = vld [vmem:[%s23144_s1] sm:$0xff]   ;;  %v15508_v1 = vld [vmem:[%s23144_s1 + $0x8] sm:$0xff]   ;;  %v15509_v2 = vld [vmem:[%s23144_s1 + $0x10] sm:$0xff]  }
   0x2   :  { %14227 = vmatprep.subr.bf16.mxu0 %v15507_v0  ;;  %v15510_v3 = vld [vmem:[%s23144_s1 + $0x18] sm:$0xff]   ;;  %v28_v4 = vld [vmem:[%s23143_s0] sm:$0xff]  ;;  %v29_v5 = vld [vmem:[%s23143_s0 + $0x8] sm:$0xff] }
   0x3   :  { %14228 = vmatpush3.bf16.msra.mxu0 %v15507_v0  ;;  %v92_v6 = vpack.c.bf16 %v29_v5, %v28_v4  ;;  %v15511_v7 = vld [vmem:[%s23144_s1 + $0x20] sm:$0xff]   ;;  %v15512_v8 = vld [vmem:[%s23144_s1 + $0x28] sm:$0xff]   ;;  %v15513_v9 = vld [vmem:[%s23144_s1 + $0x30] sm:$0xff]  }
   0x4   :  { %14229 = vmatprep.subr.bf16.mxu0 %v15508_v1  ;;  %v15514_v10 = vld [vmem:[%s23144_s1 + $0x38] sm:$0xff]   ;;  %v30_v11 = vld [vmem:[%s23143_s0 + $0x10] sm:$0xff]  ;;  %v32_v13 = vld [vmem:[%s23143_s0 + $0x20] sm:$0xff] }
   0x5   :  { %14243 = vmatprep.mubr.bf16.mxu0 %v92_v6  ;;  %v31_v12 = vld [vmem:[%s23143_s0 + $0x18] sm:$0xff]  ;;  %v33_v14 = vld [vmem:[%s23143_s0 + $0x28] sm:$0xff]  ;;  %v34_v17 = vld [vmem:[%s23143_s0 + $0x30] sm:$0xff] }
   0x6   :  { %v93_v15 = vpack.c.bf16 %v31_v12, %v30_v11  ;;  %v94_v16 = vpack.c.bf16 %v33_v14, %v32_v13  ;;  %v35_v18 = vld [vmem:[%s23143_s0 + $0x38] sm:$0xff]  ;;  %v36_v19 = vld [vmem:[%s23143_s0 + $0x40] sm:$0xff]  ;;  %v37_v20 = vld [vmem:[%s23143_s0 + $0x48] sm:$0xff] }
   0x7   :  { %14230 = vmatpush3.bf16.msra.mxu0 %v15508_v1  ;;  %v95_v21 = vpack.c.bf16 %v35_v18, %v34_v17  ;;  %v96_v22 = vpack.c.bf16 %v37_v20, %v36_v19 }
   0x8   :  { %14231 = vmatprep.subr.bf16.mxu0 %v15509_v2 }
   0xb   :  { %14232 = vmatpush3.bf16.msra.mxu0 %v15509_v2 }
   0xc   :  { %14233 = vmatprep.subr.bf16.mxu0 %v15510_v3 }
   0xf   :  { %14234 = vmatpush3.bf16.msra.mxu0 %v15510_v3 }
  0x10   :  { %14235 = vmatprep.subr.bf16.mxu0 %v15511_v7 }
  0x13   :  { %14236 = vmatpush3.bf16.msra.mxu0 %v15511_v7 }
  0x14   :  { %14237 = vmatprep.subr.bf16.mxu0 %v15512_v8 }
  0x17   :  { %14238 = vmatpush3.bf16.msra.mxu0 %v15512_v8 }
  0x18   :  { %14239 = vmatprep.subr.bf16.mxu0 %v15513_v9 }
  0x1b   :  { %14240 = vmatpush3.bf16.msra.mxu0 %v15513_v9 }
  0x1c   :  { %14241 = vmatprep.subr.bf16.mxu0 %v15514_v10 }
  0x1f   :  { %14242 = vmatpush3.bf16.msra.mxu0 %v15514_v10 }
  0x22   :  { %14244 = vmatmul.mubr.bf16.vlgmr.msra.gmra.mrb[0].mxu0 %v93_v15 }
  0x23   :  { %14247 = vmatprep.mubr.bf16.mxu0 %v94_v16 }
  0x2a   :  { %14248 = vmatmul.mubr.bf16.gmra.mrb[4].mxu0 %v95_v21 }
  0x2b   :  { %12 = vsyncpa [#allocation4], 0  ;;  %14251 = vmatprep.mubr.bf16.mxu0 %v96_v22  ;;  %v38_v23 = vld [vmem:[%s23143_s0 + $0x50] sm:$0xff]  ;;  %v39_v24 = vld [vmem:[%s23143_s0 + $0x58] sm:$0xff]  ;;  %vm1080_vm0 = vcmask 253952   ;;  %v23438_v20 = vmov 0 }
  0x2c   :  { %v40_v25 = vld [vmem:[%s23143_s0 + $0x60] sm:$0xff]  ;;  %v41_v26 = vld [vmem:[%s23143_s0 + $0x68] sm:$0xff]  ;;  %v97_v27 = vpack.c.bf16 %v39_v24, %v38_v23  ;;  %v42_v29 = vld [vmem:[%s23143_s0 + $0x70] sm:$0xff]  ;;  %vm1093_vm1 = vsmask.f32 256  ;;  %vm478_vm5 = vcmask 261120  }
  0x2d   :  { %v98_v28 = vpack.c.bf16 %v41_v26, %v40_v25  ;;  %v43_v30 = vld [vmem:[%s23143_s0 + $0x78] sm:$0xff]  ;;  %v44_v31 = vld [vmem:[%s23143_s0 + $0x80] sm:$0xff]  ;;  %v45_v32 = vld [vmem:[%s23143_s0 + $0x88] sm:$0xff]  ;;  %vm1203_vm3 = vsmask.f32 7938  ;;  %v23441_v25 = vmov 0 }
  0x2e   :  { %v99_v33 = vpack.c.bf16 %v43_v30, %v42_v29  ;;  %v100_v34 = vpack.c.bf16 %v45_v32, %v44_v31  ;;  %v46_v35 = vld [vmem:[%s23143_s0 + $0x90] sm:$0xff]  ;;  %v47_v36 = vld [vmem:[%s23143_s0 + $0x98] sm:$0xff]  ;;  %v48_v37 = vld [vmem:[%s23143_s0 + $0xa0] sm:$0xff]  ;;  %vm1505_vm6 = vsmask.f32 4368  ;;  %vm1077_vm7 = vcmask 257024  }
  0x2f   :  { %v49_v38 = vld [vmem:[%s23143_s0 + $0xa8] sm:$0xff]  ;;  %v101_v39 = vpack.c.bf16 %v47_v36, %v46_v35  ;;  %v50_v41 = vld [vmem:[%s23143_s0 + $0xb0] sm:$0xff]  ;;  %v51_v42 = vld [vmem:[%s23143_s0 + $0xb8] sm:$0xff]  ;;  %vm2474_vm10 = vsmask.f32 3328  ;;  %vm4396_vm13 = vcmask 1042432  }
  0x30   :  { %v102_v40 = vpack.c.bf16 %v49_v38, %v48_v37  ;;  %v52_v43 = vld [vmem:[%s23143_s0 + $0xc0] sm:$0xff]  ;;  %v53_v44 = vld [vmem:[%s23143_s0 + $0xc8] sm:$0xff]  ;;  %v103_v45 = vpack.c.bf16 %v51_v42, %v50_v41  ;;  %v54_v47 = vld [vmem:[%s23143_s0 + $0xd0] sm:$0xff]  ;;  %vm2475_vm11 = vsmask.f32 7440  ;;  %vm4397_vm14 = vcmask 1046532  }
  0x31   :  { %v104_v46 = vpack.c.bf16 %v53_v44, %v52_v43  ;;  %v55_v48 = vld [vmem:[%s23143_s0 + $0xd8] sm:$0xff]  ;;  %v56_v49 = vld [vmem:[%s23143_s0 + $0xe0] sm:$0xff]  ;;  %v57_v50 = vld [vmem:[%s23143_s0 + $0xe8] sm:$0xff] }
  0x32   :  { %14252 = vmatmul.mubr.bf16.gmra.mrb[8].mxu0 %v97_v27  ;;  %v105_v51 = vpack.c.bf16 %v55_v48, %v54_v47  ;;  %v106_v52 = vpack.c.bf16 %v57_v50, %v56_v49  ;;  %v58_v53 = vld [vmem:[%s23143_s0 + $0xf0] sm:$0xff]  ;;  %v59_v54 = vld [vmem:[%s23143_s0 + $0xf8] sm:$0xff]  ;;  %v60_v55 = vld [vmem:[%s23143_s0 + $0x100] sm:$0xff] }
  0x33   :  { %14255 = vmatprep.mubr.bf16.mxu0 %v98_v28  ;;  %v61_v56 = vld [vmem:[%s23143_s0 + $0x108] sm:$0xff]  ;;  %v107_v57 = vpack.c.bf16 %v59_v54, %v58_v53  ;;  %v62_v59 = vld [vmem:[%s23143_s0 + $0x110] sm:$0xff]  ;;  %v63_v60 = vld [vmem:[%s23143_s0 + $0x118] sm:$0xff] }
  0x34   :  { %v108_v58 = vpack.c.bf16 %v61_v56, %v60_v55  ;;  %v64_v61 = vld [vmem:[%s23143_s0 + $0x120] sm:$0xff]  ;;  %v65_v62 = vld [vmem:[%s23143_s0 + $0x128] sm:$0xff]  ;;  %v109_v63 = vpack.c.bf16 %v63_v60, %v62_v59  ;;  %v66_v1 = vld [vmem:[%s23143_s0 + $0x130] sm:$0xff] }
  0x35   :  { %v110_v0 = vpack.c.bf16 %v65_v62, %v64_v61  ;;  %v67_v2 = vld [vmem:[%s23143_s0 + $0x138] sm:$0xff]  ;;  %v68_v3 = vld [vmem:[%s23143_s0 + $0x140] sm:$0xff]  ;;  %v69_v4 = vld [vmem:[%s23143_s0 + $0x148] sm:$0xff] }
  0x36   :  { %v111_v5 = vpack.c.bf16 %v67_v2, %v66_v1  ;;  %v112_v6 = vpack.c.bf16 %v69_v4, %v68_v3  ;;  %v70_v7 = vld [vmem:[%s23143_s0 + $0x150] sm:$0xff]  ;;  %v71_v8 = vld [vmem:[%s23143_s0 + $0x158] sm:$0xff]  ;;  %v72_v9 = vld [vmem:[%s23143_s0 + $0x160] sm:$0xff] }
  0x37   :  { %v73_v10 = vld [vmem:[%s23143_s0 + $0x168] sm:$0xff]  ;;  %v113_v11 = vpack.c.bf16 %v71_v8, %v70_v7  ;;  %v74_v13 = vld [vmem:[%s23143_s0 + $0x170] sm:$0xff]  ;;  %v75_v14 = vld [vmem:[%s23143_s0 + $0x178] sm:$0xff] }
  0x38   :  { %v114_v12 = vpack.c.bf16 %v73_v10, %v72_v9  ;;  %v76_v15 = vld [vmem:[%s23143_s0 + $0x180] sm:$0xff]  ;;  %v77_v16 = vld [vmem:[%s23143_s0 + $0x188] sm:$0xff]  ;;  %v115_v17 = vpack.c.bf16 %v75_v14, %v74_v13  ;;  %v1101_v18 = vld [vmem:[#allocation2 + $0x18] sm:$0x1] }
  0x39   :  { %v116_v19 = vpack.c.bf16 %v77_v16, %v76_v15  ;;  %vm16094_vm2 = vmand %vm1080_vm0, %vm1093_vm1  ;;  %v1098_v21 = vld [vmem:[#allocation2 + $0xc] sm:$0x1]  ;;  %v1211_v24 = vld [vmem:[#allocation2 + $0x20] sm:$0x1] }
  0x3a   :  { %14256 = vmatmul.mubr.bf16.gmra.mrb[12].mxu0 %v99_v33  ;;  %v23439_v20 = vsel %vm16094_vm2, 4294967295, %v23438_v20  ;;  %v1102_v22 = vsel %vm16094_vm2, 0, %v1101_v18  ;;  %v1099_v23 = vsel %vm16094_vm2, 0, %v1098_v21  ;;  %vm16104_vm4 = vmand %vm1080_vm0, %vm1203_vm3  ;;  %v78_v27 = vld [vmem:[%s23143_s0 + $0x190] sm:$0xff]  ;;  %v79_v28 = vld [vmem:[%s23143_s0 + $0x198] sm:$0xff] }
  0x3b   :  { %14259 = vmatprep.mubr.bf16.mxu0 %v100_v34  ;;  %23440 = vst [vmem:[#allocation6_spill] sm:$0xff] %v23439_v20  ;;  %1103 = vst [vmem:[#allocation2 + $0x18] sm:$0x1] %v1102_v22  ;;  %v23442_v25 = vsel %vm16104_vm4, 4294967295, %v23441_v25  ;;  %v1212_v26 = vsel %vm16104_vm4, 0, %v1211_v24  ;;  %v80_v29 = vld [vmem:[%s23143_s0 + $0x1a0] sm:$0xff]  ;;  %v117_v33 = vpack.c.bf16 %v79_v28, %v78_v27 }
  0x3c   :  { %1100 = vst [vmem:[#allocation2 + $0xc] sm:$0x1] %v1099_v23  ;;  %23443 = vst [vmem:[#allocation7_spill] sm:$0xff] %v23442_v25  ;;  %v81_v30 = vld [vmem:[%s23143_s0 + $0x1a8] sm:$0xff]  ;;  %v1208_v31 = vld [vmem:[#allocation2 + $0x14] sm:$0x1] }
  0x3d   :  { %1213 = vst [vmem:[#allocation2 + $0x20] sm:$0x1] %v1212_v26  ;;  %v1209_v32 = vsel %vm16104_vm4, 0, %v1208_v31  ;;  %v1107_v34 = vld [vmem:[#allocation2 + $0x30] sm:$0x1]  ;;  %v118_v35 = vpack.c.bf16 %v81_v30, %v80_v29  ;;  %v83_v42 = vld [vmem:[%s23143_s0 + $0x1b8] sm:$0xff]  ;;  %vm17132_vm8 = vmor %vm1093_vm1, %vm1505_vm6 }
  0x3e   :  { %1210 = vst [vmem:[#allocation2 + $0x14] sm:$0x1] %v1209_v32  ;;  %v1108_v36 = vsel %vm16094_vm2, 0, %v1107_v34  ;;  %v1104_v37 = vld [vmem:[#allocation2 + $0x24] sm:$0x1]  ;;  %v82_v41 = vld [vmem:[%s23143_s0 + $0x1b0] sm:$0xff]  ;;  %vm17496_vm9 = vmand %vm1077_vm7, %vm1203_vm3 }
  0x3f   :  { %1109 = vst [vmem:[#allocation2 + $0x30] sm:$0x1] %v1108_v36  ;;  %v1105_v38 = vsel %vm16094_vm2, 0, %v1104_v37  ;;  %v84_v43 = vld [vmem:[%s23143_s0 + $0x1c0] sm:$0xff]  ;;  %v85_v44 = vld [vmem:[%s23143_s0 + $0x1c8] sm:$0xff]  ;;  %v119_v47 = vpack.c.bf16 %v83_v42, %v82_v41  ;;  %v86_v55 = vld [vmem:[%s23143_s0 + $0x1d0] sm:$0xff] }
  0x40   :  { %1106 = vst [vmem:[#allocation2 + $0x24] sm:$0x1] %v1105_v38  ;;  %v1113_v48 = vld [vmem:[#allocation2 + $0x48] sm:$0x1]  ;;  %v120_v49 = vpack.c.bf16 %v85_v44, %v84_v43  ;;  %v87_v56 = vld [vmem:[%s23143_s0 + $0x1d8] sm:$0xff]  ;;  %vm19112_vm12 = vmor %vm2474_vm10, %vm2475_vm11 }
  0x41   :  { %v1114_v50 = vsel %vm16094_vm2, 0, %v1113_v48  ;;  %v1220_v59 = vld [vmem:[#allocation2 + $0x44] sm:$0x1]  ;;  %v121_v61 = vpack.c.bf16 %v87_v56, %v86_v55  ;;  %v1119_v62 = vld [vmem:[#allocation2 + $0x60] sm:$0x1]  ;;  %vm19573_vm15 = vmor %vm4396_vm13, %vm4397_vm14 }
  0x42   :  { %14260 = vmatmul.mubr.bf16.gmra.mrb[16].mxu0 %v101_v39  ;;  %v1217_v39 = vld [vmem:[#allocation2 + $0x38] sm:$0x1]  ;;  %1115 = vst [vmem:[#allocation2 + $0x48] sm:$0x1] %v1114_v50  ;;  %v1221_v60 = vsel %vm16104_vm4, 0, %v1220_v59 }
  0x43   :  { %14263 = vmatprep.mubr.bf16.mxu0 %v102_v40  ;;  %v1218_v40 = vsel %vm16104_vm4, 0, %v1217_v39  ;;  %1222 = vst [vmem:[#allocation2 + $0x44] sm:$0x1] %v1221_v60  ;;  %v1116_v1 = vld [vmem:[#allocation2 + $0x54] sm:$0x1] }
  0x44   :  { %1219 = vst [vmem:[#allocation2 + $0x38] sm:$0x1] %v1218_v40  ;;  %v1229_v2 = vld [vmem:[#allocation2 + $0x68] sm:$0x1]  ;;  %v1117_v3 = vsel %vm16094_vm2, 0, %v1116_v1 }
  0x45   :  { %v1230_v4 = vsel %vm16104_vm4, 0, %v1229_v2  ;;  %1118 = vst [vmem:[#allocation2 + $0x54] sm:$0x1] %v1117_v3  ;;  %v1226_v7 = vld [vmem:[#allocation2 + $0x5c] sm:$0x1] }
  0x46   :  { %1231 = vst [vmem:[#allocation2 + $0x68] sm:$0x1] %v1230_v4  ;;  %v1227_v8 = vsel %vm16104_vm4, 0, %v1226_v7  ;;  %v1125_v10 = vld [vmem:[#allocation2 + $0x78] sm:$0x1] }
  0x47   :  { %1228 = vst [vmem:[#allocation2 + $0x5c] sm:$0x1] %v1227_v8  ;;  %v1235_v13 = vld [vmem:[#allocation2 + $0x80] sm:$0x1]  ;;  %v1232_v16 = vld [vmem:[#allocation2 + $0x74] sm:$0x1] }
  0x48   :  { %v1236_v15 = vsel %vm16104_vm4, 0, %v1235_v13  ;;  %v1131_v18 = vld [vmem:[#allocation2 + $0x90] sm:$0x1]  ;;  %v1128_v21 = vld [vmem:[#allocation2 + $0x84] sm:$0x1] }
  0x49   :  { %1237 = vst [vmem:[#allocation2 + $0x80] sm:$0x1] %v1236_v15  ;;  %v1241_v22 = vld [vmem:[#allocation2 + $0x98] sm:$0x1]  ;;  %v1129_v23 = vsel %vm16094_vm2, 0, %v1128_v21 }
  0x4a   :  { %14264 = vmatmul.mubr.bf16.gmra.mrb[20].mxu0 %v103_v45  ;;  %v1214_v45 = vld [vmem:[#allocation2 + $0x2c] sm:$0x1]  ;;  %v1242_v24 = vsel %vm16104_vm4, 0, %v1241_v22  ;;  %1130 = vst [vmem:[#allocation2 + $0x84] sm:$0x1] %v1129_v23 }
  0x4b   :  { %14267 = vmatprep.mubr.bf16.mxu0 %v104_v46  ;;  %v1215_v46 = vsel %vm16104_vm4, 0, %v1214_v45  ;;  %1243 = vst [vmem:[#allocation2 + $0x98] sm:$0x1] %v1242_v24  ;;  %v1238_v26 = vld [vmem:[#allocation2 + $0x8c] sm:$0x1] }
  0x4c   :  { %1216 = vst [vmem:[#allocation2 + $0x2c] sm:$0x1] %v1215_v46  ;;  %v1239_v27 = vsel %vm16104_vm4, 0, %v1238_v26  ;;  %v1137_v28 = vld [vmem:[#allocation2 + $0xa8] sm:$0x1] }
  0x4d   :  { %1240 = vst [vmem:[#allocation2 + $0x8c] sm:$0x1] %v1239_v27  ;;  %v1138_v29 = vsel %vm16094_vm2, 0, %v1137_v28  ;;  %v1134_v30 = vld [vmem:[#allocation2 + $0x9c] sm:$0x1] }
  0x4e   :  { %1139 = vst [vmem:[#allocation2 + $0xa8] sm:$0x1] %v1138_v29  ;;  %v1247_v31 = vld [vmem:[#allocation2 + $0xb0] sm:$0x1]  ;;  %v1135_v32 = vsel %vm16094_vm2, 0, %v1134_v30 }
  0x4f   :  { %1136 = vst [vmem:[#allocation2 + $0x9c] sm:$0x1] %v1135_v32  ;;  %v1244_v34 = vld [vmem:[#allocation2 + $0xa4] sm:$0x1]  ;;  %v1143_v36 = vld [vmem:[#allocation2 + $0xc0] sm:$0x1] }
  0x50   :  { %v1144_v37 = vsel %vm16094_vm2, 0, %v1143_v36  ;;  %v1140_v38 = vld [vmem:[#allocation2 + $0xb4] sm:$0x1]  ;;  %v1253_v39 = vld [vmem:[#allocation2 + $0xc8] sm:$0x1] }
  0x51   :  { %1145 = vst [vmem:[#allocation2 + $0xc0] sm:$0x1] %v1144_v37  ;;  %v1141_v40 = vsel %vm16094_vm2, 0, %v1140_v38  ;;  %v1254_v41 = vsel %vm16104_vm4, 0, %v1253_v39  ;;  %v1250_v42 = vld [vmem:[#allocation2 + $0xbc] sm:$0x1] }
  0x52   :  { %14268 = vmatmul.mubr.bf16.gmra.mrb[24].mxu0 %v105_v51  ;;  %v1110_v51 = vld [vmem:[#allocation2 + $0x3c] sm:$0x1]  ;;  %1142 = vst [vmem:[#allocation2 + $0xb4] sm:$0x1] %v1141_v40  ;;  %1255 = vst [vmem:[#allocation2 + $0xc8] sm:$0x1] %v1254_v41 }
  0x53   :  { %14271 = vmatprep.mubr.bf16.mxu0 %v106_v52  ;;  %v1223_v52 = vld [vmem:[#allocation2 + $0x50] sm:$0x1]  ;;  %v1111_v53 = vsel %vm16094_vm2, 0, %v1110_v51  ;;  %v1251_v43 = vsel %vm16104_vm4, 0, %v1250_v42  ;;  %v1152_v46 = vld [vmem:[#allocation2 + $0xe4] sm:$0x1] }
  0x54   :  { %v1224_v54 = vsel %vm16104_vm4, 0, %v1223_v52  ;;  %1112 = vst [vmem:[#allocation2 + $0x3c] sm:$0x1] %v1111_v53  ;;  %1252 = vst [vmem:[#allocation2 + $0xbc] sm:$0x1] %v1251_v43  ;;  %v1153_v48 = vsel %vm16094_vm2, 0, %v1152_v46 }
  0x55   :  { %1225 = vst [vmem:[#allocation2 + $0x50] sm:$0x1] %v1224_v54  ;;  %v1155_v44 = vld [vmem:[#allocation2 + $0xf0] sm:$0x1]  ;;  %1154 = vst [vmem:[#allocation2 + $0xe4] sm:$0x1] %v1153_v48 }
  0x56   :  { %v1156_v45 = vsel %vm16094_vm2, 0, %v1155_v44  ;;  %v1262_v50 = vld [vmem:[#allocation2 + $0xec] sm:$0x1]  ;;  %v1161_v52 = vld [vmem:[#allocation2 + $0x108] sm:$0x1] }
  0x57   :  { %1157 = vst [vmem:[#allocation2 + $0xf0] sm:$0x1] %v1156_v45  ;;  %v1263_v51 = vsel %vm16104_vm4, 0, %v1262_v50  ;;  %v1162_v53 = vsel %vm16094_vm2, 0, %v1161_v52  ;;  %v1158_v54 = vld [vmem:[#allocation2 + $0xfc] sm:$0x1] }
  0x58   :  { %1264 = vst [vmem:[#allocation2 + $0xec] sm:$0x1] %v1263_v51  ;;  %1163 = vst [vmem:[#allocation2 + $0x108] sm:$0x1] %v1162_v53  ;;  %v1271_v55 = vld [vmem:[#allocation2 + $0x110] sm:$0x1] }
  0x59   :  { %v1159_v56 = vsel %vm16094_vm2, 0, %v1158_v54  ;;  %v1167_v60 = vld [vmem:[#allocation2 + $0x120] sm:$0x1]  ;;  %v1274_v2 = vld [vmem:[#allocation2 + $0x11c] sm:$0x1] }
  0x5a   :  { %14272 = vmatmul.mubr.bf16.gmra.mrb[28].mxu0 %v107_v57  ;;  %v88_v57 = vld [vmem:[%s23143_s0 + $0x1e0] sm:$0xff]  ;;  %1160 = vst [vmem:[#allocation2 + $0xfc] sm:$0x1] %v1159_v56  ;;  %v1275_v3 = vsel %vm16104_vm4, 0, %v1274_v2  ;;  %v1173_v4 = vld [vmem:[#allocation2 + $0x138] sm:$0x1] }
  0x5b   :  { %14275 = vmatprep.mubr.bf16.mxu0 %v108_v58  ;;  %v89_v58 = vld [vmem:[%s23143_s0 + $0x1e8] sm:$0xff]  ;;  %1276 = vst [vmem:[#allocation2 + $0x11c] sm:$0x1] %v1275_v3  ;;  %v1283_v7 = vld [vmem:[#allocation2 + $0x140] sm:$0x1] }
  0x5c   :  { %v1289_v15 = vld [vmem:[#allocation2 + $0x158] sm:$0x1]  ;;  %v1185_v21 = vld [vmem:[#allocation2 + $0x168] sm:$0x1]  ;;  %v1182_v23 = vld [vmem:[#allocation2 + $0x15c] sm:$0x1] }
  0x5d   :  { %v1186_v22 = vsel %vm16094_vm2, 0, %v1185_v21  ;;  %v1295_v24 = vld [vmem:[#allocation2 + $0x170] sm:$0x1]  ;;  %v1183_v26 = vsel %vm16094_vm2, 0, %v1182_v23  ;;  %v1292_v28 = vld [vmem:[#allocation2 + $0x164] sm:$0x1] }
  0x5e   :  { %1187 = vst [vmem:[#allocation2 + $0x168] sm:$0x1] %v1186_v22  ;;  %v1296_v27 = vsel %vm16104_vm4, 0, %v1295_v24  ;;  %1184 = vst [vmem:[#allocation2 + $0x15c] sm:$0x1] %v1183_v26  ;;  %v1293_v29 = vsel %vm16104_vm4, 0, %v1292_v28 }
  0x5f   :  { %1297 = vst [vmem:[#allocation2 + $0x170] sm:$0x1] %v1296_v27  ;;  %1294 = vst [vmem:[#allocation2 + $0x164] sm:$0x1] %v1293_v29  ;;  %v1191_v30 = vld [vmem:[#allocation2 + $0x180] sm:$0x1] }
  0x60   :  { %v1188_v32 = vld [vmem:[#allocation2 + $0x174] sm:$0x1]  ;;  %v1298_v36 = vld [vmem:[#allocation2 + $0x17c] sm:$0x1]  ;;  %v1197_v38 = vld [vmem:[#allocation2 + $0x198] sm:$0x1] }
  0x61   :  { %v1299_v37 = vsel %vm16104_vm4, 0, %v1298_v36  ;;  %v1198_v39 = vsel %vm16094_vm2, 0, %v1197_v38  ;;  %v1194_v40 = vld [vmem:[#allocation2 + $0x18c] sm:$0x1]  ;;  %v1307_v41 = vld [vmem:[#allocation2 + $0x1a0] sm:$0x1] }
  0x62   :  { %14276 = vmatmul.mubr.bf16.gmra.mrb[32].mxu0 %v109_v63  ;;  %v122_v63 = vpack.c.bf16 %v89_v58, %v88_v57  ;;  %v1272_v57 = vsel %vm16104_vm4, 0, %v1271_v55  ;;  %v1268_v58 = vld [vmem:[#allocation2 + $0x104] sm:$0x1]  ;;  %1300 = vst [vmem:[#allocation2 + $0x17c] sm:$0x1] %v1299_v37  ;;  %v1195_v42 = vsel %vm16094_vm2, 0, %v1194_v40 }
  0x63   :  { %14279 = vmatprep.mubr.bf16.mxu0 %v110_v0  ;;  %v1120_v0 = vsel %vm16094_vm2, 0, %v1119_v62  ;;  %1273 = vst [vmem:[#allocation2 + $0x110] sm:$0x1] %v1272_v57  ;;  %v1269_v59 = vsel %vm16104_vm4, 0, %v1268_v58  ;;  %v1164_v62 = vld [vmem:[#allocation2 + $0x114] sm:$0x1] }
  0x64   :  { %1121 = vst [vmem:[#allocation2 + $0x60] sm:$0x1] %v1120_v0  ;;  %1270 = vst [vmem:[#allocation2 + $0x104] sm:$0x1] %v1269_v59  ;;  %v1165_v0 = vsel %vm16094_vm2, 0, %v1164_v62  ;;  %v1308_v43 = vsel %vm16104_vm4, 0, %v1307_v41 }
  0x65   :  { %1166 = vst [vmem:[#allocation2 + $0x114] sm:$0x1] %v1165_v0  ;;  %1199 = vst [vmem:[#allocation2 + $0x198] sm:$0x1] %v1198_v39 }
  0x66   :  { %1196 = vst [vmem:[#allocation2 + $0x18c] sm:$0x1] %v1195_v42  ;;  %1309 = vst [vmem:[#allocation2 + $0x1a0] sm:$0x1] %v1308_v43 }
  0x6a   :  { %14280 = vmatmul.mubr.bf16.gmra.mrb[36].mxu0 %v111_v5  ;;  %v90_v5 = vld [vmem:[%s23143_s0 + $0x1f0] sm:$0xff] }
  0x6b   :  { %14283 = vmatprep.mubr.bf16.mxu0 %v112_v6  ;;  %v91_v6 = vld [vmem:[%s23143_s0 + $0x1f8] sm:$0xff] }
  0x6c   :  { %v123_v9 = vpack.c.bf16 %v91_v6, %v90_v5  ;;  %v1174_v5 = vsel %vm16094_vm2, 0, %v1173_v4  ;;  %v1170_v6 = vld [vmem:[#allocation2 + $0x12c] sm:$0x1] }
  0x6d   :  { %1175 = vst [vmem:[#allocation2 + $0x138] sm:$0x1] %v1174_v5  ;;  %v1171_v8 = vsel %vm16094_vm2, 0, %v1170_v6 }
  0x6e   :  { %1172 = vst [vmem:[#allocation2 + $0x12c] sm:$0x1] %v1171_v8 }
  0x72   :  { %14284 = vmatmul.mubr.bf16.gmra.mrb[40].mxu0 %v113_v11  ;;  %v1126_v11 = vsel %vm16094_vm2, 0, %v1125_v10  ;;  %v1280_v10 = vld [vmem:[#allocation2 + $0x134] sm:$0x1] }
  0x73   :  { %14287 = vmatprep.mubr.bf16.mxu0 %v114_v12  ;;  %1127 = vst [vmem:[#allocation2 + $0x78] sm:$0x1] %v1126_v11  ;;  %v1122_v12 = vld [vmem:[#allocation2 + $0x6c] sm:$0x1]  ;;  %v1281_v11 = vsel %vm16104_vm4, 0, %v1280_v10 }
  0x74   :  { %v1123_v14 = vsel %vm16094_vm2, 0, %v1122_v12  ;;  %1282 = vst [vmem:[#allocation2 + $0x134] sm:$0x1] %v1281_v11  ;;  %v1179_v12 = vld [vmem:[#allocation2 + $0x150] sm:$0x1] }
  0x75   :  { %1124 = vst [vmem:[#allocation2 + $0x6c] sm:$0x1] %v1123_v14  ;;  %v1180_v13 = vsel %vm16094_vm2, 0, %v1179_v12  ;;  %v1176_v14 = vld [vmem:[#allocation2 + $0x144] sm:$0x1] }
  0x76   :  { %1181 = vst [vmem:[#allocation2 + $0x150] sm:$0x1] %v1180_v13 }
  0x7a   :  { %14288 = vmatmul.mubr.bf16.gmra.mrb[44].mxu0 %v115_v17  ;;  %v1233_v17 = vsel %vm16104_vm4, 0, %v1232_v16  ;;  %v1177_v16 = vsel %vm16094_vm2, 0, %v1176_v14 }
  0x7b   :  { %14291 = vmatprep.mubr.bf16.mxu0 %v116_v19  ;;  %1234 = vst [vmem:[#allocation2 + $0x74] sm:$0x1] %v1233_v17  ;;  %v1132_v19 = vsel %vm16094_vm2, 0, %v1131_v18  ;;  %v1290_v17 = vsel %vm16104_vm4, 0, %v1289_v15  ;;  %1178 = vst [vmem:[#allocation2 + $0x144] sm:$0x1] %v1177_v16 }
  0x7c   :  { %1133 = vst [vmem:[#allocation2 + $0x90] sm:$0x1] %v1132_v19  ;;  %1291 = vst [vmem:[#allocation2 + $0x158] sm:$0x1] %v1290_v17  ;;  %v1286_v18 = vld [vmem:[#allocation2 + $0x14c] sm:$0x1] }
  0x7d   :  { %v1287_v19 = vsel %vm16104_vm4, 0, %v1286_v18 }
  0x7e   :  { %1288 = vst [vmem:[#allocation2 + $0x14c] sm:$0x1] %v1287_v19 }
  0x82   :  { %14292 = vmatmul.mubr.bf16.gmra.mrb[48].mxu0 %v117_v33  ;;  %v1248_v33 = vsel %vm16104_vm4, 0, %v1247_v31  ;;  %v1192_v31 = vsel %vm16094_vm2, 0, %v1191_v30 }
  0x83   :  { %14295 = vmatprep.mubr.bf16.mxu0 %v118_v35  ;;  %1249 = vst [vmem:[#allocation2 + $0xb0] sm:$0x1] %v1248_v33  ;;  %v1245_v35 = vsel %vm16104_vm4, 0, %v1244_v34  ;;  %1193 = vst [vmem:[#allocation2 + $0x180] sm:$0x1] %v1192_v31  ;;  %v1189_v34 = vsel %vm16094_vm2, 0, %v1188_v32 }
  0x84   :  { %1246 = vst [vmem:[#allocation2 + $0xa4] sm:$0x1] %v1245_v35  ;;  %v1301_v33 = vld [vmem:[#allocation2 + $0x188] sm:$0x1]  ;;  %1190 = vst [vmem:[#allocation2 + $0x174] sm:$0x1] %v1189_v34 }
  0x85   :  { %v1302_v35 = vsel %vm16104_vm4, 0, %v1301_v33 }
  0x86   :  { %1303 = vst [vmem:[#allocation2 + $0x188] sm:$0x1] %v1302_v35 }
  0x8a   :  { %14296 = vmatmul.mubr.bf16.gmra.mrb[52].mxu0 %v119_v47  ;;  %v1265_v47 = vld [vmem:[#allocation2 + $0xf8] sm:$0x1] }
  0x8b   :  { %14299 = vmatprep.mubr.bf16.mxu0 %v120_v49  ;;  %v1266_v49 = vsel %vm16104_vm4, 0, %v1265_v47 }
  0x8c   :  { %1267 = vst [vmem:[#allocation2 + $0xf8] sm:$0x1] %v1266_v49 }
  0x92   :  { %14300 = vmatmul.mubr.bf16.gmra.mrb[56].mxu0 %v121_v61  ;;  %v1168_v61 = vsel %vm16094_vm2, 0, %v1167_v60 }
  0x93   :  { %14303 = vmatprep.mubr.bf16.mxu0 %v122_v63  ;;  %1169 = vst [vmem:[#allocation2 + $0x120] sm:$0x1] %v1168_v61  ;;  %v1277_v63 = vld [vmem:[#allocation2 + $0x128] sm:$0x1] }
  0x94   :  { %v1278_v1 = vsel %vm16104_vm4, 0, %v1277_v63 }
  0x95   :  { %1279 = vst [vmem:[#allocation2 + $0x128] sm:$0x1] %v1278_v1 }
  0x9a   :  { %14304 = vmatmul.mubr.bf16.gmra.mrb[60].mxu0 %v123_v9  ;;  %v1284_v9 = vsel %vm16104_vm4, 0, %v1283_v7 }
  0x9b   :  { %1285 = vst [vmem:[#allocation2 + $0x140] sm:$0x1] %v1284_v9 }
  0xf5   :  { %v16272_v44 = vpop.f32.mrb[0].mxu0 }
  0xf6   :  { %v16274_v45 = vpop.f32.mrb[1].mxu0  ;;  %v482_v51 = vsel %vm478_vm5, %v16272_v44, 0.0 }
  0xf7   :  { %v16276_v46 = vpop.f32.mrb[2].mxu0  ;;  %v479_v48 = vsel %vm478_vm5, %v16274_v45, 0.0 }
  0xf8   :  { %v16278_v47 = vpop.f32.mrb[3].mxu0  ;;  %v484_v53 = vsel %vm478_vm5, %v16276_v46, 0.0 }
  0xf9   :  { %v480_v49 = vsel %vm478_vm5, %v16278_v47, 0.0 }
  0xfa   :  { %v481_v50 = vadd.f32 %v480_v49, %v479_v48 }
  0xfc   :  { %v483_v52 = vadd.f32 %v482_v51, %v481_v50 }
  0xfd   :  { %v16288_v54 = vpop.f32.mrb[4].mxu0 }
  0xfe   :  { %v16290_v55 = vpop.f32.mrb[5].mxu0  ;;  %v485_v56 = vadd.f32 %v484_v53, %v483_v52  ;;  %v490_v63 = vsel %vm478_vm5, %v16288_v54, 0.0 }
  0xff   :  { %v486_v57 = vsel %vm478_vm5, %v16290_v55, 0.0  ;;  %v16294_v58 = vpop.f32.mrb[6].mxu0 }
 0x100   :  { %v487_v59 = vadd.f32 %v486_v57, %v485_v56  ;;  %v16296_v60 = vpop.f32.mrb[7].mxu0  ;;  %v492_v1 = vsel %vm478_vm5, %v16294_v58, 0.0 }
 0x101   :  { %v488_v61 = vsel %vm478_vm5, %v16296_v60, 0.0 }
 0x102   :  { %v489_v62 = vadd.f32 %v488_v61, %v487_v59 }
 0x104   :  { %v491_v0 = vadd.f32 %v490_v63, %v489_v62 }
 0x105   :  { %v16304_v2 = vpop.f32.mrb[8].mxu0 }
 0x106   :  { %v16306_v3 = vpop.f32.mrb[9].mxu0  ;;  %v493_v4 = vadd.f32 %v492_v1, %v491_v0  ;;  %v498_v11 = vsel %vm478_vm5, %v16304_v2, 0.0 }
 0x107   :  { %v494_v5 = vsel %vm478_vm5, %v16306_v3, 0.0  ;;  %v16310_v6 = vpop.f32.mrb[10].mxu0 }
 0x108   :  { %v495_v7 = vadd.f32 %v494_v5, %v493_v4  ;;  %v16312_v8 = vpop.f32.mrb[11].mxu0  ;;  %v500_v13 = vsel %vm478_vm5, %v16310_v6, 0.0 }
 0x109   :  { %v496_v9 = vsel %vm478_vm5, %v16312_v8, 0.0 }
 0x10a   :  { %v497_v10 = vadd.f32 %v496_v9, %v495_v7 }
 0x10c   :  { %v499_v12 = vadd.f32 %v498_v11, %v497_v10 }
 0x10d   :  { %v16320_v14 = vpop.f32.mrb[12].mxu0 }
 0x10e   :  { %v16322_v15 = vpop.f32.mrb[13].mxu0  ;;  %v501_v16 = vadd.f32 %v500_v13, %v499_v12  ;;  %v506_v24 = vsel %vm478_vm5, %v16320_v14, 0.0 }
 0x10f   :  { %v502_v17 = vsel %vm478_vm5, %v16322_v15, 0.0  ;;  %v16326_v18 = vpop.f32.mrb[14].mxu0 }
 0x110   :  { %v503_v19 = vadd.f32 %v502_v17, %v501_v16  ;;  %v16328_v21 = vpop.f32.mrb[15].mxu0  ;;  %v508_v27 = vsel %vm478_vm5, %v16326_v18, 0.0 }
 0x111   :  { %v504_v22 = vsel %vm478_vm5, %v16328_v21, 0.0 }
 0x112   :  { %v505_v23 = vadd.f32 %v504_v22, %v503_v19 }
 0x114   :  { %v507_v26 = vadd.f32 %v506_v24, %v505_v23 }
 0x115   :  { %v16336_v28 = vpop.f32.mrb[16].mxu0 }
 0x116   :  { %v16338_v29 = vpop.f32.mrb[17].mxu0  ;;  %v509_v30 = vadd.f32 %v508_v27, %v507_v26  ;;  %v514_v37 = vsel %vm478_vm5, %v16336_v28, 0.0 }
 0x117   :  { %v510_v31 = vsel %vm478_vm5, %v16338_v29, 0.0  ;;  %v16342_v32 = vpop.f32.mrb[18].mxu0 }
 0x118   :  { %v511_v33 = vadd.f32 %v510_v31, %v509_v30  ;;  %v16344_v34 = vpop.f32.mrb[19].mxu0  ;;  %v516_v39 = vsel %vm478_vm5, %v16342_v32, 0.0 }
 0x119   :  { %v512_v35 = vsel %vm478_vm5, %v16344_v34, 0.0 }
 0x11a   :  { %v513_v36 = vadd.f32 %v512_v35, %v511_v33 }
 0x11c   :  { %v515_v38 = vadd.f32 %v514_v37, %v513_v36 }
 0x11d   :  { %v16352_v40 = vpop.f32.mrb[20].mxu0 }
 0x11e   :  { %v16354_v41 = vpop.f32.mrb[21].mxu0  ;;  %v517_v42 = vadd.f32 %v516_v39, %v515_v38  ;;  %v522_v53 = vsel %vm478_vm5, %v16352_v40, 0.0 }
 0x11f   :  { %v518_v43 = vsel %vm478_vm5, %v16354_v41, 0.0  ;;  %v16358_v48 = vpop.f32.mrb[22].mxu0 }
 0x120   :  { %v519_v49 = vadd.f32 %v518_v43, %v517_v42  ;;  %v16360_v50 = vpop.f32.mrb[23].mxu0  ;;  %v524_v57 = vsel %vm478_vm5, %v16358_v48, 0.0 }
 0x121   :  { %v520_v51 = vsel %vm478_vm5, %v16360_v50, 0.0 }
 0x122   :  { %v521_v52 = vadd.f32 %v520_v51, %v519_v49 }
 0x124   :  { %v523_v56 = vadd.f32 %v522_v53, %v521_v52 }
 0x125   :  { %v16368_v59 = vpop.f32.mrb[24].mxu0 }
 0x126   :  { %v16370_v61 = vpop.f32.mrb[25].mxu0  ;;  %v525_v62 = vadd.f32 %v524_v57, %v523_v56  ;;  %v530_v9 = vsel %vm478_vm5, %v16368_v59, 0.0 }
 0x127   :  { %v526_v63 = vsel %vm478_vm5, %v16370_v61, 0.0  ;;  %v16374_v0 = vpop.f32.mrb[26].mxu0 }
 0x128   :  { %v527_v1 = vadd.f32 %v526_v63, %v525_v62  ;;  %v16376_v4 = vpop.f32.mrb[27].mxu0  ;;  %v532_v11 = vsel %vm478_vm5, %v16374_v0, 0.0 }
 0x129   :  { %v528_v5 = vsel %vm478_vm5, %v16376_v4, 0.0 }
 0x12a   :  { %v529_v7 = vadd.f32 %v528_v5, %v527_v1 }
 0x12c   :  { %v531_v10 = vadd.f32 %v530_v9, %v529_v7 }
 0x12d   :  { %v16384_v12 = vpop.f32.mrb[28].mxu0 }
 0x12e   :  { %v16386_v13 = vpop.f32.mrb[29].mxu0  ;;  %v533_v16 = vadd.f32 %v532_v11, %v531_v10  ;;  %v538_v27 = vsel %vm478_vm5, %v16384_v12, 0.0 }
 0x12f   :  { %v534_v17 = vsel %vm478_vm5, %v16386_v13, 0.0  ;;  %v16390_v19 = vpop.f32.mrb[30].mxu0 }
 0x130   :  { %v535_v22 = vadd.f32 %v534_v17, %v533_v16  ;;  %v16392_v23 = vpop.f32.mrb[31].mxu0  ;;  %v540_v31 = vsel %vm478_vm5, %v16390_v19, 0.0 }
 0x131   :  { %v536_v24 = vsel %vm478_vm5, %v16392_v23, 0.0 }
 0x132   :  { %v537_v26 = vadd.f32 %v536_v24, %v535_v22 }
 0x134   :  { %v539_v30 = vadd.f32 %v538_v27, %v537_v26 }
 0x135   :  { %v16400_v33 = vpop.f32.mrb[32].mxu0 }
 0x136   :  { %v16402_v35 = vpop.f32.mrb[33].mxu0  ;;  %v541_v36 = vadd.f32 %v540_v31, %v539_v30  ;;  %v546_v51 = vsel %vm478_vm5, %v16400_v33, 0.0 }
 0x137   :  { %v542_v37 = vsel %vm478_vm5, %v16402_v35, 0.0  ;;  %v16406_v38 = vpop.f32.mrb[34].mxu0 }
 0x138   :  { %v543_v39 = vadd.f32 %v542_v37, %v541_v36  ;;  %v16408_v42 = vpop.f32.mrb[35].mxu0  ;;  %v548_v53 = vsel %vm478_vm5, %v16406_v38, 0.0 }
 0x139   :  { %v544_v43 = vsel %vm478_vm5, %v16408_v42, 0.0 }
 0x13a   :  { %v545_v49 = vadd.f32 %v544_v43, %v543_v39 }
 0x13c   :  { %v547_v52 = vadd.f32 %v546_v51, %v545_v49 }
 0x13d   :  { %v16416_v56 = vpop.f32.mrb[36].mxu0 }
 0x13e   :  { %v16418_v57 = vpop.f32.mrb[37].mxu0  ;;  %v549_v62 = vadd.f32 %v548_v53, %v547_v52  ;;  %v554_v11 = vsel %vm478_vm5, %v16416_v56, 0.0 }
 0x13f   :  { %v550_v63 = vsel %vm478_vm5, %v16418_v57, 0.0  ;;  %v16422_v1 = vpop.f32.mrb[38].mxu0 }
 0x140   :  { %v551_v5 = vadd.f32 %v550_v63, %v549_v62  ;;  %v16424_v7 = vpop.f32.mrb[39].mxu0  ;;  %v556_v17 = vsel %vm478_vm5, %v16422_v1, 0.0 }
 0x141   :  { %v552_v9 = vsel %vm478_vm5, %v16424_v7, 0.0 }
 0x142   :  { %v553_v10 = vadd.f32 %v552_v9, %v551_v5 }
 0x144   :  { %v555_v16 = vadd.f32 %v554_v11, %v553_v10 }
 0x145   :  { %v16432_v22 = vpop.f32.mrb[40].mxu0 }
 0x146   :  { %v16434_v24 = vpop.f32.mrb[41].mxu0  ;;  %v557_v26 = vadd.f32 %v556_v17, %v555_v16  ;;  %v562_v43 = vsel %vm478_vm5, %v16432_v22, 0.0 }
 0x147   :  { %v558_v27 = vsel %vm478_vm5, %v16434_v24, 0.0  ;;  %v16438_v30 = vpop.f32.mrb[42].mxu0 }
 0x148   :  { %v559_v31 = vadd.f32 %v558_v27, %v557_v26  ;;  %v16440_v36 = vpop.f32.mrb[43].mxu0  ;;  %v564_v51 = vsel %vm478_vm5, %v16438_v30, 0.0 }
 0x149   :  { %v560_v37 = vsel %vm478_vm5, %v16440_v36, 0.0 }
 0x14a   :  { %v561_v39 = vadd.f32 %v560_v37, %v559_v31 }
 0x14c   :  { %v563_v49 = vadd.f32 %v562_v43, %v561_v39 }
 0x14d   :  { %v16448_v52 = vpop.f32.mrb[44].mxu0 }
 0x14e   :  { %v16450_v53 = vpop.f32.mrb[45].mxu0  ;;  %v565_v62 = vadd.f32 %v564_v51, %v563_v49  ;;  %v570_v17 = vsel %vm478_vm5, %v16448_v52, 0.0 }
 0x14f   :  { %v566_v63 = vsel %vm478_vm5, %v16450_v53, 0.0  ;;  %v16454_v5 = vpop.f32.mrb[46].mxu0 }
 0x150   :  { %23444 = vst [vmem:[#allocation8_spill] sm:$0xff] %v16454_v5  ;;  %v567_v9 = vadd.f32 %v566_v63, %v565_v62  ;;  %v16456_v10 = vpop.f32.mrb[47].mxu0  ;;  %v572_v27 = vsel %vm478_vm5, %v16454_v5, 0.0 }
 0x151   :  { %v568_v11 = vsel %vm478_vm5, %v16456_v10, 0.0 }
 0x152   :  { %v569_v16 = vadd.f32 %v568_v11, %v567_v9 }
 0x154   :  { %v571_v26 = vadd.f32 %v570_v17, %v569_v16 }
 0x155   :  { %v16464_v31 = vpop.f32.mrb[48].mxu0 }
 0x156   :  { %23445 = vst [vmem:[#allocation9_spill] sm:$0xff] %v16464_v31  ;;  %v16466_v37 = vpop.f32.mrb[49].mxu0  ;;  %v573_v39 = vadd.f32 %v572_v27, %v571_v26  ;;  %v578_v11 = vsel %vm478_vm5, %v16464_v31, 0.0 }
 0x157   :  { %23446 = vst [vmem:[#allocation10_spill] sm:$0xff] %v16466_v37  ;;  %v574_v43 = vsel %vm478_vm5, %v16466_v37, 0.0  ;;  %v16470_v49 = vpop.f32.mrb[50].mxu0 }
 0x158   :  { %23447 = vst [vmem:[#allocation11_spill] sm:$0xff] %v16470_v49  ;;  %v575_v51 = vadd.f32 %v574_v43, %v573_v39  ;;  %v16472_v62 = vpop.f32.mrb[51].mxu0  ;;  %v580_v17 = vsel %vm478_vm5, %v16470_v49, 0.0 }
 0x159   :  { %23448 = vst [vmem:[#allocation12_spill] sm:$0xff] %v16472_v62  ;;  %v576_v63 = vsel %vm478_vm5, %v16472_v62, 0.0 }
 0x15a   :  { %v577_v9 = vadd.f32 %v576_v63, %v575_v51 }
 0x15c   :  { %v579_v16 = vadd.f32 %v578_v11, %v577_v9 }
 0x15d   :  { %v16480_v26 = vpop.f32.mrb[52].mxu0 }
 0x15e   :  { %23449 = vst [vmem:[#allocation13_spill] sm:$0xff] %v16480_v26  ;;  %v16482_v27 = vpop.f32.mrb[53].mxu0  ;;  %v581_v20 = vadd.f32 %v580_v17, %v579_v16  ;;  %v586_v9 = vsel %vm478_vm5, %v16480_v26, 0.0 }
 0x15f   :  { %23450 = vst [vmem:[#allocation14_spill] sm:$0xff] %v16482_v27  ;;  %v582_v39 = vsel %vm478_vm5, %v16482_v27, 0.0  ;;  %v16486_v43 = vpop.f32.mrb[54].mxu0 }
 0x160   :  { %23451 = vst [vmem:[#allocation15_spill] sm:$0xff] %v16486_v43  ;;  %v583_v25 = vadd.f32 %v582_v39, %v581_v20  ;;  %v16488_v62 = vpop.f32.mrb[55].mxu0  ;;  %v588_v49 = vsel %vm478_vm5, %v16486_v43, 0.0 }
 0x161   :  { %23452 = vst [vmem:[#allocation16_spill] sm:$0xff] %v16488_v62  ;;  %v584_v51 = vsel %vm478_vm5, %v16488_v62, 0.0 }
 0x162   :  { %v585_v63 = vadd.f32 %v584_v51, %v583_v25 }
 0x164   :  { %v587_v11 = vadd.f32 %v586_v9, %v585_v63 }
 0x165   :  { %v16496_v16 = vpop.f32.mrb[56].mxu0 }
 0x166   :  { %23453 = vst [vmem:[#allocation17_spill] sm:$0xff] %v16496_v16  ;;  %v16498_v17 = vpop.f32.mrb[57].mxu0  ;;  %v589_v27 = vadd.f32 %v588_v49, %v587_v11  ;;  %v594_v63 = vsel %vm478_vm5, %v16496_v16, 0.0 }
 0x167   :  { %23454 = vst [vmem:[#allocation18_spill] sm:$0xff] %v16498_v17  ;;  %v590_v20 = vsel %vm478_vm5, %v16498_v17, 0.0  ;;  %v16502_v39 = vpop.f32.mrb[58].mxu0 }
 0x168   :  { %23455 = vst [vmem:[#allocation19_spill] sm:$0xff] %v16502_v39  ;;  %v591_v31 = vadd.f32 %v590_v20, %v589_v27  ;;  %v16504_v62 = vpop.f32.mrb[59].mxu0  ;;  %v596_v43 = vsel %vm478_vm5, %v16502_v39, 0.0 }
 0x169   :  { %23456 = vst [vmem:[#allocation20_spill] sm:$0xff] %v16504_v62  ;;  %v592_v25 = vsel %vm478_vm5, %v16504_v62, 0.0 }
 0x16a   :  { %v593_v51 = vadd.f32 %v592_v25, %v591_v31 }
 0x16c   :  { %v595_v9 = vadd.f32 %v594_v63, %v593_v51 }
 0x16d   :  { %v16512_v49 = vpop.f32.mrb[60].mxu0 }
 0x16e   :  { %v16514_v11 = vpop.f32.mrb[61].mxu0  ;;  %v597_v17 = vadd.f32 %v596_v43, %v595_v9  ;;  %v602_v51 = vsel %vm478_vm5, %v16512_v49, 0.0 }
 0x16f   :  { %23457 = vst [vmem:[#allocation21_spill] sm:$0xff] %v16514_v11  ;;  %v598_v27 = vsel %vm478_vm5, %v16514_v11, 0.0  ;;  %v16518_v20 = vpop.f32.mrb[62].mxu0 }
 0x170   :  { %v599_v26 = vadd.f32 %v598_v27, %v597_v17  ;;  %v16520_v62 = vpop.f32.mrb[63].mxu0  ;;  %v604_v39 = vsel %vm478_vm5, %v16518_v20, 0.0 }
 0x171   :  { %23458 = vst [vmem:[#allocation22_spill] sm:$0xff] %v16520_v62  ;;  %v600_v31 = vsel %vm478_vm5, %v16520_v62, 0.0 }
 0x172   :  { %v601_v25 = vadd.f32 %v600_v31, %v599_v26 }
 0x174   :  { %v603_v63 = vadd.f32 %v602_v51, %v601_v25  ;;  %v23470_v25 = vld [vmem:[#allocation9_spill] sm:$0xff]  ;;  %v23472_v51 = vld [vmem:[#allocation11_spill] sm:$0xff] }
 0x176   :  { %v605_v43 = vadd.f32 %v604_v39, %v603_v63  ;;  %v23474_v63 = vld [vmem:[#allocation14_spill] sm:$0xff] }
 0x178   :  { %v606_v9 = vrot.slane %v605_v43, 4 }
 0x17a   :  { %v607_v16 = vadd.f32 %v606_v9, %v605_v43  ;;  %v23476_v9 = vld [vmem:[#allocation16_spill] sm:$0xff] }
 0x17c   :  { %v608_v11 = vrot.slane %v607_v16, 2 }
 0x17e   :  { %v609_v37 = vadd.f32 %v608_v11, %v607_v16  ;;  %v23466_v16 = vld [vmem:[#allocation10_spill] sm:$0xff]  ;;  %v23468_v11 = vld [vmem:[#allocation12_spill] sm:$0xff] }
 0x180   :  { %v610_v5 = vrot.slane %v609_v37, 1 }
 0x182   :  { %v611_v17 = vadd.f32 %v610_v5, %v609_v37  ;;  %v23464_v37 = vld [vmem:[#allocation8_spill] sm:$0xff] }
 0x184   :  { %v16528_v27 = vmul.f32 0.001953125, %v611_v17 }
 0x186   :  { %v16532_v62 = vsub.f32 %v16274_v45, %v16528_v27  ;;  %v16536_v26 = vsub.f32 %v16278_v47, %v16528_v27  ;;  %v16540_v31 = vsub.f32 %v16272_v44, %v16528_v27  ;;  %v16544_v39 = vsub.f32 %v16276_v46, %v16528_v27 }
 0x187   :  { %v16548_v5 = vsub.f32 %v16290_v55, %v16528_v27  ;;  %v16552_v45 = vsub.f32 %v16296_v60, %v16528_v27  ;;  %v16556_v47 = vsub.f32 %v16288_v54, %v16528_v27  ;;  %v16560_v44 = vsub.f32 %v16294_v58, %v16528_v27 }
 0x188   :  { %23459 = vst [vmem:[#allocation23_spill] sm:$0xff] %v16532_v62  ;;  %23460 = vst [vmem:[#allocation24_spill] sm:$0xff] %v16536_v26  ;;  %v16564_v46 = vsub.f32 %v16306_v3, %v16528_v27  ;;  %v16568_v55 = vsub.f32 %v16312_v8, %v16528_v27  ;;  %v16572_v60 = vsub.f32 %v16304_v2, %v16528_v27 }
 0x189   :  { %23461 = vst [vmem:[#allocation25_spill] sm:$0xff] %v16540_v31  ;;  %23462 = vst [vmem:[#allocation26_spill] sm:$0xff] %v16544_v39  ;;  %v16576_v54 = vsub.f32 %v16310_v6, %v16528_v27  ;;  %v16580_v58 = vsub.f32 %v16322_v15, %v16528_v27  ;;  %v16584_v3 = vsub.f32 %v16328_v21, %v16528_v27 }
 0x18a   :  { %v16588_v8 = vsub.f32 %v16320_v14, %v16528_v27  ;;  %v16592_v2 = vsub.f32 %v16326_v18, %v16528_v27  ;;  %v16596_v6 = vsub.f32 %v16338_v29, %v16528_v27  ;;  %v16600_v15 = vsub.f32 %v16344_v34, %v16528_v27 }
 0x18b   :  { %v16604_v21 = vsub.f32 %v16336_v28, %v16528_v27  ;;  %v16608_v14 = vsub.f32 %v16342_v32, %v16528_v27  ;;  %v16612_v18 = vsub.f32 %v16354_v41, %v16528_v27  ;;  %v16616_v29 = vsub.f32 %v16360_v50, %v16528_v27 }
 0x18c   :  { %v16620_v34 = vsub.f32 %v16352_v40, %v16528_v27  ;;  %v16624_v28 = vsub.f32 %v16358_v48, %v16528_v27  ;;  %v16628_v32 = vsub.f32 %v16370_v61, %v16528_v27  ;;  %v16632_v41 = vsub.f32 %v16376_v4, %v16528_v27 }
 0x18d   :  { %v16636_v50 = vsub.f32 %v16368_v59, %v16528_v27  ;;  %v16640_v40 = vsub.f32 %v16374_v0, %v16528_v27  ;;  %v16644_v48 = vsub.f32 %v16386_v13, %v16528_v27  ;;  %v16648_v61 = vsub.f32 %v16392_v23, %v16528_v27 }
 0x18e   :  { %v16652_v4 = vsub.f32 %v16384_v12, %v16528_v27  ;;  %v16656_v59 = vsub.f32 %v16390_v19, %v16528_v27  ;;  %v16660_v0 = vsub.f32 %v16402_v35, %v16528_v27  ;;  %v16664_v13 = vsub.f32 %v16408_v42, %v16528_v27 }
 0x18f   :  { %v16668_v23 = vsub.f32 %v16400_v33, %v16528_v27  ;;  %v16672_v12 = vsub.f32 %v16406_v38, %v16528_v27  ;;  %v16676_v19 = vsub.f32 %v16418_v57, %v16528_v27  ;;  %v16680_v35 = vsub.f32 %v16424_v7, %v16528_v27 }
 0x190   :  { %v16684_v42 = vsub.f32 %v16416_v56, %v16528_v27  ;;  %v16688_v33 = vsub.f32 %v16422_v1, %v16528_v27  ;;  %v16692_v38 = vsub.f32 %v16434_v24, %v16528_v27  ;;  %v16696_v57 = vsub.f32 %v16440_v36, %v16528_v27 }
 0x191   :  { %v16700_v7 = vsub.f32 %v16432_v22, %v16528_v27  ;;  %v16704_v56 = vsub.f32 %v16438_v30, %v16528_v27  ;;  %v16708_v1 = vsub.f32 %v16450_v53, %v16528_v27  ;;  %v16712_v24 = vsub.f32 %v16456_v10, %v16528_v27 }
 0x192   :  { %v16716_v36 = vsub.f32 %v16448_v52, %v16528_v27  ;;  %v16720_v22 = vsub.f32 %v23464_v37, %v16528_v27  ;;  %v16724_v30 = vsub.f32 %v23466_v16, %v16528_v27  ;;  %v16728_v53 = vsub.f32 %v23468_v11, %v16528_v27  ;;  %v23478_v37 = vld [vmem:[#allocation13_spill] sm:$0xff]  ;;  %v23480_v11 = vld [vmem:[#allocation15_spill] sm:$0xff] }
 0x193   :  { %v16732_v10 = vsub.f32 %v23470_v25, %v16528_v27  ;;  %v16736_v52 = vsub.f32 %v23472_v51, %v16528_v27  ;;  %v16740_v43 = vsub.f32 %v23474_v63, %v16528_v27  ;;  %v16744_v17 = vsub.f32 %v23476_v9, %v16528_v27 }
 0x194   :  { %23463 = vst [vmem:[#allocation27_spill] sm:$0xff] %v16716_v36  ;;  %23465 = vst [vmem:[#allocation8_spill] sm:$0xff] %v16720_v22  ;;  %v16748_v16 = vsub.f32 %v23478_v37, %v16528_v27  ;;  %v16752_v25 = vsub.f32 %v23480_v11, %v16528_v27 }
 0x195   :  { %23467 = vst [vmem:[#allocation10_spill] sm:$0xff] %v16724_v30  ;;  %23469 = vst [vmem:[#allocation12_spill] sm:$0xff] %v16728_v53 }
 0x196   :  { %23471 = vst [vmem:[#allocation9_spill] sm:$0xff] %v16732_v10  ;;  %23473 = vst [vmem:[#allocation11_spill] sm:$0xff] %v16736_v52  ;;  %v23482_v10 = vld [vmem:[#allocation18_spill] sm:$0xff]  ;;  %v23484_v52 = vld [vmem:[#allocation20_spill] sm:$0xff] }
 0x197   :  { %23475 = vst [vmem:[#allocation14_spill] sm:$0xff] %v16740_v43  ;;  %23477 = vst [vmem:[#allocation16_spill] sm:$0xff] %v16744_v17  ;;  %v16756_v51 = vsub.f32 %v23482_v10, %v16528_v27  ;;  %v16760_v63 = vsub.f32 %v23484_v52, %v16528_v27  ;;  %v23486_v43 = vld [vmem:[#allocation17_spill] sm:$0xff]  ;;  %v23488_v17 = vld [vmem:[#allocation19_spill] sm:$0xff]  ;;  %v16780_v52 = vsub.f32 %v16512_v49, %v16528_v27 }
 0x198   :  { %23479 = vst [vmem:[#allocation13_spill] sm:$0xff] %v16748_v16  ;;  %23481 = vst [vmem:[#allocation15_spill] sm:$0xff] %v16752_v25  ;;  %v16764_v9 = vsub.f32 %v23486_v43, %v16528_v27  ;;  %v16768_v37 = vsub.f32 %v23488_v17, %v16528_v27  ;;  %v23490_v16 = vld [vmem:[#allocation21_spill] sm:$0xff]  ;;  %v23492_v25 = vld [vmem:[#allocation22_spill] sm:$0xff]  ;;  %v16784_v43 = vsub.f32 %v16518_v20, %v16528_v27 }
 0x199   :  { %23483 = vst [vmem:[#allocation18_spill] sm:$0xff] %v16756_v51  ;;  %23485 = vst [vmem:[#allocation20_spill] sm:$0xff] %v16760_v63  ;;  %v16772_v11 = vsub.f32 %v23490_v16, %v16528_v27  ;;  %v16776_v10 = vsub.f32 %v23492_v25, %v16528_v27  ;;  %v678_v17 = vmul.f32 %v16532_v62, %v16532_v62 }
 0x19a   :  { %23487 = vst [vmem:[#allocation17_spill] sm:$0xff] %v16764_v9  ;;  %23489 = vst [vmem:[#allocation19_spill] sm:$0xff] %v16768_v37  ;;  %v679_v37 = vmul.f32 %v16536_v26, %v16536_v26  ;;  %v680_v16 = vmul.f32 %v16540_v31, %v16540_v31  ;;  %v681_v25 = vmul.f32 %v16544_v39, %v16544_v39 }
 0x19b   :  { %23491 = vst [vmem:[#allocation21_spill] sm:$0xff] %v16772_v11  ;;  %23493 = vst [vmem:[#allocation22_spill] sm:$0xff] %v16776_v10  ;;  %v742_v10 = vsel %vm478_vm5, %v678_v17, 0.0  ;;  %v682_v20 = vmul.f32 %v16548_v5, %v16548_v5  ;;  %v683_v26 = vmul.f32 %v16552_v45, %v16552_v45  ;;  %v684_v39 = vmul.f32 %v16556_v47, %v16556_v47 }
 0x19c   :  { %23494 = vst [vmem:[#allocation28_spill] sm:$0xff] %v16780_v52  ;;  %23495 = vst [vmem:[#allocation29_spill] sm:$0xff] %v16784_v43  ;;  %v743_v49 = vsel %vm478_vm5, %v679_v37, 0.0  ;;  %v745_v27 = vsel %vm478_vm5, %v680_v16, 0.0  ;;  %v747_v43 = vsel %vm478_vm5, %v681_v25, 0.0  ;;  %v685_v37 = vmul.f32 %v16560_v44, %v16560_v44 }
 0x19d   :  { %v744_v52 = vadd.f32 %v743_v49, %v742_v10  ;;  %v749_v17 = vsel %vm478_vm5, %v682_v20, 0.0  ;;  %v751_v10 = vsel %vm478_vm5, %v683_v26, 0.0  ;;  %v753_v16 = vsel %vm478_vm5, %v684_v39, 0.0 }
 0x19e   :  { %v689_v26 = vmul.f32 %v16576_v54, %v16576_v54  ;;  %v690_v39 = vmul.f32 %v16580_v58, %v16580_v58 }
 0x19f   :  { %v746_v62 = vadd.f32 %v745_v27, %v744_v52  ;;  %v686_v52 = vmul.f32 %v16564_v46, %v16564_v46 }
 0x1a1   :  { %v748_v31 = vadd.f32 %v747_v43, %v746_v62  ;;  %v687_v62 = vmul.f32 %v16568_v55, %v16568_v55  ;;  %v755_v43 = vsel %vm478_vm5, %v685_v37, 0.0  ;;  %v757_v20 = vsel %vm478_vm5, %v686_v52, 0.0 }
 0x1a2   :  { %v691_v37 = vmul.f32 %v16584_v3, %v16584_v3  ;;  %v692_v52 = vmul.f32 %v16588_v8, %v16588_v8 }
 0x1a3   :  { %v750_v11 = vadd.f32 %v749_v17, %v748_v31  ;;  %v688_v31 = vmul.f32 %v16572_v60, %v16572_v60 }
 0x1a5   :  { %v752_v49 = vadd.f32 %v751_v10, %v750_v11  ;;  %v759_v11 = vsel %vm478_vm5, %v687_v62, 0.0  ;;  %v693_v62 = vmul.f32 %v16592_v2, %v16592_v2 }
 0x1a7   :  { %v754_v27 = vadd.f32 %v753_v16, %v752_v49  ;;  %v761_v49 = vsel %vm478_vm5, %v688_v31, 0.0  ;;  %v694_v31 = vmul.f32 %v16596_v6, %v16596_v6 }
 0x1a9   :  { %v756_v25 = vadd.f32 %v755_v43, %v754_v27  ;;  %v763_v27 = vsel %vm478_vm5, %v689_v26, 0.0  ;;  %v695_v26 = vmul.f32 %v16600_v15, %v16600_v15 }
 0x1ab   :  { %v758_v17 = vadd.f32 %v757_v20, %v756_v25  ;;  %v765_v25 = vsel %vm478_vm5, %v690_v39, 0.0  ;;  %v696_v39 = vmul.f32 %v16604_v21, %v16604_v21 }
 0x1ad   :  { %v760_v10 = vadd.f32 %v759_v11, %v758_v17  ;;  %v767_v17 = vsel %vm478_vm5, %v691_v37, 0.0  ;;  %v697_v37 = vmul.f32 %v16608_v14, %v16608_v14 }
 0x1af   :  { %v762_v16 = vadd.f32 %v761_v49, %v760_v10  ;;  %v769_v10 = vsel %vm478_vm5, %v692_v52, 0.0  ;;  %v698_v52 = vmul.f32 %v16612_v18, %v16612_v18 }
 0x1b1   :  { %v764_v43 = vadd.f32 %v763_v27, %v762_v16  ;;  %v771_v16 = vsel %vm478_vm5, %v693_v62, 0.0 }
 0x1b3   :  { %v766_v20 = vadd.f32 %v765_v25, %v764_v43  ;;  %v773_v43 = vsel %vm478_vm5, %v694_v31, 0.0  ;;  %v699_v31 = vmul.f32 %v16616_v29, %v16616_v29 }
 0x1b5   :  { %v768_v11 = vadd.f32 %v767_v17, %v766_v20  ;;  %v775_v20 = vsel %vm478_vm5, %v695_v26, 0.0  ;;  %v700_v26 = vmul.f32 %v16620_v34, %v16620_v34 }
 0x1b7   :  { %v770_v49 = vadd.f32 %v769_v10, %v768_v11  ;;  %v777_v11 = vsel %vm478_vm5, %v696_v39, 0.0  ;;  %v1304_v10 = vld [vmem:[#allocation2 + $0x194] sm:$0x1]  ;;  %v701_v39 = vmul.f32 %v16624_v28, %v16624_v28 }
 0x1b9   :  { %v772_v27 = vadd.f32 %v771_v16, %v770_v49  ;;  %v1305_v16 = vsel %vm16104_vm4, 0, %v1304_v10  ;;  %v702_v10 = vmul.f32 %v16628_v32, %v16628_v32  ;;  %v785_v49 = vsel %vm478_vm5, %v700_v26, 0.0 }
 0x1ba   :  { %1306 = vst [vmem:[#allocation2 + $0x194] sm:$0x1] %v1305_v16  ;;  %v787_v16 = vsel %vm478_vm5, %v701_v39, 0.0  ;;  %v15515_v39 = vld [vmem:[%s23146_s3 + $0x30] sm:$0xff]  }
 0x1bb   :  { %v774_v25 = vadd.f32 %v773_v43, %v772_v27  ;;  %v779_v27 = vsel %vm478_vm5, %v697_v37, 0.0  ;;  %14987 = vmatprep.subr.bf16.mxu1 %v15515_v39 }
 0x1bc   :  { %14989 = vmatpush3.bf16.msra.mxu1 %v15515_v39  ;;  %v711_v39 = vmul.f32 %v16664_v13, %v16664_v13 }
 0x1bd   :  { %v776_v17 = vadd.f32 %v775_v20, %v774_v25  ;;  %v781_v25 = vsel %vm478_vm5, %v698_v52, 0.0  ;;  %v704_v52 = vmul.f32 %v16636_v50, %v16636_v50 }
 0x1bf   :  { %v778_v62 = vadd.f32 %v777_v11, %v776_v17  ;;  %v783_v17 = vsel %vm478_vm5, %v699_v31, 0.0  ;;  %v705_v31 = vmul.f32 %v16640_v40, %v16640_v40  ;;  %v793_v26 = vsel %vm478_vm5, %v704_v52, 0.0 }
 0x1c0   :  { %v709_v52 = vmul.f32 %v16656_v59, %v16656_v59 }
 0x1c1   :  { %v780_v43 = vadd.f32 %v779_v27, %v778_v62  ;;  %v703_v62 = vmul.f32 %v16632_v41, %v16632_v41 }
 0x1c3   :  { %v782_v20 = vadd.f32 %v781_v25, %v780_v43  ;;  %v789_v43 = vsel %vm478_vm5, %v702_v10, 0.0  ;;  %v707_v10 = vmul.f32 %v16648_v61, %v16648_v61 }
 0x1c5   :  { %v784_v11 = vadd.f32 %v783_v17, %v782_v20  ;;  %v791_v20 = vsel %vm478_vm5, %v703_v62, 0.0  ;;  %v708_v62 = vmul.f32 %v16652_v4, %v16652_v4 }
 0x1c7   :  { %v786_v37 = vadd.f32 %v785_v49, %v784_v11  ;;  %v706_v49 = vmul.f32 %v16644_v48, %v16644_v48 }
 0x1c9   :  { %v788_v27 = vadd.f32 %v787_v16, %v786_v37  ;;  %v795_v37 = vsel %vm478_vm5, %v705_v31, 0.0  ;;  %v801_v31 = vsel %vm478_vm5, %v708_v62, 0.0  ;;  %v714_v62 = vmul.f32 %v16676_v19, %v16676_v19 }
 0x1cb   :  { %v790_v25 = vadd.f32 %v789_v43, %v788_v27  ;;  %v797_v27 = vsel %vm478_vm5, %v706_v49, 0.0  ;;  %v712_v49 = vmul.f32 %v16668_v23, %v16668_v23 }
 0x1cd   :  { %v792_v17 = vadd.f32 %v791_v20, %v790_v25  ;;  %v799_v25 = vsel %vm478_vm5, %v707_v10, 0.0  ;;  %v713_v10 = vmul.f32 %v16672_v12, %v16672_v12 }
 0x1cf   :  { %v794_v11 = vadd.f32 %v793_v26, %v792_v17  ;;  %v710_v17 = vmul.f32 %v16660_v0, %v16660_v0 }
 0x1d1   :  { %v796_v16 = vadd.f32 %v795_v37, %v794_v11  ;;  %v803_v11 = vsel %vm478_vm5, %v709_v52, 0.0  ;;  %v715_v52 = vmul.f32 %v16680_v35, %v16680_v35 }
 0x1d3   :  { %v798_v43 = vadd.f32 %v797_v27, %v796_v16  ;;  %v805_v16 = vsel %vm478_vm5, %v710_v17, 0.0  ;;  %v716_v17 = vmul.f32 %v16684_v42, %v16684_v42 }
 0x1d5   :  { %v800_v20 = vadd.f32 %v799_v25, %v798_v43  ;;  %v807_v43 = vsel %vm478_vm5, %v711_v39, 0.0  ;;  %v717_v39 = vmul.f32 %v16688_v33, %v16688_v33 }
 0x1d7   :  { %v802_v26 = vadd.f32 %v801_v31, %v800_v20  ;;  %v809_v20 = vsel %vm478_vm5, %v712_v49, 0.0  ;;  %v718_v49 = vmul.f32 %v16692_v38, %v16692_v38 }
 0x1d9   :  { %v804_v37 = vadd.f32 %v803_v11, %v802_v26  ;;  %v811_v26 = vsel %vm478_vm5, %v713_v10, 0.0  ;;  %v719_v10 = vmul.f32 %v16696_v57, %v16696_v57 }
 0x1db   :  { %v806_v27 = vadd.f32 %v805_v16, %v804_v37  ;;  %v813_v37 = vsel %vm478_vm5, %v714_v62, 0.0  ;;  %v720_v62 = vmul.f32 %v16700_v7, %v16700_v7 }
 0x1dd   :  { %v808_v25 = vadd.f32 %v807_v43, %v806_v27  ;;  %v815_v27 = vsel %vm478_vm5, %v715_v52, 0.0  ;;  %v721_v52 = vmul.f32 %v16704_v56, %v16704_v56 }
 0x1df   :  { %v810_v31 = vadd.f32 %v809_v20, %v808_v25  ;;  %v817_v25 = vsel %vm478_vm5, %v716_v17, 0.0  ;;  %v15516_v17 = vld [vmem:[%s23146_s3 + $0x38] sm:$0xff]  }
 0x1e0   :  { %14988 = vmatprep.subr.bf16.mxu1 %v15516_v17 }
 0x1e1   :  { %v812_v11 = vadd.f32 %v811_v26, %v810_v31  ;;  %v819_v31 = vsel %vm478_vm5, %v717_v39, 0.0  ;;  %v722_v39 = vmul.f32 %v16708_v1, %v16708_v1  ;;  %14990 = vmatpush3.bf16.msra.mxu1 %v15516_v17  ;;  %v727_v17 = vmul.f32 %v16728_v53, %v16728_v53 }
 0x1e3   :  { %v814_v16 = vadd.f32 %v813_v37, %v812_v11  ;;  %v821_v11 = vsel %vm478_vm5, %v718_v49, 0.0  ;;  %v723_v49 = vmul.f32 %v16712_v24, %v16712_v24 }
 0x1e5   :  { %v816_v43 = vadd.f32 %v815_v27, %v814_v16  ;;  %v823_v16 = vsel %vm478_vm5, %v719_v10, 0.0  ;;  %v724_v10 = vmul.f32 %v16716_v36, %v16716_v36 }
 0x1e7   :  { %v818_v20 = vadd.f32 %v817_v25, %v816_v43  ;;  %v825_v43 = vsel %vm478_vm5, %v720_v62, 0.0  ;;  %v831_v62 = vsel %vm478_vm5, %v723_v49, 0.0  ;;  %v23498_v49 = vld [vmem:[#allocation11_spill] sm:$0xff] }
 0x1e9   :  { %v820_v26 = vadd.f32 %v819_v31, %v818_v20  ;;  %v827_v20 = vsel %vm478_vm5, %v721_v52, 0.0 }
 0x1eb   :  { %v822_v37 = vadd.f32 %v821_v11, %v820_v26  ;;  %v829_v26 = vsel %vm478_vm5, %v722_v39, 0.0  ;;  %v23497_v39 = vld [vmem:[#allocation9_spill] sm:$0xff] }
 0x1ed   :  { %v824_v27 = vadd.f32 %v823_v16, %v822_v37  ;;  %v725_v37 = vmul.f32 %v16720_v22, %v16720_v22 }
 0x1ef   :  { %v826_v25 = vadd.f32 %v825_v43, %v824_v27  ;;  %v726_v27 = vmul.f32 %v16724_v30, %v16724_v30  ;;  %v833_v43 = vsel %vm478_vm5, %v724_v10, 0.0  ;;  %v23499_v10 = vld [vmem:[#allocation14_spill] sm:$0xff] }
 0x1f1   :  { %v828_v31 = vadd.f32 %v827_v20, %v826_v25  ;;  %v835_v25 = vsel %vm478_vm5, %v725_v37, 0.0  ;;  %v23500_v37 = vld [vmem:[#allocation16_spill] sm:$0xff] }
 0x1f3   :  { %v830_v11 = vadd.f32 %v829_v26, %v828_v31  ;;  %v728_v31 = vmul.f32 %v23497_v39, %v23497_v39  ;;  %v837_v26 = vsel %vm478_vm5, %v726_v27, 0.0  ;;  %v23501_v27 = vld [vmem:[#allocation13_spill] sm:$0xff] }
 0x1f5   :  { %v832_v16 = vadd.f32 %v831_v62, %v830_v11  ;;  %v729_v11 = vmul.f32 %v23498_v49, %v23498_v49  ;;  %v839_v62 = vsel %vm478_vm5, %v727_v17, 0.0  ;;  %v23502_v17 = vld [vmem:[#allocation15_spill] sm:$0xff] }
 0x1f7   :  { %v834_v52 = vadd.f32 %v833_v43, %v832_v16  ;;  %v730_v16 = vmul.f32 %v23499_v10, %v23499_v10  ;;  %v841_v43 = vsel %vm478_vm5, %v728_v31, 0.0 }
 0x1f9   :  { %v836_v20 = vadd.f32 %v835_v25, %v834_v52  ;;  %v731_v52 = vmul.f32 %v23500_v37, %v23500_v37  ;;  %v843_v25 = vsel %vm478_vm5, %v729_v11, 0.0 }
 0x1fb   :  { %v838_v22 = vadd.f32 %v837_v26, %v836_v20  ;;  %v732_v20 = vmul.f32 %v23501_v27, %v23501_v27  ;;  %v845_v26 = vsel %vm478_vm5, %v730_v16, 0.0 }
 0x1fd   :  { %v840_v30 = vadd.f32 %v839_v62, %v838_v22  ;;  %v733_v22 = vmul.f32 %v23502_v17, %v23502_v17  ;;  %v847_v62 = vsel %vm478_vm5, %v731_v52, 0.0  ;;  %v849_v31 = vsel %vm478_vm5, %v732_v20, 0.0  ;;  %v23503_v52 = vld [vmem:[#allocation19_spill] sm:$0xff]  ;;  %v23504_v20 = vld [vmem:[#allocation21_spill] sm:$0xff] }
 0x1ff   :  { %v842_v53 = vadd.f32 %v841_v43, %v840_v30  ;;  %v734_v30 = vmul.f32 %v16756_v51, %v16756_v51  ;;  %v851_v11 = vsel %vm478_vm5, %v733_v22, 0.0  ;;  %v23505_v22 = vld [vmem:[#allocation22_spill] sm:$0xff] }
 0x201   :  { %v844_v39 = vadd.f32 %v843_v25, %v842_v53  ;;  %v735_v53 = vmul.f32 %v16760_v63, %v16760_v63  ;;  %v853_v16 = vsel %vm478_vm5, %v734_v30, 0.0  ;;  %v23506_v30 = vld [vmem:[#allocation28_spill] sm:$0xff] }
 0x203   :  { %v846_v49 = vadd.f32 %v845_v26, %v844_v39  ;;  %v736_v39 = vmul.f32 %v16764_v9, %v16764_v9 }
 0x205   :  { %v848_v10 = vadd.f32 %v847_v62, %v846_v49  ;;  %v737_v49 = vmul.f32 %v23503_v52, %v23503_v52  ;;  %v855_v62 = vsel %vm478_vm5, %v735_v53, 0.0  ;;  %v23507_v53 = vld [vmem:[#allocation29_spill] sm:$0xff] }
 0x207   :  { %v850_v43 = vadd.f32 %v849_v31, %v848_v10  ;;  %v738_v10 = vmul.f32 %v23504_v20, %v23504_v20  ;;  %v857_v31 = vsel %vm478_vm5, %v736_v39, 0.0 }
 0x209   :  { %v852_v25 = vadd.f32 %v851_v11, %v850_v43  ;;  %v739_v43 = vmul.f32 %v23505_v22, %v23505_v22  ;;  %v859_v11 = vsel %vm478_vm5, %v737_v49, 0.0 }
 0x20b   :  { %v854_v26 = vadd.f32 %v853_v16, %v852_v25  ;;  %v740_v25 = vmul.f32 %v23506_v30, %v23506_v30  ;;  %v861_v16 = vsel %vm478_vm5, %v738_v10, 0.0 }
 0x20d   :  { %v856_v51 = vadd.f32 %v855_v62, %v854_v26  ;;  %v741_v26 = vmul.f32 %v23507_v53, %v23507_v53  ;;  %v863_v62 = vsel %vm478_vm5, %v739_v43, 0.0 }
 0x20f   :  { %v858_v63 = vadd.f32 %v857_v31, %v856_v51  ;;  %v865_v51 = vsel %vm478_vm5, %v740_v25, 0.0  ;;  %v867_v31 = vsel %vm478_vm5, %v741_v26, 0.0 }
 0x211   :  { %v860_v9 = vadd.f32 %v859_v11, %v858_v63 }
 0x213   :  { %v862_v52 = vadd.f32 %v861_v16, %v860_v9  ;;  %v880_v16 = vlaneseq }
 0x215   :  { %v864_v17 = vadd.f32 %v863_v62, %v862_v52  ;;  %v15518_v52 = vld [vmem:[%s23146_s3 + $0x40] sm:$0xff]   ;;  %v881_v43 = vshrl.u32 %v880_v16, 7  ;;  %v23509_v62 = vld [vmem:[#allocation23_spill] sm:$0xff] }
 0x216   :  { %14579 = vmatprep.subr.bf16.mxu1 %v15518_v52 }
 0x217   :  { %v866_v39 = vadd.f32 %v865_v51, %v864_v17  ;;  %v477_v17 = vld [vmem:[%s23145_s2] sm:$0x1]  ;;  %v16992_v25 = vsub.s32 0, %v881_v43 }
 0x219   :  { %v868_v27 = vadd.f32 %v867_v31, %v866_v39  ;;  %23508 = vst [vmem:[#allocation21_spill] sm:$0xff] %v16992_v25  ;;  %v23510_v39 = vld [vmem:[#allocation24_spill] sm:$0xff] }
 0x21b   :  { %v869_v49 = vrot.slane %v868_v27, 4 }
 0x21d   :  { %v870_v63 = vadd.f32 %v869_v49, %v868_v27  ;;  %v23511_v49 = vld [vmem:[#allocation25_spill] sm:$0xff] }
 0x21f   :  { %v871_v11 = vrot.slane %v870_v63, 2 }
 0x221   :  { %v872_v37 = vadd.f32 %v871_v11, %v870_v63  ;;  %v23512_v11 = vld [vmem:[#allocation26_spill] sm:$0xff] }
 0x223   :  { %v873_v30 = vrot.slane %v872_v37, 1 }
 0x225   :  { %v874_v36 = vadd.f32 %v873_v30, %v872_v37 }
 0x227   :  { %v875_v10 = vmul.f32 0.001953125, %v874_v36 }
 0x229   :  { %v876_v9 = vadd.f32 1e-05, %v875_v10 }
 0x22b   :  { %15630 = vrsqrt.f32 %v876_v9 }
 0x235   :  { %v15631_v27 = vpop.eup %15630 }
 0x236   :  { %v878_v26 = vmul.f32 %v15631_v27, %v477_v17 }
 0x238   :  { %v16995_v37 = vrot.slane %v878_v26, %v16992_v25  ;;  %v23535_v25 = vld [vmem:[#allocation14_spill] sm:$0xff] }
 0x23a   :  { %v945_v36 = vmul.f32 %v16995_v37, %v23504_v20  ;;  %v946_v30 = vmul.f32 %v16995_v37, %v23505_v22  ;;  %v17003_v51 = vmul.f32 %v16995_v37, %v23509_v62  ;;  %v17007_v31 = vmul.f32 %v16995_v37, %v23510_v39 }
 0x23b   :  { %v17011_v63 = vmul.f32 %v16995_v37, %v23511_v49  ;;  %v17015_v10 = vmul.f32 %v16995_v37, %v23512_v11  ;;  %v17019_v20 = vmul.f32 %v16995_v37, %v16548_v5  ;;  %v17023_v22 = vmul.f32 %v16995_v37, %v16552_v45 }
 0x23c   :  { %v1009_v9 = vmax.f32 %v945_v36, 0.0  ;;  %v1010_v16 = vmax.f32 %v946_v30, 0.0  ;;  %v17027_v52 = vmul.f32 %v16995_v37, %v16556_v47  ;;  %v17031_v43 = vmul.f32 %v16995_v37, %v16560_v44 }
 0x23d   :  { %v17035_v17 = vmul.f32 %v16995_v37, %v16564_v46  ;;  %v17039_v5 = vmul.f32 %v16995_v37, %v16568_v55  ;;  %v17043_v45 = vmul.f32 %v16995_v37, %v16572_v60  ;;  %v17047_v47 = vmul.f32 %v16995_v37, %v16576_v54 }
 0x23e   :  { %v1073_v27 = vmin.f32 %v1009_v9, 6.0  ;;  %v1074_v26 = vmin.f32 %v1010_v16, 6.0  ;;  %v17051_v44 = vmul.f32 %v16995_v37, %v16580_v58  ;;  %v17055_v46 = vmul.f32 %v16995_v37, %v16584_v3 }
 0x23f   :  { %v17059_v55 = vmul.f32 %v16995_v37, %v16588_v8  ;;  %v17063_v60 = vmul.f32 %v16995_v37, %v16592_v2  ;;  %v17067_v54 = vmul.f32 %v16995_v37, %v16596_v6  ;;  %v17071_v58 = vmul.f32 %v16995_v37, %v16600_v15 }
 0x240   :  { %v17073_v36 = vpack.c.bf16 %v1073_v27, %v1073_v27  ;;  %v13844_v3 = vpack.c.bf16 %v1074_v26, %v1074_v26  ;;  %v17077_v8 = vmul.f32 %v16995_v37, %v16604_v21  ;;  %v17081_v2 = vmul.f32 %v16995_v37, %v16608_v14 }
 0x241   :  { %v17085_v6 = vmul.f32 %v16995_v37, %v16612_v18  ;;  %v17089_v15 = vmul.f32 %v16995_v37, %v16616_v29  ;;  %v17093_v30 = vmul.f32 %v16995_v37, %v16620_v34  ;;  %v17097_v21 = vmul.f32 %v16995_v37, %v16624_v28 }
 0x242   :  { %v2018_v62 = vshrl.u32 %v17073_v36, 16  ;;  %v2026_v14 = vshrl.u32 %v13844_v3, 16  ;;  %v2029_v39 = vshll.u32 %v13844_v3, 16  ;;  %v17102_v18 = vmul.f32 %v16995_v37, %v16628_v32 }
 0x243   :  { %v17106_v29 = vmul.f32 %v16995_v37, %v16632_v41  ;;  %v17110_v34 = vmul.f32 %v16995_v37, %v16636_v50  ;;  %v17114_v28 = vmul.f32 %v16995_v37, %v16640_v40  ;;  %v17118_v49 = vmul.f32 %v16995_v37, %v16644_v48  ;;  %v2364_v40 = vld [vmem:[#allocation2 + $0x194] sm:$0x1] }
 0x244   :  { %v17120_v11 = vrot.slane %v2018_v62, 7  ;;  %v2028_v32 = vrot.slane %v2026_v14, 7  ;;  %v17124_v9 = vmul.f32 %v16995_v37, %v16648_v61  ;;  %v17128_v41 = vmul.f32 %v16995_v37, %v16652_v4  ;;  %v23537_v14 = vld [vmem:[#allocation16_spill] sm:$0xff] }
 0x245   :  { %v23514_v50 = vmov 0  ;;  %v17138_v48 = vmul.f32 %v16995_v37, %v16656_v59  ;;  %v17142_v16 = vmul.f32 %v16995_v37, %v16660_v0  ;;  %v17146_v61 = vmul.f32 %v16995_v37, %v16664_v13 }
 0x246   :  { %23513 = vst [vmem:[#allocation22_spill] sm:$0xff] %v17120_v11  ;;  %v23515_v50 = vsel %vm17132_vm8, 4294967295, %v23514_v50  ;;  %v17150_v4 = vmul.f32 %v16995_v37, %v16668_v23  ;;  %v2024_v27 = vrot.slane %v17120_v11, 4  ;;  %v2031_v26 = vor.u32 %v2029_v39, %v2028_v32  ;;  %v23541_v11 = vld [vmem:[#allocation15_spill] sm:$0xff] }
 0x247   :  { %23516 = vst [vmem:[#allocation29_spill] sm:$0xff] %v23515_v50  ;;  %v2033_v3 = vrot.slane %v2028_v32, 4  ;;  %v17155_v59 = vmul.f32 %v16995_v37, %v16672_v12  ;;  %v17159_v0 = vmul.f32 %v16995_v37, %v16676_v19  ;;  %v17163_v13 = vmul.f32 %v16995_v37, %v16680_v35  ;;  %v23539_v50 = vld [vmem:[#allocation13_spill] sm:$0xff] }
 0x248   :  { %v17167_v23 = vmul.f32 %v16995_v37, %v16684_v42  ;;  %v17171_v62 = vmul.f32 %v16995_v37, %v16688_v33  ;;  %v2032_v12 = vsel %vm17132_vm8, %v2024_v27, %v2031_v26  ;;  %v17179_v19 = vmul.f32 %v16995_v37, %v16692_v38  ;;  %v23525_v27 = vld [vmem:[#allocation8_spill] sm:$0xff]  ;;  %v23527_v26 = vld [vmem:[#allocation10_spill] sm:$0xff] }
 0x249   :  { %v2365_v39 = vsel %vm16094_vm2, %v2033_v3, %v2364_v40  ;;  %v17183_v35 = vmul.f32 %v16995_v37, %v16696_v57  ;;  %2363 = vst.msk [vmem:[#allocation2 + $0x190] sm:$0xf] %vm1077_vm7, %v2032_v12  ;;  %v17188_v42 = vmul.f32 %v16995_v37, %v16700_v7  ;;  %v17192_v33 = vmul.f32 %v16995_v37, %v16704_v56  ;;  %v23523_v57 = vld [vmem:[#allocation27_spill] sm:$0xff]  ;;  %v23529_v3 = vld [vmem:[#allocation12_spill] sm:$0xff]  ;;  %v23531_v12 = vld [vmem:[#allocation9_spill] sm:$0xff] }
 0x24a   :  { %23518 = vst [vmem:[#allocation23_spill] sm:$0xff] %v17179_v19  ;;  %2366 = vst [vmem:[#allocation2 + $0x194] sm:$0x1] %v2365_v39  ;;  %v17196_v32 = vmul.f32 %v16995_v37, %v16708_v1  ;;  %v17200_v38 = vmul.f32 %v16995_v37, %v16712_v24  ;;  %v17204_v40 = vmul.f32 %v16995_v37, %v23523_v57  ;;  %v23533_v39 = vld [vmem:[#allocation11_spill] sm:$0xff] }
 0x24b   :  { %23519 = vst [vmem:[#allocation24_spill] sm:$0xff] %v17183_v35  ;;  %23520 = vst [vmem:[#allocation25_spill] sm:$0xff] %v17188_v42  ;;  %v17208_v7 = vmul.f32 %v16995_v37, %v23525_v27  ;;  %v17212_v56 = vmul.f32 %v16995_v37, %v23527_v26  ;;  %v17216_v1 = vmul.f32 %v16995_v37, %v23529_v3 }
 0x24c   :  { %23521 = vst [vmem:[#allocation26_spill] sm:$0xff] %v17192_v33  ;;  %23522 = vst [vmem:[#allocation30_spill] sm:$0xff] %v17200_v38  ;;  %v17220_v24 = vmul.f32 %v16995_v37, %v23531_v12  ;;  %v17224_v57 = vmul.f32 %v16995_v37, %v23533_v39  ;;  %v17228_v27 = vmul.f32 %v16995_v37, %v23535_v25 }
 0x24d   :  { %23524 = vst [vmem:[#allocation27_spill] sm:$0xff] %v17204_v40  ;;  %23526 = vst [vmem:[#allocation8_spill] sm:$0xff] %v17208_v7  ;;  %v17232_v26 = vmul.f32 %v16995_v37, %v23537_v14  ;;  %v17236_v3 = vmul.f32 %v16995_v37, %v23539_v50  ;;  %v17240_v12 = vmul.f32 %v16995_v37, %v23541_v11  ;;  %v23563_v19 = vld [vmem:[#allocation22_spill] sm:$0xff] }
 0x24e   :  { %23528 = vst [vmem:[#allocation10_spill] sm:$0xff] %v17212_v56  ;;  %23530 = vst [vmem:[#allocation12_spill] sm:$0xff] %v17216_v1 }
 0x24f   :  { %23532 = vst [vmem:[#allocation9_spill] sm:$0xff] %v17220_v24  ;;  %23534 = vst [vmem:[#allocation11_spill] sm:$0xff] %v17224_v57  ;;  %v23542_v24 = vld [vmem:[#allocation18_spill] sm:$0xff]  ;;  %v23544_v57 = vld [vmem:[#allocation20_spill] sm:$0xff] }
 0x250   :  { %23536 = vst [vmem:[#allocation14_spill] sm:$0xff] %v17228_v27  ;;  %23538 = vst [vmem:[#allocation16_spill] sm:$0xff] %v17232_v26  ;;  %v17244_v39 = vmul.f32 %v16995_v37, %v23542_v24  ;;  %v17248_v25 = vmul.f32 %v16995_v37, %v23544_v57  ;;  %v23546_v27 = vld [vmem:[#allocation17_spill] sm:$0xff]  ;;  %v23548_v26 = vld [vmem:[#allocation19_spill] sm:$0xff]  ;;  %v17264_v24 = vmul.f32 %v16995_v37, %v23507_v53  ;;  %v957_v53 = vmax.f32 %v17035_v17, 0.0 }
 0x251   :  { %23540 = vst [vmem:[#allocation13_spill] sm:$0xff] %v17236_v3  ;;  %v17252_v14 = vmul.f32 %v16995_v37, %v23546_v27  ;;  %v17256_v50 = vmul.f32 %v16995_v37, %v23548_v26  ;;  %v23550_v3 = vld [vmem:[#allocation28_spill] sm:$0xff]  ;;  %v951_v27 = vmax.f32 %v17011_v63, 0.0  ;;  %v953_v26 = vmax.f32 %v17019_v20, 0.0 }
 0x252   :  { %23543 = vst [vmem:[#allocation15_spill] sm:$0xff] %v17244_v39  ;;  %23545 = vst [vmem:[#allocation18_spill] sm:$0xff] %v17248_v25  ;;  %v17260_v11 = vmul.f32 %v16995_v37, %v23550_v3  ;;  %v950_v25 = vmax.f32 %v17007_v31, 0.0  ;;  %v955_v3 = vmax.f32 %v17027_v52, 0.0  ;;  %v958_v37 = vmax.f32 %v17039_v5, 0.0 }
 0x253   :  { %23547 = vst [vmem:[#allocation20_spill] sm:$0xff] %v17252_v14  ;;  %23549 = vst [vmem:[#allocation17_spill] sm:$0xff] %v17256_v50  ;;  %v952_v14 = vmax.f32 %v17015_v10, 0.0  ;;  %v954_v50 = vmax.f32 %v17023_v22, 0.0  ;;  %v959_v57 = vmax.f32 %v17043_v45, 0.0  ;;  %v960_v31 = vmax.f32 %v17047_v47, 0.0 }
 0x254   :  { %23551 = vst [vmem:[#allocation19_spill] sm:$0xff] %v17260_v11  ;;  %23552 = vst [vmem:[#allocation28_spill] sm:$0xff] %v17264_v24  ;;  %v956_v11 = vmax.f32 %v17031_v43, 0.0  ;;  %v961_v63 = vmax.f32 %v17051_v44, 0.0  ;;  %v962_v10 = vmax.f32 %v17055_v46, 0.0  ;;  %v963_v20 = vmax.f32 %v17059_v55, 0.0 }
 0x255   :  { %v964_v22 = vmax.f32 %v17063_v60, 0.0  ;;  %v965_v52 = vmax.f32 %v17067_v54, 0.0  ;;  %v966_v43 = vmax.f32 %v17071_v58, 0.0  ;;  %v967_v17 = vmax.f32 %v17077_v8, 0.0 }
 0x256   :  { %v968_v5 = vmax.f32 %v17081_v2, 0.0  ;;  %v23553_v39 = vld [vmem:[#allocation9_spill] sm:$0xff]  ;;  %v23564_v44 = vshll.u32 %v17073_v36, 16  ;;  %v23565_v55 = vmax.f32 %v17003_v51, 0.0  ;;  %v17338_v54 = vmin.f32 %v950_v25, 6.0 }
 0x257   :  { %v23555_v35 = vld [vmem:[#allocation14_spill] sm:$0xff]  ;;  %v23556_v42 = vld [vmem:[#allocation16_spill] sm:$0xff]  ;;  %v17340_v58 = vmin.f32 %v951_v27, 6.0  ;;  %v17342_v8 = vmin.f32 %v952_v14, 6.0  ;;  %v17344_v2 = vmin.f32 %v953_v26, 6.0  ;;  %v17346_v45 = vmin.f32 %v954_v50, 6.0 }
 0x258   :  { %v23557_v33 = vld [vmem:[#allocation13_spill] sm:$0xff]  ;;  %v17332_v46 = vor.u32 %v23564_v44, %v23563_v19  ;;  %v17336_v60 = vmin.f32 %v23565_v55, 6.0  ;;  %v17348_v47 = vmin.f32 %v955_v3, 6.0  ;;  %v17350_v24 = vmin.f32 %v956_v11, 6.0 }
 0x259   :  { %v23558_v38 = vld [vmem:[#allocation15_spill] sm:$0xff]  ;;  %v23559_v40 = vld [vmem:[#allocation18_spill] sm:$0xff]  ;;  %v17352_v36 = vmin.f32 %v957_v53, 6.0  ;;  %v17354_v19 = vmin.f32 %v958_v37, 6.0  ;;  %v17356_v51 = vmin.f32 %v959_v57, 6.0  ;;  %v17358_v25 = vmin.f32 %v960_v31, 6.0 }
 0x25a   :  { %v23560_v7 = vld [vmem:[#allocation20_spill] sm:$0xff]  ;;  %v23561_v56 = vld [vmem:[#allocation17_spill] sm:$0xff]  ;;  %v17360_v27 = vmin.f32 %v961_v63, 6.0  ;;  %v17362_v14 = vmin.f32 %v962_v10, 6.0  ;;  %v17364_v26 = vmin.f32 %v963_v20, 6.0  ;;  %v17366_v50 = vmin.f32 %v964_v22, 6.0 }
 0x25b   :  { %v23562_v1 = vld [vmem:[#allocation19_spill] sm:$0xff]  ;;  %v17368_v3 = vmin.f32 %v965_v52, 6.0  ;;  %v17370_v11 = vmin.f32 %v966_v43, 6.0  ;;  %v17372_v53 = vmin.f32 %v967_v17, 6.0  ;;  %v17374_v37 = vmin.f32 %v968_v5, 6.0  ;;  %v15519_v57 = vld [vmem:[%s23146_s3 + $0x10] sm:$0xff]  }
 0x25c   :  { %v23566_v31 = vmax.f32 %v17085_v6, 0.0  ;;  %v23567_v10 = vmax.f32 %v17089_v15, 0.0  ;;  %v23568_v22 = vmax.f32 %v17093_v30, 0.0  ;;  %v23569_v43 = vmax.f32 %v17097_v21, 0.0  ;;  %14307 = vmatprep.subr.bf16.mxu0 %v15519_v57  ;;  %v15522_v21 = vld [vmem:[%s23146_s3 + $0x18] sm:$0xff]  }
 0x25d   :  { %v23570_v5 = vmax.f32 %v17102_v18, 0.0  ;;  %v23571_v6 = vmax.f32 %v17106_v29, 0.0  ;;  %v23572_v15 = vmax.f32 %v17110_v34, 0.0  ;;  %v23573_v30 = vmax.f32 %v17114_v28, 0.0  ;;  %14308 = vmatpush3.bf16.msra.mxu0 %v15519_v57 }
 0x25e   :  { %v17381_v63 = vmin.f32 %v23566_v31, 6.0  ;;  %v17385_v20 = vmin.f32 %v23567_v10, 6.0  ;;  %v17389_v52 = vmin.f32 %v23568_v22, 6.0  ;;  %v17393_v17 = vmin.f32 %v23569_v43, 6.0  ;;  %14309 = vmatprep.subr.bf16.mxu0 %v15522_v21 }
 0x25f   :  { %v17397_v44 = vmin.f32 %v23570_v5, 6.0  ;;  %v17401_v55 = vmin.f32 %v23571_v6, 6.0  ;;  %v17405_v31 = vmin.f32 %v23572_v15, 6.0  ;;  %v17409_v10 = vmin.f32 %v23573_v30, 6.0 }
 0x260   :  { %v23574_v18 = vmax.f32 %v17118_v49, 0.0  ;;  %v23575_v29 = vmax.f32 %v17124_v9, 0.0  ;;  %v23576_v34 = vmax.f32 %v17128_v41, 0.0  ;;  %v23577_v28 = vmax.f32 %v17138_v48, 0.0 }
 0x261   :  { %v23578_v15 = vmax.f32 %v17142_v16, 0.0  ;;  %v23579_v49 = vmax.f32 %v17146_v61, 0.0  ;;  %v23580_v9 = vmax.f32 %v17150_v4, 0.0  ;;  %v23581_v41 = vmax.f32 %v17155_v59, 0.0  ;;  %v23590_v59 = vld [vmem:[#allocation23_spill] sm:$0xff]  ;;  %14310 = vmatpush3.bf16.msra.mxu0 %v15522_v21 }
 0x262   :  { %v17416_v22 = vmin.f32 %v23574_v18, 6.0  ;;  %v17420_v43 = vmin.f32 %v23575_v29, 6.0  ;;  %v17424_v5 = vmin.f32 %v23576_v34, 6.0  ;;  %v17428_v6 = vmin.f32 %v23577_v28, 6.0  ;;  %v23619_v21 = vld [vmem:[#allocation11_spill] sm:$0xff] }
 0x263   :  { %v17432_v30 = vmin.f32 %v23578_v15, 6.0  ;;  %v17436_v18 = vmin.f32 %v23579_v49, 6.0  ;;  %v17440_v29 = vmin.f32 %v23580_v9, 6.0  ;;  %v17444_v34 = vmin.f32 %v23581_v41, 6.0 }
 0x264   :  { %v23583_v48 = vmax.f32 %v17159_v0, 0.0  ;;  %v23585_v16 = vmax.f32 %v17163_v13, 0.0  ;;  %v23587_v61 = vmax.f32 %v17167_v23, 0.0  ;;  %v23588_v4 = vmax.f32 %v17171_v62, 0.0 }
 0x265   :  { %23582 = vst [vmem:[#allocation9_spill] sm:$0xff] %v17444_v34  ;;  %v23591_v9 = vmax.f32 %v23590_v59, 0.0  ;;  %v23593_v34 = vld [vmem:[#allocation24_spill] sm:$0xff]  ;;  %v23600_v62 = vmax.f32 %v17196_v32, 0.0  ;;  %v2360_v32 = vld [vmem:[#allocation2 + $0x18c] sm:$0xf] }
 0x266   :  { %v17448_v57 = vmin.f32 %v23583_v48, 6.0  ;;  %v17452_v28 = vmin.f32 %v23585_v16, 6.0  ;;  %v17456_v15 = vmin.f32 %v23587_v61, 6.0  ;;  %v17460_v49 = vmin.f32 %v23588_v4, 6.0 }
 0x267   :  { %v17464_v41 = vmin.f32 %v23591_v9, 6.0  ;;  %v23594_v0 = vmax.f32 %v23593_v34, 0.0  ;;  %v17480_v4 = vmin.f32 %v23600_v62, 6.0 }
 0x268   :  { %23584 = vst [vmem:[#allocation14_spill] sm:$0xff] %v17448_v57  ;;  %23586 = vst [vmem:[#allocation16_spill] sm:$0xff] %v17452_v28  ;;  %v23596_v57 = vld [vmem:[#allocation25_spill] sm:$0xff]  ;;  %v23598_v28 = vld [vmem:[#allocation26_spill] sm:$0xff] }
 0x269   :  { %23589 = vst [vmem:[#allocation13_spill] sm:$0xff] %v17460_v49  ;;  %23592 = vst [vmem:[#allocation15_spill] sm:$0xff] %v17464_v41  ;;  %v17468_v48 = vmin.f32 %v23594_v0, 6.0  ;;  %v23597_v13 = vmax.f32 %v23596_v57, 0.0  ;;  %v23599_v23 = vmax.f32 %v23598_v28, 0.0  ;;  %v23602_v49 = vld [vmem:[#allocation30_spill] sm:$0xff] }
 0x26a   :  { %23601 = vst [vmem:[#allocation20_spill] sm:$0xff] %v17480_v4  ;;  %v23603_v59 = vmax.f32 %v23602_v49, 0.0  ;;  %v23605_v41 = vld [vmem:[#allocation27_spill] sm:$0xff]  ;;  %v23611_v28 = vmov 0 }
 0x26b   :  { %23595 = vst [vmem:[#allocation18_spill] sm:$0xff] %v17468_v48  ;;  %v17472_v16 = vmin.f32 %v23597_v13, 6.0  ;;  %v17476_v61 = vmin.f32 %v23599_v23, 6.0  ;;  %v23606_v34 = vmax.f32 %v23605_v41, 0.0  ;;  %v23608_v48 = vld [vmem:[#allocation8_spill] sm:$0xff]  ;;  %v23612_v28 = vsel %vm17496_vm9, 4294967295, %v23611_v28 }
 0x26c   :  { %v17484_v9 = vmin.f32 %v23603_v59, 6.0  ;;  %v23609_v57 = vmax.f32 %v23608_v48, 0.0  ;;  %23613 = vst [vmem:[#allocation23_spill] sm:$0xff] %v23612_v28  ;;  %v23614_v23 = vld [vmem:[#allocation10_spill] sm:$0xff]  ;;  %v23616_v59 = vld [vmem:[#allocation12_spill] sm:$0xff]  ;;  %v23618_v48 = vmax.f32 %v23553_v39, 0.0 }
 0x26d   :  { %v17488_v0 = vmin.f32 %v23606_v34, 6.0  ;;  %v23615_v49 = vmax.f32 %v23614_v23, 0.0  ;;  %v23617_v41 = vmax.f32 %v23616_v59, 0.0  ;;  %v23622_v23 = vmax.f32 %v23556_v42, 0.0 }
 0x26e   :  { %23604 = vst [vmem:[#allocation17_spill] sm:$0xff] %v17484_v9  ;;  %v17492_v13 = vmin.f32 %v23609_v57, 6.0  ;;  %v17510_v57 = vmin.f32 %v23618_v48, 6.0  ;;  %v23621_v9 = vmax.f32 %v23555_v35, 0.0  ;;  %v23623_v59 = vmax.f32 %v23557_v33, 0.0 }
 0x26f   :  { %23607 = vst [vmem:[#allocation19_spill] sm:$0xff] %v17488_v0  ;;  %v17502_v62 = vmin.f32 %v23615_v49, 6.0  ;;  %v17506_v34 = vmin.f32 %v23617_v41, 6.0  ;;  %v17522_v49 = vmin.f32 %v23622_v23, 6.0  ;;  %v23624_v39 = vmax.f32 %v17240_v12, 0.0 }
 0x270   :  { %23610 = vst [vmem:[#allocation22_spill] sm:$0xff] %v17492_v13  ;;  %v23620_v13 = vmax.f32 %v23619_v21, 0.0  ;;  %v17518_v4 = vmin.f32 %v23621_v9, 6.0  ;;  %v17526_v41 = vmin.f32 %v23623_v59, 6.0  ;;  %v23626_v21 = vmax.f32 %v23558_v38, 0.0 }
 0x271   :  { %v17530_v48 = vmin.f32 %v23624_v39, 6.0  ;;  %v23627_v35 = vmax.f32 %v23559_v40, 0.0  ;;  %v23628_v42 = vmax.f32 %v23560_v7, 0.0  ;;  %v23629_v33 = vmax.f32 %v23561_v56, 0.0 }
 0x272   :  { %v17514_v0 = vmin.f32 %v23620_v13, 6.0  ;;  %v17534_v13 = vmin.f32 %v23626_v21, 6.0  ;;  %v23630_v12 = vmax.f32 %v23562_v1, 0.0  ;;  %v2361_v40 = vsel %vm17496_vm9, %v17332_v46, %v2360_v32  ;;  %v23657_v32 = vld [vmem:[#allocation14_spill] sm:$0xff] }
 0x273   :  { %23625 = vst [vmem:[#allocation24_spill] sm:$0xff] %v17530_v48  ;;  %v17538_v9 = vmin.f32 %v23627_v35, 6.0  ;;  %v17542_v23 = vmin.f32 %v23628_v42, 6.0  ;;  %v17546_v59 = vmin.f32 %v23629_v33, 6.0  ;;  %v23631_v48 = vld [vmem:[#allocation28_spill] sm:$0xff]  ;;  %v17561_v7 = vpack.c.bf16 %v17336_v60, %v17336_v60  ;;  %v23661_v33 = vld [vmem:[#allocation13_spill] sm:$0xff] }
 0x274   :  { %v17550_v39 = vmin.f32 %v23630_v12, 6.0  ;;  %v23632_v38 = vmax.f32 %v23631_v48, 0.0  ;;  %v17565_v56 = vpack.c.bf16 %v17338_v54, %v17338_v54  ;;  %v17569_v1 = vpack.c.bf16 %v17340_v58, %v17340_v58  ;;  %2362 = vst [vmem:[#allocation2 + $0x18c] sm:$0xf] %v2361_v40  ;;  %v23659_v42 = vld [vmem:[#allocation16_spill] sm:$0xff]  ;;  %v23663_v12 = vld [vmem:[#allocation15_spill] sm:$0xff] }
 0x275   :  { %v17573_v48 = vpack.c.bf16 %v17342_v8, %v17342_v8  ;;  %v17577_v35 = vpack.c.bf16 %v17344_v2, %v17344_v2  ;;  %v17581_v46 = vpack.c.bf16 %v17346_v45, %v17346_v45  ;;  %v17585_v60 = vpack.c.bf16 %v17348_v47, %v17348_v47  ;;  %v23665_v40 = vld [vmem:[#allocation18_spill] sm:$0xff]  ;;  %v23669_v28 = vld [vmem:[#allocation17_spill] sm:$0xff] }
 0x276   :  { %v17554_v21 = vmin.f32 %v23632_v38, 6.0  ;;  %v17589_v54 = vpack.c.bf16 %v17350_v24, %v17350_v24  ;;  %v17593_v58 = vpack.c.bf16 %v17352_v36, %v17352_v36  ;;  %v17597_v8 = vpack.c.bf16 %v17354_v19, %v17354_v19 }
 0x277   :  { %23633 = vst [vmem:[#allocation25_spill] sm:$0xff] %v17573_v48  ;;  %23634 = vst [vmem:[#allocation26_spill] sm:$0xff] %v17577_v35  ;;  %v17601_v45 = vpack.c.bf16 %v17356_v51, %v17356_v51  ;;  %v17605_v47 = vpack.c.bf16 %v17358_v25, %v17358_v25  ;;  %v17609_v24 = vpack.c.bf16 %v17360_v27, %v17360_v27 }
 0x278   :  { %23635 = vst [vmem:[#allocation30_spill] sm:$0xff] %v17581_v46  ;;  %23636 = vst [vmem:[#allocation27_spill] sm:$0xff] %v17585_v60  ;;  %v17613_v2 = vpack.c.bf16 %v17362_v14, %v17362_v14  ;;  %v17617_v36 = vpack.c.bf16 %v17364_v26, %v17364_v26  ;;  %v17621_v19 = vpack.c.bf16 %v17366_v50, %v17366_v50 }
 0x279   :  { %23637 = vst [vmem:[#allocation8_spill] sm:$0xff] %v17589_v54  ;;  %v17625_v51 = vpack.c.bf16 %v17368_v3, %v17368_v3  ;;  %v17629_v25 = vpack.c.bf16 %v17370_v11, %v17370_v11  ;;  %v17633_v27 = vpack.c.bf16 %v17372_v53, %v17372_v53  ;;  %v17637_v14 = vpack.c.bf16 %v17374_v37, %v17374_v37 }
 0x27a   :  { %23638 = vst [vmem:[#allocation10_spill] sm:$0xff] %v17617_v36  ;;  %23639 = vst [vmem:[#allocation12_spill] sm:$0xff] %v17621_v19  ;;  %v17641_v26 = vpack.c.bf16 %v17381_v63, %v17381_v63  ;;  %v17645_v50 = vpack.c.bf16 %v17385_v20, %v17385_v20  ;;  %v17649_v3 = vpack.c.bf16 %v17389_v52, %v17389_v52 }
 0x27b   :  { %23640 = vst [vmem:[#allocation11_spill] sm:$0xff] %v17625_v51  ;;  %23641 = vst [vmem:[#allocation28_spill] sm:$0xff] %v17629_v25  ;;  %v17653_v11 = vpack.c.bf16 %v17393_v17, %v17393_v17  ;;  %v17657_v53 = vpack.c.bf16 %v17397_v44, %v17397_v44  ;;  %v17661_v37 = vpack.c.bf16 %v17401_v55, %v17401_v55 }
 0x27c   :  { %23642 = vst [vmem:[#allocation31_spill] sm:$0xff] %v17633_v27  ;;  %23643 = vst [vmem:[#allocation32_spill] sm:$0xff] %v17637_v14  ;;  %v17665_v63 = vpack.c.bf16 %v17405_v31, %v17405_v31  ;;  %v17669_v20 = vpack.c.bf16 %v17409_v10, %v17409_v10  ;;  %v17673_v52 = vpack.c.bf16 %v17416_v22, %v17416_v22 }
 0x27d   :  { %23644 = vst [vmem:[#allocation33_spill] sm:$0xff] %v17641_v26  ;;  %23645 = vst [vmem:[#allocation34_spill] sm:$0xff] %v17645_v50  ;;  %v17677_v17 = vpack.c.bf16 %v17420_v43, %v17420_v43  ;;  %v17681_v44 = vpack.c.bf16 %v17424_v5, %v17424_v5  ;;  %v17685_v55 = vpack.c.bf16 %v17428_v6, %v17428_v6  ;;  %v23655_v43 = vld [vmem:[#allocation9_spill] sm:$0xff] }
 0x27e   :  { %23646 = vst [vmem:[#allocation35_spill] sm:$0xff] %v17649_v3  ;;  %23647 = vst [vmem:[#allocation36_spill] sm:$0xff] %v17653_v11  ;;  %v17689_v31 = vpack.c.bf16 %v17432_v30, %v17432_v30  ;;  %v17693_v10 = vpack.c.bf16 %v17436_v18, %v17436_v18  ;;  %v17697_v22 = vpack.c.bf16 %v17440_v29, %v17440_v29 }
 0x27f   :  { %23648 = vst [vmem:[#allocation37_spill] sm:$0xff] %v17673_v52  ;;  %23649 = vst [vmem:[#allocation38_spill] sm:$0xff] %v17677_v17  ;;  %v17701_v5 = vpack.c.bf16 %v23655_v43, %v23655_v43  ;;  %v17705_v6 = vpack.c.bf16 %v23657_v32, %v23657_v32  ;;  %v17709_v30 = vpack.c.bf16 %v23659_v42, %v23659_v42  ;;  %v23668_v42 = vld [vmem:[#allocation20_spill] sm:$0xff] }
 0x280   :  { %23650 = vst [vmem:[#allocation39_spill] sm:$0xff] %v17681_v44  ;;  %23651 = vst [vmem:[#allocation40_spill] sm:$0xff] %v17685_v55  ;;  %v17713_v18 = vpack.c.bf16 %v17456_v15, %v17456_v15  ;;  %v17717_v29 = vpack.c.bf16 %v23661_v33, %v23661_v33  ;;  %v17721_v38 = vpack.c.bf16 %v23663_v12, %v23663_v12 }
 0x281   :  { %23652 = vst [vmem:[#allocation41_spill] sm:$0xff] %v17689_v31  ;;  %23653 = vst [vmem:[#allocation42_spill] sm:$0xff] %v17693_v10  ;;  %v17725_v43 = vpack.c.bf16 %v23665_v40, %v23665_v40  ;;  %v17729_v32 = vpack.c.bf16 %v17472_v16, %v17472_v16  ;;  %v17733_v15 = vpack.c.bf16 %v17476_v61, %v17476_v61 }
 0x282   :  { %23654 = vst [vmem:[#allocation43_spill] sm:$0xff] %v17697_v22  ;;  %23656 = vst [vmem:[#allocation9_spill] sm:$0xff] %v17701_v5  ;;  %v17737_v33 = vpack.c.bf16 %v23668_v42, %v23668_v42  ;;  %v17741_v12 = vpack.c.bf16 %v23669_v28, %v23669_v28  ;;  %v17753_v61 = vpack.c.bf16 %v17502_v62, %v17502_v62 }
 0x283   :  { %23658 = vst [vmem:[#allocation14_spill] sm:$0xff] %v17705_v6  ;;  %23660 = vst [vmem:[#allocation16_spill] sm:$0xff] %v17709_v30  ;;  %v17757_v42 = vpack.c.bf16 %v17506_v34, %v17506_v34  ;;  %v17761_v28 = vpack.c.bf16 %v17510_v57, %v17510_v57  ;;  %v17773_v62 = vpack.c.bf16 %v17522_v49, %v17522_v49 }
 0x284   :  { %23662 = vst [vmem:[#allocation13_spill] sm:$0xff] %v17717_v29  ;;  %23664 = vst [vmem:[#allocation15_spill] sm:$0xff] %v17721_v38  ;;  %v23671_v38 = vld [vmem:[#allocation19_spill] sm:$0xff]  ;;  %v17777_v34 = vpack.c.bf16 %v17526_v41, %v17526_v41  ;;  %v17793_v49 = vpack.c.bf16 %v17542_v23, %v17542_v23  ;;  %v17797_v41 = vpack.c.bf16 %v17546_v59, %v17546_v59  ;;  %v23699_v59 = vshrl.u32 %v17661_v37, 16 }
 0x285   :  { %23666 = vst [vmem:[#allocation18_spill] sm:$0xff] %v17725_v43  ;;  %23667 = vst [vmem:[#allocation44_spill] sm:$0xff] %v17733_v15  ;;  %v17745_v40 = vpack.c.bf16 %v23671_v38, %v23671_v38  ;;  %v23673_v43 = vld [vmem:[#allocation22_spill] sm:$0xff]  ;;  %v17765_v38 = vpack.c.bf16 %v17514_v0, %v17514_v0  ;;  %v17785_v0 = vpack.c.bf16 %v17534_v13, %v17534_v13  ;;  %v23707_v23 = vshrl.u32 %v17573_v48, 16 }
 0x286   :  { %23670 = vst [vmem:[#allocation20_spill] sm:$0xff] %v17741_v12  ;;  %v17749_v16 = vpack.c.bf16 %v23673_v43, %v23673_v43  ;;  %23675 = vst [vmem:[#allocation22_spill] sm:$0xff] %v17753_v61  ;;  %v17769_v43 = vpack.c.bf16 %v17518_v4, %v17518_v4  ;;  %v17789_v4 = vpack.c.bf16 %v17538_v9, %v17538_v9  ;;  %v23705_v9 = vshrl.u32 %v17569_v1, 16 }
 0x287   :  { %23672 = vst [vmem:[#allocation17_spill] sm:$0xff] %v17745_v40  ;;  %23676 = vst [vmem:[#allocation45_spill] sm:$0xff] %v17757_v42  ;;  %v23682_v42 = vld [vmem:[#allocation24_spill] sm:$0xff]  ;;  %v17805_v13 = vpack.c.bf16 %v17554_v21, %v17554_v21  ;;  %v2234_v21 = vld [vmem:[#allocation2 + $0x9c] sm:$0xf]  ;;  %v23714_v48 = vshrl.u32 %v17585_v60, 16 }
 0x288   :  { %23674 = vst [vmem:[#allocation19_spill] sm:$0xff] %v17749_v16  ;;  %23677 = vst [vmem:[#allocation46_spill] sm:$0xff] %v17761_v28  ;;  %v17781_v57 = vpack.c.bf16 %v23682_v42, %v23682_v42  ;;  %v17801_v42 = vpack.c.bf16 %v17550_v39, %v17550_v39  ;;  %v23701_v39 = vshrl.u32 %v17561_v7, 16 }
 0x289   :  { %23678 = vst [vmem:[#allocation47_spill] sm:$0xff] %v17765_v38  ;;  %23679 = vst [vmem:[#allocation48_spill] sm:$0xff] %v17769_v43 }
 0x28a   :  { %23680 = vst [vmem:[#allocation49_spill] sm:$0xff] %v17773_v62  ;;  %23681 = vst [vmem:[#allocation50_spill] sm:$0xff] %v17777_v34 }
 0x28b   :  { %23683 = vst [vmem:[#allocation24_spill] sm:$0xff] %v17781_v57  ;;  %23684 = vst [vmem:[#allocation51_spill] sm:$0xff] %v17785_v0  ;;  %v23690_v22 = vld [vmem:[#allocation15_spill] sm:$0xff]  ;;  %v23703_v0 = vshrl.u32 %v17565_v56, 16  ;;  %v23712_v57 = vshrl.u32 %v17581_v46, 16 }
 0x28c   :  { %23685 = vst [vmem:[#allocation52_spill] sm:$0xff] %v17789_v4  ;;  %23686 = vst [vmem:[#allocation53_spill] sm:$0xff] %v17793_v49  ;;  %v23691_v5 = vld [vmem:[#allocation18_spill] sm:$0xff]  ;;  %v23698_v49 = vshrl.u32 %v17657_v53, 16  ;;  %v17947_v4 = vrot.slane %v23705_v9, 7 }
 0x28d   :  { %23687 = vst [vmem:[#allocation54_spill] sm:$0xff] %v17797_v41  ;;  %23688 = vst [vmem:[#allocation55_spill] sm:$0xff] %v17801_v42  ;;  %v17935_v41 = vrot.slane %v23699_v59, 7  ;;  %v17939_v42 = vrot.slane %v23701_v39, 7  ;;  %v17943_v62 = vrot.slane %v23703_v0, 7  ;;  %v23709_v59 = vshrl.u32 %v17577_v35, 16 }
 0x28e   :  { %23689 = vst [vmem:[#allocation56_spill] sm:$0xff] %v17805_v13  ;;  %v23692_v15 = vld [vmem:[#allocation45_spill] sm:$0xff]  ;;  %v1714_v28 = vrot.slane %v23698_v49, 7  ;;  %23706 = vst [vmem:[#allocation60_spill] sm:$0xff] %v17947_v4  ;;  %v17951_v49 = vrot.slane %v23707_v23, 7  ;;  %v23710_v39 = vshll.u32 %v17657_v53, 16 }
 0x28f   :  { %23700 = vst [vmem:[#allocation57_spill] sm:$0xff] %v17935_v41  ;;  %23702 = vst [vmem:[#allocation58_spill] sm:$0xff] %v17939_v42  ;;  %v17955_v13 = vrot.slane %v23709_v59, 7  ;;  %v23711_v0 = vshll.u32 %v17661_v37, 16  ;;  %v17964_v9 = vrot.slane %v23712_v57, 7  ;;  %v17968_v23 = vrot.slane %v23714_v48, 7 }
 0x290   :  { %23704 = vst [vmem:[#allocation59_spill] sm:$0xff] %v17943_v62  ;;  %23708 = vst [vmem:[#allocation61_spill] sm:$0xff] %v17951_v49  ;;  %v1717_v34 = vor.u32 %v23710_v39, %v1714_v28  ;;  %v1718_v43 = vrot.slane %v1714_v28, 4  ;;  %v23716_v35 = vshrl.u32 %v17589_v54, 16  ;;  %v23718_v53 = vshrl.u32 %v17593_v58, 16 }
 0x291   :  { %v1725_v38 = vor.u32 %v23711_v0, %v17935_v41  ;;  %23713 = vst [vmem:[#allocation62_spill] sm:$0xff] %v17964_v9  ;;  %23715 = vst [vmem:[#allocation63_spill] sm:$0xff] %v17968_v23  ;;  %v23719_v28 = vshrl.u32 %v17597_v8, 16  ;;  %v23723_v48 = vshrl.u32 %v17601_v45, 16  ;;  %v23735_v0 = vshrl.u32 %v17633_v27, 16 }
 0x292   :  { %v17972_v59 = vrot.slane %v23716_v35, 7  ;;  %v17976_v39 = vrot.slane %v23718_v53, 7  ;;  %v2235_v60 = vsel %vm17496_vm9, %v1717_v34, %v2234_v21  ;;  %v23724_v35 = vshrl.u32 %v17605_v47, 16 }
 0x293   :  { %v17980_v37 = vrot.slane %v23719_v28, 7  ;;  %v1726_v57 = vsel %vm17132_vm8, %v1718_v43, %v1725_v38  ;;  %v17988_v23 = vrot.slane %v23723_v48, 7  ;;  %2236 = vst [vmem:[#allocation2 + $0x9c] sm:$0xf] %v2235_v60  ;;  %v23726_v53 = vshrl.u32 %v17609_v24, 16 }
 0x294   :  { %23717 = vst [vmem:[#allocation64_spill] sm:$0xff] %v17972_v59  ;;  %v17992_v54 = vrot.slane %v23724_v35, 7  ;;  %2237 = vst.msk [vmem:[#allocation2 + $0xa0] sm:$0xf] %vm1077_vm7, %v1726_v57  ;;  %v23727_v38 = vshrl.u32 %v17613_v2, 16  ;;  %v23729_v34 = vshrl.u32 %v17617_v36, 16 }
 0x295   :  { %23720 = vst [vmem:[#allocation65_spill] sm:$0xff] %v17980_v37  ;;  %v17997_v28 = vrot.slane %v23726_v53, 7  ;;  %v23730_v48 = vshrl.u32 %v17621_v19, 16  ;;  %v23732_v60 = vshrl.u32 %v17625_v51, 16  ;;  %v23733_v57 = vshrl.u32 %v17629_v25, 16 }
 0x296   :  { %23725 = vst [vmem:[#allocation66_spill] sm:$0xff] %v17992_v54  ;;  %v18001_v43 = vrot.slane %v23727_v38, 7  ;;  %v18005_v21 = vrot.slane %v23729_v34, 7  ;;  %v18021_v38 = vrot.slane %v23735_v0, 7  ;;  %v23736_v36 = vshrl.u32 %v17637_v14, 16 }
 0x297   :  { %v18009_v46 = vrot.slane %v23730_v48, 7  ;;  %v18013_v35 = vrot.slane %v23732_v60, 7  ;;  %v18017_v53 = vrot.slane %v23733_v57, 7  ;;  %v23738_v19 = vshrl.u32 %v17641_v26, 16 }
 0x298   :  { %23728 = vst [vmem:[#allocation67_spill] sm:$0xff] %v18001_v43  ;;  %v18025_v34 = vrot.slane %v23736_v36, 7  ;;  %v23739_v51 = vshrl.u32 %v17645_v50, 16  ;;  %v23741_v25 = vshrl.u32 %v17649_v3, 16  ;;  %v23742_v27 = vshrl.u32 %v17653_v11, 16 }
 0x299   :  { %23731 = vst [vmem:[#allocation68_spill] sm:$0xff] %v18009_v46  ;;  %23734 = vst [vmem:[#allocation69_spill] sm:$0xff] %v18017_v53  ;;  %v18029_v48 = vrot.slane %v23738_v19, 7  ;;  %v23744_v36 = vshrl.u32 %v17665_v63, 16  ;;  %v23745_v19 = vshrl.u32 %v17669_v20, 16  ;;  %v23752_v14 = vshrl.u32 %v17685_v55, 16 }
 0x29a   :  { %23737 = vst [vmem:[#allocation70_spill] sm:$0xff] %v18025_v34  ;;  %v18033_v60 = vrot.slane %v23739_v51, 7  ;;  %v18037_v57 = vrot.slane %v23741_v25, 7  ;;  %v18041_v0 = vrot.slane %v23742_v27, 7  ;;  %v23747_v51 = vshrl.u32 %v17673_v52, 16 }
 0x29b   :  { %v18046_v34 = vrot.slane %v23744_v36, 7  ;;  %v18050_v26 = vrot.slane %v23745_v19, 7  ;;  %v23749_v25 = vshrl.u32 %v17677_v17, 16  ;;  %v23751_v27 = vshrl.u32 %v17681_v44, 16 }
 0x29c   :  { %23740 = vst [vmem:[#allocation71_spill] sm:$0xff] %v18033_v60  ;;  %23743 = vst [vmem:[#allocation72_spill] sm:$0xff] %v18041_v0  ;;  %v18054_v50 = vrot.slane %v23747_v51, 7  ;;  %v18066_v36 = vrot.slane %v23752_v14, 7  ;;  %v23754_v41 = vshrl.u32 %v17689_v31, 16  ;;  %v23755_v52 = vshrl.u32 %v17693_v10, 16 }
 0x29d   :  { %23746 = vst [vmem:[#allocation73_spill] sm:$0xff] %v18050_v26  ;;  %v18058_v3 = vrot.slane %v23749_v25, 7  ;;  %v18062_v11 = vrot.slane %v23751_v27, 7  ;;  %v23762_v55 = vshrl.u32 %v17705_v6, 16  ;;  %v23763_v31 = vshrl.u32 %v17709_v30, 16 }
 0x29e   :  { %23748 = vst [vmem:[#allocation74_spill] sm:$0xff] %v18054_v50  ;;  %23753 = vst [vmem:[#allocation76_spill] sm:$0xff] %v18066_v36  ;;  %v18070_v19 = vrot.slane %v23754_v41, 7  ;;  %v18074_v51 = vrot.slane %v23755_v52, 7  ;;  %v23757_v50 = vld [vmem:[#allocation43_spill] sm:$0xff]  ;;  %v23765_v10 = vshrl.u32 %v17713_v18, 16 }
 0x29f   :  { %23750 = vst [vmem:[#allocation75_spill] sm:$0xff] %v18058_v3  ;;  %v23758_v17 = vshrl.u32 %v23757_v50, 16  ;;  %v23759_v3 = vld [vmem:[#allocation9_spill] sm:$0xff]  ;;  %v18086_v14 = vrot.slane %v23762_v55, 7  ;;  %v18090_v41 = vrot.slane %v23763_v31, 7  ;;  %v23766_v50 = vshrl.u32 %v17717_v29, 16 }
 0x2a0   :  { %23756 = vst [vmem:[#allocation77_spill] sm:$0xff] %v18074_v51  ;;  %v23760_v44 = vshrl.u32 %v23759_v3, 16  ;;  %v18094_v52 = vrot.slane %v23765_v10, 7  ;;  %v23768_v3 = vshrl.u32 %v23690_v22, 16  ;;  %v23770_v55 = vshrl.u32 %v23691_v5, 16 }
 0x2a1   :  { %v18078_v25 = vrot.slane %v23758_v17, 7  ;;  %23764 = vst [vmem:[#allocation79_spill] sm:$0xff] %v18090_v41  ;;  %v18098_v17 = vrot.slane %v23766_v50, 7  ;;  %v23772_v31 = vshll.u32 %v17561_v7, 16  ;;  %v23774_v10 = vshll.u32 %v17565_v56, 16 }
 0x2a2   :  { %v18082_v27 = vrot.slane %v23760_v44, 7  ;;  %v18102_v44 = vrot.slane %v23768_v3, 7  ;;  %v18106_v6 = vrot.slane %v23770_v55, 7  ;;  %v23776_v50 = vshll.u32 %v17569_v1, 16  ;;  %v23779_v55 = vld [vmem:[#allocation44_spill] sm:$0xff] }
 0x2a3   :  { %23767 = vst [vmem:[#allocation80_spill] sm:$0xff] %v18098_v17  ;;  %v18111_v30 = vor.u32 %v23772_v31, %v17939_v42  ;;  %v18116_v29 = vor.u32 %v23774_v10, %v17943_v62  ;;  %v23778_v22 = vshrl.u32 %v17729_v32, 16  ;;  %v23782_v7 = vshrl.u32 %v17737_v33, 16  ;;  %v23835_v62 = vld [vmem:[#allocation63_spill] sm:$0xff] }
 0x2a4   :  { %23761 = vst [vmem:[#allocation78_spill] sm:$0xff] %v18082_v27  ;;  %23769 = vst [vmem:[#allocation81_spill] sm:$0xff] %v18102_v44  ;;  %v15517_v27 = vld [vmem:[#allocation2 + $0x9c] sm:$0xff]   ;;  %v18121_v3 = vor.u32 %v23776_v50, %v17947_v4  ;;  %v23783_v56 = vshrl.u32 %v17741_v12, 16  ;;  %v23785_v1 = vshrl.u32 %v17745_v40, 16 }
 0x2a5   :  { %23771 = vst [vmem:[#allocation82_spill] sm:$0xff] %v18106_v6  ;;  %23773 = vst [vmem:[#allocation83_spill] sm:$0xff] %v18111_v30  ;;  %v18125_v5 = vrot.slane %v23778_v22, 7  ;;  %v23780_v6 = vshrl.u32 %v23779_v55, 16  ;;  %v18133_v31 = vrot.slane %v23782_v7, 7  ;;  %14539 = vmatprep.mubr.msk.bf16.mxu1 %vm478_vm5, %v15517_v27  ;;  %v23787_v22 = vshrl.u32 %v17749_v16, 16 }
 0x2a6   :  { %23775 = vst [vmem:[#allocation84_spill] sm:$0xff] %v18116_v29  ;;  %23777 = vst [vmem:[#allocation85_spill] sm:$0xff] %v18121_v3  ;;  %v18137_v10 = vrot.slane %v23783_v56, 7  ;;  %v18142_v50 = vrot.slane %v23785_v1, 7  ;;  %v23791_v7 = vshrl.u32 %v23692_v15, 16  ;;  %v23793_v56 = vld [vmem:[#allocation46_spill] sm:$0xff] }
 0x2a7   :  { %v18129_v44 = vrot.slane %v23780_v6, 7  ;;  %v18146_v3 = vrot.slane %v23787_v22, 7  ;;  %v23789_v6 = vshrl.u32 %v17753_v61, 16  ;;  %v23794_v12 = vshrl.u32 %v23793_v56, 16  ;;  %v23796_v27 = vld [vmem:[#allocation47_spill] sm:$0xff] }
 0x2a8   :  { %23784 = vst [vmem:[#allocation86_spill] sm:$0xff] %v18137_v10  ;;  %23786 = vst [vmem:[#allocation87_spill] sm:$0xff] %v18142_v50  ;;  %v18154_v29 = vrot.slane %v23791_v7, 7  ;;  %v23797_v40 = vshrl.u32 %v23796_v27, 16  ;;  %v23799_v50 = vld [vmem:[#allocation48_spill] sm:$0xff] }
 0x2a9   :  { %23781 = vst [vmem:[#allocation44_spill] sm:$0xff] %v18129_v44  ;;  %23788 = vst [vmem:[#allocation88_spill] sm:$0xff] %v18146_v3  ;;  %v18150_v30 = vrot.slane %v23789_v6, 7  ;;  %v18158_v10 = vrot.slane %v23794_v12, 7  ;;  %v23800_v16 = vshrl.u32 %v23799_v50, 16  ;;  %v23802_v3 = vld [vmem:[#allocation49_spill] sm:$0xff] }
 0x2aa   :  { %23792 = vst [vmem:[#allocation90_spill] sm:$0xff] %v18154_v29  ;;  %v18162_v1 = vrot.slane %v23797_v40, 7  ;;  %v23803_v61 = vshrl.u32 %v23802_v3, 16  ;;  %v23808_v29 = vld [vmem:[#allocation24_spill] sm:$0xff] }
 0x2ab   :  { %23790 = vst [vmem:[#allocation89_spill] sm:$0xff] %v18150_v30  ;;  %23795 = vst [vmem:[#allocation91_spill] sm:$0xff] %v18158_v10  ;;  %v18166_v22 = vrot.slane %v23800_v16, 7  ;;  %v23805_v30 = vld [vmem:[#allocation50_spill] sm:$0xff]  ;;  %v23809_v56 = vshrl.u32 %v23808_v29, 16  ;;  %v23811_v10 = vld [vmem:[#allocation51_spill] sm:$0xff] }
 0x2ac   :  { %23798 = vst [vmem:[#allocation92_spill] sm:$0xff] %v18162_v1  ;;  %v18170_v6 = vrot.slane %v23803_v61, 7  ;;  %v23806_v15 = vshrl.u32 %v23805_v30, 16  ;;  %v23812_v27 = vshrl.u32 %v23811_v10, 16  ;;  %v23814_v1 = vld [vmem:[#allocation52_spill] sm:$0xff] }
 0x2ad   :  { %23801 = vst [vmem:[#allocation93_spill] sm:$0xff] %v18166_v22  ;;  %v18178_v12 = vrot.slane %v23809_v56, 7  ;;  %v23815_v50 = vshrl.u32 %v23814_v1, 16  ;;  %v23817_v22 = vld [vmem:[#allocation53_spill] sm:$0xff]  ;;  %v23833_v1 = vld [vmem:[#allocation30_spill] sm:$0xff] }
 0x2ae   :  { %23804 = vst [vmem:[#allocation94_spill] sm:$0xff] %v18170_v6  ;;  %v18174_v7 = vrot.slane %v23806_v15, 7  ;;  %v18182_v40 = vrot.slane %v23812_v27, 7  ;;  %v23818_v3 = vshrl.u32 %v23817_v22, 16  ;;  %v23820_v6 = vld [vmem:[#allocation54_spill] sm:$0xff]  ;;  %v23834_v42 = vshll.u32 %v23833_v1, 16 }
 0x2af   :  { %23810 = vst [vmem:[#allocation96_spill] sm:$0xff] %v18178_v12  ;;  %v18186_v16 = vrot.slane %v23815_v50, 7  ;;  %v23821_v30 = vshrl.u32 %v23820_v6, 16  ;;  %v23826_v12 = vld [vmem:[#allocation56_spill] sm:$0xff] }
 0x2b0   :  { %23807 = vst [vmem:[#allocation95_spill] sm:$0xff] %v18174_v7  ;;  %23813 = vst [vmem:[#allocation97_spill] sm:$0xff] %v18182_v40  ;;  %v18190_v61 = vrot.slane %v23818_v3, 7  ;;  %v23823_v7 = vld [vmem:[#allocation55_spill] sm:$0xff]  ;;  %v23827_v10 = vshrl.u32 %v23826_v12, 16  ;;  %v23828_v3 = vld [vmem:[#allocation25_spill] sm:$0xff]  ;;  %v18222_v50 = vor.u32 %v23834_v42, %v17964_v9 }
 0x2b1   :  { %23816 = vst [vmem:[#allocation98_spill] sm:$0xff] %v18186_v16  ;;  %v18194_v15 = vrot.slane %v23821_v30, 7  ;;  %v23824_v29 = vshrl.u32 %v23823_v7, 16  ;;  %v23841_v42 = vshll.u32 %v17593_v58, 16  ;;  %v23846_v58 = vshll.u32 %v17605_v47, 16  ;;  %v23850_v47 = vld [vmem:[#allocation10_spill] sm:$0xff] }
 0x2b2   :  { %23819 = vst [vmem:[#allocation99_spill] sm:$0xff] %v18190_v61  ;;  %v18202_v27 = vrot.slane %v23827_v10, 7  ;;  %v23829_v61 = vshll.u32 %v23828_v3, 16  ;;  %v23836_v3 = vld [vmem:[#allocation27_spill] sm:$0xff]  ;;  %v2238_v22 = vld [vmem:[#allocation2 + $0xa4] sm:$0x1] }
 0x2b3   :  { %23822 = vst [vmem:[#allocation100_spill] sm:$0xff] %v18194_v15  ;;  %v18198_v56 = vrot.slane %v23824_v29, 7  ;;  %v23830_v29 = vld [vmem:[#allocation26_spill] sm:$0xff]  ;;  %v18240_v1 = vor.u32 %v23841_v42, %v17976_v39  ;;  %v18258_v42 = vor.u32 %v23846_v58, %v17992_v54  ;;  %v23851_v58 = vshll.u32 %v23850_v47, 16  ;;  %v23858_v47 = vld [vmem:[#allocation28_spill] sm:$0xff]  ;;  %v23941_v9 = vld [vmem:[#allocation91_spill] sm:$0xff] }
 0x2b4   :  { %v18210_v6 = vor.u32 %v23829_v61, %v17951_v49  ;;  %v23831_v7 = vshll.u32 %v23830_v29, 16  ;;  %v23837_v61 = vshll.u32 %v23836_v3, 16  ;;  %v23839_v29 = vld [vmem:[#allocation8_spill] sm:$0xff]  ;;  %v23843_v3 = vshll.u32 %v17597_v8, 16 }
 0x2b5   :  { %23825 = vst [vmem:[#allocation101_spill] sm:$0xff] %v18198_v56  ;;  %23842 = vst [vmem:[#allocation26_spill] sm:$0xff] %v18240_v1  ;;  %v23847_v8 = vshll.u32 %v17609_v24, 16  ;;  %v23853_v24 = vld [vmem:[#allocation12_spill] sm:$0xff] }
 0x2b6   :  { %v18216_v56 = vor.u32 %v23831_v7, %v17955_v13  ;;  %v18228_v4 = vor.u32 %v23837_v61, %v23835_v62  ;;  %v23840_v7 = vshll.u32 %v23839_v29, 16  ;;  %v18246_v61 = vor.u32 %v23843_v3, %v17980_v37  ;;  %v23983_v30 = vld [vmem:[#allocation84_spill] sm:$0xff] }
 0x2b7   :  { %v23844_v29 = vshll.u32 %v17601_v45, 16  ;;  %v18264_v3 = vor.u32 %v23847_v8, %v17997_v28  ;;  %v23849_v45 = vshll.u32 %v17613_v2, 16  ;;  %v23854_v8 = vshll.u32 %v23853_v24, 16  ;;  %v23855_v2 = vld [vmem:[#allocation11_spill] sm:$0xff]  ;;  %v23987_v10 = vld [vmem:[#allocation60_spill] sm:$0xff] }
 0x2b8   :  { %23832 = vst [vmem:[#allocation56_spill] sm:$0xff] %v18216_v56  ;;  %23838 = vst [vmem:[#allocation25_spill] sm:$0xff] %v18228_v4  ;;  %v18234_v56 = vor.u32 %v23840_v7, %v17972_v59  ;;  %v23860_v24 = vld [vmem:[#allocation31_spill] sm:$0xff]  ;;  %v23933_v59 = vld [vmem:[#allocation89_spill] sm:$0xff] }
 0x2b9   :  { %v18252_v7 = vor.u32 %v23844_v29, %v17988_v23  ;;  %23848 = vst [vmem:[#allocation63_spill] sm:$0xff] %v18264_v3  ;;  %v18270_v29 = vor.u32 %v23849_v45, %v18001_v43  ;;  %v18282_v3 = vor.u32 %v23854_v8, %v18009_v46  ;;  %v23856_v45 = vshll.u32 %v23855_v2, 16  ;;  %v23863_v46 = vld [vmem:[#allocation70_spill] sm:$0xff]  ;;  %v23864_v2 = vld [vmem:[#allocation32_spill] sm:$0xff] }
 0x2ba   :  { %v23861_v8 = vshll.u32 %v23860_v24, 16  ;;  %v23869_v24 = vld [vmem:[#allocation34_spill] sm:$0xff] }
 0x2bb   :  { %23845 = vst [vmem:[#allocation30_spill] sm:$0xff] %v18252_v7  ;;  %v18276_v7 = vor.u32 %v23851_v58, %v18005_v21  ;;  %v18288_v54 = vor.u32 %v23856_v45, %v18013_v35  ;;  %v23859_v58 = vshll.u32 %v23858_v47, 16  ;;  %v23865_v45 = vshll.u32 %v23864_v2, 16  ;;  %v23866_v47 = vld [vmem:[#allocation33_spill] sm:$0xff]  ;;  %v23871_v2 = vld [vmem:[#allocation35_spill] sm:$0xff] }
 0x2bc   :  { %v18300_v43 = vor.u32 %v23861_v8, %v18021_v38  ;;  %v23870_v8 = vshll.u32 %v23869_v24, 16  ;;  %v23876_v24 = vshll.u32 %v17665_v63, 16  ;;  %v23884_v63 = vld [vmem:[#allocation38_spill] sm:$0xff] }
 0x2bd   :  { %23852 = vst [vmem:[#allocation27_spill] sm:$0xff] %v18276_v7  ;;  %23857 = vst [vmem:[#allocation8_spill] sm:$0xff] %v18288_v54  ;;  %v18294_v7 = vor.u32 %v23859_v58, %v18017_v53  ;;  %v18306_v54 = vor.u32 %v23865_v45, %v23863_v46  ;;  %v23867_v58 = vshll.u32 %v23866_v47, 16  ;;  %v23872_v45 = vshll.u32 %v23871_v2, 16  ;;  %v23874_v47 = vld [vmem:[#allocation36_spill] sm:$0xff] }
 0x2be   :  { %23862 = vst [vmem:[#allocation10_spill] sm:$0xff] %v18300_v43  ;;  %v18318_v43 = vor.u32 %v23870_v8, %v18033_v60  ;;  %v18336_v8 = vor.u32 %v23876_v24, %v18046_v34  ;;  %v23878_v2 = vshll.u32 %v17669_v20, 16  ;;  %v23885_v24 = vshll.u32 %v23884_v63, 16  ;;  %v23886_v20 = vld [vmem:[#allocation39_spill] sm:$0xff]  ;;  %v23891_v63 = vld [vmem:[#allocation41_spill] sm:$0xff] }
 0x2bf   :  { %v18312_v37 = vor.u32 %v23867_v58, %v18029_v48  ;;  %v18324_v53 = vor.u32 %v23872_v45, %v18037_v57  ;;  %v23875_v58 = vshll.u32 %v23874_v47, 16  ;;  %v23880_v47 = vld [vmem:[#allocation37_spill] sm:$0xff] }
 0x2c0   :  { %23877 = vst [vmem:[#allocation28_spill] sm:$0xff] %v18336_v8  ;;  %v18342_v45 = vor.u32 %v23878_v2, %v18050_v26  ;;  %v23887_v2 = vshll.u32 %v23886_v20, 16  ;;  %v23894_v20 = vld [vmem:[#allocation42_spill] sm:$0xff] }
 0x2c1   :  { %23868 = vst [vmem:[#allocation12_spill] sm:$0xff] %v18312_v37  ;;  %23873 = vst [vmem:[#allocation11_spill] sm:$0xff] %v18324_v53  ;;  %v18330_v37 = vor.u32 %v23875_v58, %v18041_v0  ;;  %v23879_v53 = vld [vmem:[#allocation74_spill] sm:$0xff]  ;;  %v23881_v58 = vshll.u32 %v23880_v47, 16  ;;  %v23883_v0 = vld [vmem:[#allocation75_spill] sm:$0xff] }
 0x2c2   :  { %v18354_v8 = vor.u32 %v23885_v24, %v23883_v0  ;;  %v18360_v46 = vor.u32 %v23887_v2, %v18062_v11  ;;  %v23889_v47 = vld [vmem:[#allocation40_spill] sm:$0xff]  ;;  %v23892_v24 = vshll.u32 %v23891_v63, 16  ;;  %v23895_v2 = vshll.u32 %v23894_v20, 16  ;;  %v23900_v63 = vld [vmem:[#allocation9_spill] sm:$0xff]  ;;  %v23902_v20 = vld [vmem:[#allocation14_spill] sm:$0xff] }
 0x2c3   :  { %v18348_v60 = vor.u32 %v23881_v58, %v23879_v53  ;;  %v23890_v58 = vshll.u32 %v23889_v47, 16  ;;  %v23896_v47 = vld [vmem:[#allocation43_spill] sm:$0xff] }
 0x2c4   :  { %23888 = vst [vmem:[#allocation32_spill] sm:$0xff] %v18360_v46  ;;  %v18372_v26 = vor.u32 %v23892_v24, %v18070_v19  ;;  %v18378_v46 = vor.u32 %v23895_v2, %v18074_v51  ;;  %v23901_v24 = vshll.u32 %v23900_v63, 16  ;;  %v23903_v2 = vshll.u32 %v23902_v20, 16  ;;  %v23909_v20 = vld [vmem:[#allocation13_spill] sm:$0xff] }
 0x2c5   :  { %23882 = vst [vmem:[#allocation31_spill] sm:$0xff] %v18348_v60  ;;  %v18366_v60 = vor.u32 %v23890_v58, %v18066_v36  ;;  %v23897_v58 = vshll.u32 %v23896_v47, 16  ;;  %v23899_v36 = vld [vmem:[#allocation78_spill] sm:$0xff]  ;;  %v23905_v47 = vld [vmem:[#allocation16_spill] sm:$0xff]  ;;  %v23907_v63 = vshll.u32 %v17713_v18, 16 }
 0x2c6   :  { %23893 = vst [vmem:[#allocation33_spill] sm:$0xff] %v18372_v26  ;;  %v18390_v26 = vor.u32 %v23901_v24, %v23899_v36  ;;  %v18396_v1 = vor.u32 %v23903_v2, %v18086_v14  ;;  %v23910_v2 = vshll.u32 %v23909_v20, 16  ;;  %v23911_v36 = vld [vmem:[#allocation81_spill] sm:$0xff]  ;;  %v23916_v18 = vld [vmem:[#allocation18_spill] sm:$0xff]  ;;  %v23918_v20 = vshll.u32 %v17729_v32, 16  ;;  %v23924_v32 = vld [vmem:[#allocation20_spill] sm:$0xff] }
 0x2c7   :  { %v18384_v0 = vor.u32 %v23897_v58, %v18078_v25  ;;  %v23906_v58 = vshll.u32 %v23905_v47, 16  ;;  %v18408_v24 = vor.u32 %v23907_v63, %v18094_v52  ;;  %v23912_v47 = vld [vmem:[#allocation15_spill] sm:$0xff]  ;;  %v23917_v63 = vshll.u32 %v23916_v18, 16 }
 0x2c8   :  { %23904 = vst [vmem:[#allocation35_spill] sm:$0xff] %v18396_v1  ;;  %v18414_v1 = vor.u32 %v23910_v2, %v18098_v17  ;;  %v18432_v2 = vor.u32 %v23918_v20, %v18125_v5  ;;  %v23921_v18 = vshll.u32 %v17737_v33, 16  ;;  %v23925_v20 = vshll.u32 %v23924_v32, 16  ;;  %v23931_v33 = vld [vmem:[#allocation19_spill] sm:$0xff]  ;;  %v23934_v32 = vld [vmem:[#allocation22_spill] sm:$0xff] }
 0x2c9   :  { %23898 = vst [vmem:[#allocation34_spill] sm:$0xff] %v18384_v0  ;;  %v18402_v0 = vor.u32 %v23906_v58, %v18090_v41  ;;  %23908 = vst [vmem:[#allocation36_spill] sm:$0xff] %v18408_v24  ;;  %v23913_v58 = vshll.u32 %v23912_v47, 16  ;;  %v23915_v41 = vld [vmem:[#allocation82_spill] sm:$0xff]  ;;  %v23920_v47 = vshll.u32 %v23779_v55, 16  ;;  %v23927_v55 = vld [vmem:[#allocation17_spill] sm:$0xff] }
 0x2ca   :  { %v18426_v24 = vor.u32 %v23917_v63, %v23915_v41  ;;  %23919 = vst [vmem:[#allocation37_spill] sm:$0xff] %v18432_v2  ;;  %v18444_v63 = vor.u32 %v23921_v18, %v18133_v31  ;;  %v23923_v41 = vld [vmem:[#allocation86_spill] sm:$0xff]  ;;  %v23932_v18 = vshll.u32 %v23931_v33, 16 }
 0x2cb   :  { %v18420_v51 = vor.u32 %v23913_v58, %v23911_v36  ;;  %v18438_v58 = vor.u32 %v23920_v47, %v18129_v44  ;;  %v18450_v2 = vor.u32 %v23925_v20, %v23923_v41  ;;  %v23928_v47 = vshll.u32 %v23927_v55, 16  ;;  %v23930_v44 = vld [vmem:[#allocation88_spill] sm:$0xff]  ;;  %v23937_v41 = vld [vmem:[#allocation90_spill] sm:$0xff]  ;;  %v23938_v55 = vld [vmem:[#allocation45_spill] sm:$0xff] }
 0x2cc   :  { %23922 = vst [vmem:[#allocation38_spill] sm:$0xff] %v18444_v63  ;;  %v18462_v63 = vor.u32 %v23932_v18, %v23930_v44  ;;  %v23935_v20 = vshll.u32 %v23934_v32, 16  ;;  %v23942_v33 = vld [vmem:[#allocation46_spill] sm:$0xff]  ;;  %v23945_v44 = vld [vmem:[#allocation92_spill] sm:$0xff]  ;;  %v23946_v32 = vld [vmem:[#allocation47_spill] sm:$0xff] }
 0x2cd   :  { %23914 = vst [vmem:[#allocation74_spill] sm:$0xff] %v18420_v51  ;;  %v23926_v51 = vld [vmem:[#allocation87_spill] sm:$0xff]  ;;  %v23943_v18 = vshll.u32 %v23942_v33, 16  ;;  %v23954_v33 = vld [vmem:[#allocation49_spill] sm:$0xff] }
 0x2ce   :  { %v18456_v17 = vor.u32 %v23928_v47, %v23926_v51  ;;  %v18468_v4 = vor.u32 %v23935_v20, %v23933_v59  ;;  %v23939_v47 = vshll.u32 %v23938_v55, 16  ;;  %v23947_v20 = vshll.u32 %v23946_v32, 16  ;;  %v23949_v59 = vld [vmem:[#allocation93_spill] sm:$0xff]  ;;  %v23950_v55 = vld [vmem:[#allocation48_spill] sm:$0xff]  ;;  %v23958_v32 = vld [vmem:[#allocation50_spill] sm:$0xff] }
 0x2cf   :  { %v18480_v49 = vor.u32 %v23943_v18, %v23941_v9  ;;  %v23955_v18 = vshll.u32 %v23954_v33, 16  ;;  %v23957_v9 = vld [vmem:[#allocation95_spill] sm:$0xff] }
 0x2d0   :  { %23929 = vst [vmem:[#allocation39_spill] sm:$0xff] %v18456_v17  ;;  %23936 = vst [vmem:[#allocation40_spill] sm:$0xff] %v18468_v4  ;;  %v18474_v17 = vor.u32 %v23939_v47, %v23937_v41  ;;  %v18486_v4 = vor.u32 %v23947_v20, %v23945_v44  ;;  %v23951_v47 = vshll.u32 %v23950_v55, 16  ;;  %v23953_v41 = vld [vmem:[#allocation94_spill] sm:$0xff]  ;;  %v23959_v20 = vshll.u32 %v23958_v32, 16  ;;  %v23961_v44 = vld [vmem:[#allocation96_spill] sm:$0xff] }
 0x2d1   :  { %23944 = vst [vmem:[#allocation42_spill] sm:$0xff] %v18480_v49  ;;  %v18498_v49 = vor.u32 %v23955_v18, %v23953_v41  ;;  %v23962_v55 = vld [vmem:[#allocation24_spill] sm:$0xff]  ;;  %v23964_v33 = vld [vmem:[#allocation51_spill] sm:$0xff] }
 0x2d2   :  { %23940 = vst [vmem:[#allocation41_spill] sm:$0xff] %v18474_v17  ;;  %23948 = vst [vmem:[#allocation43_spill] sm:$0xff] %v18486_v4  ;;  %v18492_v17 = vor.u32 %v23951_v47, %v23949_v59  ;;  %v18504_v4 = vor.u32 %v23959_v20, %v23957_v9  ;;  %v23963_v47 = vshll.u32 %v23962_v55, 16  ;;  %v23965_v18 = vshll.u32 %v23964_v33, 16  ;;  %v23967_v32 = vld [vmem:[#allocation52_spill] sm:$0xff]  ;;  %v23969_v55 = vld [vmem:[#allocation99_spill] sm:$0xff] }
 0x2d3   :  { %23956 = vst [vmem:[#allocation14_spill] sm:$0xff] %v18498_v49  ;;  %v23968_v20 = vshll.u32 %v23967_v32, 16  ;;  %v23973_v33 = vld [vmem:[#allocation54_spill] sm:$0xff]  ;;  %v23976_v32 = vld [vmem:[#allocation55_spill] sm:$0xff]  ;;  %v2050_v59 = vrot.slane %v18202_v27, 4 }
 0x2d4   :  { %23952 = vst [vmem:[#allocation9_spill] sm:$0xff] %v18492_v17  ;;  %23960 = vst [vmem:[#allocation16_spill] sm:$0xff] %v18504_v4  ;;  %v18510_v17 = vor.u32 %v23963_v47, %v23961_v44  ;;  %v18516_v49 = vor.u32 %v23965_v18, %v18182_v40  ;;  %v23970_v47 = vld [vmem:[#allocation53_spill] sm:$0xff]  ;;  %v23974_v18 = vshll.u32 %v23973_v33, 16 }
 0x2d5   :  { %v18522_v4 = vor.u32 %v23968_v20, %v18186_v16  ;;  %v23971_v41 = vshll.u32 %v23970_v47, 16  ;;  %v23975_v44 = vld [vmem:[#allocation101_spill] sm:$0xff]  ;;  %v23977_v20 = vshll.u32 %v23976_v32, 16 }
 0x2d6   :  { %23966 = vst [vmem:[#allocation13_spill] sm:$0xff] %v18516_v49  ;;  %v18534_v49 = vor.u32 %v23974_v18, %v18194_v15  ;;  %v23984_v15 = vld [vmem:[#allocation58_spill] sm:$0xff] }
 0x2d7   :  { %v18528_v9 = vor.u32 %v23971_v41, %v23969_v55  ;;  %v18540_v40 = vor.u32 %v23977_v20, %v23975_v44  ;;  %v23979_v41 = vshll.u32 %v23826_v12, 16  ;;  %v23985_v55 = vrot.slane %v23984_v15, 4 }
 0x2d9   :  { %23972 = vst [vmem:[#allocation81_spill] sm:$0xff] %v18528_v9  ;;  %23978 = vst [vmem:[#allocation15_spill] sm:$0xff] %v18540_v40  ;;  %v18546_v47 = vor.u32 %v23979_v41, %v18202_v27  ;;  %v23980_v9 = vld [vmem:[#allocation57_spill] sm:$0xff]  ;;  %v1522_v20 = vsel %vm17132_vm8, %v23985_v55, %v23983_v30  ;;  %v23988_v40 = vrot.slane %v23987_v10, 4  ;;  %v23989_v41 = vrot.slane %v17955_v13, 4 }
 0x2da   :  { %v23981_v33 = vrot.slane %v23980_v9, 4  ;;  %v23991_v30 = vrot.slane %v17976_v39, 4  ;;  %2153 = vst.msk [vmem:[#allocation2 + $0x10] sm:$0xf] %vm1077_vm7, %v1522_v20 }
 0x2db   :  { %v1539_v12 = vsel %vm17132_vm8, %v23988_v40, %v18210_v6  ;;  %v1556_v9 = vsel %vm17132_vm8, %v23989_v41, %v18222_v50  ;;  %v23992_v6 = vrot.slane %v17988_v23, 4  ;;  %v23994_v40 = vrot.slane %v18005_v21, 4  ;;  %v18609_v21 = vld [vmem:[#allocation2 + $0x18] sm:$0xf] }
 0x2dc   :  { %v2239_v16 = vsel %vm16094_vm2, %v23981_v33, %v2238_v22  ;;  %v23990_v22 = vrot.slane %v23835_v62, 4  ;;  %v1590_v10 = vsel %vm17132_vm8, %v23991_v30, %v18246_v61  ;;  %2160 = vst.msk [vmem:[#allocation2 + $0x1c] sm:$0xf] %vm1077_vm7, %v1539_v12  ;;  %v23993_v62 = vrot.slane %v17997_v28, 4  ;;  %2167 = vst.msk [vmem:[#allocation2 + $0x28] sm:$0xf] %vm1077_vm7, %v1556_v9 }
 0x2dd   :  { %v1607_v13 = vsel %vm17132_vm8, %v23992_v6, %v18258_v42  ;;  %2240 = vst [vmem:[#allocation2 + $0xa4] sm:$0x1] %v2239_v16  ;;  %v1641_v23 = vsel %vm17132_vm8, %v23994_v40, %v18282_v3  ;;  %v23996_v16 = vrot.slane %v18021_v38, 4  ;;  %2181 = vst.msk [vmem:[#allocation2 + $0x40] sm:$0xf] %vm1077_vm7, %v1590_v10  ;;  %v23997_v38 = vrot.slane %v18029_v48, 4 }
 0x2de   :  { %v1573_v15 = vsel %vm17132_vm8, %v23990_v22, %v18234_v56  ;;  %v1624_v39 = vsel %vm17132_vm8, %v23993_v62, %v18270_v29  ;;  %v23995_v56 = vrot.slane %v18013_v35, 4  ;;  %2188 = vst.msk [vmem:[#allocation2 + $0x4c] sm:$0xf] %vm1077_vm7, %v1607_v13  ;;  %v18611_v35 = vld [vmem:[#allocation2 + $0xc] sm:$0xf]  ;;  %v23998_v42 = vrot.slane %v18037_v57, 4 }
 0x2df   :  { %v1675_v28 = vsel %vm17132_vm8, %v23996_v16, %v18306_v54  ;;  %2174 = vst.msk [vmem:[#allocation2 + $0x34] sm:$0xf] %vm1077_vm7, %v1573_v15  ;;  %v18613_v61 = vld [vmem:[#allocation2 + $0x20] sm:$0x1]  ;;  %v1692_v54 = vsel %vm17132_vm8, %v23997_v38, %v18318_v43  ;;  %v23999_v29 = vrot.slane %v18046_v34, 4  ;;  %v24000_v33 = vrot.slane %v23879_v53, 4 }
 0x2e0   :  { %v1658_v50 = vsel %vm17132_vm8, %v23995_v56, %v18294_v7  ;;  %v18615_v7 = vld [vmem:[#allocation2 + $0x14] sm:$0x1]  ;;  %v1709_v3 = vsel %vm17132_vm8, %v23998_v42, %v18330_v37  ;;  %2195 = vst.msk [vmem:[#allocation2 + $0x58] sm:$0xf] %vm1077_vm7, %v1624_v39  ;;  %2202 = vst.msk [vmem:[#allocation2 + $0x64] sm:$0xf] %vm1077_vm7, %v1641_v23 }
 0x2e1   :  { %v1743_v55 = vsel %vm17132_vm8, %v23999_v29, %v18342_v45  ;;  %v1760_v48 = vsel %vm17132_vm8, %v24000_v33, %v18354_v8  ;;  %2209 = vst.msk [vmem:[#allocation2 + $0x70] sm:$0xf] %vm1077_vm7, %v1658_v50  ;;  %2216 = vst.msk [vmem:[#allocation2 + $0x7c] sm:$0xf] %vm1077_vm7, %v1675_v28  ;;  %v18641_v37 = vld [vmem:[#allocation2 + $0x30] sm:$0xf] }
 0x2e2   :  { %v18643_v43 = vld [vmem:[#allocation2 + $0x24] sm:$0xf]  ;;  %v18645_v34 = vld [vmem:[#allocation2 + $0x38] sm:$0x1]  ;;  %v18647_v57 = vld [vmem:[#allocation2 + $0x2c] sm:$0x1] }
 0x2e3   :  { %v24001_v53 = vrot.slane %v18062_v11, 4  ;;  %v24002_v45 = vrot.slane %v18070_v19, 4  ;;  %v24003_v12 = vrot.slane %v18078_v25, 4  ;;  %v24004_v9 = vrot.slane %v18086_v14, 4  ;;  %2223 = vst.msk [vmem:[#allocation2 + $0x88] sm:$0xf] %vm1077_vm7, %v1692_v54 }
 0x2e4   :  { %2230 = vst.msk [vmem:[#allocation2 + $0x94] sm:$0xf] %vm1077_vm7, %v1709_v3  ;;  %2244 = vst.msk [vmem:[#allocation2 + $0xac] sm:$0xf] %vm1077_vm7, %v1743_v55  ;;  %v18677_v19 = vld [vmem:[#allocation2 + $0x50] sm:$0x1] }
 0x2e5   :  { %v1777_v8 = vsel %vm17132_vm8, %v24001_v53, %v18366_v60  ;;  %v1794_v20 = vsel %vm17132_vm8, %v24002_v45, %v18378_v46  ;;  %v1811_v41 = vsel %vm17132_vm8, %v24003_v12, %v18390_v26  ;;  %v1828_v11 = vsel %vm17132_vm8, %v24004_v9, %v18402_v0  ;;  %2251 = vst.msk [vmem:[#allocation2 + $0xb8] sm:$0xf] %vm1077_vm7, %v1760_v48  ;;  %v18673_v46 = vld [vmem:[#allocation2 + $0x48] sm:$0xf]  ;;  %v18675_v60 = vld [vmem:[#allocation2 + $0x3c] sm:$0xf] }
 0x2e6   :  { %v18679_v26 = vld [vmem:[#allocation2 + $0x44] sm:$0x1]  ;;  %v24005_v25 = vrot.slane %v18094_v52, 4  ;;  %v24006_v14 = vrot.slane %v23911_v36, 4  ;;  %v24007_v15 = vrot.slane %v18125_v5, 4  ;;  %v24008_v10 = vrot.slane %v18133_v31, 4 }
 0x2e7   :  { %2258 = vst.msk [vmem:[#allocation2 + $0xc4] sm:$0xf] %vm1077_vm7, %v1777_v8  ;;  %2265 = vst.msk [vmem:[#allocation2 + $0xe8] sm:$0xf] %vm1077_vm7, %v1794_v20  ;;  %v18705_v36 = vld [vmem:[#allocation2 + $0x60] sm:$0xf] }
 0x2e8   :  { %v1845_v0 = vsel %vm17132_vm8, %v24005_v25, %v18414_v1  ;;  %v1862_v22 = vsel %vm17132_vm8, %v24006_v14, %v18426_v24  ;;  %v1879_v30 = vsel %vm17132_vm8, %v24007_v15, %v18438_v58  ;;  %v1896_v52 = vsel %vm17132_vm8, %v24008_v10, %v18450_v2  ;;  %2272 = vst.msk [vmem:[#allocation2 + $0xf4] sm:$0xf] %vm1077_vm7, %v1811_v41  ;;  %v18707_v5 = vld [vmem:[#allocation2 + $0x54] sm:$0xf]  ;;  %v18709_v1 = vld [vmem:[#allocation2 + $0x68] sm:$0x1] }
 0x2e9   :  { %2279 = vst.msk [vmem:[#allocation2 + $0x100] sm:$0xf] %vm1077_vm7, %v1828_v11  ;;  %v18711_v24 = vld [vmem:[#allocation2 + $0x5c] sm:$0x1]  ;;  %v24009_v31 = vrot.slane %v23926_v51, 4  ;;  %v24010_v58 = vld [vmem:[#allocation41_spill] sm:$0xff] }
 0x2ea   :  { %v24011_v6 = vld [vmem:[#allocation89_spill] sm:$0xff]  ;;  %v24013_v39 = vld [vmem:[#allocation43_spill] sm:$0xff]  ;;  %v24016_v50 = vld [vmem:[#allocation14_spill] sm:$0xff]  ;;  %2286 = vst.msk [vmem:[#allocation2 + $0x10c] sm:$0xf] %vm1077_vm7, %v1845_v0  ;;  %v24025_v12 = vrot.slane %v23975_v44, 4 }
 0x2eb   :  { %v1913_v2 = vsel %vm17132_vm8, %v24009_v31, %v18462_v63  ;;  %v24012_v13 = vrot.slane %v24011_v6, 4  ;;  %v24014_v40 = vld [vmem:[#allocation91_spill] sm:$0xff]  ;;  %v24017_v16 = vld [vmem:[#allocation93_spill] sm:$0xff]  ;;  %2293 = vst.msk [vmem:[#allocation2 + $0x118] sm:$0xf] %vm1077_vm7, %v1862_v22  ;;  %v24034_v31 = vld [vmem:[#allocation62_spill] sm:$0xff] }
 0x2ec   :  { %v24015_v23 = vrot.slane %v24014_v40, 4  ;;  %v24018_v28 = vrot.slane %v24017_v16, 4  ;;  %2300 = vst.msk [vmem:[#allocation2 + $0x124] sm:$0xf] %vm1077_vm7, %v1879_v30  ;;  %2307 = vst.msk [vmem:[#allocation2 + $0x130] sm:$0xf] %vm1077_vm7, %v1896_v52  ;;  %v2049_v41 = vsel %vm17132_vm8, %v24025_v12, %v18546_v47 }
 0x2ed   :  { %v1930_v62 = vsel %vm17132_vm8, %v24012_v13, %v24010_v58  ;;  %v18737_v63 = vld [vmem:[#allocation2 + $0x78] sm:$0xf]  ;;  %v18739_v38 = vld [vmem:[#allocation2 + $0x6c] sm:$0xf]  ;;  %v18741_v54 = vld [vmem:[#allocation2 + $0x80] sm:$0x1] }
 0x2ee   :  { %v1947_v56 = vsel %vm17132_vm8, %v24015_v23, %v24013_v39  ;;  %v1964_v51 = vsel %vm17132_vm8, %v24018_v28, %v24016_v50  ;;  %v18743_v42 = vld [vmem:[#allocation2 + $0x74] sm:$0x1]  ;;  %v24019_v3 = vld [vmem:[#allocation95_spill] sm:$0xff]  ;;  %v24021_v33 = vld [vmem:[#allocation97_spill] sm:$0xff]  ;;  %2314 = vst.msk [vmem:[#allocation2 + $0x13c] sm:$0xf] %vm1077_vm7, %v1913_v2 }
 0x2ef   :  { %v24020_v29 = vrot.slane %v24019_v3, 4  ;;  %v24022_v48 = vrot.slane %v24021_v33, 4  ;;  %v24023_v8 = vld [vmem:[#allocation99_spill] sm:$0xff]  ;;  %2321 = vst.msk [vmem:[#allocation2 + $0x148] sm:$0xf] %vm1077_vm7, %v1930_v62  ;;  %v24030_v14 = vld [vmem:[#allocation85_spill] sm:$0xff] }
 0x2f0   :  { %v24024_v45 = vrot.slane %v24023_v8, 4  ;;  %2328 = vst.msk [vmem:[#allocation2 + $0x154] sm:$0xf] %vm1077_vm7, %v1947_v56  ;;  %2335 = vst.msk [vmem:[#allocation2 + $0x160] sm:$0xf] %vm1077_vm7, %v1964_v51  ;;  %v24026_v44 = vld [vmem:[#allocation83_spill] sm:$0xff]  ;;  %v2158_v22 = vsel %vm17496_vm9, %v24030_v14, %v18609_v21 }
 0x2f1   :  { %v1981_v55 = vsel %vm17132_vm8, %v24020_v29, %v18510_v17  ;;  %v1998_v53 = vsel %vm17132_vm8, %v24022_v48, %v18522_v4  ;;  %v18769_v4 = vld [vmem:[#allocation2 + $0x90] sm:$0xf]  ;;  %v18771_v17 = vld [vmem:[#allocation2 + $0x84] sm:$0xf]  ;;  %v18773_v9 = vld [vmem:[#allocation2 + $0x98] sm:$0x1]  ;;  %v2151_v47 = vsel %vm17496_vm9, %v24026_v44, %v18611_v35 }
 0x2f2   :  { %v2015_v20 = vsel %vm17132_vm8, %v24024_v45, %v18534_v49  ;;  %v18775_v49 = vld [vmem:[#allocation2 + $0x8c] sm:$0x1]  ;;  %v24028_v11 = vld [vmem:[#allocation59_spill] sm:$0xff]  ;;  %2342 = vst.msk [vmem:[#allocation2 + $0x16c] sm:$0xf] %vm1077_vm7, %v1981_v55  ;;  %v24033_v21 = vld [vmem:[#allocation56_spill] sm:$0xff] }
 0x2f3   :  { %v24029_v25 = vrot.slane %v24028_v11, 4  ;;  %v24031_v15 = vld [vmem:[#allocation61_spill] sm:$0xff]  ;;  %2349 = vst.msk [vmem:[#allocation2 + $0x178] sm:$0xf] %vm1077_vm7, %v1998_v53  ;;  %2356 = vst.msk [vmem:[#allocation2 + $0x184] sm:$0xf] %vm1077_vm7, %v2015_v20 }
 0x2f4   :  { %v24032_v30 = vrot.slane %v24031_v15, 4  ;;  %2370 = vst.msk [vmem:[#allocation2 + $0x19c] sm:$0xf] %vm1077_vm7, %v2049_v41  ;;  %v18799_v35 = vld [vmem:[#allocation2 + $0xa8] sm:$0xf]  ;;  %v24035_v2 = vrot.slane %v24034_v31, 4 }
 0x2f5   :  { %v2155_v0 = vsel %vm16094_vm2, %v24029_v25, %v18615_v7  ;;  %v18801_v7 = vld [vmem:[#allocation2 + $0xb0] sm:$0x1]  ;;  %v18803_v52 = vld [vmem:[#allocation2 + $0xb4] sm:$0xf]  ;;  %2152 = vst [vmem:[#allocation2 + $0xc] sm:$0xf] %v2151_v47 }
 0x2f6   :  { %v2162_v10 = vsel %vm16094_vm2, %v24032_v30, %v18613_v61  ;;  %2156 = vst [vmem:[#allocation2 + $0x14] sm:$0x1] %v2155_v0  ;;  %2159 = vst [vmem:[#allocation2 + $0x18] sm:$0xf] %v2158_v22  ;;  %v2165_v61 = vsel %vm17496_vm9, %v24033_v21, %v18643_v43  ;;  %v2169_v58 = vsel %vm16094_vm2, %v24035_v2, %v18647_v57  ;;  %v24036_v6 = vld [vmem:[#allocation25_spill] sm:$0xff]  ;;  %v24037_v62 = vld [vmem:[#allocation64_spill] sm:$0xff] }
 0x2f7   :  { %2163 = vst [vmem:[#allocation2 + $0x20] sm:$0x1] %v2162_v10  ;;  %v2172_v13 = vsel %vm17496_vm9, %v24036_v6, %v18641_v37  ;;  %v24038_v39 = vrot.slane %v24037_v62, 4  ;;  %v18823_v23 = vld [vmem:[#allocation2 + $0xc0] sm:$0xf]  ;;  %v24039_v37 = vld [vmem:[#allocation26_spill] sm:$0xff] }
 0x2f8   :  { %v18825_v43 = vld [vmem:[#allocation2 + $0xc8] sm:$0x1]  ;;  %v2252_v56 = vld [vmem:[#allocation2 + $0xbc] sm:$0x1]  ;;  %v18827_v50 = vld [vmem:[#allocation2 + $0xe4] sm:$0xf]  ;;  %v2179_v57 = vsel %vm17496_vm9, %v24039_v37, %v18675_v60 }
 0x2f9   :  { %v2176_v40 = vsel %vm16094_vm2, %v24038_v39, %v18645_v34  ;;  %v18829_v16 = vld [vmem:[#allocation2 + $0xec] sm:$0x1]  ;;  %2166 = vst [vmem:[#allocation2 + $0x24] sm:$0xf] %v2165_v61  ;;  %2170 = vst [vmem:[#allocation2 + $0x2c] sm:$0x1] %v2169_v58 }
 0x2fa   :  { %2173 = vst [vmem:[#allocation2 + $0x30] sm:$0xf] %v2172_v13  ;;  %2177 = vst [vmem:[#allocation2 + $0x38] sm:$0x1] %v2176_v40  ;;  %v24040_v34 = vld [vmem:[#allocation65_spill] sm:$0xff]  ;;  %v24042_v3 = vld [vmem:[#allocation30_spill] sm:$0xff] }
 0x2fb   :  { %v24041_v28 = vrot.slane %v24040_v34, 4  ;;  %v2186_v29 = vsel %vm17496_vm9, %v24042_v3, %v18673_v46  ;;  %v24043_v55 = vld [vmem:[#allocation66_spill] sm:$0xff]  ;;  %v18851_v60 = vld [vmem:[#allocation2 + $0xf8] sm:$0x1]  ;;  %v18853_v8 = vld [vmem:[#allocation2 + $0xfc] sm:$0xf] }
 0x2fc   :  { %v24044_v33 = vrot.slane %v24043_v55, 4  ;;  %v18849_v53 = vld [vmem:[#allocation2 + $0xf0] sm:$0xf]  ;;  %v18855_v45 = vld [vmem:[#allocation2 + $0x104] sm:$0x1]  ;;  %v24045_v46 = vld [vmem:[#allocation63_spill] sm:$0xff] }
 0x2fd   :  { %v2183_v51 = vsel %vm16094_vm2, %v24041_v28, %v18679_v26  ;;  %2180 = vst [vmem:[#allocation2 + $0x3c] sm:$0xf] %v2179_v57  ;;  %2187 = vst [vmem:[#allocation2 + $0x48] sm:$0xf] %v2186_v29  ;;  %v2193_v26 = vsel %vm17496_vm9, %v24045_v46, %v18707_v5  ;;  %v24046_v20 = vld [vmem:[#allocation67_spill] sm:$0xff]  ;;  %v24049_v47 = vld [vmem:[#allocation68_spill] sm:$0xff] }
 0x2fe   :  { %v2190_v48 = vsel %vm16094_vm2, %v24044_v33, %v18677_v19  ;;  %2184 = vst [vmem:[#allocation2 + $0x44] sm:$0x1] %v2183_v51  ;;  %v24047_v19 = vrot.slane %v24046_v20, 4  ;;  %v24048_v41 = vld [vmem:[#allocation27_spill] sm:$0xff]  ;;  %v24050_v11 = vrot.slane %v24049_v47, 4  ;;  %v24052_v15 = vld [vmem:[#allocation69_spill] sm:$0xff] }
 0x2ff   :  { %2191 = vst [vmem:[#allocation2 + $0x50] sm:$0x1] %v2190_v48  ;;  %v2200_v44 = vsel %vm17496_vm9, %v24048_v41, %v18705_v36  ;;  %v18875_v0 = vld [vmem:[#allocation2 + $0x108] sm:$0xf]  ;;  %v18877_v5 = vld [vmem:[#allocation2 + $0x110] sm:$0x1] }
 0x300   :  { %v2197_v12 = vsel %vm16094_vm2, %v24047_v19, %v18711_v24  ;;  %v2204_v25 = vsel %vm16094_vm2, %v24050_v11, %v18709_v1  ;;  %v18879_v14 = vld [vmem:[#allocation2 + $0x114] sm:$0xf]  ;;  %v18881_v22 = vld [vmem:[#allocation2 + $0x11c] sm:$0x1]  ;;  %2194 = vst [vmem:[#allocation2 + $0x54] sm:$0xf] %v2193_v26 }
 0x301   :  { %2198 = vst [vmem:[#allocation2 + $0x5c] sm:$0x1] %v2197_v12  ;;  %2201 = vst [vmem:[#allocation2 + $0x60] sm:$0xf] %v2200_v44  ;;  %v24051_v36 = vld [vmem:[#allocation8_spill] sm:$0xff]  ;;  %v24053_v1 = vrot.slane %v24052_v15, 4 }
 0x302   :  { %2205 = vst [vmem:[#allocation2 + $0x68] sm:$0x1] %v2204_v25  ;;  %v2207_v24 = vsel %vm17496_vm9, %v24051_v36, %v18739_v38  ;;  %v24054_v10 = vld [vmem:[#allocation10_spill] sm:$0xff]  ;;  %v18901_v58 = vld [vmem:[#allocation2 + $0x120] sm:$0xf]  ;;  %v24058_v62 = vld [vmem:[#allocation71_spill] sm:$0xff] }
 0x303   :  { %v2211_v30 = vsel %vm16094_vm2, %v24053_v1, %v18743_v42  ;;  %v2214_v21 = vsel %vm17496_vm9, %v24054_v10, %v18737_v63  ;;  %v24055_v61 = vld [vmem:[#allocation70_spill] sm:$0xff]  ;;  %v2301_v38 = vld [vmem:[#allocation2 + $0x128] sm:$0x1]  ;;  %v18903_v6 = vld [vmem:[#allocation2 + $0x12c] sm:$0xf]  ;;  %v24059_v39 = vrot.slane %v24058_v62, 4 }
 0x304   :  { %v24056_v31 = vrot.slane %v24055_v61, 4  ;;  %v2308_v13 = vld [vmem:[#allocation2 + $0x134] sm:$0x1]  ;;  %2208 = vst [vmem:[#allocation2 + $0x6c] sm:$0xf] %v2207_v24  ;;  %v24057_v42 = vld [vmem:[#allocation12_spill] sm:$0xff] }
 0x305   :  { %2212 = vst [vmem:[#allocation2 + $0x74] sm:$0x1] %v2211_v30  ;;  %2215 = vst [vmem:[#allocation2 + $0x78] sm:$0xf] %v2214_v21  ;;  %v2221_v63 = vsel %vm17496_vm9, %v24057_v42, %v18771_v17  ;;  %v24060_v40 = vld [vmem:[#allocation11_spill] sm:$0xff]  ;;  %v24061_v57 = vld [vmem:[#allocation72_spill] sm:$0xff] }
 0x306   :  { %v2218_v2 = vsel %vm16094_vm2, %v24056_v31, %v18741_v54  ;;  %v2225_v54 = vsel %vm16094_vm2, %v24059_v39, %v18775_v49  ;;  %v2228_v37 = vsel %vm17496_vm9, %v24060_v40, %v18769_v4  ;;  %v24062_v34 = vrot.slane %v24061_v57, 4  ;;  %v18923_v51 = vld [vmem:[#allocation2 + $0x138] sm:$0xf]  ;;  %v2315_v17 = vld [vmem:[#allocation2 + $0x140] sm:$0x1]  ;;  %v24064_v4 = vld [vmem:[#allocation73_spill] sm:$0xff] }
 0x307   :  { %2219 = vst [vmem:[#allocation2 + $0x80] sm:$0x1] %v2218_v2  ;;  %2222 = vst [vmem:[#allocation2 + $0x84] sm:$0xf] %v2221_v63  ;;  %v24063_v49 = vld [vmem:[#allocation28_spill] sm:$0xff]  ;;  %v24065_v29 = vrot.slane %v24064_v4, 4 }
 0x308   :  { %v2232_v28 = vsel %vm16094_vm2, %v24062_v34, %v18773_v9  ;;  %2226 = vst [vmem:[#allocation2 + $0x8c] sm:$0x1] %v2225_v54  ;;  %2229 = vst [vmem:[#allocation2 + $0x90] sm:$0xf] %v2228_v37  ;;  %v2242_v3 = vsel %vm17496_vm9, %v24063_v49, %v18799_v35  ;;  %v24066_v9 = vld [vmem:[#allocation31_spill] sm:$0xff]  ;;  %v24069_v35 = vld [vmem:[#allocation32_spill] sm:$0xff] }
 0x309   :  { %2233 = vst [vmem:[#allocation2 + $0x98] sm:$0x1] %v2232_v28  ;;  %v2246_v55 = vsel %vm16094_vm2, %v24065_v29, %v18801_v7  ;;  %v2249_v33 = vsel %vm17496_vm9, %v24066_v9, %v18803_v52  ;;  %v24067_v48 = vld [vmem:[#allocation75_spill] sm:$0xff]  ;;  %v18942_v20 = vld [vmem:[#allocation2 + $0x150] sm:$0xf]  ;;  %v2256_v7 = vsel %vm17496_vm9, %v24069_v35, %v18823_v23  ;;  %v24070_v12 = vld [vmem:[#allocation76_spill] sm:$0xff] }
 0x30a   :  { %v24068_v46 = vrot.slane %v24067_v48, 4  ;;  %v2318_v19 = vld [vmem:[#allocation2 + $0x144] sm:$0xf]  ;;  %2243 = vst [vmem:[#allocation2 + $0xa8] sm:$0xf] %v2242_v3  ;;  %v24071_v52 = vrot.slane %v24070_v12, 4 }
 0x30b   :  { %2247 = vst [vmem:[#allocation2 + $0xb0] sm:$0x1] %v2246_v55  ;;  %2250 = vst [vmem:[#allocation2 + $0xb4] sm:$0xf] %v2249_v33  ;;  %v24073_v47 = vld [vmem:[#allocation77_spill] sm:$0xff]  ;;  %v24079_v21 = vld [vmem:[#allocation79_spill] sm:$0xff] }
 0x30c   :  { %v2253_v26 = vsel %vm16094_vm2, %v24068_v46, %v2252_v56  ;;  %v2260_v41 = vsel %vm16094_vm2, %v24071_v52, %v18825_v43  ;;  %v24072_v56 = vld [vmem:[#allocation33_spill] sm:$0xff]  ;;  %v24074_v11 = vrot.slane %v24073_v47, 4  ;;  %v2329_v36 = vld [vmem:[#allocation2 + $0x158] sm:$0x1]  ;;  %2257 = vst [vmem:[#allocation2 + $0xc0] sm:$0xf] %v2256_v7 }
 0x30d   :  { %2254 = vst [vmem:[#allocation2 + $0xbc] sm:$0x1] %v2253_v26  ;;  %v2263_v44 = vsel %vm17496_vm9, %v24072_v56, %v18827_v50  ;;  %v2322_v24 = vld [vmem:[#allocation2 + $0x14c] sm:$0x1]  ;;  %v18962_v23 = vld [vmem:[#allocation2 + $0x168] sm:$0xf] }
 0x30e   :  { %v2267_v25 = vsel %vm16094_vm2, %v24074_v11, %v18829_v16  ;;  %2261 = vst [vmem:[#allocation2 + $0xc8] sm:$0x1] %v2260_v41  ;;  %2264 = vst [vmem:[#allocation2 + $0xe4] sm:$0xf] %v2263_v44  ;;  %v24075_v43 = vld [vmem:[#allocation34_spill] sm:$0xff]  ;;  %v24078_v16 = vld [vmem:[#allocation35_spill] sm:$0xff] }
 0x30f   :  { %2268 = vst [vmem:[#allocation2 + $0xec] sm:$0x1] %v2267_v25  ;;  %v2270_v15 = vsel %vm17496_vm9, %v24075_v43, %v18849_v53  ;;  %v24076_v50 = vld [vmem:[#allocation78_spill] sm:$0xff]  ;;  %v2277_v10 = vsel %vm17496_vm9, %v24078_v16, %v18853_v8  ;;  %v24080_v61 = vrot.slane %v24079_v21, 4  ;;  %v2332_v2 = vld [vmem:[#allocation2 + $0x15c] sm:$0xf] }
 0x310   :  { %v24077_v1 = vrot.slane %v24076_v50, 4  ;;  %v2343_v42 = vld [vmem:[#allocation2 + $0x170] sm:$0x1]  ;;  %v2336_v53 = vld [vmem:[#allocation2 + $0x164] sm:$0x1] }
 0x311   :  { %v2281_v31 = vsel %vm16094_vm2, %v24080_v61, %v18855_v45  ;;  %2271 = vst [vmem:[#allocation2 + $0xf0] sm:$0xf] %v2270_v15  ;;  %2278 = vst [vmem:[#allocation2 + $0xfc] sm:$0xf] %v2277_v10  ;;  %v24082_v8 = vld [vmem:[#allocation80_spill] sm:$0xff]  ;;  %v24084_v45 = vld [vmem:[#allocation74_spill] sm:$0xff] }
 0x312   :  { %v2274_v30 = vsel %vm16094_vm2, %v24077_v1, %v18851_v60  ;;  %2282 = vst [vmem:[#allocation2 + $0x104] sm:$0x1] %v2281_v31  ;;  %v24081_v60 = vld [vmem:[#allocation36_spill] sm:$0xff]  ;;  %v24083_v62 = vrot.slane %v24082_v8, 4  ;;  %v2291_v54 = vsel %vm17496_vm9, %v24084_v45, %v18879_v14  ;;  %v24085_v40 = vld [vmem:[#allocation82_spill] sm:$0xff]  ;;  %v24108_v61 = vld [vmem:[#allocation13_spill] sm:$0xff] }
 0x313   :  { %2275 = vst [vmem:[#allocation2 + $0xf8] sm:$0x1] %v2274_v30  ;;  %v2284_v63 = vsel %vm17496_vm9, %v24081_v60, %v18875_v0  ;;  %v24086_v37 = vrot.slane %v24085_v40, 4  ;;  %v2353_v34 = vld [vmem:[#allocation2 + $0x180] sm:$0xf]  ;;  %v24090_v29 = vld [vmem:[#allocation38_spill] sm:$0xff] }
 0x314   :  { %v2288_v39 = vsel %vm16094_vm2, %v24083_v62, %v18877_v5  ;;  %v2346_v28 = vld [vmem:[#allocation2 + $0x174] sm:$0xf]  ;;  %v2350_v0 = vld [vmem:[#allocation2 + $0x17c] sm:$0x1]  ;;  %2285 = vst [vmem:[#allocation2 + $0x108] sm:$0xf] %v2284_v63 }
 0x315   :  { %v2295_v57 = vsel %vm16094_vm2, %v24086_v37, %v18881_v22  ;;  %2289 = vst [vmem:[#allocation2 + $0x110] sm:$0x1] %v2288_v39  ;;  %2292 = vst [vmem:[#allocation2 + $0x114] sm:$0xf] %v2291_v54  ;;  %v24087_v5 = vld [vmem:[#allocation37_spill] sm:$0xff]  ;;  %v24088_v3 = vld [vmem:[#allocation44_spill] sm:$0xff]  ;;  %v2305_v22 = vsel %vm17496_vm9, %v24090_v29, %v18903_v6  ;;  %v2347_v31 = vsel %vm17496_vm9, %v24108_v61, %v2346_v28 }
 0x316   :  { %2296 = vst [vmem:[#allocation2 + $0x11c] sm:$0x1] %v2295_v57  ;;  %v2298_v49 = vsel %vm17496_vm9, %v24087_v5, %v18901_v58  ;;  %v24089_v14 = vrot.slane %v24088_v3, 4  ;;  %v24091_v55 = vld [vmem:[#allocation86_spill] sm:$0xff]  ;;  %v2357_v48 = vld [vmem:[#allocation2 + $0x188] sm:$0x1] }
 0x317   :  { %v24092_v9 = vrot.slane %v24091_v55, 4  ;;  %v2367_v46 = vld [vmem:[#allocation2 + $0x198] sm:$0xf]  ;;  %v2371_v26 = vld [vmem:[#allocation2 + $0x1a0] sm:$0x1]  ;;  %v24097_v52 = vld [vmem:[#allocation90_spill] sm:$0xff] }
 0x318   :  { %v2302_v4 = vsel %vm16094_vm2, %v24089_v14, %v2301_v38  ;;  %2299 = vst [vmem:[#allocation2 + $0x120] sm:$0xf] %v2298_v49  ;;  %2306 = vst [vmem:[#allocation2 + $0x12c] sm:$0xf] %v2305_v22  ;;  %v24093_v58 = vld [vmem:[#allocation39_spill] sm:$0xff]  ;;  %v24094_v35 = vld [vmem:[#allocation88_spill] sm:$0xff]  ;;  %v2372_v57 = vsel %vm16094_vm2, %v2050_v59, %v2371_v26 }
 0x319   :  { %v2309_v33 = vsel %vm16094_vm2, %v24092_v9, %v2308_v13  ;;  %2303 = vst [vmem:[#allocation2 + $0x128] sm:$0x1] %v2302_v4  ;;  %v2312_v38 = vsel %vm17496_vm9, %v24093_v58, %v18923_v51  ;;  %v24095_v7 = vrot.slane %v24094_v35, 4  ;;  %v24096_v12 = vld [vmem:[#allocation40_spill] sm:$0xff]  ;;  %v24098_v41 = vrot.slane %v24097_v52, 4  ;;  %v24099_v51 = vld [vmem:[#allocation42_spill] sm:$0xff] }
 0x31a   :  { %2310 = vst [vmem:[#allocation2 + $0x134] sm:$0x1] %v2309_v33  ;;  %v2319_v13 = vsel %vm17496_vm9, %v24096_v12, %v2318_v19  ;;  %2313 = vst [vmem:[#allocation2 + $0x138] sm:$0xf] %v2312_v38  ;;  %v2326_v44 = vsel %vm17496_vm9, %v24099_v51, %v18942_v20  ;;  %v24100_v47 = vld [vmem:[#allocation92_spill] sm:$0xff]  ;;  %v24102_v19 = vld [vmem:[#allocation9_spill] sm:$0xff] }
 0x31b   :  { %v2316_v6 = vsel %vm16094_vm2, %v24095_v7, %v2315_v17  ;;  %v2323_v56 = vsel %vm16094_vm2, %v24098_v41, %v2322_v24  ;;  %2320 = vst [vmem:[#allocation2 + $0x144] sm:$0xf] %v2319_v13  ;;  %v24101_v17 = vrot.slane %v24100_v47, 4  ;;  %v2333_v25 = vsel %vm17496_vm9, %v24102_v19, %v2332_v2  ;;  %v24103_v43 = vld [vmem:[#allocation94_spill] sm:$0xff]  ;;  %v19046_v1 = vld [vmem:[#allocation2 + $0x1c] sm:$0xf] }
 0x31c   :  { %2317 = vst [vmem:[#allocation2 + $0x140] sm:$0x1] %v2316_v6  ;;  %2324 = vst [vmem:[#allocation2 + $0x14c] sm:$0x1] %v2323_v56  ;;  %v24104_v24 = vrot.slane %v24103_v43, 4  ;;  %v19051_v20 = vld [vmem:[%s23146_s3 + $0x48] sm:$0xff]  }
 0x31d   :  { %v2330_v11 = vsel %vm16094_vm2, %v24101_v17, %v2329_v36  ;;  %v2377_v50 = vld [vmem:[#allocation2 + $0x10] sm:$0xf]  ;;  %2327 = vst [vmem:[#allocation2 + $0x150] sm:$0xf] %v2326_v44  ;;  %2334 = vst [vmem:[#allocation2 + $0x15c] sm:$0xf] %v2333_v25 }
 0x31e   :  { %v2337_v15 = vsel %vm16094_vm2, %v24104_v24, %v2336_v53  ;;  %2331 = vst [vmem:[#allocation2 + $0x158] sm:$0x1] %v2330_v11  ;;  %v24105_v36 = vld [vmem:[#allocation16_spill] sm:$0xff]  ;;  %v24109_v2 = vld [vmem:[#allocation98_spill] sm:$0xff]  ;;  %v2376_v63 = vld [vmem:[#allocation2 + $0xc] sm:$0xf] }
 0x31f   :  { %2338 = vst [vmem:[#allocation2 + $0x164] sm:$0x1] %v2337_v15  ;;  %v2340_v30 = vsel %vm17496_vm9, %v24105_v36, %v18962_v23  ;;  %v24106_v16 = vld [vmem:[#allocation96_spill] sm:$0xff]  ;;  %v24110_v53 = vrot.slane %v24109_v2, 4  ;;  %v2443_v8 = vld [vmem:[#allocation2 + $0x14] sm:$0x1] }
 0x320   :  { %v24107_v10 = vrot.slane %v24106_v16, 4  ;;  %v2378_v62 = vld [vmem:[#allocation2 + $0x18] sm:$0xf]  ;;  %2341 = vst [vmem:[#allocation2 + $0x168] sm:$0xf] %v2340_v30  ;;  %v24111_v23 = vld [vmem:[#allocation81_spill] sm:$0xff] }
 0x321   :  { %v2351_v60 = vsel %vm16094_vm2, %v24110_v53, %v2350_v0  ;;  %2348 = vst [vmem:[#allocation2 + $0x174] sm:$0xf] %v2347_v31  ;;  %v24112_v39 = vld [vmem:[#allocation100_spill] sm:$0xff]  ;;  %v24114_v40 = vld [vmem:[#allocation15_spill] sm:$0xff]  ;;  %v15520_v28 = vld [vmem:[#allocation2 + $0xa8] sm:$0xff]   ;;  %v15874_v0 = vmov 0  }
 0x322   :  { %v2344_v21 = vsel %vm16094_vm2, %v24107_v10, %v2343_v42  ;;  %2352 = vst [vmem:[#allocation2 + $0x17c] sm:$0x1] %v2351_v60  ;;  %v2354_v42 = vsel %vm17496_vm9, %v24111_v23, %v2353_v34  ;;  %v24113_v45 = vrot.slane %v24112_v39, 4  ;;  %v2368_v37 = vsel %vm17496_vm9, %v24114_v40, %v2367_v46  ;;  %2373 = vst [vmem:[#allocation2 + $0x1a0] sm:$0x1] %v2372_v57  ;;  %v15521_v34 = vld [vmem:[#allocation2 + $0xb4] sm:$0xff]  }
 0x323   :  { %2345 = vst [vmem:[#allocation2 + $0x170] sm:$0x1] %v2344_v21  ;;  %2355 = vst [vmem:[#allocation2 + $0x180] sm:$0xf] %v2354_v42  ;;  %14540 = vmatmul.mubr.msk.bf16.vlgmr.msra.gmra.mrb[0].mxu1 %vm478_vm5, %v15520_v28  ;;  %v2502_v59 = vshrl.u32 %v2376_v63, 16  ;;  %v2505_v27 = vshll.u32 %v2376_v63, 16 }
 0x324   :  { %v2358_v54 = vsel %vm16094_vm2, %v24113_v45, %v2357_v48  ;;  %2369 = vst [vmem:[#allocation2 + $0x198] sm:$0xf] %v2368_v37  ;;  %1078 = vst.msk [vmem:[#allocation2] sm:$0xf] %vm1077_vm7, %v15874_v0  ;;  %v2511_v32 = vshll.u32 %v2377_v50, 16  ;;  %v2515_v5 = vshrl.u32 %v2377_v50, 16  ;;  %14543 = vmatprep.mubr.msk.bf16.mxu1 %vm478_vm5, %v15521_v34 }
 0x325   :  { %2359 = vst [vmem:[#allocation2 + $0x188] sm:$0x1] %v2358_v54  ;;  %1079 = vst.msk [vmem:[#allocation2 + $0x4] sm:$0xf] %vm1077_vm7, %v15874_v0  ;;  %v2444_v49 = vld [vmem:[#allocation2 + $0x20] sm:$0x1] }
 0x326   :  { %1081 = vst.msk [vmem:[#allocation2 + $0x8] sm:$0x1] %vm1080_vm0, %v15874_v0  ;;  %1084 = vst.msk [vmem:[#allocation2 + $0xe0] sm:$0x1] %vm1080_vm0, %v15874_v0  ;;  %v15541_v3 = vld [vmem:[%s23146_s3 + $0x50] sm:$0xff]   ;;  %v15636_v14 = vld [vmem:[%s23146_s3 + $0x40] sm:$0xff]  }
 0x327   :  { %1082 = vst.msk [vmem:[#allocation2 + $0xd8] sm:$0xf] %vm1077_vm7, %v15874_v0  ;;  %1083 = vst.msk [vmem:[#allocation2 + $0xdc] sm:$0xf] %vm1077_vm7, %v15874_v0  ;;  %14580 = vmatpush3.bf16.msra.mxu1 %v15636_v14  ;;  %v2521_v4 = vshll.u32 %v2443_v8, 16  ;;  %v2526_v29 = vshrl.u32 %v2378_v62, 16 }
 0x328   :  { %1086 = vst.msk [vmem:[#allocation2 + $0xcc] sm:$0xf] %vm1077_vm7, %v15874_v0  ;;  %1087 = vst.msk [vmem:[#allocation2 + $0xd0] sm:$0xf] %vm1077_vm7, %v15874_v0  ;;  %v2529_v22 = vshll.u32 %v2378_v62, 16  ;;  %v2535_v55 = vshll.u32 %v19046_v1, 16  ;;  %14581 = vmatprep.subr.bf16.mxu1 %v19051_v20 }
 0x329   :  { %1088 = vst.msk [vmem:[#allocation2 + $0xd4] sm:$0x1] %vm1080_vm0, %v15874_v0  ;;  %1091 = vst.msk [vmem:[#allocation2 + $0x1ac] sm:$0x1] %vm1080_vm0, %v15874_v0  ;;  %v2380_v9 = vld [vmem:[#allocation2 + $0x24] sm:$0xf] }
 0x32a   :  { %1089 = vst.msk [vmem:[#allocation2 + $0x1a4] sm:$0xf] %vm1077_vm7, %v15874_v0  ;;  %1090 = vst.msk [vmem:[#allocation2 + $0x1a8] sm:$0xf] %vm1077_vm7, %v15874_v0  ;;  %v19103_v33 = vld [vmem:[#allocation2 + $0x28] sm:$0xf] }
 0x32b   :  { %v2504_v48 = vrot.slane %v2502_v59, 4  ;;  %v2507_v46 = vrot.slane %v2505_v27, 5  ;;  %v2513_v26 = vrot.slane %v2511_v32, 5  ;;  %v2517_v58 = vrot.slane %v2515_v5, 4  ;;  %v15523_v13 = vld [vmem:[#allocation2 + $0xc0] sm:$0xff]   ;;  %14582 = vmatpush3.bf16.msra.mxu1 %v19051_v20 }
 0x32c   :  { %v2523_v38 = vrot.slane %v2521_v4, 5  ;;  %v2528_v35 = vrot.slane %v2526_v29, 4  ;;  %v2531_v7 = vrot.slane %v2529_v22, 5  ;;  %v19106_v52 = vrot.slane %v2535_v55, 5  ;;  %v15524_v44 = vld [vmem:[#allocation2 + $0xe4] sm:$0xff]   ;;  %14647 = vmatprep.subr.bf16.mxu1 %v15541_v3  ;;  %14544 = vmatmul.mubr.msk.bf16.gmra.mrb[4].mxu1 %vm478_vm5, %v15523_v13  ;;  %v15525_v29 = vld [vmem:[#allocation2 + $0xf0] sm:$0xff]  }
 0x32d   :  { %v2508_v6 = vor.u32 %v2507_v46, %v2504_v48  ;;  %v2518_v12 = vor.u32 %v2517_v58, %v2513_v26  ;;  %v2539_v41 = vshrl.u32 %v19046_v1, 16  ;;  %v2545_v51 = vshll.u32 %v2444_v49, 16  ;;  %v1095_v15 = vld [vmem:[#allocation2] sm:$0x1]  ;;  %v1205_v50 = vld [vmem:[#allocation2 + $0x8] sm:$0x1]  ;;  %14547 = vmatprep.mubr.msk.bf16.mxu1 %vm478_vm5, %v15524_v44 }
 0x32e   :  { %v2532_v56 = vor.u32 %v2531_v7, %v2528_v35  ;;  %v2550_v47 = vshrl.u32 %v2380_v9, 16  ;;  %v2553_v17 = vshll.u32 %v2380_v9, 16  ;;  %v2559_v24 = vshll.u32 %v19103_v33, 16  ;;  %v2375_v1 = vld [vmem:[#allocation2 + $0x4] sm:$0xf]  ;;  %v15526_v22 = vld [vmem:[#allocation2 + $0xfc] sm:$0xff]  }
 0x32f   :  { %v2509_v19 = vrot.slane %v2508_v6, 4  ;;  %v2519_v25 = vrot.slane %v2518_v12, 4  ;;  %v2541_v43 = vrot.slane %v2539_v41, 4  ;;  %v2445_v36 = vld [vmem:[#allocation2 + $0x2c] sm:$0x1]  ;;  %v1096_v30 = vsel %vm16094_vm2, 0, %v1095_v15 }
 0x330   :  { %v1206_v16 = vsel %vm16104_vm4, 0, %v1205_v50  ;;  %v2487_v10 = vshll.u32 %v2375_v1, 16  ;;  %v2491_v21 = vshrl.u32 %v2375_v1, 16  ;;  %v2382_v61 = vld [vmem:[#allocation2 + $0x30] sm:$0xf]  ;;  %v2533_v53 = vrot.slane %v2532_v56, 4 }
 0x331   :  { %v2383_v31 = vld [vmem:[#allocation2 + $0x34] sm:$0xf]  ;;  %1097 = vst [vmem:[#allocation2] sm:$0x1] %v1096_v30  ;;  %1207 = vst [vmem:[#allocation2 + $0x8] sm:$0x1] %v1206_v16  ;;  %v2514_v2 = vsel %vm19112_vm12, %v2509_v19, %v2513_v26  ;;  %v2542_v60 = vor.u32 %v2541_v43, %v19106_v52  ;;  %v2524_v23 = vsel %vm19112_vm12, %v2519_v25, %v2523_v38 }
 0x332   :  { %v2547_v63 = vrot.slane %v2545_v51, 5  ;;  %v19126_v8 = vrot.slane %v2487_v10, 5  ;;  %v2493_v62 = vrot.slane %v2491_v21, 4  ;;  %v2552_v42 = vrot.slane %v2550_v47, 4  ;;  %v2446_v27 = vld [vmem:[#allocation2 + $0x38] sm:$0x1] }
 0x333   :  { %v2538_v39 = vsel %vm19112_vm12, %v2533_v53, %v19106_v52  ;;  %v2543_v45 = vrot.slane %v2542_v60, 4  ;;  %v2555_v54 = vrot.slane %v2553_v17, 5  ;;  %v2561_v40 = vrot.slane %v2559_v24, 5  ;;  %v2384_v55 = vld [vmem:[#allocation2 + $0x3c] sm:$0xf] }
 0x334   :  { %v2494_v37 = vor.u32 %v2493_v62, %v19126_v8  ;;  %v2563_v57 = vshrl.u32 %v19103_v33, 16  ;;  %v2569_v28 = vshll.u32 %v2445_v36, 16  ;;  %v2574_v34 = vshrl.u32 %v2382_v61, 16  ;;  %14548 = vmatmul.mubr.msk.bf16.gmra.mrb[8].mxu1 %vm478_vm5, %v15525_v29  ;;  %v2385_v17 = vld [vmem:[#allocation2 + $0x40] sm:$0xf]  ;;  %v15527_v62 = vld [vmem:[#allocation2 + $0x108] sm:$0xff]  }
 0x335   :  { %v2548_v0 = vsel %vm19112_vm12, %v2543_v45, %v2547_v63  ;;  %v2556_v59 = vor.u32 %v2555_v54, %v2552_v42  ;;  %v2577_v32 = vshll.u32 %v2382_v61, 16  ;;  %v2583_v5 = vshll.u32 %v2383_v31, 16  ;;  %14551 = vmatprep.mubr.msk.bf16.mxu1 %vm478_vm5, %v15526_v22  ;;  %v2447_v24 = vld [vmem:[#allocation2 + $0x44] sm:$0x1]  ;;  %v2386_v16 = vld [vmem:[#allocation2 + $0x48] sm:$0xf] }
 0x336   :  { %v19137_v49 = vrot.slane %v2494_v37, 4  ;;  %v19139_v3 = vcombine.low %v2514_v2, %v2524_v23  ;;  %v2565_v14 = vrot.slane %v2563_v57, 4  ;;  %v2571_v4 = vrot.slane %v2569_v28, 5  ;;  %v2387_v23 = vld [vmem:[#allocation2 + $0x4c] sm:$0xf] }
 0x337   :  { %v2557_v9 = vrot.slane %v2556_v59, 4  ;;  %v2576_v33 = vrot.slane %v2574_v34, 4  ;;  %v2579_v48 = vrot.slane %v2577_v32, 5  ;;  %v2585_v46 = vrot.slane %v2583_v5, 5  ;;  %v2448_v34 = vld [vmem:[#allocation2 + $0x50] sm:$0x1] }
 0x338   :  { %v2374_v26 = vld [vmem:[#allocation2] sm:$0xf]  ;;  %v2442_v58 = vld [vmem:[#allocation2 + $0x8] sm:$0x1]  ;;  %v19141_v38 = vcombine.low %v2538_v39, %v2548_v0  ;;  %v2566_v35 = vor.u32 %v2565_v14, %v2561_v40  ;;  %v2587_v7 = vshrl.u32 %v2383_v31, 16  ;;  %v2593_v6 = vshll.u32 %v2446_v27, 16 }
 0x339   :  { %v2478_v12 = vshrl.u32 %v2374_v26, 16  ;;  %v2481_v13 = vshll.u32 %v2374_v26, 16  ;;  %v2497_v52 = vshll.u32 %v2442_v58, 16  ;;  %v2562_v41 = vsel %vm19112_vm12, %v2557_v9, %v2561_v40  ;;  %v15528_v40 = vld [vmem:[#allocation2 + $0x114] sm:$0xff]   ;;  %v2449_v26 = vld [vmem:[#allocation2 + $0x5c] sm:$0x1] }
 0x33a   :  { %v2567_v56 = vrot.slane %v2566_v35, 4  ;;  %v2580_v51 = vor.u32 %v2579_v48, %v2576_v33  ;;  %v2589_v44 = vrot.slane %v2587_v7, 4  ;;  %v2595_v47 = vrot.slane %v2593_v6, 5  ;;  %v2388_v59 = vld [vmem:[#allocation2 + $0x54] sm:$0xf] }
 0x33b   :  { %v2480_v19 = vrot.slane %v2478_v12, 4  ;;  %v2483_v25 = vrot.slane %v2481_v13, 5  ;;  %v2499_v43 = vrot.slane %v2497_v52, 5  ;;  %v2598_v15 = vshrl.u32 %v2384_v55, 16  ;;  %v2390_v6 = vld [vmem:[#allocation2 + $0x60] sm:$0xf] }
 0x33c   :  { %v2572_v50 = vsel %vm19112_vm12, %v2567_v56, %v2571_v4  ;;  %v2581_v1 = vrot.slane %v2580_v51, 4  ;;  %v2590_v36 = vor.u32 %v2589_v44, %v2585_v46  ;;  %v2601_v30 = vshll.u32 %v2384_v55, 16  ;;  %14552 = vmatmul.mubr.msk.bf16.gmra.mrb[12].mxu1 %vm478_vm5, %v15527_v62  ;;  %v2389_v55 = vld [vmem:[#allocation2 + $0x58] sm:$0xf] }
 0x33d   :  { %v2484_v10 = vor.u32 %v2483_v25, %v2480_v19  ;;  %v2500_v21 = vsel %vm19112_vm12, %v19137_v49, %v2499_v43  ;;  %v19152_v61 = vcombine.low %v2562_v41, %v2572_v50  ;;  %v2600_v31 = vrot.slane %v2598_v15, 4  ;;  %14555 = vmatprep.mubr.msk.bf16.mxu1 %vm478_vm5, %v15528_v40  ;;  %v2391_v15 = vld [vmem:[#allocation2 + $0x64] sm:$0xf] }
 0x33e   :  { %v2586_v2 = vsel %vm19112_vm12, %v2581_v1, %v2585_v46  ;;  %v2591_v53 = vrot.slane %v2590_v36, 4  ;;  %v2603_v60 = vrot.slane %v2601_v30, 5  ;;  %v2607_v63 = vshll.u32 %v2385_v17, 16  ;;  %v2450_v30 = vld [vmem:[#allocation2 + $0x68] sm:$0x1] }
 0x33f   :  { %v2485_v42 = vrot.slane %v2484_v10, 4  ;;  %v2611_v39 = vshrl.u32 %v2385_v17, 16  ;;  %v2617_v45 = vshll.u32 %v2447_v24, 16  ;;  %v2622_v54 = vshrl.u32 %v2386_v16, 16  ;;  %v15529_v17 = vld [vmem:[#allocation2 + $0x120] sm:$0xff]  }
 0x340   :  { %v2596_v37 = vsel %vm19112_vm12, %v2591_v53, %v2595_v47  ;;  %v2604_v57 = vor.u32 %v2603_v60, %v2600_v31  ;;  %v2609_v28 = vrot.slane %v2607_v63, 5  ;;  %v2625_v0 = vshll.u32 %v2386_v16, 16 }
 0x341   :  { %v2490_v27 = vsel %vm19112_vm12, %v2485_v42, %v19126_v8  ;;  %v19162_v32 = vcombine.low %v2586_v2, %v2596_v37  ;;  %v2613_v5 = vrot.slane %v2611_v39, 4  ;;  %v2619_v49 = vrot.slane %v2617_v45, 5  ;;  %v2392_v2 = vld [vmem:[#allocation2 + $0x6c] sm:$0xf] }
 0x342   :  { %v13031_v14 = vcombine.low %v2490_v27, %v2500_v21  ;;  %v2605_v4 = vrot.slane %v2604_v57, 4  ;;  %v2624_v29 = vrot.slane %v2622_v54, 4  ;;  %v2627_v22 = vrot.slane %v2625_v0, 5  ;;  %v2393_v54 = vld [vmem:[#allocation2 + $0x70] sm:$0xf] }
 0x343   :  { %v2614_v9 = vor.u32 %v2613_v5, %v2609_v28  ;;  %v2631_v33 = vshll.u32 %v2387_v23, 16  ;;  %v2635_v48 = vshrl.u32 %v2387_v23, 16  ;;  %v2641_v46 = vshll.u32 %v2448_v34, 16  ;;  %v2451_v34 = vld [vmem:[#allocation2 + $0x74] sm:$0x1] }
 0x344   :  { %14311 = vmatprep.mubr.msk.bf16.mxu0 %vm478_vm5, %v13031_v14  ;;  %v2610_v8 = vsel %vm19112_vm12, %v2605_v4, %v2609_v28  ;;  %v2628_v58 = vor.u32 %v2627_v22, %v2624_v29  ;;  %v2646_v35 = vshrl.u32 %v2388_v59, 16  ;;  %v2649_v7 = vshll.u32 %v2388_v59, 16  ;;  %14556 = vmatmul.mubr.msk.bf16.gmra.mrb[16].mxu1 %vm478_vm5, %v15529_v17  ;;  %v15532_v22 = vld [vmem:[#allocation2 + $0x138] sm:$0xff]  }
 0x345   :  { %14312 = vmatmul.mubr.msk.bf16.vlgmr.msra.gmra.mrb[64].mxu0 %vm478_vm5, %v19139_v3  ;;  %v2615_v12 = vrot.slane %v2614_v9, 4  ;;  %v2633_v13 = vrot.slane %v2631_v33, 5  ;;  %v2637_v52 = vrot.slane %v2635_v48, 4  ;;  %v2643_v41 = vrot.slane %v2641_v46, 5  ;;  %v15530_v3 = vld [vmem:[#allocation2 + $0x12c] sm:$0xff]  }
 0x346   :  { %14315 = vmatprep.mubr.msk.bf16.mxu0 %vm478_vm5, %v19141_v38  ;;  %v2629_v56 = vrot.slane %v2628_v58, 4  ;;  %v2648_v51 = vrot.slane %v2646_v35, 4  ;;  %v2651_v44 = vrot.slane %v2649_v7, 5  ;;  %v2655_v47 = vshll.u32 %v2389_v55, 16  ;;  %14559 = vmatprep.mubr.msk.bf16.mxu1 %vm478_vm5, %v15530_v3 }
 0x347   :  { %v2620_v19 = vsel %vm19112_vm12, %v2615_v12, %v2619_v49  ;;  %v2638_v25 = vor.u32 %v2637_v52, %v2633_v13  ;;  %v2659_v43 = vshrl.u32 %v2389_v55, 16  ;;  %v2665_v24 = vshll.u32 %v2449_v26, 16  ;;  %v2394_v55 = vld [vmem:[#allocation2 + $0x78] sm:$0xf]  ;;  %v15533_v26 = vld [vmem:[#allocation2 + $0x144] sm:$0xff]  }
 0x348   :  { %v19174_v50 = vcombine.low %v2610_v8, %v2620_v19  ;;  %v2634_v1 = vsel %vm19112_vm12, %v2629_v56, %v2633_v13  ;;  %v2652_v36 = vor.u32 %v2651_v44, %v2648_v51  ;;  %v2657_v38 = vrot.slane %v2655_v47, 5  ;;  %v2452_v56 = vld [vmem:[#allocation2 + $0x80] sm:$0x1]  ;;  %v2396_v47 = vld [vmem:[#allocation2 + $0x84] sm:$0xf] }
 0x349   :  { %v2639_v16 = vrot.slane %v2638_v25, 4  ;;  %v2661_v10 = vrot.slane %v2659_v43, 4  ;;  %v2667_v21 = vrot.slane %v2665_v24, 5  ;;  %v2670_v31 = vshrl.u32 %v2390_v6, 16  ;;  %v2397_v24 = vld [vmem:[#allocation2 + $0x88] sm:$0xf] }
 0x34a   :  { %v2653_v53 = vrot.slane %v2652_v36, 4  ;;  %v2673_v60 = vshll.u32 %v2390_v6, 16  ;;  %v2679_v63 = vshll.u32 %v2391_v15, 16  ;;  %v2683_v62 = vshrl.u32 %v2391_v15, 16 }
 0x34b   :  { %v2644_v23 = vsel %vm19112_vm12, %v2639_v16, %v2643_v41  ;;  %v2662_v42 = vor.u32 %v2661_v10, %v2657_v38  ;;  %v2672_v39 = vrot.slane %v2670_v31, 4  ;;  %v2689_v45 = vshll.u32 %v2450_v30, 16 }
 0x34c   :  { %v13037_v40 = vcombine.low %v2634_v1, %v2644_v23  ;;  %v2658_v37 = vsel %vm19112_vm12, %v2653_v53, %v2657_v38  ;;  %v2675_v57 = vrot.slane %v2673_v60, 5  ;;  %v2681_v28 = vrot.slane %v2679_v63, 5  ;;  %14560 = vmatmul.mubr.msk.bf16.gmra.mrb[20].mxu1 %vm478_vm5, %v15532_v22  ;;  %v2453_v53 = vld [vmem:[#allocation2 + $0x8c] sm:$0x1]  ;;  %v2400_v22 = vld [vmem:[#allocation2 + $0x9c] sm:$0xf] }
 0x34d   :  { %14316 = vmatmul.mubr.msk.bf16.gmra.mrb[68].mxu0 %vm478_vm5, %v19152_v61  ;;  %v2663_v0 = vrot.slane %v2662_v42, 4  ;;  %v2685_v59 = vrot.slane %v2683_v62, 4  ;;  %v2691_v27 = vrot.slane %v2689_v45, 5  ;;  %v2694_v5 = vshrl.u32 %v2392_v2, 16  ;;  %v2395_v61 = vld [vmem:[#allocation2 + $0x7c] sm:$0xf]  ;;  %14563 = vmatprep.mubr.msk.bf16.mxu1 %vm478_vm5, %v15533_v26 }
 0x34e   :  { %14319 = vmatprep.mubr.msk.bf16.mxu0 %vm478_vm5, %v19162_v32  ;;  %v2676_v49 = vor.u32 %v2675_v57, %v2672_v39  ;;  %v2697_v14 = vshll.u32 %v2392_v2, 16  ;;  %v2703_v4 = vshll.u32 %v2393_v54, 16  ;;  %v2707_v29 = vshrl.u32 %v2393_v54, 16  ;;  %v2398_v62 = vld [vmem:[#allocation2 + $0x90] sm:$0xf]  ;;  %v15535_v54 = vld [vmem:[#allocation2 + $0x15c] sm:$0xff]  }
 0x34f   :  { %v2668_v9 = vsel %vm19112_vm12, %v2663_v0, %v2667_v21  ;;  %v2686_v33 = vor.u32 %v2685_v59, %v2681_v28  ;;  %v2696_v48 = vrot.slane %v2694_v5, 4  ;;  %v2713_v46 = vshll.u32 %v2451_v34, 16  ;;  %v15534_v21 = vld [vmem:[#allocation2 + $0x150] sm:$0xff]  }
 0x350   :  { %v19190_v8 = vcombine.low %v2658_v37, %v2668_v9  ;;  %v2677_v58 = vrot.slane %v2676_v49, 4  ;;  %v2699_v35 = vrot.slane %v2697_v14, 5  ;;  %v2705_v7 = vrot.slane %v2703_v4, 5  ;;  %v2399_v45 = vld [vmem:[#allocation2 + $0x94] sm:$0xf] }
 0x351   :  { %v2687_v32 = vrot.slane %v2686_v33, 4  ;;  %v2709_v6 = vrot.slane %v2707_v29, 4  ;;  %v2715_v12 = vrot.slane %v2713_v46, 5  ;;  %v2718_v13 = vshrl.u32 %v2394_v55, 16  ;;  %v2454_v14 = vld [vmem:[#allocation2 + $0x98] sm:$0x1] }
 0x352   :  { %v2682_v52 = vsel %vm19112_vm12, %v2677_v58, %v2681_v28  ;;  %v2700_v41 = vor.u32 %v2699_v35, %v2696_v48  ;;  %v2721_v51 = vshll.u32 %v2394_v55, 16  ;;  %v2727_v44 = vshll.u32 %v2395_v61, 16  ;;  %v2401_v46 = vld [vmem:[#allocation2 + $0xa0] sm:$0xf] }
 0x353   :  { %v2692_v17 = vsel %vm19112_vm12, %v2687_v32, %v2691_v27  ;;  %v2710_v19 = vor.u32 %v2709_v6, %v2705_v7  ;;  %v2720_v25 = vrot.slane %v2718_v13, 4  ;;  %v2731_v43 = vshrl.u32 %v2395_v61, 16 }
 0x354   :  { %v13039_v15 = vcombine.low %v2682_v52, %v2692_v17  ;;  %v2701_v3 = vrot.slane %v2700_v41, 4  ;;  %v2723_v1 = vrot.slane %v2721_v51, 5  ;;  %v2729_v36 = vrot.slane %v2727_v44, 5  ;;  %14564 = vmatmul.mubr.msk.bf16.gmra.mrb[24].mxu1 %vm478_vm5, %v15534_v21  ;;  %v15536_v44 = vld [vmem:[#allocation2 + $0x168] sm:$0xff]  }
 0x355   :  { %14320 = vmatmul.mubr.msk.bf16.gmra.mrb[72].mxu0 %vm478_vm5, %v19174_v50  ;;  %v2711_v38 = vrot.slane %v2710_v19, 4  ;;  %v2733_v30 = vrot.slane %v2731_v43, 4  ;;  %v2737_v16 = vshll.u32 %v2452_v56, 16  ;;  %v2742_v10 = vshrl.u32 %v2396_v47, 16  ;;  %14567 = vmatprep.mubr.msk.bf16.mxu1 %vm478_vm5, %v15535_v54 }
 0x356   :  { %14323 = vmatprep.mubr.msk.bf16.mxu0 %vm478_vm5, %v13037_v40  ;;  %v2706_v31 = vsel %vm19112_vm12, %v2701_v3, %v2705_v7  ;;  %v2724_v2 = vor.u32 %v2723_v1, %v2720_v25  ;;  %v2745_v60 = vshll.u32 %v2396_v47, 16  ;;  %v2751_v63 = vshll.u32 %v2397_v24, 16  ;;  %v2402_v47 = vld [vmem:[#allocation2 + $0xa8] sm:$0xf] }
 0x357   :  { %v2716_v23 = vsel %vm19112_vm12, %v2711_v38, %v2715_v12  ;;  %v2734_v42 = vor.u32 %v2733_v30, %v2729_v36  ;;  %v2739_v50 = vrot.slane %v2737_v16, 5  ;;  %v2744_v39 = vrot.slane %v2742_v10, 4  ;;  %v2455_v12 = vld [vmem:[#allocation2 + $0xa4] sm:$0x1]  ;;  %v2403_v16 = vld [vmem:[#allocation2 + $0xac] sm:$0xf] }
 0x358   :  { %v19205_v37 = vcombine.low %v2706_v31, %v2716_v23  ;;  %v2725_v57 = vrot.slane %v2724_v2, 4  ;;  %v2747_v40 = vrot.slane %v2745_v60, 5  ;;  %v2753_v28 = vrot.slane %v2751_v63, 5  ;;  %v2456_v60 = vld [vmem:[#allocation2 + $0xb0] sm:$0x1] }
 0x359   :  { %v2735_v34 = vrot.slane %v2734_v42, 4  ;;  %v2755_v0 = vshrl.u32 %v2397_v24, 16  ;;  %v2761_v59 = vshll.u32 %v2453_v53, 16  ;;  %v2766_v27 = vshrl.u32 %v2398_v62, 16  ;;  %v2404_v63 = vld [vmem:[#allocation2 + $0xb4] sm:$0xf] }
 0x35a   :  { %v2730_v5 = vsel %vm19112_vm12, %v2725_v57, %v2729_v36  ;;  %v2748_v49 = vor.u32 %v2747_v40, %v2744_v39  ;;  %v2769_v4 = vshll.u32 %v2398_v62, 16  ;;  %v2775_v29 = vshll.u32 %v2399_v45, 16 }
 0x35b   :  { %v2740_v55 = vsel %vm19112_vm12, %v2735_v34, %v2739_v50  ;;  %v2757_v9 = vrot.slane %v2755_v0, 4  ;;  %v2763_v33 = vrot.slane %v2761_v59, 5  ;;  %v2768_v48 = vrot.slane %v2766_v27, 4  ;;  %v2405_v0 = vld [vmem:[#allocation2 + $0xb8] sm:$0xf] }
 0x35c   :  { %v13041_v61 = vcombine.low %v2730_v5, %v2740_v55  ;;  %v2749_v26 = vrot.slane %v2748_v49, 4  ;;  %v2771_v58 = vrot.slane %v2769_v4, 5  ;;  %v2777_v35 = vrot.slane %v2775_v29, 5  ;;  %14568 = vmatmul.mubr.msk.bf16.gmra.mrb[28].mxu1 %vm478_vm5, %v15536_v44  ;;  %v2457_v4 = vld [vmem:[#allocation2 + $0xbc] sm:$0x1]  ;;  %v15538_v29 = vld [vmem:[#allocation2 + $0x180] sm:$0xff]  }
 0x35d   :  { %14324 = vmatmul.mubr.msk.bf16.gmra.mrb[76].mxu0 %vm478_vm5, %v19190_v8  ;;  %v2758_v7 = vor.u32 %v2757_v9, %v2753_v28  ;;  %v2779_v32 = vshrl.u32 %v2399_v45, 16  ;;  %v2785_v6 = vshll.u32 %v2454_v14, 16  ;;  %v2790_v13 = vshrl.u32 %v2400_v22, 16  ;;  %v15537_v8 = vld [vmem:[#allocation2 + $0x174] sm:$0xff]  }
 0x35e   :  { %14327 = vmatprep.mubr.msk.bf16.mxu0 %vm478_vm5, %v13039_v15  ;;  %v2754_v52 = vsel %vm19112_vm12, %v2749_v26, %v2753_v28  ;;  %v2772_v41 = vor.u32 %v2771_v58, %v2768_v48  ;;  %v2793_v56 = vshll.u32 %v2400_v22, 16  ;;  %v2799_v51 = vshll.u32 %v2401_v46, 16  ;;  %14571 = vmatprep.mubr.msk.bf16.mxu1 %vm478_vm5, %v15537_v8  ;;  %v1149_v48 = vld [vmem:[#allocation2 + $0xd8] sm:$0x1] }
 0x35f   :  { %v2759_v17 = vrot.slane %v2758_v7, 4  ;;  %v2781_v19 = vrot.slane %v2779_v32, 4  ;;  %v2787_v25 = vrot.slane %v2785_v6, 5  ;;  %v2792_v43 = vrot.slane %v2790_v13, 4  ;;  %v2407_v13 = vld [vmem:[#allocation2 + $0xdc] sm:$0xf] }
 0x360   :  { %v2773_v24 = vrot.slane %v2772_v41, 4  ;;  %v2795_v3 = vrot.slane %v2793_v56, 5  ;;  %v2801_v1 = vrot.slane %v2799_v51, 5  ;;  %v2803_v36 = vshrl.u32 %v2401_v46, 16 }
 0x361   :  { %v2764_v15 = vsel %vm19112_vm12, %v2759_v17, %v2763_v33  ;;  %v2782_v38 = vor.u32 %v2781_v19, %v2777_v35  ;;  %v2809_v30 = vshll.u32 %v2455_v12, 16  ;;  %v2814_v10 = vshrl.u32 %v2402_v47, 16  ;;  %v15539_v33 = vld [vmem:[#allocation2 + $0x18c] sm:$0xff]  }
 0x362   :  { %v13042_v21 = vcombine.low %v2754_v52, %v2764_v15  ;;  %v2778_v31 = vsel %vm19112_vm12, %v2773_v24, %v2777_v35  ;;  %v2796_v2 = vor.u32 %v2795_v3, %v2792_v43  ;;  %v2805_v53 = vrot.slane %v2803_v36, 4  ;;  %v1259_v35 = vld [vmem:[#allocation2 + $0xe0] sm:$0x1]  ;;  %v2408_v52 = vld [vmem:[#allocation2 + $0xe4] sm:$0xf] }
 0x363   :  { %v2783_v62 = vrot.slane %v2782_v38, 4  ;;  %v2811_v23 = vrot.slane %v2809_v30, 5  ;;  %v2816_v42 = vrot.slane %v2814_v10, 4  ;;  %v2817_v50 = vshll.u32 %v2402_v47, 16  ;;  %v2409_v47 = vld [vmem:[#allocation2 + $0xe8] sm:$0xf] }
 0x364   :  { %v2797_v39 = vrot.slane %v2796_v2, 4  ;;  %v2806_v45 = vor.u32 %v2805_v53, %v2801_v1  ;;  %v2823_v54 = vshll.u32 %v2403_v16, 16  ;;  %v2827_v57 = vshrl.u32 %v2403_v16, 16  ;;  %14572 = vmatmul.mubr.msk.bf16.gmra.mrb[32].mxu1 %vm478_vm5, %v15538_v29  ;;  %v2459_v15 = vld [vmem:[#allocation2 + $0xec] sm:$0x1] }
 0x365   :  { %14328 = vmatmul.mubr.msk.bf16.gmra.mrb[80].mxu0 %vm478_vm5, %v19205_v37  ;;  %v2788_v40 = vsel %vm19112_vm12, %v2783_v62, %v2787_v25  ;;  %v2819_v28 = vrot.slane %v2817_v50, 5  ;;  %v2833_v34 = vshll.u32 %v2456_v60, 16  ;;  %v2838_v59 = vshrl.u32 %v2404_v63, 16  ;;  %14575 = vmatprep.mubr.msk.bf16.mxu1 %vm478_vm5, %v15539_v33  ;;  %v15540_v60 = vld [vmem:[#allocation2 + $0x198] sm:$0xff]   ;;  %v2411_v50 = vld [vmem:[#allocation2 + $0xf4] sm:$0xf] }
 0x366   :  { %14331 = vmatprep.mubr.msk.bf16.mxu0 %vm478_vm5, %v13041_v61  ;;  %v13043_v27 = vcombine.low %v2778_v31, %v2788_v40  ;;  %v2802_v5 = vsel %vm19112_vm12, %v2797_v39, %v2801_v1  ;;  %v2807_v49 = vrot.slane %v2806_v45, 4  ;;  %v2825_v14 = vrot.slane %v2823_v54, 5 }
 0x367   :  { %v2820_v22 = vor.u32 %v2819_v28, %v2816_v42  ;;  %v2829_v55 = vrot.slane %v2827_v57, 4  ;;  %v2835_v37 = vrot.slane %v2833_v34, 5  ;;  %v2840_v9 = vrot.slane %v2838_v59, 4  ;;  %v15542_v59 = vld [vmem:[%s23146_s3] sm:$0xff]  }
 0x368   :  { %v2812_v46 = vsel %vm19112_vm12, %v2807_v49, %v2811_v23  ;;  %v2841_v26 = vshll.u32 %v2404_v63, 16  ;;  %v2847_v58 = vshll.u32 %v2405_v0, 16  ;;  %v2851_v61 = vshrl.u32 %v2405_v0, 16  ;;  %v2410_v63 = vld [vmem:[#allocation2 + $0xf0] sm:$0xf]  ;;  %14375 = vmatprep.subr.bf16.mxu0 %v15542_v59 }
 0x369   :  { %v19234_v7 = vcombine.low %v2802_v5, %v2812_v46  ;;  %v2821_v32 = vrot.slane %v2820_v22, 4  ;;  %v2830_v6 = vor.u32 %v2829_v55, %v2825_v14  ;;  %v2857_v12 = vshll.u32 %v2457_v4, 16  ;;  %14376 = vmatpush3.bf16.msra.mxu0 %v15542_v59  ;;  %v5878_v59 = vld [vmem:[#allocation2 + $0x18] sm:$0xf] }
 0x36a   :  { %v2843_v41 = vrot.slane %v2841_v26, 5  ;;  %v2849_v56 = vrot.slane %v2847_v58, 5  ;;  %v2853_v51 = vrot.slane %v2851_v61, 4  ;;  %v1150_v44 = vsel %vm16094_vm2, 0, %v1149_v48  ;;  %v5875_v61 = vld [vmem:[#allocation2 + $0xc] sm:$0xf] }
 0x36b   :  { %v2826_v17 = vsel %vm19112_vm12, %v2821_v32, %v2825_v14  ;;  %v2831_v19 = vrot.slane %v2830_v6, 4  ;;  %v2859_v25 = vrot.slane %v2857_v12, 5  ;;  %1151 = vst [vmem:[#allocation2 + $0xd8] sm:$0x1] %v1150_v44  ;;  %v1260_v43 = vsel %vm16104_vm4, 0, %v1259_v35 }
 0x36c   :  { %v2844_v8 = vor.u32 %v2843_v41, %v2840_v9  ;;  %v2854_v24 = vor.u32 %v2853_v51, %v2849_v56  ;;  %1261 = vst [vmem:[#allocation2 + $0xe0] sm:$0x1] %v1260_v43  ;;  %v2871_v3 = vshll.u32 %v2407_v13, 16  ;;  %v2875_v1 = vshrl.u32 %v2407_v13, 16  ;;  %14576 = vmatmul.mubr.msk.bf16.gmra.mrb[36].mxu1 %vm478_vm5, %v15540_v60  ;;  %v2460_v14 = vld [vmem:[#allocation2 + $0xf8] sm:$0x1] }
 0x36d   :  { %14332 = vmatmul.mubr.msk.bf16.gmra.mrb[84].mxu0 %vm478_vm5, %v13042_v21  ;;  %v2836_v36 = vsel %vm19112_vm12, %v2831_v19, %v2835_v37  ;;  %v2886_v38 = vshrl.u32 %v2408_v52, 16  ;;  %v2889_v30 = vshll.u32 %v2408_v52, 16  ;;  %v2895_v16 = vshll.u32 %v2409_v47, 16 }
 0x36e   :  { %14335 = vmatprep.mubr.msk.bf16.mxu0 %vm478_vm5, %v13043_v27  ;;  %v13045_v10 = vcombine.low %v2826_v17, %v2836_v36  ;;  %v2845_v31 = vrot.slane %v2844_v8, 4  ;;  %v2855_v2 = vrot.slane %v2854_v24, 4  ;;  %v19247_v53 = vrot.slane %v2871_v3, 5  ;;  %v5877_v3 = vld [vmem:[#allocation2 + $0x14] sm:$0x1] }
 0x36f   :  { %v2877_v62 = vrot.slane %v2875_v1, 4  ;;  %v2888_v23 = vrot.slane %v2886_v38, 4  ;;  %v2891_v42 = vrot.slane %v2889_v30, 5  ;;  %v2897_v21 = vrot.slane %v2895_v16, 5  ;;  %v2412_v1 = vld [vmem:[#allocation2 + $0xfc] sm:$0xf] }
 0x370   :  { %v2850_v39 = vsel %vm19112_vm12, %v2845_v31, %v2849_v56  ;;  %v2860_v45 = vsel %vm19112_vm12, %v2855_v2, %v2859_v25  ;;  %v2899_v54 = vshrl.u32 %v2409_v47, 16  ;;  %v2905_v57 = vshll.u32 %v2459_v15, 16  ;;  %v5876_v47 = vld [vmem:[#allocation2 + $0x10] sm:$0xf] }
 0x371   :  { %v19254_v40 = vcombine.low %v2850_v39, %v2860_v45  ;;  %v2878_v28 = vor.u32 %v2877_v62, %v19247_v53  ;;  %v2892_v34 = vor.u32 %v2891_v42, %v2888_v23  ;;  %v2910_v0 = vshrl.u32 %v2410_v63, 16  ;;  %v2413_v23 = vld [vmem:[#allocation2 + $0x100] sm:$0xf] }
 0x372   :  { %v2406_v27 = vld [vmem:[#allocation2 + $0xd8] sm:$0xf]  ;;  %v2901_v5 = vrot.slane %v2899_v54, 4  ;;  %v2907_v49 = vrot.slane %v2905_v57, 5  ;;  %v2913_v4 = vshll.u32 %v2410_v63, 16  ;;  %v2919_v29 = vshll.u32 %v2411_v50, 16 }
 0x373   :  { %v2458_v22 = vld [vmem:[#allocation2 + $0xe0] sm:$0x1]  ;;  %v2862_v55 = vshrl.u32 %v2406_v27, 16  ;;  %v2865_v37 = vshll.u32 %v2406_v27, 16  ;;  %v2879_v9 = vrot.slane %v2878_v28, 4  ;;  %v2893_v33 = vrot.slane %v2892_v34, 4 }
 0x374   :  { %v2881_v48 = vshll.u32 %v2458_v22, 16  ;;  %v2902_v46 = vor.u32 %v2901_v5, %v2897_v21  ;;  %v2912_v26 = vrot.slane %v2910_v0, 4  ;;  %v2915_v58 = vrot.slane %v2913_v4, 5  ;;  %v2461_v54 = vld [vmem:[#allocation2 + $0x104] sm:$0x1] }
 0x375   :  { %14336 = vmatmul.mubr.msk.bf16.gmra.mrb[88].mxu0 %vm478_vm5, %v19234_v7  ;;  %v2864_v35 = vrot.slane %v2862_v55, 4  ;;  %v2867_v32 = vrot.slane %v2865_v37, 5  ;;  %v2898_v6 = vsel %vm19112_vm12, %v2893_v33, %v2897_v21  ;;  %v2921_v12 = vrot.slane %v2919_v29, 5  ;;  %v15543_v7 = vld [vmem:[%s23146_s3 + $0x8] sm:$0xff]   ;;  %v5879_v55 = vld [vmem:[#allocation2 + $0x1c] sm:$0xf] }
 0x376   :  { %14339 = vmatprep.mubr.msk.bf16.mxu0 %vm478_vm5, %v13045_v10  ;;  %v2883_v13 = vrot.slane %v2881_v48, 5  ;;  %v2903_v52 = vrot.slane %v2902_v46, 4  ;;  %v2916_v41 = vor.u32 %v2915_v58, %v2912_v26  ;;  %v2923_v56 = vshrl.u32 %v2411_v50, 16  ;;  %14377 = vmatprep.subr.bf16.mxu0 %v15543_v7  ;;  %v5880_v33 = vld [vmem:[#allocation2 + $0x20] sm:$0x1] }
 0x377   :  { %v2868_v51 = vor.u32 %v2867_v32, %v2864_v35  ;;  %v2929_v44 = vshll.u32 %v2460_v14, 16  ;;  %v5972_v17 = vshrl.u32 %v5875_v61, 16  ;;  %v5975_v19 = vshll.u32 %v5875_v61, 16  ;;  %14378 = vmatpush3.bf16.msra.mxu0 %v15543_v7 }
 0x378   :  { %v2884_v25 = vsel %vm19112_vm12, %v2879_v9, %v2883_v13  ;;  %v2908_v43 = vsel %vm19112_vm12, %v2903_v52, %v2907_v49  ;;  %v2917_v8 = vrot.slane %v2916_v41, 4  ;;  %v2925_v24 = vrot.slane %v2923_v56, 4  ;;  %v2414_v13 = vld [vmem:[#allocation2 + $0x108] sm:$0xf] }
 0x379   :  { %v2869_v36 = vrot.slane %v2868_v51, 4  ;;  %v13048_v15 = vcombine.low %v2898_v6, %v2908_v43  ;;  %v2931_v38 = vrot.slane %v2929_v44, 5  ;;  %v5974_v30 = vrot.slane %v5972_v17, 4  ;;  %v2415_v44 = vld [vmem:[#allocation2 + $0x10c] sm:$0xf] }
 0x37a   :  { %v2922_v16 = vsel %vm19112_vm12, %v2917_v8, %v2921_v12  ;;  %v2926_v10 = vor.u32 %v2925_v24, %v2921_v12  ;;  %v5977_v31 = vrot.slane %v5975_v19, 5  ;;  %v5981_v2 = vshll.u32 %v5876_v47, 16  ;;  %v2462_v24 = vld [vmem:[#allocation2 + $0x110] sm:$0x1] }
 0x37b   :  { %v2874_v60 = vsel %vm19112_vm12, %v2869_v36, %v19247_v53  ;;  %v5985_v63 = vshrl.u32 %v5876_v47, 16  ;;  %v5991_v62 = vshll.u32 %v5877_v3, 16  ;;  %v2934_v42 = vshrl.u32 %v2412_v1, 16 }
 0x37c   :  { %v13047_v21 = vcombine.low %v2874_v60, %v2884_v25  ;;  %v2927_v50 = vrot.slane %v2926_v10, 4  ;;  %v5978_v39 = vor.u32 %v5977_v31, %v5974_v30  ;;  %v5983_v45 = vrot.slane %v5981_v2, 5  ;;  %v5882_v60 = vld [vmem:[#allocation2 + $0x28] sm:$0xf] }
 0x37d   :  { %14340 = vmatmul.mubr.msk.bf16.gmra.mrb[92].mxu0 %vm478_vm5, %v19254_v40  ;;  %v5987_v57 = vrot.slane %v5985_v63, 4  ;;  %v5993_v28 = vrot.slane %v5991_v62, 5  ;;  %v2936_v34 = vrot.slane %v2934_v42, 4  ;;  %v2937_v0 = vshll.u32 %v2412_v1, 16 }
 0x37e   :  { %14343 = vmatprep.mubr.msk.bf16.mxu0 %vm478_vm5, %v13047_v21  ;;  %v2932_v53 = vsel %vm19112_vm12, %v2927_v50, %v2931_v38  ;;  %v5979_v27 = vrot.slane %v5978_v39, 4  ;;  %v2943_v5 = vshll.u32 %v2413_v23, 16  ;;  %v2947_v49 = vshrl.u32 %v2413_v23, 16  ;;  %v5883_v39 = vld [vmem:[#allocation2 + $0x2c] sm:$0x1] }
 0x37f   :  { %v13049_v14 = vcombine.low %v2922_v16, %v2932_v53  ;;  %v5988_v4 = vor.u32 %v5987_v57, %v5983_v45  ;;  %v2939_v29 = vrot.slane %v2937_v0, 5  ;;  %v2953_v22 = vshll.u32 %v2461_v54, 16  ;;  %v5881_v16 = vld [vmem:[#allocation2 + $0x24] sm:$0xf] }
 0x380   :  { %v5984_v40 = vsel %vm19112_vm12, %v5979_v27, %v5983_v45  ;;  %v2945_v37 = vrot.slane %v2943_v5, 5  ;;  %v2949_v9 = vrot.slane %v2947_v49, 4  ;;  %v5996_v48 = vshrl.u32 %v5878_v59, 16 }
 0x381   :  { %v5989_v46 = vrot.slane %v5988_v4, 4  ;;  %v2940_v26 = vor.u32 %v2939_v29, %v2936_v34  ;;  %v2955_v58 = vrot.slane %v2953_v22, 5  ;;  %v5999_v61 = vshll.u32 %v5878_v59, 16  ;;  %v2416_v59 = vld [vmem:[#allocation2 + $0x114] sm:$0xf]  ;;  %v15546_v4 = vld [vmem:[%s23146_s3 + $0x58] sm:$0xff]  }
 0x382   :  { %v2950_v35 = vor.u32 %v2949_v9, %v2945_v37  ;;  %v5998_v32 = vrot.slane %v5996_v48, 4  ;;  %v6005_v6 = vshll.u32 %v5879_v55, 16  ;;  %v6009_v12 = vshrl.u32 %v5879_v55, 16 }
 0x383   :  { %v5994_v52 = vsel %vm19112_vm12, %v5989_v46, %v5993_v28  ;;  %v2941_v41 = vrot.slane %v2940_v26, 4  ;;  %v6001_v56 = vrot.slane %v5999_v61, 5  ;;  %v6015_v51 = vshll.u32 %v5880_v33, 16  ;;  %v2463_v33 = vld [vmem:[#allocation2 + $0x11c] sm:$0x1]  ;;  %v15637_v26 = vld [vmem:[%s23146_s3 + $0x50] sm:$0xff]  }
 0x384   :  { %v13339_v47 = vcombine.low %v5984_v40, %v5994_v52  ;;  %v2951_v17 = vrot.slane %v2950_v35, 4  ;;  %v6007_v19 = vrot.slane %v6005_v6, 5  ;;  %v6011_v7 = vrot.slane %v6009_v12, 4  ;;  %v5884_v6 = vld [vmem:[#allocation2 + $0x30] sm:$0xf] }
 0x385   :  { %14344 = vmatmul.mubr.msk.bf16.gmra.mrb[96].mxu0 %vm478_vm5, %v13048_v15  ;;  %v2946_v25 = vsel %vm19112_vm12, %v2941_v41, %v2945_v37  ;;  %v6002_v43 = vor.u32 %v6001_v56, %v5998_v32  ;;  %v6017_v8 = vrot.slane %v6015_v51, 5  ;;  %v2958_v3 = vshrl.u32 %v2414_v13, 16  ;;  %v5885_v56 = vld [vmem:[#allocation2 + $0x34] sm:$0xf] }
 0x386   :  { %14347 = vmatprep.mubr.msk.bf16.mxu0 %vm478_vm5, %v13049_v14  ;;  %14583 = vmatprep.mubr.msk.bf16.mxu1 %vm478_vm5, %v13339_v47  ;;  %v2956_v1 = vsel %vm19112_vm12, %v2951_v17, %v2955_v58  ;;  %v6012_v36 = vor.u32 %v6011_v7, %v6007_v19  ;;  %v2961_v38 = vshll.u32 %v2414_v13, 16  ;;  %v2967_v30 = vshll.u32 %v2415_v44, 16  ;;  %v2417_v14 = vld [vmem:[#allocation2 + $0x118] sm:$0xf] }
 0x387   :  { %v13050_v10 = vcombine.low %v2946_v25, %v2956_v1  ;;  %v6003_v15 = vrot.slane %v6002_v43, 4  ;;  %v2960_v31 = vrot.slane %v2958_v3, 4  ;;  %v2971_v2 = vshrl.u32 %v2415_v44, 16  ;;  %v5886_v3 = vld [vmem:[#allocation2 + $0x38] sm:$0x1] }
 0x388   :  { %v6013_v63 = vrot.slane %v6012_v36, 4  ;;  %v2963_v62 = vrot.slane %v2961_v38, 5  ;;  %v2969_v23 = vrot.slane %v2967_v30, 5  ;;  %v2977_v42 = vshll.u32 %v2462_v24, 16 }
 0x389   :  { %v6008_v21 = vsel %vm19112_vm12, %v6003_v15, %v6007_v19  ;;  %v2973_v50 = vrot.slane %v2971_v2, 4  ;;  %v6020_v45 = vshrl.u32 %v5881_v16, 16  ;;  %v6023_v54 = vshll.u32 %v5881_v16, 16  ;;  %v2418_v15 = vld [vmem:[#allocation2 + $0x120] sm:$0xf] }
 0x38a   :  { %v6018_v57 = vsel %vm19112_vm12, %v6013_v63, %v6017_v8  ;;  %v2964_v28 = vor.u32 %v2963_v62, %v2960_v31  ;;  %v2979_v34 = vrot.slane %v2977_v42, 5  ;;  %v6029_v0 = vshll.u32 %v5882_v60, 16  ;;  %v2419_v62 = vld [vmem:[#allocation2 + $0x124] sm:$0xf] }
 0x38b   :  { %v13340_v53 = vcombine.low %v6008_v21, %v6018_v57  ;;  %v2974_v27 = vor.u32 %v2973_v50, %v2969_v23  ;;  %v6022_v5 = vrot.slane %v6020_v45, 4  ;;  %v6025_v49 = vrot.slane %v6023_v54, 5  ;;  %v2464_v54 = vld [vmem:[#allocation2 + $0x128] sm:$0x1] }
 0x38c   :  { %v2965_v29 = vrot.slane %v2964_v28, 4  ;;  %v6031_v22 = vrot.slane %v6029_v0, 5  ;;  %v6033_v55 = vshrl.u32 %v5882_v60, 16  ;;  %v6039_v40 = vshll.u32 %v5883_v39, 16 }
 0x38d   :  { %14348 = vmatmul.mubr.msk.bf16.gmra.mrb[100].mxu0 %vm478_vm5, %v13050_v10  ;;  %14584 = vmatmul.mubr.msk.bf16.vlgmr.msra.gmra.mrb[40].mxu1 %vm478_vm5, %v13340_v53  ;;  %v2975_v37 = vrot.slane %v2974_v27, 4  ;;  %v6026_v9 = vor.u32 %v6025_v49, %v6022_v5  ;;  %v2982_v48 = vshrl.u32 %v2416_v59, 16  ;;  %v2985_v46 = vshll.u32 %v2416_v59, 16  ;;  %v5887_v27 = vld [vmem:[#allocation2 + $0x3c] sm:$0xf] }
 0x38e   :  { %14648 = vmatpush3.bf16.msra.mxu1 %v15637_v26  ;;  %v2970_v58 = vsel %vm19112_vm12, %v2965_v29, %v2969_v23  ;;  %v6035_v61 = vrot.slane %v6033_v55, 4  ;;  %v6041_v35 = vrot.slane %v6039_v40, 5  ;;  %v2991_v32 = vshll.u32 %v2417_v14, 16  ;;  %v5888_v29 = vld [vmem:[#allocation2 + $0x40] sm:$0xf] }
 0x38f   :  { %v2980_v12 = vsel %vm19112_vm12, %v2975_v37, %v2979_v34  ;;  %v6027_v13 = vrot.slane %v6026_v9, 4  ;;  %v2984_v52 = vrot.slane %v2982_v48, 4  ;;  %v2987_v41 = vrot.slane %v2985_v46, 5  ;;  %14649 = vmatprep.subr.bf16.mxu1 %v15546_v4 }
 0x390   :  { %v13051_v51 = vcombine.low %v2970_v58, %v2980_v12  ;;  %v6036_v44 = vor.u32 %v6035_v61, %v6031_v22  ;;  %v2993_v47 = vrot.slane %v2991_v32, 5  ;;  %v2995_v17 = vshrl.u32 %v2417_v14, 16  ;;  %v5889_v61 = vld [vmem:[#allocation2 + $0x44] sm:$0x1] }
 0x391   :  { %v6032_v19 = vsel %vm19112_vm12, %v6027_v13, %v6031_v22  ;;  %v2988_v7 = vor.u32 %v2987_v41, %v2984_v52  ;;  %v3001_v25 = vshll.u32 %v2463_v33, 16  ;;  %v6044_v43 = vshrl.u32 %v5884_v6, 16 }
 0x392   :  { %14351 = vmatprep.mubr.msk.bf16.mxu0 %vm478_vm5, %v13051_v51  ;;  %v6037_v8 = vrot.slane %v6036_v44, 4  ;;  %v2997_v24 = vrot.slane %v2995_v17, 4  ;;  %v6047_v1 = vshll.u32 %v5884_v6, 16  ;;  %v6053_v36 = vshll.u32 %v5885_v56, 16  ;;  %14650 = vmatpush3.bf16.msra.mxu1 %v15546_v4  ;;  %v2420_v6 = vld [vmem:[#allocation2 + $0x12c] sm:$0xf] }
 0x393   :  { %v2989_v38 = vrot.slane %v2988_v7, 4  ;;  %v3003_v30 = vrot.slane %v3001_v25, 5  ;;  %v6046_v16 = vrot.slane %v6044_v43, 4  ;;  %v6057_v10 = vshrl.u32 %v5885_v56, 16  ;;  %v2421_v56 = vld [vmem:[#allocation2 + $0x130] sm:$0xf] }
 0x394   :  { %v6042_v31 = vsel %vm19112_vm12, %v6037_v8, %v6041_v35  ;;  %v2998_v2 = vor.u32 %v2997_v24, %v2993_v47  ;;  %v6049_v60 = vrot.slane %v6047_v1, 5  ;;  %v6055_v63 = vrot.slane %v6053_v36, 5  ;;  %v2465_v1 = vld [vmem:[#allocation2 + $0x134] sm:$0x1] }
 0x395   :  { %v13341_v23 = vcombine.low %v6032_v19, %v6042_v31  ;;  %v2994_v42 = vsel %vm19112_vm12, %v2989_v38, %v2993_v47  ;;  %v6059_v21 = vrot.slane %v6057_v10, 4  ;;  %v6063_v50 = vshll.u32 %v5886_v3, 16  ;;  %v5890_v38 = vld [vmem:[#allocation2 + $0x48] sm:$0xf]  ;;  %v5891_v31 = vld [vmem:[#allocation2 + $0x4c] sm:$0xf] }
 0x396   :  { %v2999_v39 = vrot.slane %v2998_v2, 4  ;;  %v6050_v45 = vor.u32 %v6049_v60, %v6046_v16  ;;  %v3006_v57 = vshrl.u32 %v2418_v15, 16  ;;  %v3009_v28 = vshll.u32 %v2418_v15, 16 }
 0x397   :  { %14587 = vmatprep.mubr.msk.bf16.mxu1 %vm478_vm5, %v13341_v23  ;;  %v6060_v34 = vor.u32 %v6059_v21, %v6055_v63  ;;  %v6065_v0 = vrot.slane %v6063_v50, 5  ;;  %v3015_v59 = vshll.u32 %v2419_v62, 16  ;;  %v3019_v53 = vshrl.u32 %v2419_v62, 16 }
 0x398   :  { %v3004_v5 = vsel %vm19112_vm12, %v2999_v39, %v3003_v30  ;;  %v6051_v49 = vrot.slane %v6050_v45, 4  ;;  %v3008_v14 = vrot.slane %v3006_v57, 4  ;;  %v3011_v4 = vrot.slane %v3009_v28, 5  ;;  %v5892_v57 = vld [vmem:[#allocation2 + $0x50] sm:$0x1] }
 0x399   :  { %v13052_v22 = vcombine.low %v2994_v42, %v3004_v5  ;;  %v6061_v55 = vrot.slane %v6060_v34, 4  ;;  %v3017_v40 = vrot.slane %v3015_v59, 5  ;;  %v3021_v37 = vrot.slane %v3019_v53, 4 }
 0x39a   :  { %v6056_v9 = vsel %vm19112_vm12, %v6051_v49, %v6055_v63  ;;  %v3012_v33 = vor.u32 %v3011_v4, %v3008_v14  ;;  %v3025_v48 = vshll.u32 %v2464_v54, 16  ;;  %v6068_v46 = vshrl.u32 %v5887_v27, 16 }
 0x39b   :  { %14352 = vmatmul.mubr.msk.bf16.gmra.mrb[104].mxu0 %vm478_vm5, %v13052_v22  ;;  %v6066_v26 = vsel %vm19112_vm12, %v6061_v55, %v6065_v0  ;;  %v3022_v58 = vor.u32 %v3021_v37, %v3017_v40  ;;  %v6071_v35 = vshll.u32 %v5887_v27, 16  ;;  %v6077_v32 = vshll.u32 %v5888_v29, 16  ;;  %v2422_v27 = vld [vmem:[#allocation2 + $0x138] sm:$0xf] }
 0x39c   :  { %v13342_v12 = vcombine.low %v6056_v9, %v6066_v26  ;;  %v3013_v13 = vrot.slane %v3012_v33, 4  ;;  %v3027_v52 = vrot.slane %v3025_v48, 5  ;;  %v6070_v41 = vrot.slane %v6068_v46, 4  ;;  %v2466_v48 = vld [vmem:[#allocation2 + $0x140] sm:$0x1] }
 0x39d   :  { %v3023_v51 = vrot.slane %v3022_v58, 4  ;;  %v6073_v44 = vrot.slane %v6071_v35, 5  ;;  %v6079_v47 = vrot.slane %v6077_v32, 5  ;;  %v6081_v17 = vshrl.u32 %v5888_v29, 16  ;;  %v2423_v29 = vld [vmem:[#allocation2 + $0x13c] sm:$0xf] }
 0x39e   :  { %14588 = vmatmul.mubr.msk.bf16.gmra.mrb[44].mxu1 %vm478_vm5, %v13342_v12  ;;  %v3018_v19 = vsel %vm19112_vm12, %v3013_v13, %v3017_v40  ;;  %v6087_v7 = vshll.u32 %v5889_v61, 16  ;;  %v3030_v25 = vshrl.u32 %v2420_v6, 16  ;;  %v3033_v43 = vshll.u32 %v2420_v6, 16  ;;  %v5893_v6 = vld [vmem:[#allocation2 + $0x54] sm:$0xf] }
 0x39f   :  { %v3028_v8 = vsel %vm19112_vm12, %v3023_v51, %v3027_v52  ;;  %v6074_v24 = vor.u32 %v6073_v44, %v6070_v41  ;;  %v6083_v3 = vrot.slane %v6081_v17, 4  ;;  %v3039_v36 = vshll.u32 %v2421_v56, 16 }
 0x3a0   :  { %v13053_v30 = vcombine.low %v3018_v19, %v3028_v8  ;;  %v6089_v16 = vrot.slane %v6087_v7, 5  ;;  %v3032_v10 = vrot.slane %v3030_v25, 4  ;;  %v3035_v15 = vrot.slane %v3033_v43, 5  ;;  %v5895_v19 = vld [vmem:[#allocation2 + $0x5c] sm:$0x1] }
 0x3a1   :  { %v6075_v2 = vrot.slane %v6074_v24, 4  ;;  %v6084_v60 = vor.u32 %v6083_v3, %v6079_v47  ;;  %v3041_v63 = vrot.slane %v3039_v36, 5  ;;  %v3043_v62 = vshrl.u32 %v2421_v56, 16  ;;  %v5894_v56 = vld [vmem:[#allocation2 + $0x58] sm:$0xf] }
 0x3a2   :  { %14355 = vmatprep.mubr.msk.bf16.mxu0 %vm478_vm5, %v13053_v30  ;;  %v3036_v23 = vor.u32 %v3035_v15, %v3032_v10  ;;  %v3049_v42 = vshll.u32 %v2465_v1, 16  ;;  %v6092_v21 = vshrl.u32 %v5890_v38, 16  ;;  %v6095_v50 = vshll.u32 %v5890_v38, 16  ;;  %v2424_v24 = vld [vmem:[#allocation2 + $0x144] sm:$0xf] }
 0x3a3   :  { %v6080_v39 = vsel %vm19112_vm12, %v6075_v2, %v6079_v47  ;;  %v6085_v45 = vrot.slane %v6084_v60, 4  ;;  %v3045_v54 = vrot.slane %v3043_v62, 4  ;;  %v6101_v28 = vshll.u32 %v5891_v31, 16 }
 0x3a4   :  { %v3037_v34 = vrot.slane %v3036_v23, 4  ;;  %v3051_v0 = vrot.slane %v3049_v42, 5  ;;  %v6094_v59 = vrot.slane %v6092_v21, 4  ;;  %v6097_v53 = vrot.slane %v6095_v50, 5  ;;  %v2467_v23 = vld [vmem:[#allocation2 + $0x14c] sm:$0x1] }
 0x3a5   :  { %v6090_v5 = vsel %vm19112_vm12, %v6085_v45, %v6089_v16  ;;  %v3046_v49 = vor.u32 %v3045_v54, %v3041_v63  ;;  %v6103_v14 = vrot.slane %v6101_v28, 5  ;;  %v6105_v4 = vshrl.u32 %v5891_v31, 16  ;;  %v2425_v31 = vld [vmem:[#allocation2 + $0x148] sm:$0xf]  ;;  %v5896_v45 = vld [vmem:[#allocation2 + $0x60] sm:$0xf] }
 0x3a6   :  { %v13343_v22 = vcombine.low %v6080_v39, %v6090_v5  ;;  %v3042_v55 = vsel %vm19112_vm12, %v3037_v34, %v3041_v63  ;;  %v6098_v40 = vor.u32 %v6097_v53, %v6094_v59  ;;  %v6111_v37 = vshll.u32 %v5892_v57, 16  ;;  %v5897_v5 = vld [vmem:[#allocation2 + $0x64] sm:$0xf] }
 0x3a7   :  { %v3047_v9 = vrot.slane %v3046_v49, 4  ;;  %v6107_v33 = vrot.slane %v6105_v4, 4  ;;  %v3054_v46 = vshrl.u32 %v2422_v27, 16  ;;  %v3057_v26 = vshll.u32 %v2422_v27, 16 }
 0x3a8   :  { %14591 = vmatprep.mubr.msk.bf16.mxu1 %vm478_vm5, %v13343_v22  ;;  %v6099_v58 = vrot.slane %v6098_v40, 4  ;;  %v6113_v61 = vrot.slane %v6111_v37, 5  ;;  %v3063_v35 = vshll.u32 %v2423_v29, 16  ;;  %v3067_v32 = vshrl.u32 %v2423_v29, 16  ;;  %v5898_v22 = vld [vmem:[#allocation2 + $0x68] sm:$0x1] }
 0x3a9   :  { %v3052_v12 = vsel %vm19112_vm12, %v3047_v9, %v3051_v0  ;;  %v6108_v13 = vor.u32 %v6107_v33, %v6103_v14  ;;  %v3056_v52 = vrot.slane %v3054_v46, 4  ;;  %v3059_v41 = vrot.slane %v3057_v26, 5 }
 0x3aa   :  { %v13054_v51 = vcombine.low %v3042_v55, %v3052_v12  ;;  %v6104_v44 = vsel %vm19112_vm12, %v6099_v58, %v6103_v14  ;;  %v3065_v47 = vrot.slane %v3063_v35, 5  ;;  %v3069_v17 = vrot.slane %v3067_v32, 4  ;;  %v2426_v55 = vld [vmem:[#allocation2 + $0x150] sm:$0xf] }
 0x3ab   :  { %v6109_v7 = vrot.slane %v6108_v13, 4  ;;  %v3060_v25 = vor.u32 %v3059_v41, %v3056_v52  ;;  %v3073_v43 = vshll.u32 %v2466_v48, 16  ;;  %v6116_v8 = vshrl.u32 %v5893_v6, 16  ;;  %v2427_v48 = vld [vmem:[#allocation2 + $0x154] sm:$0xf] }
 0x3ac   :  { %14356 = vmatmul.mubr.msk.bf16.gmra.mrb[108].mxu0 %vm478_vm5, %v13054_v51  ;;  %v3070_v3 = vor.u32 %v3069_v17, %v3065_v47  ;;  %v6119_v1 = vshll.u32 %v5893_v6, 16  ;;  %v6125_v36 = vshll.u32 %v5894_v56, 16  ;;  %v6129_v38 = vshrl.u32 %v5894_v56, 16  ;;  %v2468_v51 = vld [vmem:[#allocation2 + $0x158] sm:$0x1] }
 0x3ad   :  { %v6114_v30 = vsel %vm19112_vm12, %v6109_v7, %v6113_v61  ;;  %v3061_v16 = vrot.slane %v3060_v25, 4  ;;  %v3075_v10 = vrot.slane %v3073_v43, 5  ;;  %v6118_v15 = vrot.slane %v6116_v8, 4  ;;  %v5899_v7 = vld [vmem:[#allocation2 + $0x6c] sm:$0xf] }
 0x3ae   :  { %v13344_v2 = vcombine.low %v6104_v44, %v6114_v30  ;;  %v3071_v60 = vrot.slane %v3070_v3, 4  ;;  %v6121_v63 = vrot.slane %v6119_v1, 5  ;;  %v6127_v62 = vrot.slane %v6125_v36, 5  ;;  %v5900_v3 = vld [vmem:[#allocation2 + $0x70] sm:$0xf] }
 0x3af   :  { %v3066_v42 = vsel %vm19112_vm12, %v3061_v16, %v3065_v47  ;;  %v6131_v21 = vrot.slane %v6129_v38, 4  ;;  %v6135_v50 = vshll.u32 %v5895_v19, 16  ;;  %v3078_v39 = vshrl.u32 %v2424_v24, 16 }
 0x3b0   :  { %14592 = vmatmul.mubr.msk.bf16.gmra.mrb[48].mxu1 %vm478_vm5, %v13344_v2  ;;  %v3076_v54 = vsel %vm19112_vm12, %v3071_v60, %v3075_v10  ;;  %v6122_v57 = vor.u32 %v6121_v63, %v6118_v15  ;;  %v3081_v28 = vshll.u32 %v2424_v24, 16  ;;  %v3087_v34 = vshll.u32 %v2425_v31, 16  ;;  %v5901_v2 = vld [vmem:[#allocation2 + $0x74] sm:$0x1] }
 0x3b1   :  { %v13055_v0 = vcombine.low %v3066_v42, %v3076_v54  ;;  %v6132_v59 = vor.u32 %v6131_v21, %v6127_v62  ;;  %v6137_v53 = vrot.slane %v6135_v50, 5  ;;  %v3080_v27 = vrot.slane %v3078_v39, 4 }
 0x3b2   :  { %v6123_v49 = vrot.slane %v6122_v57, 4  ;;  %v3083_v14 = vrot.slane %v3081_v28, 5  ;;  %v3089_v4 = vrot.slane %v3087_v34, 5  ;;  %v3091_v29 = vshrl.u32 %v2425_v31, 16 }
 0x3b3   :  { %14359 = vmatprep.mubr.msk.bf16.mxu0 %vm478_vm5, %v13055_v0  ;;  %v6133_v40 = vrot.slane %v6132_v59, 4  ;;  %v3097_v37 = vshll.u32 %v2467_v23, 16  ;;  %v6140_v9 = vshrl.u32 %v5896_v45, 16  ;;  %v6143_v33 = vshll.u32 %v5896_v45, 16  ;;  %v2428_v45 = vld [vmem:[#allocation2 + $0x15c] sm:$0xf] }
 0x3b4   :  { %v6128_v46 = vsel %vm19112_vm12, %v6123_v49, %v6127_v62  ;;  %v3084_v26 = vor.u32 %v3083_v14, %v3080_v27  ;;  %v3093_v58 = vrot.slane %v3091_v29, 4  ;;  %v6149_v61 = vshll.u32 %v5897_v5, 16 }
 0x3b5   :  { %v6138_v35 = vsel %vm19112_vm12, %v6133_v40, %v6137_v53  ;;  %v3099_v32 = vrot.slane %v3097_v37, 5  ;;  %v6142_v6 = vrot.slane %v6140_v9, 4  ;;  %v6145_v12 = vrot.slane %v6143_v33, 5  ;;  %v5902_v33 = vld [vmem:[#allocation2 + $0x78] sm:$0xf] }
 0x3b6   :  { %v13345_v13 = vcombine.low %v6128_v46, %v6138_v35  ;;  %v3085_v52 = vrot.slane %v3084_v26, 4  ;;  %v3094_v41 = vor.u32 %v3093_v58, %v3089_v4  ;;  %v6151_v56 = vrot.slane %v6149_v61, 5 }
 0x3b7   :  { %v6146_v44 = vor.u32 %v6145_v12, %v6142_v6  ;;  %v6153_v47 = vshrl.u32 %v5897_v5, 16  ;;  %v6159_v17 = vshll.u32 %v5898_v22, 16  ;;  %v3102_v19 = vshrl.u32 %v2426_v55, 16  ;;  %v2429_v5 = vld [vmem:[#allocation2 + $0x160] sm:$0xf] }
 0x3b8   :  { %14595 = vmatprep.mubr.msk.bf16.mxu1 %vm478_vm5, %v13345_v13  ;;  %v3090_v25 = vsel %vm19112_vm12, %v3085_v52, %v3089_v4  ;;  %v3095_v43 = vrot.slane %v3094_v41, 4  ;;  %v3105_v8 = vshll.u32 %v2426_v55, 16  ;;  %v3111_v24 = vshll.u32 %v2427_v48, 16  ;;  %v2469_v22 = vld [vmem:[#allocation2 + $0x164] sm:$0x1] }
 0x3b9   :  { %v6147_v1 = vrot.slane %v6146_v44, 4  ;;  %v6155_v36 = vrot.slane %v6153_v47, 4  ;;  %v6161_v38 = vrot.slane %v6159_v17, 5  ;;  %v3104_v30 = vrot.slane %v3102_v19, 4  ;;  %v5903_v12 = vld [vmem:[#allocation2 + $0x7c] sm:$0xf] }
 0x3ba   :  { %v3100_v16 = vsel %vm19112_vm12, %v3095_v43, %v3099_v32  ;;  %v3107_v10 = vrot.slane %v3105_v8, 5  ;;  %v3113_v15 = vrot.slane %v3111_v24, 5  ;;  %v3115_v31 = vshrl.u32 %v2427_v48, 16 }
 0x3bb   :  { %v13056_v60 = vcombine.low %v3090_v25, %v3100_v16  ;;  %v6152_v63 = vsel %vm19112_vm12, %v6147_v1, %v6151_v56  ;;  %v6156_v62 = vor.u32 %v6155_v36, %v6151_v56  ;;  %v3121_v23 = vshll.u32 %v2468_v51, 16  ;;  %v5904_v51 = vld [vmem:[#allocation2 + $0x80] sm:$0x1]  ;;  %v2431_v16 = vld [vmem:[#allocation2 + $0x16c] sm:$0xf] }
 0x3bc   :  { %v3108_v42 = vor.u32 %v3107_v10, %v3104_v30  ;;  %v3117_v21 = vrot.slane %v3115_v31, 4  ;;  %v6164_v50 = vshrl.u32 %v5899_v7, 16  ;;  %v6167_v39 = vshll.u32 %v5899_v7, 16  ;;  %v2430_v7 = vld [vmem:[#allocation2 + $0x168] sm:$0xf] }
 0x3bd   :  { %14360 = vmatmul.mubr.msk.bf16.gmra.mrb[112].mxu0 %vm478_vm5, %v13056_v60  ;;  %v6157_v54 = vrot.slane %v6156_v62, 4  ;;  %v3123_v57 = vrot.slane %v3121_v23, 5  ;;  %v6173_v28 = vshll.u32 %v5900_v3, 16  ;;  %v6177_v34 = vshrl.u32 %v5900_v3, 16  ;;  %v15563_v3 = vld [vmem:[%s23146_s3 + $0x60] sm:$0xff]  }
 0x3be   :  { %v3109_v0 = vrot.slane %v3108_v42, 4  ;;  %v3118_v59 = vor.u32 %v3117_v21, %v3113_v15  ;;  %v6166_v53 = vrot.slane %v6164_v50, 4  ;;  %v6169_v27 = vrot.slane %v6167_v39, 5  ;;  %v2470_v60 = vld [vmem:[#allocation2 + $0x170] sm:$0x1]  ;;  %14715 = vmatprep.subr.bf16.mxu1 %v15563_v3 }
 0x3bf   :  { %v6162_v49 = vsel %vm19112_vm12, %v6157_v54, %v6161_v38  ;;  %v6175_v14 = vrot.slane %v6173_v28, 5  ;;  %v6179_v4 = vrot.slane %v6177_v34, 4  ;;  %v6183_v29 = vshll.u32 %v5901_v2, 16  ;;  %v5905_v21 = vld [vmem:[#allocation2 + $0x84] sm:$0xf] }
 0x3c0   :  { %v13346_v55 = vcombine.low %v6152_v63, %v6162_v49  ;;  %v3114_v40 = vsel %vm19112_vm12, %v3109_v0, %v3113_v15  ;;  %v3119_v37 = vrot.slane %v3118_v59, 4  ;;  %v6170_v9 = vor.u32 %v6169_v27, %v6166_v53  ;;  %v5906_v59 = vld [vmem:[#allocation2 + $0x88] sm:$0xf] }
 0x3c1   :  { %v6180_v48 = vor.u32 %v6179_v4, %v6175_v14  ;;  %v6185_v46 = vrot.slane %v6183_v29, 5  ;;  %v3126_v26 = vshrl.u32 %v2428_v45, 16  ;;  %v3129_v58 = vshll.u32 %v2428_v45, 16 }
 0x3c2   :  { %14596 = vmatmul.mubr.msk.bf16.gmra.mrb[52].mxu1 %vm478_vm5, %v13346_v55  ;;  %v3124_v61 = vsel %vm19112_vm12, %v3119_v37, %v3123_v57  ;;  %v6171_v35 = vrot.slane %v6170_v9, 4  ;;  %v3135_v32 = vshll.u32 %v2429_v5, 16  ;;  %v3139_v6 = vshrl.u32 %v2429_v5, 16 }
 0x3c3   :  { %v13057_v13 = vcombine.low %v3114_v40, %v3124_v61  ;;  %v6181_v52 = vrot.slane %v6180_v48, 4  ;;  %v3128_v41 = vrot.slane %v3126_v26, 4  ;;  %v3131_v56 = vrot.slane %v3129_v58, 5  ;;  %v2432_v40 = vld [vmem:[#allocation2 + $0x174] sm:$0xf] }
 0x3c4   :  { %v6176_v44 = vsel %vm19112_vm12, %v6171_v35, %v6175_v14  ;;  %v3137_v47 = vrot.slane %v3135_v32, 5  ;;  %v3141_v17 = vrot.slane %v3139_v6, 4  ;;  %v3145_v19 = vshll.u32 %v2469_v22, 16  ;;  %v5907_v14 = vld [vmem:[#allocation2 + $0x8c] sm:$0x1] }
 0x3c5   :  { %14363 = vmatprep.mubr.msk.bf16.mxu0 %vm478_vm5, %v13057_v13  ;;  %v6186_v25 = vsel %vm19112_vm12, %v6181_v52, %v6185_v46  ;;  %v3132_v43 = vor.u32 %v3131_v56, %v3128_v41  ;;  %v6188_v8 = vshrl.u32 %v5902_v33, 16  ;;  %v6191_v24 = vshll.u32 %v5902_v33, 16  ;;  %v2433_v35 = vld [vmem:[#allocation2 + $0x178] sm:$0xf] }
 0x3c6   :  { %v13347_v1 = vcombine.low %v6176_v44, %v6186_v25  ;;  %v3142_v36 = vor.u32 %v3141_v17, %v3137_v47  ;;  %v3147_v38 = vrot.slane %v3145_v19, 5  ;;  %v6197_v30 = vshll.u32 %v5903_v12, 16  ;;  %v2471_v44 = vld [vmem:[#allocation2 + $0x17c] sm:$0x1]  ;;  %v5908_v25 = vld [vmem:[#allocation2 + $0x90] sm:$0xf] }
 0x3c7   :  { %v3133_v10 = vrot.slane %v3132_v43, 4  ;;  %v6190_v15 = vrot.slane %v6188_v8, 4  ;;  %v6193_v31 = vrot.slane %v6191_v24, 5  ;;  %v6201_v2 = vshrl.u32 %v5903_v12, 16 }
 0x3c8   :  { %14599 = vmatprep.mubr.msk.bf16.mxu1 %vm478_vm5, %v13347_v1  ;;  %v3143_v63 = vrot.slane %v3142_v36, 4  ;;  %v6199_v62 = vrot.slane %v6197_v30, 5  ;;  %v6207_v23 = vshll.u32 %v5904_v51, 16  ;;  %v3150_v42 = vshrl.u32 %v2430_v7, 16  ;;  %v5909_v1 = vld [vmem:[#allocation2 + $0x94] sm:$0xf] }
 0x3c9   :  { %v3138_v50 = vsel %vm19112_vm12, %v3133_v10, %v3137_v47  ;;  %v6194_v39 = vor.u32 %v6193_v31, %v6190_v15  ;;  %v6203_v45 = vrot.slane %v6201_v2, 4  ;;  %v3153_v54 = vshll.u32 %v2430_v7, 16 }
 0x3ca   :  { %v3148_v57 = vsel %vm19112_vm12, %v3143_v63, %v3147_v38  ;;  %v6209_v28 = vrot.slane %v6207_v23, 5  ;;  %v3152_v34 = vrot.slane %v3150_v42, 4  ;;  %v3159_v0 = vshll.u32 %v2431_v16, 16 }
 0x3cb   :  { %v13058_v53 = vcombine.low %v3138_v50, %v3148_v57  ;;  %v6195_v27 = vrot.slane %v6194_v39, 4  ;;  %v6204_v5 = vor.u32 %v6203_v45, %v6199_v62  ;;  %v3155_v49 = vrot.slane %v3153_v54, 5  ;;  %v2435_v57 = vld [vmem:[#allocation2 + $0x184] sm:$0xf] }
 0x3cc   :  { %v3161_v4 = vrot.slane %v3159_v0, 5  ;;  %v3163_v29 = vshrl.u32 %v2431_v16, 16  ;;  %v3169_v22 = vshll.u32 %v2470_v60, 16  ;;  %v6212_v55 = vshrl.u32 %v5905_v21, 16  ;;  %v5910_v60 = vld [vmem:[#allocation2 + $0x98] sm:$0x1] }
 0x3cd   :  { %14364 = vmatmul.mubr.msk.bf16.gmra.mrb[116].mxu0 %vm478_vm5, %v13058_v53  ;;  %v6200_v37 = vsel %vm19112_vm12, %v6195_v27, %v6199_v62  ;;  %v6205_v9 = vrot.slane %v6204_v5, 4  ;;  %v3156_v33 = vor.u32 %v3155_v49, %v3152_v34  ;;  %v6215_v48 = vshll.u32 %v5905_v21, 16  ;;  %v2434_v21 = vld [vmem:[#allocation2 + $0x180] sm:$0xf] }
 0x3ce   :  { %v3165_v46 = vrot.slane %v3163_v29, 4  ;;  %v3171_v26 = vrot.slane %v3169_v22, 5  ;;  %v6214_v58 = vrot.slane %v6212_v55, 4  ;;  %v6221_v61 = vshll.u32 %v5906_v59, 16 }
 0x3cf   :  { %v6210_v32 = vsel %vm19112_vm12, %v6205_v9, %v6209_v28  ;;  %v3157_v6 = vrot.slane %v3156_v33, 4  ;;  %v6217_v12 = vrot.slane %v6215_v48, 5  ;;  %v6225_v13 = vshrl.u32 %v5906_v59, 16 }
 0x3d0   :  { %v13348_v52 = vcombine.low %v6200_v37, %v6210_v32  ;;  %v3166_v41 = vor.u32 %v3165_v46, %v3161_v4  ;;  %v6223_v56 = vrot.slane %v6221_v61, 5  ;;  %v6231_v51 = vshll.u32 %v5907_v14, 16  ;;  %v2472_v14 = vld [vmem:[#allocation2 + $0x188] sm:$0x1]  ;;  %v5912_v46 = vld [vmem:[#allocation2 + $0xa0] sm:$0xf] }
 0x3d1   :  { %v3162_v47 = vsel %vm19112_vm12, %v3157_v6, %v3161_v4  ;;  %v6218_v17 = vor.u32 %v6217_v12, %v6214_v58  ;;  %v6227_v19 = vrot.slane %v6225_v13, 4  ;;  %v3174_v7 = vshrl.u32 %v2432_v40, 16 }
 0x3d2   :  { %14600 = vmatmul.mubr.msk.bf16.gmra.mrb[56].mxu1 %vm478_vm5, %v13348_v52  ;;  %v3167_v43 = vrot.slane %v3166_v41, 4  ;;  %v6233_v8 = vrot.slane %v6231_v51, 5  ;;  %v3177_v24 = vshll.u32 %v2432_v40, 16  ;;  %v3183_v3 = vshll.u32 %v2433_v35, 16  ;;  %v5911_v40 = vld [vmem:[#allocation2 + $0x9c] sm:$0xf] }
 0x3d3   :  { %v6219_v36 = vrot.slane %v6218_v17, 4  ;;  %v6228_v38 = vor.u32 %v6227_v19, %v6223_v56  ;;  %v3176_v30 = vrot.slane %v3174_v7, 4  ;;  %v3187_v16 = vshrl.u32 %v2433_v35, 16  ;;  %v5913_v52 = vld [vmem:[#allocation2 + $0xa4] sm:$0x1] }
 0x3d4   :  { %v3172_v10 = vsel %vm19112_vm12, %v3167_v43, %v3171_v26  ;;  %v3179_v15 = vrot.slane %v3177_v24, 5  ;;  %v3185_v31 = vrot.slane %v3183_v3, 5  ;;  %v3193_v2 = vshll.u32 %v2471_v44, 16 }
 0x3d5   :  { %v13059_v63 = vcombine.low %v3162_v47, %v3172_v10  ;;  %v6224_v62 = vsel %vm19112_vm12, %v6219_v36, %v6223_v56  ;;  %v6229_v23 = vrot.slane %v6228_v38, 4  ;;  %v3189_v42 = vrot.slane %v3187_v16, 4  ;;  %v2436_v47 = vld [vmem:[#allocation2 + $0x18c] sm:$0xf] }
 0x3d6   :  { %v3180_v50 = vor.u32 %v3179_v15, %v3176_v30  ;;  %v3195_v39 = vrot.slane %v3193_v2, 5  ;;  %v6236_v45 = vshrl.u32 %v5908_v25, 16  ;;  %v6239_v54 = vshll.u32 %v5908_v25, 16 }
 0x3d7   :  { %14367 = vmatprep.mubr.msk.bf16.mxu0 %vm478_vm5, %v13059_v63  ;;  %v6234_v28 = vsel %vm19112_vm12, %v6229_v23, %v6233_v8  ;;  %v3190_v34 = vor.u32 %v3189_v42, %v3185_v31  ;;  %v6245_v0 = vshll.u32 %v5909_v1, 16  ;;  %v6249_v59 = vshrl.u32 %v5909_v1, 16  ;;  %v2437_v1 = vld [vmem:[#allocation2 + $0x190] sm:$0xf] }
 0x3d8   :  { %v13349_v53 = vcombine.low %v6224_v62, %v6234_v28  ;;  %v3181_v27 = vrot.slane %v3180_v50, 4  ;;  %v6238_v5 = vrot.slane %v6236_v45, 4  ;;  %v6241_v49 = vrot.slane %v6239_v54, 5 }
 0x3d9   :  { %v3191_v4 = vrot.slane %v3190_v34, 4  ;;  %v6247_v29 = vrot.slane %v6245_v0, 5  ;;  %v6251_v22 = vrot.slane %v6249_v59, 4  ;;  %v6255_v55 = vshll.u32 %v5910_v60, 16  ;;  %v2473_v60 = vld [vmem:[#allocation2 + $0x194] sm:$0x1] }
 0x3da   :  { %14603 = vmatprep.mubr.msk.bf16.mxu1 %vm478_vm5, %v13349_v53  ;;  %v3186_v37 = vsel %vm19112_vm12, %v3181_v27, %v3185_v31  ;;  %v6242_v9 = vor.u32 %v6241_v49, %v6238_v5  ;;  %v3198_v33 = vshrl.u32 %v2434_v21, 16  ;;  %v3201_v48 = vshll.u32 %v2434_v21, 16  ;;  %v5914_v21 = vld [vmem:[#allocation2 + $0xa8] sm:$0xf]  ;;  %v5916_v53 = vld [vmem:[#allocation2 + $0xb0] sm:$0x1] }
 0x3db   :  { %v3196_v26 = vsel %vm19112_vm12, %v3191_v4, %v3195_v39  ;;  %v6252_v58 = vor.u32 %v6251_v22, %v6247_v29  ;;  %v6257_v61 = vrot.slane %v6255_v55, 5  ;;  %v3207_v35 = vshll.u32 %v2435_v57, 16 }
 0x3dc   :  { %v13060_v32 = vcombine.low %v3186_v37, %v3196_v26  ;;  %v6243_v6 = vrot.slane %v6242_v9, 4  ;;  %v3200_v12 = vrot.slane %v3198_v33, 4  ;;  %v3203_v13 = vrot.slane %v3201_v48, 5 }
 0x3dd   :  { %v6253_v41 = vrot.slane %v6252_v58, 4  ;;  %v3209_v56 = vrot.slane %v3207_v35, 5  ;;  %v3211_v51 = vshrl.u32 %v2435_v57, 16  ;;  %v3217_v44 = vshll.u32 %v2472_v14, 16  ;;  %v5915_v57 = vld [vmem:[#allocation2 + $0xac] sm:$0xf] }
 0x3de   :  { %14368 = vmatmul.mubr.msk.bf16.gmra.mrb[120].mxu0 %vm478_vm5, %v13060_v32  ;;  %v6248_v17 = vsel %vm19112_vm12, %v6243_v6, %v6247_v29  ;;  %v3204_v19 = vor.u32 %v3203_v13, %v3200_v12  ;;  %v6260_v7 = vshrl.u32 %v5911_v40, 16  ;;  %v6263_v25 = vshll.u32 %v5911_v40, 16  ;;  %v5917_v40 = vld [vmem:[#allocation2 + $0xb4] sm:$0xf]  ;;  %v5918_v35 = vld [vmem:[#allocation2 + $0xb8] sm:$0xf] }
 0x3df   :  { %v6258_v43 = vsel %vm19112_vm12, %v6253_v41, %v6257_v61  ;;  %v3213_v8 = vrot.slane %v3211_v51, 4  ;;  %v3219_v24 = vrot.slane %v3217_v44, 5  ;;  %v6269_v3 = vshll.u32 %v5912_v46, 16 }
 0x3e0   :  { %v13350_v36 = vcombine.low %v6248_v17, %v6258_v43  ;;  %v3205_v38 = vrot.slane %v3204_v19, 4  ;;  %v6262_v30 = vrot.slane %v6260_v7, 4  ;;  %v6265_v16 = vrot.slane %v6263_v25, 5  ;;  %v5920_v25 = vld [vmem:[#allocation2 + $0xc0] sm:$0xf] }
 0x3e1   :  { %v3214_v10 = vor.u32 %v3213_v8, %v3209_v56  ;;  %v6271_v15 = vrot.slane %v6269_v3, 5  ;;  %v6273_v31 = vshrl.u32 %v5912_v46, 16  ;;  %v6279_v2 = vshll.u32 %v5913_v52, 16  ;;  %v5919_v52 = vld [vmem:[#allocation2 + $0xbc] sm:$0x1] }
 0x3e2   :  { %14604 = vmatmul.mubr.msk.bf16.gmra.mrb[60].mxu1 %vm478_vm5, %v13350_v36  ;;  %v3210_v63 = vsel %vm19112_vm12, %v3205_v38, %v3209_v56  ;;  %v6266_v62 = vor.u32 %v6265_v16, %v6262_v30  ;;  %v3222_v23 = vshrl.u32 %v2436_v47, 16  ;;  %v3225_v42 = vshll.u32 %v2436_v47, 16  ;;  %v5921_v16 = vld [vmem:[#allocation2 + $0xc4] sm:$0xf] }
 0x3e3   :  { %v3215_v50 = vrot.slane %v3214_v10, 4  ;;  %v6275_v39 = vrot.slane %v6273_v31, 4  ;;  %v6281_v45 = vrot.slane %v6279_v2, 5  ;;  %v3231_v54 = vshll.u32 %v2437_v1, 16 }
 0x3e4   :  { %v6267_v28 = vrot.slane %v6266_v62, 4  ;;  %v3224_v34 = vrot.slane %v3222_v23, 4  ;;  %v3227_v0 = vrot.slane %v3225_v42, 5  ;;  %v3235_v59 = vshrl.u32 %v2437_v1, 16  ;;  %v15638_v62 = vld [vmem:[#allocation2 + $0x4] sm:$0xf] }
 0x3e5   :  { %v3220_v27 = vsel %vm19112_vm12, %v3215_v50, %v3219_v24  ;;  %v6276_v5 = vor.u32 %v6275_v39, %v6271_v15  ;;  %v3233_v49 = vrot.slane %v3231_v54, 5  ;;  %v3241_v14 = vshll.u32 %v2473_v60, 16  ;;  %v15639_v23 = vld [vmem:[#allocation2] sm:$0xf]  ;;  %v15641_v50 = vld [vmem:[#allocation2 + $0xc] sm:$0xf] }
 0x3e6   :  { %v13061_v4 = vcombine.low %v3210_v63, %v3220_v27  ;;  %v6272_v29 = vsel %vm19112_vm12, %v6267_v28, %v6271_v15  ;;  %v3228_v22 = vor.u32 %v3227_v0, %v3224_v34  ;;  %v3237_v55 = vrot.slane %v3235_v59, 4  ;;  %v5923_v0 = vld [vmem:[#allocation2 + $0xe4] sm:$0xf] }
 0x3e7   :  { %v6277_v37 = vrot.slane %v6276_v5, 4  ;;  %v3243_v9 = vrot.slane %v3241_v14, 5  ;;  %v6284_v33 = vshrl.u32 %v5914_v21, 16  ;;  %v6287_v48 = vshll.u32 %v5914_v21, 16  ;;  %v15640_v21 = vld [vmem:[#allocation2 + $0x10] sm:$0xf] }
 0x3e8   :  { %14371 = vmatprep.mubr.msk.bf16.mxu0 %vm478_vm5, %v13061_v4  ;;  %v3229_v46 = vrot.slane %v3228_v22, 4  ;;  %v3238_v26 = vor.u32 %v3237_v55, %v3233_v49  ;;  %v6293_v58 = vshll.u32 %v5915_v57, 16  ;;  %v6297_v61 = vshrl.u32 %v5915_v57, 16  ;;  %v5925_v55 = vld [vmem:[#allocation2 + $0xec] sm:$0x1] }
 0x3e9   :  { %v6282_v32 = vsel %vm19112_vm12, %v6277_v37, %v6281_v45  ;;  %v6286_v6 = vrot.slane %v6284_v33, 4  ;;  %v6289_v12 = vrot.slane %v6287_v48, 5  ;;  %v6303_v13 = vshll.u32 %v5916_v53, 16  ;;  %v5922_v45 = vld [vmem:[#allocation2 + $0xc8] sm:$0x1] }
 0x3ea   :  { %v13351_v41 = vcombine.low %v6272_v29, %v6282_v32  ;;  %v3234_v56 = vsel %vm19112_vm12, %v3229_v46, %v3233_v49  ;;  %v3239_v51 = vrot.slane %v3238_v26, 4  ;;  %v6295_v44 = vrot.slane %v6293_v58, 5  ;;  %v5924_v49 = vld [vmem:[#allocation2 + $0xe8] sm:$0xf]  ;;  %v15642_v26 = vld [vmem:[#allocation2 + $0x1c] sm:$0xf] }
 0x3eb   :  { %v6290_v47 = vor.u32 %v6289_v12, %v6286_v6  ;;  %v6299_v17 = vrot.slane %v6297_v61, 4  ;;  %v6305_v19 = vrot.slane %v6303_v13, 5  ;;  %v6308_v7 = vshrl.u32 %v5917_v40, 16  ;;  %v15643_v58 = vld [vmem:[#allocation2 + $0x18] sm:$0xf] }
 0x3ec   :  { %14607 = vmatprep.mubr.msk.bf16.mxu1 %vm478_vm5, %v13351_v41  ;;  %v3244_v43 = vsel %vm19112_vm12, %v3239_v51, %v3243_v9  ;;  %v6311_v8 = vshll.u32 %v5917_v40, 16  ;;  %v6317_v24 = vshll.u32 %v5918_v35, 16  ;;  %v6321_v3 = vshrl.u32 %v5918_v35, 16  ;;  %v5926_v32 = vld [vmem:[#allocation2 + $0xf0] sm:$0xf]  ;;  %v15577_v41 = vld [vmem:[%s23146_s3 + $0x20] sm:$0xff]  }
 0x3ed   :  { %v13062_v1 = vcombine.low %v3234_v56, %v3244_v43  ;;  %v6291_v36 = vrot.slane %v6290_v47, 4  ;;  %v6300_v38 = vor.u32 %v6299_v17, %v6295_v44  ;;  %v6310_v30 = vrot.slane %v6308_v7, 4  ;;  %v5927_v17 = vld [vmem:[#allocation2 + $0xf4] sm:$0xf]  ;;  %v15644_v43 = vld [vmem:[#allocation2 + $0x24] sm:$0xf]  ;;  %14443 = vmatprep.subr.bf16.mxu0 %v15577_v41 }
 0x3ee   :  { %v6313_v10 = vrot.slane %v6311_v8, 5  ;;  %v6319_v15 = vrot.slane %v6317_v24, 5  ;;  %v6323_v31 = vrot.slane %v6321_v3, 4  ;;  %v6327_v2 = vshll.u32 %v5919_v52, 16  ;;  %v15645_v8 = vld [vmem:[#allocation2 + $0x28] sm:$0xf] }
 0x3ef   :  { %14372 = vmatmul.mubr.msk.bf16.gmra.mrb[124].mxu0 %vm478_vm5, %v13062_v1  ;;  %v6296_v60 = vsel %vm19112_vm12, %v6291_v36, %v6295_v44  ;;  %v6301_v63 = vrot.slane %v6300_v38, 4  ;;  %v13097_v42 = vcombine.low %v15639_v23, %v15638_v62  ;;  %v13098_v39 = vcombine.low %v15641_v50, %v15640_v21  ;;  %v5928_v3 = vld [vmem:[#allocation2 + $0xf8] sm:$0x1] }
 0x3f0   :  { %v6314_v54 = vor.u32 %v6313_v10, %v6310_v30  ;;  %v6324_v57 = vor.u32 %v6323_v31, %v6319_v15  ;;  %v6329_v28 = vrot.slane %v6327_v2, 5  ;;  %v6332_v34 = vshrl.u32 %v5920_v25, 16  ;;  %v5929_v2 = vld [vmem:[#allocation2 + $0xfc] sm:$0xf] }
 0x3f1   :  { %v6306_v59 = vsel %vm19112_vm12, %v6301_v63, %v6305_v19  ;;  %14379 = vmatprep.mubr.msk.bf16.mxu0 %vm478_vm5, %v13097_v42  ;;  %v6335_v53 = vshll.u32 %v5920_v25, 16  ;;  %v6341_v27 = vshll.u32 %v5921_v16, 16  ;;  %v6345_v5 = vshrl.u32 %v5921_v16, 16 }
 0x3f2   :  { %v13352_v14 = vcombine.low %v6296_v60, %v6306_v59  ;;  %v6315_v4 = vrot.slane %v6314_v54, 4  ;;  %v6325_v29 = vrot.slane %v6324_v57, 4  ;;  %v6334_v22 = vrot.slane %v6332_v34, 4  ;;  %v15647_v34 = vld [vmem:[#allocation2 + $0x34] sm:$0xf] }
 0x3f3   :  { %v6337_v40 = vrot.slane %v6335_v53, 5  ;;  %v6343_v37 = vrot.slane %v6341_v27, 5  ;;  %v6347_v9 = vrot.slane %v6345_v5, 4  ;;  %v6351_v33 = vshll.u32 %v5922_v45, 16  ;;  %v5930_v45 = vld [vmem:[#allocation2 + $0x100] sm:$0xf] }
 0x3f4   :  { %14608 = vmatmul.mubr.msk.bf16.gmra.mrb[0].mxu1 %vm478_vm5, %v13352_v14  ;;  %v6320_v48 = vsel %vm19112_vm12, %v6315_v4, %v6319_v15  ;;  %v6330_v46 = vsel %vm19112_vm12, %v6325_v29, %v6329_v28  ;;  %v13099_v61 = vcombine.low %v15643_v58, %v15642_v26  ;;  %v6356_v35 = vshrl.u32 %v5923_v0, 16  ;;  %v15646_v28 = vld [vmem:[#allocation2 + $0x30] sm:$0xf]  ;;  %v5931_v14 = vld [vmem:[#allocation2 + $0x104] sm:$0x1]  ;;  %v15578_v4 = vld [vmem:[%s23146_s3 + $0x28] sm:$0xff]  }
 0x3f5   :  { %v13353_v6 = vcombine.low %v6320_v48, %v6330_v46  ;;  %v6338_v12 = vor.u32 %v6337_v40, %v6334_v22  ;;  %v6348_v13 = vor.u32 %v6347_v9, %v6343_v37  ;;  %v6353_v52 = vrot.slane %v6351_v33, 5  ;;  %v5933_v9 = vld [vmem:[#allocation2 + $0x10c] sm:$0xf] }
 0x3f6   :  { %v6358_v56 = vrot.slane %v6356_v35, 4  ;;  %v6359_v51 = vshll.u32 %v5923_v0, 16  ;;  %v6365_v44 = vshll.u32 %v5924_v49, 16  ;;  %v6369_v47 = vshrl.u32 %v5924_v49, 16 }
 0x3f7   :  { %14611 = vmatprep.mubr.msk.bf16.mxu1 %vm478_vm5, %v13353_v6  ;;  %14380 = vmatmul.mubr.msk.bf16.vlgmr.msra.gmra.mrb[64].mxu0 %vm478_vm5, %v13098_v39  ;;  %v6339_v19 = vrot.slane %v6338_v12, 4  ;;  %v6349_v7 = vrot.slane %v6348_v13, 4  ;;  %v6375_v25 = vshll.u32 %v5925_v55, 16  ;;  %v13100_v24 = vcombine.low %v15644_v43, %v15645_v8  ;;  %v15649_v6 = vld [vmem:[#allocation2 + $0x40] sm:$0xf] }
 0x3f8   :  { %14383 = vmatprep.mubr.msk.bf16.mxu0 %vm478_vm5, %v13099_v61  ;;  %v6361_v1 = vrot.slane %v6359_v51, 5  ;;  %v6367_v36 = vrot.slane %v6365_v44, 5  ;;  %v6371_v38 = vrot.slane %v6369_v47, 4  ;;  %v6380_v30 = vshrl.u32 %v5926_v32, 16  ;;  %14444 = vmatpush3.bf16.msra.mxu0 %v15577_v41  ;;  %v5934_v13 = vld [vmem:[#allocation2 + $0x110] sm:$0x1] }
 0x3f9   :  { %v6344_v16 = vsel %vm19112_vm12, %v6339_v19, %v6343_v37  ;;  %v6354_v10 = vsel %vm19112_vm12, %v6349_v7, %v6353_v52  ;;  %v6377_v15 = vrot.slane %v6375_v25, 5  ;;  %v6383_v31 = vshll.u32 %v5926_v32, 16  ;;  %v5932_v37 = vld [vmem:[#allocation2 + $0x108] sm:$0xf]  ;;  %14445 = vmatprep.subr.bf16.mxu0 %v15578_v4  ;;  %v15648_v32 = vld [vmem:[#allocation2 + $0x3c] sm:$0xf] }
 0x3fa   :  { %v13354_v60 = vcombine.low %v6344_v16, %v6354_v10  ;;  %v6362_v63 = vor.u32 %v6361_v1, %v6358_v56  ;;  %v6372_v62 = vor.u32 %v6371_v38, %v6367_v36  ;;  %v6382_v23 = vrot.slane %v6380_v30, 4  ;;  %v15650_v44 = vld [vmem:[%s23146_s3 + $0x30] sm:$0xff]   ;;  %v5936_v16 = vld [vmem:[#allocation2 + $0x118] sm:$0xf] }
 0x3fb   :  { %v6385_v42 = vrot.slane %v6383_v31, 5  ;;  %v6389_v21 = vshll.u32 %v5927_v17, 16  ;;  %v6393_v50 = vshrl.u32 %v5927_v17, 16  ;;  %v6399_v39 = vshll.u32 %v5928_v3, 16  ;;  %v5935_v25 = vld [vmem:[#allocation2 + $0x114] sm:$0xf] }
 0x3fc   :  { %14612 = vmatmul.mubr.msk.bf16.gmra.mrb[4].mxu1 %vm478_vm5, %v13354_v60  ;;  %v6363_v54 = vrot.slane %v6362_v63, 4  ;;  %v6373_v57 = vrot.slane %v6372_v62, 4  ;;  %v13101_v0 = vcombine.low %v15646_v28, %v15647_v34  ;;  %v6404_v59 = vshrl.u32 %v5929_v2, 16  ;;  %14446 = vmatpush3.bf16.msra.mxu0 %v15578_v4  ;;  %v15652_v60 = vld [vmem:[#allocation2 + $0x4c] sm:$0xf] }
 0x3fd   :  { %v6386_v53 = vor.u32 %v6385_v42, %v6382_v23  ;;  %v6391_v27 = vrot.slane %v6389_v21, 5  ;;  %v6395_v5 = vrot.slane %v6393_v50, 4  ;;  %v6401_v49 = vrot.slane %v6399_v39, 5  ;;  %14511 = vmatprep.subr.bf16.mxu0 %v15650_v44  ;;  %v5937_v62 = vld [vmem:[#allocation2 + $0x11c] sm:$0x1] }
 0x3fe   :  { %v6368_v29 = vsel %vm19112_vm12, %v6363_v54, %v6367_v36  ;;  %v6378_v22 = vsel %vm19112_vm12, %v6373_v57, %v6377_v15  ;;  %v6406_v55 = vrot.slane %v6404_v59, 4  ;;  %v6407_v40 = vshll.u32 %v5929_v2, 16  ;;  %v15651_v2 = vld [vmem:[#allocation2 + $0x48] sm:$0xf]  ;;  %v5938_v39 = vld [vmem:[#allocation2 + $0x120] sm:$0xf] }
 0x3ff   :  { %v13355_v33 = vcombine.low %v6368_v29, %v6378_v22  ;;  %14384 = vmatmul.mubr.msk.bf16.gmra.mrb[68].mxu0 %vm478_vm5, %v13100_v24  ;;  %v6387_v48 = vrot.slane %v6386_v53, 4  ;;  %v6396_v46 = vor.u32 %v6395_v5, %v6391_v27  ;;  %v6413_v26 = vshll.u32 %v5930_v45, 16  ;;  %v5939_v34 = vld [vmem:[#allocation2 + $0x124] sm:$0xf]  ;;  %v5940_v29 = vld [vmem:[#allocation2 + $0x128] sm:$0x1] }
 0x400   :  { %14387 = vmatprep.mubr.msk.bf16.mxu0 %vm478_vm5, %v13101_v0  ;;  %v6409_v58 = vrot.slane %v6407_v40, 5  ;;  %v6417_v61 = vshrl.u32 %v5930_v45, 16  ;;  %v6423_v35 = vshll.u32 %v5931_v14, 16  ;;  %v13102_v12 = vcombine.low %v15648_v32, %v15649_v6 }
 0x401   :  { %14615 = vmatprep.mubr.msk.bf16.mxu1 %vm478_vm5, %v13355_v33  ;;  %v6392_v52 = vsel %vm19112_vm12, %v6387_v48, %v6391_v27  ;;  %v6397_v41 = vrot.slane %v6396_v46, 4  ;;  %v6415_v56 = vrot.slane %v6413_v26, 5  ;;  %v6428_v51 = vshrl.u32 %v5932_v37, 16 }
 0x402   :  { %v6410_v47 = vor.u32 %v6409_v58, %v6406_v55  ;;  %v6419_v17 = vrot.slane %v6417_v61, 4  ;;  %v6425_v19 = vrot.slane %v6423_v35, 5  ;;  %v6431_v7 = vshll.u32 %v5932_v37, 16  ;;  %v15653_v37 = vld [vmem:[#allocation2 + $0x54] sm:$0xf] }
 0x403   :  { %v6402_v43 = vsel %vm19112_vm12, %v6397_v41, %v6401_v49  ;;  %v6430_v8 = vrot.slane %v6428_v51, 4  ;;  %v6437_v24 = vshll.u32 %v5933_v9, 16  ;;  %v6441_v3 = vshrl.u32 %v5933_v9, 16  ;;  %v15654_v9 = vld [vmem:[#allocation2 + $0x58] sm:$0xf] }
 0x404   :  { %v13356_v1 = vcombine.low %v6392_v52, %v6402_v43  ;;  %v6411_v36 = vrot.slane %v6410_v47, 4  ;;  %v6420_v38 = vor.u32 %v6419_v17, %v6415_v56  ;;  %v6433_v30 = vrot.slane %v6431_v7, 5  ;;  %v5941_v61 = vld [vmem:[#allocation2 + $0x12c] sm:$0xf]  ;;  %v19474_v7 = vld [vmem:[#allocation2 + $0x64] sm:$0xf] }
 0x405   :  { %v6439_v10 = vrot.slane %v6437_v24, 5  ;;  %v6443_v15 = vrot.slane %v6441_v3, 4  ;;  %v6447_v31 = vshll.u32 %v5934_v13, 16  ;;  %v13103_v63 = vcombine.low %v15651_v2, %v15652_v60  ;;  %v5942_v13 = vld [vmem:[#allocation2 + $0x130] sm:$0xf] }
 0x406   :  { %14616 = vmatmul.mubr.msk.bf16.gmra.mrb[8].mxu1 %vm478_vm5, %v13356_v1  ;;  %v6416_v23 = vsel %vm19112_vm12, %v6411_v36, %v6415_v56  ;;  %v6421_v42 = vrot.slane %v6420_v38, 4  ;;  %v6434_v21 = vor.u32 %v6433_v30, %v6430_v8  ;;  %v6452_v50 = vshrl.u32 %v5935_v25, 16  ;;  %v5943_v43 = vld [vmem:[#allocation2 + $0x134] sm:$0x1] }
 0x407   :  { %14388 = vmatmul.mubr.msk.bf16.gmra.mrb[72].mxu0 %vm478_vm5, %v13102_v12  ;;  %v6444_v45 = vor.u32 %v6443_v15, %v6439_v10  ;;  %v6449_v54 = vrot.slane %v6447_v31, 5  ;;  %v6455_v57 = vshll.u32 %v5935_v25, 16  ;;  %v6461_v28 = vshll.u32 %v5936_v16, 16 }
 0x408   :  { %v6426_v0 = vsel %vm19112_vm12, %v6421_v42, %v6425_v19  ;;  %v6435_v59 = vrot.slane %v6434_v21, 4  ;;  %14391 = vmatprep.mubr.msk.bf16.mxu0 %vm478_vm5, %v13103_v63  ;;  %v6454_v53 = vrot.slane %v6452_v50, 4  ;;  %v6465_v27 = vshrl.u32 %v5936_v16, 16  ;;  %v15655_v19 = vld [vmem:[#allocation2 + $0x60] sm:$0xf] }
 0x409   :  { %v13357_v5 = vcombine.low %v6416_v23, %v6426_v0  ;;  %v6445_v49 = vrot.slane %v6444_v45, 4  ;;  %v6457_v14 = vrot.slane %v6455_v57, 5  ;;  %v6463_v4 = vrot.slane %v6461_v28, 5  ;;  %v5945_v21 = vld [vmem:[#allocation2 + $0x13c] sm:$0xf] }
 0x40a   :  { %v6440_v22 = vsel %vm19112_vm12, %v6435_v59, %v6439_v10  ;;  %v6467_v55 = vrot.slane %v6465_v27, 4  ;;  %v6471_v40 = vshll.u32 %v5937_v62, 16  ;;  %v13104_v33 = vcombine.low %v15653_v37, %v15654_v9  ;;  %v5944_v10 = vld [vmem:[#allocation2 + $0x138] sm:$0xf]  ;;  %v15657_v45 = vld [vmem:[#allocation2 + $0x6c] sm:$0xf] }
 0x40b   :  { %14619 = vmatprep.mubr.msk.bf16.mxu1 %vm478_vm5, %v13357_v5  ;;  %v6450_v48 = vsel %vm19112_vm12, %v6445_v49, %v6449_v54  ;;  %v6458_v46 = vor.u32 %v6457_v14, %v6454_v53  ;;  %v6476_v26 = vshrl.u32 %v5938_v39, 16  ;;  %v6479_v58 = vshll.u32 %v5938_v39, 16  ;;  %v19486_v54 = vld [vmem:[#allocation2 + $0x70] sm:$0xf]  ;;  %v5946_v53 = vld [vmem:[#allocation2 + $0x140] sm:$0x1] }
 0x40c   :  { %v13358_v35 = vcombine.low %v6440_v22, %v6450_v48  ;;  %v6468_v32 = vor.u32 %v6467_v55, %v6463_v4  ;;  %v6473_v6 = vrot.slane %v6471_v40, 5  ;;  %v6485_v12 = vshll.u32 %v5939_v34, 16  ;;  %v5948_v9 = vld [vmem:[#allocation2 + $0x148] sm:$0xf] }
 0x40d   :  { %v6459_v52 = vrot.slane %v6458_v46, 4  ;;  %v6478_v41 = vrot.slane %v6476_v26, 4  ;;  %v6481_v56 = vrot.slane %v6479_v58, 5  ;;  %v6489_v51 = vshrl.u32 %v5939_v34, 16  ;;  %v15659_v26 = vld [vmem:[#allocation2 + $0x78] sm:$0xf] }
 0x40e   :  { %14620 = vmatmul.mubr.msk.bf16.gmra.mrb[12].mxu1 %vm478_vm5, %v13358_v35  ;;  %v6469_v44 = vrot.slane %v6468_v32, 4  ;;  %v6487_v47 = vrot.slane %v6485_v12, 5  ;;  %v6495_v17 = vshll.u32 %v5940_v29, 16  ;;  %v13105_v25 = vcombine.low %v15655_v19, %v19474_v7  ;;  %v5947_v29 = vld [vmem:[#allocation2 + $0x144] sm:$0xf] }
 0x40f   :  { %v6464_v8 = vsel %vm19112_vm12, %v6459_v52, %v6463_v4  ;;  %14392 = vmatmul.mubr.msk.bf16.gmra.mrb[76].mxu0 %vm478_vm5, %v13104_v33  ;;  %v6482_v24 = vor.u32 %v6481_v56, %v6478_v41  ;;  %v6491_v3 = vrot.slane %v6489_v51, 4  ;;  %v6500_v1 = vshrl.u32 %v5941_v61, 16  ;;  %v19492_v58 = vld [vmem:[#allocation2 + $0x7c] sm:$0xf]  ;;  %v5949_v41 = vld [vmem:[#allocation2 + $0x14c] sm:$0x1] }
 0x410   :  { %v6474_v36 = vsel %vm19112_vm12, %v6469_v44, %v6473_v6  ;;  %v6497_v38 = vrot.slane %v6495_v17, 5  ;;  %14395 = vmatprep.mubr.msk.bf16.mxu0 %vm478_vm5, %v13105_v25  ;;  %v6503_v30 = vshll.u32 %v5941_v61, 16  ;;  %v6509_v16 = vshll.u32 %v5942_v13, 16  ;;  %v5950_v25 = vld [vmem:[#allocation2 + $0x150] sm:$0xf] }
 0x411   :  { %v13359_v15 = vcombine.low %v6464_v8, %v6474_v36  ;;  %v6483_v31 = vrot.slane %v6482_v24, 4  ;;  %v6492_v2 = vor.u32 %v6491_v3, %v6487_v47  ;;  %v6502_v60 = vrot.slane %v6500_v1, 4  ;;  %v5951_v1 = vld [vmem:[#allocation2 + $0x154] sm:$0xf] }
 0x412   :  { %v6505_v63 = vrot.slane %v6503_v30, 5  ;;  %v6511_v62 = vrot.slane %v6509_v16, 5  ;;  %v6513_v23 = vshrl.u32 %v5942_v13, 16  ;;  %v6519_v42 = vshll.u32 %v5943_v43, 16  ;;  %v15661_v16 = vld [vmem:[#allocation2 + $0x84] sm:$0xf] }
 0x413   :  { %14623 = vmatprep.mubr.msk.bf16.mxu1 %vm478_vm5, %v13359_v15  ;;  %v6488_v50 = vsel %vm19112_vm12, %v6483_v31, %v6487_v47  ;;  %v6493_v39 = vrot.slane %v6492_v2, 4  ;;  %v13106_v57 = vcombine.low %v15657_v45, %v19486_v54  ;;  %v6524_v28 = vshrl.u32 %v5944_v10, 16 }
 0x414   :  { %v6506_v34 = vor.u32 %v6505_v63, %v6502_v60  ;;  %v6515_v0 = vrot.slane %v6513_v23, 4  ;;  %v6521_v59 = vrot.slane %v6519_v42, 5  ;;  %v6527_v27 = vshll.u32 %v5944_v10, 16  ;;  %v19503_v10 = vld [vmem:[#allocation2 + $0x88] sm:$0xf] }
 0x415   :  { %v6498_v5 = vsel %vm19112_vm12, %v6493_v39, %v6497_v38  ;;  %v6526_v49 = vrot.slane %v6524_v28, 4  ;;  %v6533_v14 = vshll.u32 %v5945_v21, 16  ;;  %v6537_v4 = vshrl.u32 %v5945_v21, 16  ;;  %v5952_v60 = vld [vmem:[#allocation2 + $0x158] sm:$0x1] }
 0x416   :  { %v13360_v22 = vcombine.low %v6488_v50, %v6498_v5  ;;  %v6507_v55 = vrot.slane %v6506_v34, 4  ;;  %v6516_v40 = vor.u32 %v6515_v0, %v6511_v62  ;;  %v6529_v37 = vrot.slane %v6527_v27, 5  ;;  %v5953_v39 = vld [vmem:[#allocation2 + $0x15c] sm:$0xf]  ;;  %v5954_v0 = vld [vmem:[#allocation2 + $0x160] sm:$0xf] }
 0x417   :  { %14396 = vmatmul.mubr.msk.bf16.gmra.mrb[80].mxu0 %vm478_vm5, %v13106_v57  ;;  %v6535_v33 = vrot.slane %v6533_v14, 5  ;;  %v6539_v48 = vrot.slane %v6537_v4, 4  ;;  %v6543_v46 = vshll.u32 %v5946_v53, 16  ;;  %v13107_v61 = vcombine.low %v15659_v26, %v19492_v58  ;;  %v15663_v5 = vld [vmem:[#allocation2 + $0x90] sm:$0xf] }
 0x418   :  { %14624 = vmatmul.mubr.msk.bf16.gmra.mrb[16].mxu1 %vm478_vm5, %v13360_v22  ;;  %v6512_v35 = vsel %vm19112_vm12, %v6507_v55, %v6511_v62  ;;  %v6517_v32 = vrot.slane %v6516_v40, 4  ;;  %v6530_v6 = vor.u32 %v6529_v37, %v6526_v49  ;;  %v6548_v12 = vshrl.u32 %v5947_v29, 16  ;;  %v19511_v49 = vld [vmem:[#allocation2 + $0x94] sm:$0xf]  ;;  %v5955_v55 = vld [vmem:[#allocation2 + $0x164] sm:$0x1] }
 0x419   :  { %v6540_v13 = vor.u32 %v6539_v48, %v6535_v33  ;;  %v6545_v52 = vrot.slane %v6543_v46, 5  ;;  %14399 = vmatprep.mubr.msk.bf16.mxu0 %vm478_vm5, %v13107_v61  ;;  %v6551_v56 = vshll.u32 %v5947_v29, 16  ;;  %v6557_v51 = vshll.u32 %v5948_v9, 16  ;;  %v5956_v46 = vld [vmem:[#allocation2 + $0x168] sm:$0xf] }
 0x41a   :  { %v6522_v44 = vsel %vm19112_vm12, %v6517_v32, %v6521_v59  ;;  %v6531_v47 = vrot.slane %v6530_v6, 4  ;;  %v6550_v17 = vrot.slane %v6548_v12, 4  ;;  %v6561_v19 = vshrl.u32 %v5948_v9, 16 }
 0x41b   :  { %v13361_v43 = vcombine.low %v6512_v35, %v6522_v44  ;;  %v6541_v8 = vrot.slane %v6540_v13, 4  ;;  %v6553_v24 = vrot.slane %v6551_v56, 5  ;;  %v6559_v3 = vrot.slane %v6557_v51, 5  ;;  %v15665_v44 = vld [vmem:[#allocation2 + $0x9c] sm:$0xf] }
 0x41c   :  { %v6536_v36 = vsel %vm19112_vm12, %v6531_v47, %v6535_v33  ;;  %v6563_v38 = vrot.slane %v6561_v19, 4  ;;  %v6567_v30 = vshll.u32 %v5949_v41, 16  ;;  %v13108_v15 = vcombine.low %v15661_v16, %v19503_v10  ;;  %v5957_v41 = vld [vmem:[#allocation2 + $0x16c] sm:$0xf]  ;;  %v19522_v47 = vld [vmem:[#allocation2 + $0xa0] sm:$0xf] }
 0x41d   :  { %14627 = vmatprep.mubr.msk.bf16.mxu1 %vm478_vm5, %v13361_v43  ;;  %v6546_v31 = vsel %vm19112_vm12, %v6541_v8, %v6545_v52  ;;  %v6554_v2 = vor.u32 %v6553_v24, %v6550_v17  ;;  %v6572_v63 = vshrl.u32 %v5950_v25, 16  ;;  %v6575_v62 = vshll.u32 %v5950_v25, 16  ;;  %v5958_v24 = vld [vmem:[#allocation2 + $0x170] sm:$0x1]  ;;  %v5959_v16 = vld [vmem:[#allocation2 + $0x174] sm:$0xf] }
 0x41e   :  { %v13362_v23 = vcombine.low %v6536_v36, %v6546_v31  ;;  %v6564_v42 = vor.u32 %v6563_v38, %v6559_v3  ;;  %v6569_v21 = vrot.slane %v6567_v30, 5  ;;  %v6581_v50 = vshll.u32 %v5951_v1, 16 }
 0x41f   :  { %v6555_v45 = vrot.slane %v6554_v2, 4  ;;  %14400 = vmatmul.mubr.msk.bf16.gmra.mrb[84].mxu0 %vm478_vm5, %v13108_v15  ;;  %v6574_v57 = vrot.slane %v6572_v63, 4  ;;  %v6577_v28 = vrot.slane %v6575_v62, 5  ;;  %v6585_v34 = vshrl.u32 %v5951_v1, 16  ;;  %v5960_v63 = vld [vmem:[#allocation2 + $0x178] sm:$0xf] }
 0x420   :  { %14628 = vmatmul.mubr.msk.bf16.gmra.mrb[20].mxu1 %vm478_vm5, %v13362_v23  ;;  %v6565_v59 = vrot.slane %v6564_v42, 4  ;;  %v6583_v53 = vrot.slane %v6581_v50, 5  ;;  %v6591_v27 = vshll.u32 %v5952_v60, 16  ;;  %v13109_v14 = vcombine.low %v15663_v5, %v19511_v49  ;;  %v19528_v50 = vld [vmem:[#allocation2 + $0xac] sm:$0xf] }
 0x421   :  { %v6560_v4 = vsel %vm19112_vm12, %v6555_v45, %v6559_v3  ;;  %v6578_v29 = vor.u32 %v6577_v28, %v6574_v57  ;;  %v6587_v22 = vrot.slane %v6585_v34, 4  ;;  %v6596_v40 = vshrl.u32 %v5953_v39, 16 }
 0x422   :  { %v6570_v37 = vsel %vm19112_vm12, %v6565_v59, %v6569_v21  ;;  %v6593_v9 = vrot.slane %v6591_v27, 5  ;;  %14403 = vmatprep.mubr.msk.bf16.mxu0 %vm478_vm5, %v13109_v14  ;;  %v6599_v33 = vshll.u32 %v5953_v39, 16  ;;  %v6605_v48 = vshll.u32 %v5954_v0, 16  ;;  %v15667_v21 = vld [vmem:[#allocation2 + $0xa8] sm:$0xf] }
 0x423   :  { %v13363_v26 = vcombine.low %v6560_v4, %v6570_v37  ;;  %v6579_v61 = vrot.slane %v6578_v29, 4  ;;  %v6588_v35 = vor.u32 %v6587_v22, %v6583_v53  ;;  %v6598_v32 = vrot.slane %v6596_v40, 4 }
 0x424   :  { %v6601_v6 = vrot.slane %v6599_v33, 5  ;;  %v6607_v12 = vrot.slane %v6605_v48, 5  ;;  %v6609_v13 = vshrl.u32 %v5954_v0, 16  ;;  %v6615_v52 = vshll.u32 %v5955_v55, 16  ;;  %v5962_v55 = vld [vmem:[#allocation2 + $0x180] sm:$0xf] }
 0x425   :  { %14631 = vmatprep.mubr.msk.bf16.mxu1 %vm478_vm5, %v13363_v26  ;;  %v6584_v56 = vsel %vm19112_vm12, %v6579_v61, %v6583_v53  ;;  %v6589_v51 = vrot.slane %v6588_v35, 4  ;;  %v13110_v17 = vcombine.low %v15665_v44, %v19522_v47  ;;  %v6620_v19 = vshrl.u32 %v5956_v46, 16  ;;  %v5961_v53 = vld [vmem:[#allocation2 + $0x17c] sm:$0x1]  ;;  %v5963_v48 = vld [vmem:[#allocation2 + $0x184] sm:$0xf] }
 0x426   :  { %v6602_v25 = vor.u32 %v6601_v6, %v6598_v32  ;;  %v6611_v43 = vrot.slane %v6609_v13, 4  ;;  %v6617_v8 = vrot.slane %v6615_v52, 5  ;;  %v6623_v3 = vshll.u32 %v5956_v46, 16  ;;  %v15669_v35 = vld [vmem:[#allocation2 + $0xb4] sm:$0xf] }
 0x427   :  { %v6594_v1 = vsel %vm19112_vm12, %v6589_v51, %v6593_v9  ;;  %14404 = vmatmul.mubr.msk.bf16.gmra.mrb[88].mxu0 %vm478_vm5, %v13110_v17  ;;  %v6622_v36 = vrot.slane %v6620_v19, 4  ;;  %v6629_v38 = vshll.u32 %v5957_v41, 16  ;;  %v6633_v30 = vshrl.u32 %v5957_v41, 16  ;;  %v19539_v32 = vld [vmem:[#allocation2 + $0xb8] sm:$0xf] }
 0x428   :  { %v13364_v15 = vcombine.low %v6584_v56, %v6594_v1  ;;  %v6603_v31 = vrot.slane %v6602_v25, 4  ;;  %v6612_v2 = vor.u32 %v6611_v43, %v6607_v12  ;;  %v6625_v60 = vrot.slane %v6623_v3, 5  ;;  %v5964_v52 = vld [vmem:[#allocation2 + $0x188] sm:$0x1]  ;;  %v5965_v51 = vld [vmem:[#allocation2 + $0x18c] sm:$0xf] }
 0x429   :  { %v6631_v62 = vrot.slane %v6629_v38, 5  ;;  %v6635_v23 = vrot.slane %v6633_v30, 4  ;;  %v6639_v42 = vshll.u32 %v5958_v24, 16  ;;  %v13111_v39 = vcombine.low %v15667_v21, %v19528_v50  ;;  %v5966_v1 = vld [vmem:[#allocation2 + $0x190] sm:$0xf] }
 0x42a   :  { %14632 = vmatmul.mubr.msk.bf16.gmra.mrb[24].mxu1 %vm478_vm5, %v13364_v15  ;;  %v6608_v45 = vsel %vm19112_vm12, %v6603_v31, %v6607_v12  ;;  %v6613_v57 = vrot.slane %v6612_v2, 4  ;;  %v6626_v28 = vor.u32 %v6625_v60, %v6622_v36  ;;  %v6644_v34 = vshrl.u32 %v5959_v16, 16  ;;  %v5967_v60 = vld [vmem:[#allocation2 + $0x194] sm:$0x1] }
 0x42b   :  { %v6636_v0 = vor.u32 %v6635_v23, %v6631_v62  ;;  %v6641_v59 = vrot.slane %v6639_v42, 5  ;;  %14407 = vmatprep.mubr.msk.bf16.mxu0 %vm478_vm5, %v13111_v39  ;;  %v6647_v27 = vshll.u32 %v5959_v16, 16  ;;  %v6653_v5 = vshll.u32 %v5960_v63, 16 }
 0x42c   :  { %v6618_v14 = vsel %vm19112_vm12, %v6613_v57, %v6617_v8  ;;  %v6627_v4 = vrot.slane %v6626_v28, 4  ;;  %v6646_v29 = vrot.slane %v6644_v34, 4  ;;  %v6657_v22 = vshrl.u32 %v5960_v63, 16  ;;  %v5968_v34 = vld [vmem:[#allocation2 + $0x198] sm:$0xf] }
 0x42d   :  { %v13365_v40 = vcombine.low %v6608_v45, %v6618_v14  ;;  %v6637_v37 = vrot.slane %v6636_v0, 4  ;;  %v6649_v9 = vrot.slane %v6647_v27, 5  ;;  %v6655_v33 = vrot.slane %v6653_v5, 5  ;;  %v19551_v27 = vld [vmem:[#allocation2 + $0xdc] sm:$0xf] }
 0x42e   :  { %v6632_v46 = vsel %vm19112_vm12, %v6627_v4, %v6631_v62  ;;  %v6659_v26 = vrot.slane %v6657_v22, 4  ;;  %v6663_v61 = vshll.u32 %v5961_v53, 16  ;;  %v13112_v6 = vcombine.low %v15669_v35, %v19539_v32  ;;  %v15672_v5 = vld [vmem:[#allocation2 + $0xd8] sm:$0xf]  ;;  %v5969_v4 = vld [vmem:[#allocation2 + $0x19c] sm:$0xf] }
 0x42f   :  { %14635 = vmatprep.mubr.msk.bf16.mxu1 %vm478_vm5, %v13365_v40  ;;  %v6642_v12 = vsel %vm19112_vm12, %v6637_v37, %v6641_v59  ;;  %v6650_v13 = vor.u32 %v6649_v9, %v6646_v29  ;;  %v6668_v41 = vshrl.u32 %v5962_v55, 16  ;;  %v6671_v56 = vshll.u32 %v5962_v55, 16  ;;  %v15673_v40 = vld [vmem:[#allocation2 + $0xe4] sm:$0xf]  ;;  %v19557_v37 = vld [vmem:[#allocation2 + $0xe8] sm:$0xf] }
 0x430   :  { %v13366_v44 = vcombine.low %v6632_v46, %v6642_v12  ;;  %v6660_v17 = vor.u32 %v6659_v26, %v6655_v33  ;;  %v6665_v19 = vrot.slane %v6663_v61, 5  ;;  %14408 = vmatmul.mubr.msk.bf16.gmra.mrb[92].mxu0 %vm478_vm5, %v13112_v6  ;;  %v6677_v25 = vshll.u32 %v5963_v48, 16  ;;  %v5970_v46 = vld [vmem:[#allocation2 + $0x1a0] sm:$0x1] }
 0x431   :  { %v6651_v43 = vrot.slane %v6650_v13, 4  ;;  %v6670_v8 = vrot.slane %v6668_v41, 4  ;;  %v6673_v24 = vrot.slane %v6671_v56, 5  ;;  %v6681_v3 = vshrl.u32 %v5963_v48, 16 }
 0x432   :  { %14636 = vmatmul.mubr.msk.bf16.gmra.mrb[28].mxu1 %vm478_vm5, %v13366_v44  ;;  %v6661_v36 = vrot.slane %v6660_v17, 4  ;;  %v6679_v38 = vrot.slane %v6677_v25, 5  ;;  %v6687_v30 = vshll.u32 %v5964_v52, 16  ;;  %v6692_v16 = vshrl.u32 %v5965_v51, 16 }
 0x433   :  { %v6656_v15 = vsel %vm19112_vm12, %v6651_v43, %v6655_v33  ;;  %v6674_v31 = vor.u32 %v6673_v24, %v6670_v8  ;;  %v6683_v2 = vrot.slane %v6681_v3, 4  ;;  %v6695_v63 = vshll.u32 %v5965_v51, 16  ;;  %v7301_v43 = vld [vmem:[#allocation2 + $0xc] sm:$0xe]  ;;  %v15675_v3 = vld [vmem:[#allocation2 + $0xf0] sm:$0xf] }
 0x434   :  { %v6666_v62 = vsel %vm19112_vm12, %v6661_v36, %v6665_v19  ;;  %v6689_v23 = vrot.slane %v6687_v30, 5  ;;  %v6694_v42 = vrot.slane %v6692_v16, 4  ;;  %v6701_v21 = vshll.u32 %v5966_v1, 16 }
 0x435   :  { %v13367_v39 = vcombine.low %v6656_v15, %v6666_v62  ;;  %v6675_v45 = vrot.slane %v6674_v31, 4  ;;  %v6684_v57 = vor.u32 %v6683_v2, %v6679_v38  ;;  %v6697_v28 = vrot.slane %v6695_v63, 5  ;;  %v15677_v31 = vld [vmem:[#allocation2 + $0x10] sm:$0xf] }
 0x436   :  { %v6703_v0 = vrot.slane %v6701_v21, 5  ;;  %v6705_v59 = vshrl.u32 %v5966_v1, 16  ;;  %v6711_v53 = vshll.u32 %v5967_v60, 16  ;;  %v13113_v14 = vcombine.low %v15672_v5, %v19551_v27  ;;  %v19567_v1 = vld [vmem:[#allocation2 + $0xf4] sm:$0xf] }
 0x437   :  { %14639 = vmatprep.mubr.msk.bf16.mxu1 %vm478_vm5, %v13367_v39  ;;  %v6680_v29 = vsel %vm19112_vm12, %v6675_v45, %v6679_v38  ;;  %v6685_v22 = vrot.slane %v6684_v57, 4  ;;  %v6698_v55 = vor.u32 %v6697_v28, %v6694_v42  ;;  %v13114_v9 = vcombine.low %v15673_v40, %v19557_v37  ;;  %v15678_v42 = vld [vmem:[#allocation2 + $0xfc] sm:$0xf]  ;;  %v19577_v21 = vld [vmem:[#allocation2 + $0x100] sm:$0xf] }
 0x438   :  { %v6707_v33 = vrot.slane %v6705_v59, 4  ;;  %v6713_v48 = vrot.slane %v6711_v53, 5  ;;  %14411 = vmatprep.mubr.msk.bf16.mxu0 %vm478_vm5, %v13113_v14  ;;  %v6716_v26 = vshrl.u32 %v5968_v34, 16  ;;  %v6719_v61 = vshll.u32 %v5968_v34, 16  ;;  %v15680_v28 = vld [vmem:[#allocation2 + $0x14] sm:$0x1] }
 0x439   :  { %v6690_v35 = vsel %vm19112_vm12, %v6685_v22, %v6689_v23  ;;  %v6699_v6 = vrot.slane %v6698_v55, 4  ;;  %14412 = vmatmul.mubr.msk.bf16.gmra.mrb[96].mxu0 %vm478_vm5, %v13114_v9  ;;  %v6725_v12 = vshll.u32 %v5969_v4, 16  ;;  %v6729_v13 = vshrl.u32 %v5969_v4, 16  ;;  %v15682_v5 = vld [vmem:[#allocation2 + $0x108] sm:$0xf] }
 0x43a   :  { %v13368_v52 = vcombine.low %v6680_v29, %v6690_v35  ;;  %v6708_v41 = vor.u32 %v6707_v33, %v6703_v0  ;;  %v6718_v56 = vrot.slane %v6716_v26, 4  ;;  %v6721_v51 = vrot.slane %v6719_v61, 5  ;;  %v19586_v14 = vld [vmem:[#allocation2 + $0x10c] sm:$0xf]  ;;  %v7302_v40 = vld [vmem:[#allocation2 + $0x18] sm:$0xe] }
 0x43b   :  { %v6704_v44 = vsel %vm19112_vm12, %v6699_v6, %v6703_v0  ;;  %v6727_v17 = vrot.slane %v6725_v12, 5  ;;  %v6731_v19 = vrot.slane %v6729_v13, 4  ;;  %v6735_v25 = vshll.u32 %v5970_v46, 16  ;;  %v15681_v0 = vld [vmem:[#allocation2 + $0x1c] sm:$0xf] }
 0x43c   :  { %14640 = vmatmul.mubr.msk.bf16.gmra.mrb[32].mxu1 %vm478_vm5, %v13368_v52  ;;  %v6709_v8 = vrot.slane %v6708_v41, 4  ;;  %v6722_v24 = vor.u32 %v6721_v51, %v6718_v56  ;;  %v13115_v36 = vcombine.low %v15675_v3, %v19567_v1  ;;  %v13405_v15 = vrot.slane %v7301_v43, 9  ;;  %v15684_v46 = vld [vmem:[#allocation2 + $0x28] sm:$0xf]  ;;  %v15685_v35 = vld [vmem:[#allocation2 + $0x20] sm:$0x1] }
 0x43d   :  { %v6732_v38 = vor.u32 %v6731_v19, %v6727_v17  ;;  %v7431_v2 = vrot.slane %v15677_v31, 5  ;;  %v6737_v62 = vrot.slane %v6735_v25, 5  ;;  %v13116_v39 = vcombine.low %v15678_v42, %v19577_v21  ;;  %v15686_v52 = vld [vmem:[#allocation2 + $0x2c] sm:$0x1]  ;;  %v15687_v51 = vld [vmem:[#allocation2 + $0x114] sm:$0xf] }
 0x43e   :  { %v6714_v30 = vsel %vm19112_vm12, %v6709_v8, %v6713_v48  ;;  %v6723_v16 = vrot.slane %v6722_v24, 4  ;;  %14415 = vmatprep.mubr.msk.bf16.mxu0 %vm478_vm5, %v13115_v36  ;;  %v7434_v34 = vrot.slane %v15680_v28, 5  ;;  %v7438_v59 = vrot.slane %v15681_v0, 5  ;;  %v7303_v48 = vld [vmem:[#allocation2 + $0x24] sm:$0xe] }
 0x43f   :  { %v13369_v60 = vcombine.low %v6704_v44, %v6714_v30  ;;  %v6733_v63 = vrot.slane %v6732_v38, 4  ;;  %v7433_v57 = vrot.slane %v7431_v2, 4  ;;  %v13117_v4 = vcombine.low %v15682_v5, %v19586_v14  ;;  %v19598_v44 = vld [vmem:[#allocation2 + $0x118] sm:$0xf]  ;;  %v15689_v19 = vld [vmem:[#allocation2 + $0x34] sm:$0xf] }
 0x440   :  { %v6728_v45 = vsel %vm19112_vm12, %v6723_v16, %v6727_v17  ;;  %v7432_v22 = vsel %vm19573_vm15, %v13405_v15, %v7431_v2  ;;  %v7440_v33 = vrot.slane %v7438_v59, 4  ;;  %v7445_v26 = vrot.slane %v15684_v46, 5  ;;  %v15690_v8 = vld [vmem:[#allocation2 + $0x120] sm:$0xf]  ;;  %v19603_v24 = vld [vmem:[#allocation2 + $0x124] sm:$0xf] }
 0x441   :  { %14643 = vmatprep.mubr.msk.bf16.mxu1 %vm478_vm5, %v13369_v60  ;;  %v6738_v53 = vsel %vm19112_vm12, %v6733_v63, %v6737_v62  ;;  %14416 = vmatmul.mubr.msk.bf16.gmra.mrb[100].mxu0 %vm478_vm5, %v13116_v39  ;;  %v7435_v55 = vsel %vm19573_vm15, %v7433_v57, %v7434_v34  ;;  %v13406_v61 = vrot.slane %v7302_v40, 9  ;;  %v7441_v6 = vrot.slane %v15685_v35, 5  ;;  %v15692_v36 = vld [vmem:[#allocation2 + $0x40] sm:$0xf]  ;;  %v7304_v31 = vld [vmem:[#allocation2 + $0x30] sm:$0xe] }
 0x442   :  { %v13370_v29 = vcombine.low %v6728_v45, %v6738_v53  ;;  %v13441_v9 = vcombine.low %v7432_v22, %v7435_v55  ;;  %14419 = vmatprep.mubr.msk.bf16.mxu0 %vm478_vm5, %v13117_v4  ;;  %v7447_v12 = vrot.slane %v7445_v26, 4  ;;  %v13407_v13 = vrot.slane %v7303_v48, 9  ;;  %v15579_v2 = vld [vmem:[%s23146_s3 + $0x68] sm:$0xff]   ;;  %v7305_v62 = vld [vmem:[#allocation2 + $0x3c] sm:$0xe]  ;;  %v15693_v39 = vld [vmem:[%s23146_s3 + $0x60] sm:$0xff]  }
 0x443   :  { %v7448_v41 = vrot.slane %v15686_v52, 5  ;;  %v7442_v56 = vsel %vm19573_vm15, %v7440_v33, %v7441_v6  ;;  %v13118_v17 = vcombine.low %v15687_v51, %v19598_v44  ;;  %v7452_v25 = vrot.slane %v15689_v19, 5  ;;  %v15694_v57 = vld [vmem:[#allocation2 + $0x38] sm:$0x1]  ;;  %v15695_v0 = vld [vmem:[#allocation2 + $0x44] sm:$0x1] }
 0x444   :  { %14644 = vmatmul.mubr.msk.bf16.gmra.mrb[36].mxu1 %vm478_vm5, %v13370_v29  ;;  %v13119_v3 = vcombine.low %v15690_v8, %v19603_v24  ;;  %v7459_v38 = vrot.slane %v15692_v36, 5  ;;  %v7439_v30 = vsel %vm19573_vm15, %v13406_v61, %v7438_v59  ;;  %v7446_v15 = vsel %vm19573_vm15, %v13407_v13, %v7445_v26  ;;  %v19623_v53 = vld [vmem:[%s23146_s3 + $0x70] sm:$0xff]   ;;  %v15696_v4 = vld [vmem:[#allocation2 + $0x12c] sm:$0xf]  ;;  %v15699_v33 = vld [vmem:[#allocation2 + $0x138] sm:$0xf] }
 0x445   :  { %14651 = vmatprep.mubr.msk.bf16.mxu1 %vm478_vm5, %v13441_v9  ;;  %v7449_v43 = vsel %vm19573_vm15, %v7447_v12, %v7448_v41  ;;  %v13442_v16 = vcombine.low %v7439_v30, %v7442_v56  ;;  %v7454_v63 = vrot.slane %v7452_v25, 4  ;;  %v13408_v45 = vrot.slane %v7304_v31, 9  ;;  %v19627_v29 = vld [vmem:[#allocation2 + $0x130] sm:$0xf]  ;;  %v15698_v55 = vld [vmem:[#allocation2 + $0x4c] sm:$0xf] }
 0x446   :  { %v13443_v60 = vcombine.low %v7446_v15, %v7449_v43  ;;  %v7461_v42 = vrot.slane %v7459_v38, 4  ;;  %v7455_v28 = vrot.slane %v15694_v57, 5  ;;  %v13409_v34 = vrot.slane %v7305_v62, 9  ;;  %v19632_v48 = vld [vmem:[#allocation2 + $0x13c] sm:$0xf] }
 0x447   :  { %v7462_v59 = vrot.slane %v15695_v0, 5  ;;  %v13120_v22 = vcombine.low %v15696_v4, %v19627_v29  ;;  %v7466_v40 = vrot.slane %v15698_v55, 5  ;;  %v13121_v46 = vcombine.low %v15699_v33, %v19632_v48  ;;  %v15701_v26 = vld [vmem:[#allocation2 + $0x58] sm:$0xf]  ;;  %v7306_v13 = vld [vmem:[#allocation2 + $0x48] sm:$0xe] }
 0x448   :  { %v7456_v5 = vsel %vm19573_vm15, %v7454_v63, %v7455_v28  ;;  %v7473_v61 = vrot.slane %v15701_v26, 5  ;;  %v7453_v35 = vsel %vm19573_vm15, %v13408_v45, %v7452_v25  ;;  %v7460_v12 = vsel %vm19573_vm15, %v13409_v34, %v7459_v38  ;;  %v7307_v56 = vld [vmem:[#allocation2 + $0x54] sm:$0xe]  ;;  %v15702_v19 = vld [vmem:[#allocation2 + $0x50] sm:$0x1] }
 0x449   :  { %14420 = vmatmul.mubr.msk.bf16.gmra.mrb[104].mxu0 %vm478_vm5, %v13118_v17  ;;  %v7463_v9 = vsel %vm19573_vm15, %v7461_v42, %v7462_v59  ;;  %v13444_v6 = vcombine.low %v7453_v35, %v7456_v5  ;;  %v7468_v41 = vrot.slane %v7466_v40, 4  ;;  %v13410_v17 = vrot.slane %v7306_v13, 9  ;;  %v15703_v8 = vld [vmem:[#allocation2 + $0x5c] sm:$0x1]  ;;  %v15704_v38 = vld [vmem:[#allocation2 + $0x144] sm:$0xf] }
 0x44a   :  { %14423 = vmatprep.mubr.msk.bf16.mxu0 %vm478_vm5, %v13119_v3  ;;  %v13445_v52 = vcombine.low %v7460_v12, %v7463_v9  ;;  %v7475_v51 = vrot.slane %v7473_v61, 4  ;;  %v7469_v25 = vrot.slane %v15702_v19, 5  ;;  %v13411_v43 = vrot.slane %v7307_v56, 9  ;;  %v19646_v30 = vld [vmem:[#allocation2 + $0x148] sm:$0xf] }
 0x44b   :  { %v7476_v3 = vrot.slane %v15703_v8, 5  ;;  %v15706_v15 = vld [vmem:[#allocation2 + $0x64] sm:$0xf]  ;;  %v19651_v63 = vld [vmem:[#allocation2 + $0x154] sm:$0xf]  ;;  %v7467_v45 = vsel %vm19573_vm15, %v13410_v17, %v7466_v40 }
 0x44c   :  { %14652 = vmatmul.mubr.msk.bf16.vlgmr.msra.gmra.mrb[40].mxu1 %vm478_vm5, %v13442_v16  ;;  %v7470_v36 = vsel %vm19573_vm15, %v7468_v41, %v7469_v25  ;;  %v13122_v16 = vcombine.low %v15704_v38, %v19646_v30  ;;  %v7480_v31 = vrot.slane %v15706_v15, 5  ;;  %v15709_v42 = vld [vmem:[#allocation2 + $0x70] sm:$0xf]  ;;  %v7474_v28 = vsel %vm19573_vm15, %v13411_v43, %v7473_v61  ;;  %v7308_v34 = vld [vmem:[#allocation2 + $0x60] sm:$0xe] }
 0x44d   :  { %14716 = vmatpush3.bf16.msra.mxu1 %v15693_v39  ;;  %14655 = vmatprep.mubr.msk.bf16.mxu1 %vm478_vm5, %v13443_v60  ;;  %v15707_v60 = vld [vmem:[#allocation2 + $0x150] sm:$0xf]  ;;  %v7487_v39 = vrot.slane %v15709_v42, 5  ;;  %v13446_v57 = vcombine.low %v7467_v45, %v7470_v36  ;;  %v7309_v5 = vld [vmem:[#allocation2 + $0x6c] sm:$0xe] }
 0x44e   :  { %14717 = vmatprep.subr.bf16.mxu1 %v15579_v2  ;;  %v13123_v62 = vcombine.low %v15707_v60, %v19651_v63  ;;  %v7482_v59 = vrot.slane %v7480_v31, 4  ;;  %v15710_v55 = vld [vmem:[#allocation2 + $0x68] sm:$0x1]  ;;  %v13413_v9 = vrot.slane %v7309_v5, 9  ;;  %v15711_v33 = vld [vmem:[#allocation2 + $0x74] sm:$0x1] }
 0x44f   :  { %v7489_v4 = vrot.slane %v7487_v39, 4  ;;  %v7483_v40 = vrot.slane %v15710_v55, 5  ;;  %v15712_v26 = vld [vmem:[#allocation2 + $0x7c] sm:$0xf]  ;;  %v19664_v12 = vld [vmem:[#allocation2 + $0x160] sm:$0xf] }
 0x450   :  { %v7494_v35 = vrot.slane %v15712_v26, 5  ;;  %v15715_v41 = vld [vmem:[#allocation2 + $0x168] sm:$0xf]  ;;  %v19669_v56 = vld [vmem:[#allocation2 + $0x16c] sm:$0xf]  ;;  %v7488_v8 = vsel %vm19573_vm15, %v13413_v9, %v7487_v39 }
 0x451   :  { %14424 = vmatmul.mubr.msk.bf16.gmra.mrb[108].mxu0 %vm478_vm5, %v13120_v22  ;;  %14718 = vmatpush3.bf16.msra.mxu1 %v15579_v2  ;;  %v7477_v2 = vsel %vm19573_vm15, %v7475_v51, %v7476_v3  ;;  %v13412_v22 = vrot.slane %v7308_v34, 9  ;;  %v7484_v61 = vsel %vm19573_vm15, %v7482_v59, %v7483_v40  ;;  %v13125_v51 = vcombine.low %v15715_v41, %v19669_v56  ;;  %v15717_v17 = vld [vmem:[#allocation2 + $0x88] sm:$0xf]  ;;  %v7310_v3 = vld [vmem:[#allocation2 + $0x78] sm:$0xe] }
 0x452   :  { %14427 = vmatprep.mubr.msk.bf16.mxu0 %vm478_vm5, %v13121_v46  ;;  %14783 = vmatprep.subr.bf16.mxu1 %v19623_v53  ;;  %v13447_v0 = vcombine.low %v7474_v28, %v7477_v2  ;;  %v7490_v46 = vrot.slane %v15711_v33, 5  ;;  %v7501_v19 = vrot.slane %v15717_v17, 5  ;;  %v7496_v36 = vrot.slane %v7494_v35, 4  ;;  %v15718_v15 = vld [vmem:[#allocation2 + $0x4] sm:$0xf] }
 0x453   :  { %v7481_v25 = vsel %vm19573_vm15, %v13412_v22, %v7480_v31  ;;  %v4401_v2 = vrot.slane %v15718_v15, 5  ;;  %v15719_v60 = vld [vmem:[#allocation2 + $0x80] sm:$0x1]  ;;  %v4300_v31 = vld [vmem:[#allocation2] sm:$0xe]  ;;  %v13414_v45 = vrot.slane %v7310_v3, 9 }
 0x454   :  { %14656 = vmatmul.mubr.msk.bf16.gmra.mrb[44].mxu1 %vm478_vm5, %v13444_v6  ;;  %v15713_v6 = vld [vmem:[#allocation2 + $0x15c] sm:$0xf]  ;;  %v13448_v43 = vcombine.low %v7481_v25, %v7484_v61  ;;  %v7503_v42 = vrot.slane %v7501_v19, 4  ;;  %v15720_v28 = vld [vmem:[#allocation2 + $0x8c] sm:$0x1]  ;;  %v13163_v55 = vrot.slane %v4300_v31, 9 }
 0x455   :  { %14659 = vmatprep.mubr.msk.bf16.mxu1 %vm478_vm5, %v13445_v52  ;;  %v13124_v13 = vcombine.low %v15713_v6, %v19664_v12  ;;  %v7491_v52 = vsel %vm19573_vm15, %v7489_v4, %v7490_v46  ;;  %v7504_v34 = vrot.slane %v15720_v28, 5  ;;  %v19682_v59 = vld [vmem:[#allocation2 + $0x178] sm:$0xf]  ;;  %v15723_v4 = vld [vmem:[#allocation2 + $0x94] sm:$0xf]  ;;  %v4403_v40 = vrot.slane %v4401_v2, 4 }
 0x456   :  { %v13449_v38 = vcombine.low %v7488_v8, %v7491_v52  ;;  %v7508_v22 = vrot.slane %v15723_v4, 5  ;;  %v15724_v9 = vld [vmem:[#allocation2 + $0x8] sm:$0x1]  ;;  %v15725_v26 = vld [vmem:[#allocation2 + $0x180] sm:$0xf]  ;;  %v7495_v41 = vsel %vm19573_vm15, %v13414_v45, %v7494_v35 }
 0x457   :  { %v4404_v33 = vrot.slane %v15724_v9, 5  ;;  %v7505_v46 = vsel %vm19573_vm15, %v7503_v42, %v7504_v34  ;;  %v19687_v61 = vld [vmem:[#allocation2 + $0x184] sm:$0xf]  ;;  %v7312_v25 = vld [vmem:[#allocation2 + $0x90] sm:$0xe] }
 0x458   :  { %v13127_v6 = vcombine.low %v15725_v26, %v19687_v61  ;;  %v7510_v8 = vrot.slane %v7508_v22, 4  ;;  %v7313_v3 = vld [vmem:[#allocation2 + $0x9c] sm:$0xe]  ;;  %v15732_v34 = vld [vmem:[#allocation2 + $0x18c] sm:$0xf] }
 0x459   :  { %14428 = vmatmul.mubr.msk.bf16.gmra.mrb[112].mxu0 %vm478_vm5, %v13122_v16  ;;  %v7311_v16 = vld [vmem:[#allocation2 + $0x84] sm:$0xe]  ;;  %v15730_v42 = vld [vmem:[#allocation2 + $0x1c] sm:$0xf]  ;;  %v13417_v45 = vrot.slane %v7313_v3, 9 }
 0x45a   :  { %14431 = vmatprep.mubr.msk.bf16.mxu0 %vm478_vm5, %v13123_v62  ;;  %v7497_v62 = vrot.slane %v15719_v60, 5  ;;  %v15729_v60 = vld [vmem:[#allocation2 + $0x98] sm:$0x1]  ;;  %v4415_v31 = vrot.slane %v15730_v42, 5  ;;  %v15734_v4 = vld [vmem:[#allocation2 + $0xac] sm:$0xf] }
 0x45b   :  { %v15738_v42 = vld [vmem:[#allocation2 + $0x28] sm:$0xf] }
 0x45c   :  { %14660 = vmatmul.mubr.msk.bf16.gmra.mrb[48].mxu1 %vm478_vm5, %v13446_v57  ;;  %v7498_v39 = vsel %vm19573_vm15, %v7496_v36, %v7497_v62  ;;  %v13415_v57 = vrot.slane %v7311_v16, 9  ;;  %v4402_v36 = vsel %vm19573_vm15, %v13163_v55, %v4401_v2  ;;  %v15728_v16 = vld [vmem:[#allocation2 + $0x10] sm:$0xf]  ;;  %v7511_v62 = vrot.slane %v15729_v60, 5  ;;  %v15737_v60 = vld [vmem:[#allocation2 + $0x20] sm:$0x1] }
 0x45d   :  { %14663 = vmatprep.mubr.msk.bf16.mxu1 %vm478_vm5, %v13447_v0  ;;  %v15721_v0 = vld [vmem:[#allocation2 + $0x174] sm:$0xf]  ;;  %v4408_v15 = vrot.slane %v15728_v16, 5  ;;  %v7522_v55 = vrot.slane %v15734_v4, 5  ;;  %v15741_v4 = vld [vmem:[#allocation2 + $0xbc] sm:$0x1] }
 0x45e   :  { %v13126_v5 = vcombine.low %v15721_v0, %v19682_v59  ;;  %v7502_v17 = vsel %vm19573_vm15, %v13415_v57, %v7501_v19  ;;  %v13416_v19 = vrot.slane %v7312_v25, 9  ;;  %v7512_v2 = vsel %vm19573_vm15, %v7510_v8, %v7511_v62  ;;  %v19704_v0 = vld [vmem:[#allocation2 + $0x190] sm:$0xf]  ;;  %v7314_v25 = vld [vmem:[#allocation2 + $0xa8] sm:$0xe] }
 0x45f   :  { %v4410_v26 = vrot.slane %v4408_v15, 4  ;;  %v15736_v8 = vld [vmem:[#allocation2 + $0x14] sm:$0x1]  ;;  %v4418_v62 = vrot.slane %v15737_v60, 5 }
 0x460   :  { %v4411_v3 = vrot.slane %v15736_v8, 5  ;;  %v15743_v8 = vld [vmem:[#allocation2 + $0xe8] sm:$0xf] }
 0x461   :  { %14432 = vmatmul.mubr.msk.bf16.gmra.mrb[116].mxu0 %vm478_vm5, %v13124_v13  ;;  %v15727_v13 = vld [vmem:[#allocation2 + $0xa0] sm:$0xf] }
 0x462   :  { %14435 = vmatprep.mubr.msk.bf16.mxu0 %vm478_vm5, %v13125_v51  ;;  %v7515_v52 = vrot.slane %v15727_v13, 5  ;;  %v13450_v51 = vcombine.low %v7495_v41, %v7498_v39  ;;  %v15731_v39 = vld [vmem:[#allocation2 + $0xa4] sm:$0x1]  ;;  %v7509_v13 = vsel %vm19573_vm15, %v13416_v19, %v7508_v22  ;;  %v4417_v41 = vrot.slane %v4415_v31, 4 }
 0x463   :  { %v7518_v57 = vrot.slane %v15731_v39, 5  ;;  %v4412_v19 = vsel %vm19573_vm15, %v4410_v26, %v4411_v3  ;;  %v15739_v39 = vld [vmem:[#allocation2 + $0xb0] sm:$0x1]  ;;  %v7543_v3 = vrot.slane %v15743_v8, 5 }
 0x464   :  { %14664 = vmatmul.mubr.msk.bf16.gmra.mrb[52].mxu1 %vm478_vm5, %v13448_v43  ;;  %v13451_v43 = vcombine.low %v7502_v17, %v7505_v46  ;;  %v7517_v35 = vrot.slane %v7515_v52, 4  ;;  %v7516_v17 = vsel %vm19573_vm15, %v13417_v45, %v7515_v52  ;;  %v4422_v52 = vrot.slane %v15738_v42, 5 }
 0x465   :  { %14667 = vmatprep.mubr.msk.bf16.mxu1 %vm478_vm5, %v13449_v38  ;;  %v4405_v38 = vsel %vm19573_vm15, %v4403_v40, %v4404_v33  ;;  %v4301_v40 = vld [vmem:[#allocation2 + $0xc] sm:$0xe]  ;;  %v15735_v33 = vld [vmem:[#allocation2 + $0xb8] sm:$0xf]  ;;  %v13418_v45 = vrot.slane %v7314_v25, 9 }
 0x466   :  { %v13199_v28 = vcombine.low %v4402_v36, %v4405_v38  ;;  %v7519_v9 = vsel %vm19573_vm15, %v7517_v35, %v7518_v57  ;;  %v7529_v46 = vrot.slane %v15735_v33, 5  ;;  %v7524_v38 = vrot.slane %v7522_v55, 4  ;;  %v7315_v35 = vld [vmem:[#allocation2 + $0xb4] sm:$0xe] }
 0x467   :  { %v13453_v36 = vcombine.low %v7516_v17, %v7519_v9  ;;  %v7525_v57 = vrot.slane %v15739_v39, 5  ;;  %v4303_v17 = vld [vmem:[#allocation2 + $0x24] sm:$0xe] }
 0x468   :  { %v7531_v22 = vrot.slane %v7529_v46, 4 }
 0x469   :  { %14436 = vmatmul.mubr.msk.bf16.gmra.mrb[120].mxu0 %vm478_vm5, %v13126_v5  ;;  %v13128_v5 = vcombine.low %v15732_v34, %v19704_v0  ;;  %v7526_v33 = vsel %vm19573_vm15, %v7524_v38, %v7525_v57  ;;  %v15746_v57 = vld [vmem:[#allocation2 + $0x38] sm:$0x1] }
 0x46a   :  { %14439 = vmatprep.mubr.msk.bf16.mxu0 %vm478_vm5, %v13127_v6  ;;  %v4302_v6 = vld [vmem:[#allocation2 + $0x18] sm:$0xe] }
 0x46b   :  { %v13165_v16 = vrot.slane %v4302_v6, 9  ;;  %v15742_v6 = vld [vmem:[#allocation2 + $0xc4] sm:$0xf] }
 0x46c   :  { %14668 = vmatmul.mubr.msk.bf16.gmra.mrb[56].mxu1 %vm478_vm5, %v13450_v51  ;;  %v13452_v51 = vcombine.low %v7509_v13, %v7512_v2  ;;  %v15740_v2 = vld [vmem:[#allocation2 + $0x34] sm:$0xf]  ;;  %v7536_v13 = vrot.slane %v15742_v6, 5 }
 0x46d   :  { %14671 = vmatprep.mubr.msk.bf16.mxu1 %vm478_vm5, %v13451_v43  ;;  %v13164_v43 = vrot.slane %v4301_v40, 9  ;;  %v4429_v34 = vrot.slane %v15740_v2, 5  ;;  %v7532_v40 = vrot.slane %v15741_v4, 5  ;;  %v7545_v2 = vrot.slane %v7543_v3, 4  ;;  %v15748_v4 = vld [vmem:[#allocation2 + $0x40] sm:$0xf] }
 0x46f   :  { %v4409_v9 = vsel %vm19573_vm15, %v13164_v43, %v4408_v15  ;;  %v7523_v15 = vsel %vm19573_vm15, %v13418_v45, %v7522_v55  ;;  %v4431_v43 = vrot.slane %v4429_v34, 4  ;;  %v7538_v55 = vrot.slane %v7536_v13, 4  ;;  %v7317_v45 = vld [vmem:[#allocation2 + $0xe4] sm:$0xe] }
 0x470   :  { %v13200_v26 = vcombine.low %v4409_v9, %v4412_v19  ;;  %v13454_v38 = vcombine.low %v7523_v15, %v7526_v33  ;;  %v15745_v19 = vld [vmem:[%s23146_s3 + $0x30] sm:$0xff]   ;;  %v15749_v33 = vld [vmem:[#allocation2 + $0xc8] sm:$0x1] }
 0x471   :  { %14440 = vmatmul.mubr.msk.bf16.gmra.mrb[124].mxu0 %vm478_vm5, %v13128_v5  ;;  %v13419_v5 = vrot.slane %v7315_v35, 9  ;;  %v4304_v35 = vld [vmem:[#allocation2 + $0x30] sm:$0xe] }
 0x472   :  { %14447 = vmatprep.mubr.msk.bf16.mxu0 %vm478_vm5, %v13199_v28  ;;  %v4419_v28 = vsel %vm19573_vm15, %v4417_v41, %v4418_v62  ;;  %v7533_v41 = vsel %vm19573_vm15, %v7531_v22, %v7532_v40  ;;  %v15744_v62 = vld [vmem:[#allocation2 + $0x2c] sm:$0x1]  ;;  %v13167_v39 = vrot.slane %v4304_v35, 9  ;;  %v4436_v40 = vrot.slane %v15748_v4, 5 }
 0x473   :  { %v7530_v60 = vsel %vm19573_vm15, %v13419_v5, %v7529_v46  ;;  %v4425_v22 = vrot.slane %v15744_v62, 5  ;;  %v15747_v46 = vld [vmem:[%s23146_s3 + $0x38] sm:$0xff]  }
 0x474   :  { %14672 = vmatmul.mubr.msk.bf16.gmra.mrb[60].mxu1 %vm478_vm5, %v13452_v51  ;;  %v4416_v51 = vsel %vm19573_vm15, %v13165_v16, %v4415_v31  ;;  %v7316_v31 = vld [vmem:[#allocation2 + $0xc0] sm:$0xe]  ;;  %v13166_v16 = vrot.slane %v4303_v17, 9  ;;  %v13455_v42 = vcombine.low %v7530_v60, %v7533_v41  ;;  %v13421_v41 = vrot.slane %v7317_v45, 9  ;;  %v4305_v62 = vld [vmem:[#allocation2 + $0x3c] sm:$0xe] }
 0x475   :  { %14675 = vmatprep.mubr.msk.bf16.mxu1 %vm478_vm5, %v13453_v36  ;;  %v13201_v25 = vcombine.low %v4416_v51, %v4419_v28  ;;  %v4424_v36 = vrot.slane %v4422_v52, 4  ;;  %v4432_v28 = vrot.slane %v15746_v57, 5  ;;  %v13420_v9 = vrot.slane %v7316_v31, 9  ;;  %v15750_v51 = vld [vmem:[#allocation2 + $0x4c] sm:$0xf] }
 0x476   :  { %v4443_v17 = vrot.slane %v15750_v51, 5  ;;  %v4423_v35 = vsel %vm19573_vm15, %v13166_v16, %v4422_v52  ;;  %v4430_v31 = vsel %vm19573_vm15, %v13167_v39, %v4429_v34  ;;  %v4438_v45 = vrot.slane %v4436_v40, 4  ;;  %v4306_v57 = vld [vmem:[#allocation2 + $0x48] sm:$0xe]  ;;  %v7318_v16 = vld [vmem:[#allocation2 + $0xf0] sm:$0xe] }
 0x477   :  { %v4426_v5 = vsel %vm19573_vm15, %v4424_v36, %v4425_v22  ;;  %v4433_v6 = vsel %vm19573_vm15, %v4431_v43, %v4432_v28  ;;  %v7537_v52 = vsel %vm19573_vm15, %v13420_v9, %v7536_v13  ;;  %v7544_v34 = vsel %vm19573_vm15, %v13421_v41, %v7543_v3  ;;  %v15757_v41 = vld [vmem:[#allocation2 + $0xf8] sm:$0x1] }
 0x478   :  { %v13202_v15 = vcombine.low %v4423_v35, %v4426_v5  ;;  %v13203_v22 = vcombine.low %v4430_v31, %v4433_v6  ;;  %v13168_v39 = vrot.slane %v4305_v62, 9  ;;  %v15755_v6 = vld [vmem:[#allocation2 + $0x50] sm:$0x1]  ;;  %v13422_v13 = vrot.slane %v7318_v16, 9  ;;  %v4307_v16 = vld [vmem:[#allocation2 + $0x54] sm:$0xe] }
 0x479   :  { %14448 = vmatmul.mubr.msk.bf16.vlgmr.msra.gmra.mrb[64].mxu0 %vm478_vm5, %v13200_v26  ;;  %v7539_v26 = vrot.slane %v15749_v33, 5  ;;  %v7319_v33 = vld [vmem:[#allocation2 + $0xfc] sm:$0xe]  ;;  %v4446_v51 = vrot.slane %v15755_v6, 5  ;;  %v7553_v35 = vrot.slane %v15757_v41, 5  ;;  %v4457_v31 = vrot.slane %v19474_v7, 5 }
 0x47a   :  { %14451 = vmatprep.mubr.msk.bf16.mxu0 %vm478_vm5, %v13201_v25  ;;  %14512 = vmatpush3.bf16.msra.mxu0 %v15745_v19  ;;  %v15751_v25 = vld [vmem:[#allocation2 + $0xec] sm:$0x1]  ;;  %v15753_v19 = vld [vmem:[#allocation2 + $0x100] sm:$0xf]  ;;  %v13423_v62 = vrot.slane %v7319_v33, 9 }
 0x47b   :  { %14513 = vmatprep.subr.bf16.mxu0 %v15747_v46  ;;  %v7546_v8 = vrot.slane %v15751_v25, 5  ;;  %v7540_v36 = vsel %vm19573_vm15, %v7538_v55, %v7539_v26  ;;  %v4445_v55 = vrot.slane %v4443_v17, 4  ;;  %v13169_v26 = vrot.slane %v4306_v57, 9  ;;  %v15761_v6 = vld [vmem:[#allocation2 + $0x5c] sm:$0x1] }
 0x47c   :  { %14676 = vmatmul.mubr.msk.bf16.gmra.mrb[0].mxu1 %vm478_vm5, %v13454_v38  ;;  %v15752_v38 = vld [vmem:[#allocation2 + $0xf4] sm:$0xf]  ;;  %v13456_v28 = vcombine.low %v7537_v52, %v7540_v36  ;;  %v15758_v36 = vld [vmem:[#allocation2 + $0x10c] sm:$0xf] }
 0x47d   :  { %14679 = vmatprep.mubr.msk.bf16.mxu1 %vm478_vm5, %v13455_v42  ;;  %v7550_v60 = vrot.slane %v15752_v38, 5  ;;  %v7547_v43 = vsel %vm19573_vm15, %v7545_v2, %v7546_v8  ;;  %v7557_v42 = vrot.slane %v15753_v19, 5  ;;  %v15756_v8 = vld [vmem:[#allocation2 + $0x58] sm:$0xf]  ;;  %v4447_v38 = vsel %vm19573_vm15, %v4445_v55, %v4446_v51  ;;  %v7321_v41 = vld [vmem:[#allocation2 + $0x114] sm:$0xe] }
 0x47e   :  { %14514 = vmatpush3.bf16.msra.mxu0 %v15747_v46  ;;  %v15754_v46 = vld [vmem:[#allocation2 + $0x44] sm:$0x1]  ;;  %v13457_v5 = vcombine.low %v7544_v34, %v7547_v43  ;;  %v4450_v3 = vrot.slane %v15756_v8, 5  ;;  %v4437_v19 = vsel %vm19573_vm15, %v13168_v39, %v4436_v40  ;;  %v4444_v52 = vsel %vm19573_vm15, %v13169_v26, %v4443_v17  ;;  %v15760_v34 = vld [vmem:[#allocation2 + $0x118] sm:$0xf] }
 0x47f   :  { %v4439_v2 = vrot.slane %v15754_v46, 5  ;;  %v7552_v4 = vrot.slane %v7550_v60, 4  ;;  %v7559_v9 = vrot.slane %v7557_v42, 4  ;;  %v15759_v43 = vld [vmem:[#allocation2 + $0x104] sm:$0x1]  ;;  %v13205_v55 = vcombine.low %v4444_v52, %v4447_v38 }
 0x480   :  { %v7571_v7 = vrot.slane %v15760_v34, 5  ;;  %v4452_v46 = vrot.slane %v4450_v3, 4  ;;  %v7320_v40 = vld [vmem:[#allocation2 + $0x108] sm:$0xe]  ;;  %v7558_v17 = vsel %vm19573_vm15, %v13423_v62, %v7557_v42  ;;  %v13170_v26 = vrot.slane %v4307_v16, 9 }
 0x481   :  { %14452 = vmatmul.mubr.msk.bf16.gmra.mrb[68].mxu0 %vm478_vm5, %v13202_v15  ;;  %v4440_v25 = vsel %vm19573_vm15, %v4438_v45, %v4439_v2  ;;  %v7564_v15 = vrot.slane %v15758_v36, 5  ;;  %v7554_v45 = vsel %vm19573_vm15, %v7552_v4, %v7553_v35  ;;  %v4308_v2 = vld [vmem:[#allocation2 + $0x60] sm:$0xe]  ;;  %v4459_v4 = vrot.slane %v4457_v31, 4 }
 0x482   :  { %14455 = vmatprep.mubr.msk.bf16.mxu0 %vm478_vm5, %v13203_v22  ;;  %v7560_v22 = vrot.slane %v15759_v43, 5  ;;  %v13204_v57 = vcombine.low %v4437_v19, %v4440_v25  ;;  %v4453_v51 = vrot.slane %v15761_v6, 5  ;;  %v15762_v25 = vld [vmem:[#allocation2 + $0x110] sm:$0x1]  ;;  %v13171_v35 = vrot.slane %v4308_v2, 9 }
 0x483   :  { %v7566_v39 = vrot.slane %v7564_v15, 4  ;;  %v7567_v8 = vrot.slane %v15762_v25, 5  ;;  %v13424_v36 = vrot.slane %v7320_v40, 9  ;;  %v7573_v38 = vrot.slane %v7571_v7, 4 }
 0x484   :  { %14680 = vmatmul.mubr.msk.bf16.gmra.mrb[4].mxu1 %vm478_vm5, %v13456_v28  ;;  %v7561_v28 = vsel %vm19573_vm15, %v7559_v9, %v7560_v22  ;;  %v4454_v43 = vsel %vm19573_vm15, %v4452_v46, %v4453_v51  ;;  %v4464_v42 = vrot.slane %v19486_v54, 5  ;;  %v4471_v19 = vrot.slane %v19492_v58, 5  ;;  %v15766_v46 = vld [vmem:[#allocation2 + $0x130] sm:$0xf]  ;;  %v7323_v51 = vld [vmem:[#allocation2 + $0x12c] sm:$0xe] }
 0x485   :  { %14683 = vmatprep.mubr.msk.bf16.mxu1 %vm478_vm5, %v13457_v5  ;;  %v7551_v5 = vsel %vm19573_vm15, %v13422_v13, %v7550_v60  ;;  %v13459_v9 = vcombine.low %v7558_v17, %v7561_v28  ;;  %v15763_v60 = vld [vmem:[#allocation2 + $0x68] sm:$0x1]  ;;  %v7568_v62 = vsel %vm19573_vm15, %v7566_v39, %v7567_v8  ;;  %v4451_v16 = vsel %vm19573_vm15, %v13170_v26, %v4450_v3  ;;  %v15765_v28 = vld [vmem:[#allocation2 + $0x124] sm:$0xf]  ;;  %v7322_v3 = vld [vmem:[#allocation2 + $0x120] sm:$0xe] }
 0x486   :  { %v13458_v33 = vcombine.low %v7551_v5, %v7554_v45  ;;  %v4460_v13 = vrot.slane %v15763_v60, 5  ;;  %v13425_v45 = vrot.slane %v7321_v41, 9  ;;  %v13206_v34 = vcombine.low %v4451_v16, %v4454_v43  ;;  %v4309_v5 = vld [vmem:[#allocation2 + $0x6c] sm:$0xe]  ;;  %v15768_v60 = vld [vmem:[#allocation2 + $0x80] sm:$0x1] }
 0x487   :  { %v4458_v54 = vsel %vm19573_vm15, %v13171_v35, %v4457_v31  ;;  %v7585_v2 = vrot.slane %v15766_v46, 5  ;;  %v7565_v40 = vsel %vm19573_vm15, %v13424_v36, %v7564_v15  ;;  %v4473_v26 = vrot.slane %v4471_v19, 4  ;;  %v15767_v15 = vld [vmem:[#allocation2 + $0x74] sm:$0x1] }
 0x488   :  { %v4461_v22 = vsel %vm19573_vm15, %v4459_v4, %v4460_v13  ;;  %v4466_v4 = vrot.slane %v4464_v42, 4  ;;  %v13460_v17 = vcombine.low %v7565_v40, %v7568_v62  ;;  %v7572_v31 = vsel %vm19573_vm15, %v13425_v45, %v7571_v7  ;;  %v15770_v45 = vld [vmem:[#allocation2 + $0x134] sm:$0x1] }
 0x489   :  { %14456 = vmatmul.mubr.msk.bf16.gmra.mrb[72].mxu0 %vm478_vm5, %v13204_v57  ;;  %v15764_v57 = vld [vmem:[#allocation2 + $0x11c] sm:$0x1]  ;;  %v13207_v39 = vcombine.low %v4458_v54, %v4461_v22  ;;  %v4467_v25 = vrot.slane %v15767_v15, 5  ;;  %v7587_v41 = vrot.slane %v7585_v2, 4  ;;  %v4474_v13 = vrot.slane %v15768_v60, 5 }
 0x48a   :  { %14459 = vmatprep.mubr.msk.bf16.mxu0 %vm478_vm5, %v13205_v55  ;;  %v7574_v52 = vrot.slane %v15764_v57, 5  ;;  %v7578_v55 = vrot.slane %v15765_v28, 5  ;;  %v13426_v36 = vrot.slane %v7322_v3, 9  ;;  %v4478_v62 = vrot.slane %v19503_v10, 5  ;;  %v15771_v54 = vld [vmem:[#allocation2 + $0x13c] sm:$0xf] }
 0x48b   :  { %v4468_v7 = vsel %vm19573_vm15, %v4466_v4, %v4467_v25  ;;  %v13427_v22 = vrot.slane %v7323_v51, 9  ;;  %v7588_v57 = vrot.slane %v15770_v45, 5  ;;  %v4485_v16 = vrot.slane %v19511_v49, 5  ;;  %v4311_v4 = vld [vmem:[#allocation2 + $0x84] sm:$0xe] }
 0x48c   :  { %14684 = vmatmul.mubr.msk.bf16.gmra.mrb[8].mxu1 %vm478_vm5, %v13458_v33  ;;  %v7575_v58 = vsel %vm19573_vm15, %v7573_v38, %v7574_v52  ;;  %v4310_v33 = vld [vmem:[#allocation2 + $0x78] sm:$0xe]  ;;  %v7580_v6 = vrot.slane %v7578_v55, 4  ;;  %v15769_v38 = vld [vmem:[#allocation2 + $0x128] sm:$0x1]  ;;  %v4475_v52 = vsel %vm19573_vm15, %v4473_v26, %v4474_v13  ;;  %v7592_v46 = vrot.slane %v15771_v54, 5 }
 0x48d   :  { %14687 = vmatprep.mubr.msk.bf16.mxu1 %vm478_vm5, %v13459_v9  ;;  %v13172_v9 = vrot.slane %v4309_v5, 9  ;;  %v13461_v8 = vcombine.low %v7572_v31, %v7575_v58  ;;  %v13173_v35 = vrot.slane %v4310_v33, 9  ;;  %v7581_v43 = vrot.slane %v15769_v38, 5  ;;  %v15772_v58 = vld [vmem:[#allocation2 + $0x148] sm:$0xf] }
 0x48e   :  { %v7589_v10 = vsel %vm19573_vm15, %v7587_v41, %v7588_v57  ;;  %v7579_v49 = vsel %vm19573_vm15, %v13426_v36, %v7578_v55  ;;  %v4312_v3 = vld [vmem:[#allocation2 + $0x90] sm:$0xe]  ;;  %v7324_v31 = vld [vmem:[#allocation2 + $0x138] sm:$0xe]  ;;  %v4487_v51 = vrot.slane %v4485_v16, 4  ;;  %v13174_v15 = vrot.slane %v4311_v4, 9 }
 0x48f   :  { %v7582_v28 = vsel %vm19573_vm15, %v7580_v6, %v7581_v43  ;;  %v4472_v40 = vsel %vm19573_vm15, %v13173_v35, %v4471_v19  ;;  %v7325_v6 = vld [vmem:[#allocation2 + $0x144] sm:$0xe]  ;;  %v7594_v19 = vrot.slane %v7592_v46, 4  ;;  %v15773_v25 = vld [vmem:[#allocation2 + $0x8c] sm:$0x1]  ;;  %v13175_v41 = vrot.slane %v4312_v3, 9 }
 0x490   :  { %v13209_v33 = vcombine.low %v4472_v40, %v4475_v52  ;;  %v13462_v26 = vcombine.low %v7579_v49, %v7582_v28  ;;  %v15774_v35 = vld [vmem:[#allocation2 + $0x98] sm:$0x1]  ;;  %v4492_v13 = vrot.slane %v19522_v47, 5  ;;  %v15775_v36 = vld [vmem:[#allocation2 + $0x140] sm:$0x1]  ;;  %v13429_v43 = vrot.slane %v7325_v6, 9 }
 0x491   :  { %14460 = vmatmul.mubr.msk.bf16.gmra.mrb[76].mxu0 %vm478_vm5, %v13206_v34  ;;  %v4465_v34 = vsel %vm19573_vm15, %v13172_v9, %v4464_v42  ;;  %v7586_v42 = vsel %vm19573_vm15, %v13427_v22, %v7585_v2  ;;  %v4488_v60 = vrot.slane %v15774_v35, 5  ;;  %v13428_v2 = vrot.slane %v7324_v31, 9  ;;  %v15776_v22 = vld [vmem:[#allocation2 + $0x14c] sm:$0x1]  ;;  %v19831_v57 = vld [vmem:[#allocation2 + $0x154] sm:$0xf] }
 0x492   :  { %14463 = vmatprep.mubr.msk.bf16.mxu0 %vm478_vm5, %v13207_v39  ;;  %v13208_v5 = vcombine.low %v4465_v34, %v4468_v7  ;;  %v7599_v39 = vrot.slane %v15772_v58, 5  ;;  %v13463_v9 = vcombine.low %v7586_v42, %v7589_v10  ;;  %v7595_v38 = vrot.slane %v15775_v36, 5  ;;  %v4313_v10 = vld [vmem:[#allocation2 + $0x9c] sm:$0xe]  ;;  %v15779_v31 = vld [vmem:[#allocation2 + $0xa4] sm:$0x1] }
 0x493   :  { %v7602_v45 = vrot.slane %v15776_v22, 5  ;;  %v7606_v52 = vrot.slane %v19831_v57, 5  ;;  %v4489_v47 = vsel %vm19573_vm15, %v4487_v51, %v4488_v60  ;;  %v4499_v28 = vrot.slane %v19528_v50, 5  ;;  %v4316_v36 = vld [vmem:[#allocation2 + $0xd8] sm:$0xe] }
 0x494   :  { %14688 = vmatmul.mubr.msk.bf16.gmra.mrb[12].mxu1 %vm478_vm5, %v13460_v17  ;;  %v4480_v17 = vrot.slane %v4478_v62, 4  ;;  %v7601_v55 = vrot.slane %v7599_v39, 4  ;;  %v7596_v34 = vsel %vm19573_vm15, %v7594_v19, %v7595_v38  ;;  %v4479_v54 = vsel %vm19573_vm15, %v13174_v15, %v4478_v62  ;;  %v7326_v19 = vld [vmem:[#allocation2 + $0x150] sm:$0xe]  ;;  %v15780_v15 = vld [vmem:[#allocation2 + $0x158] sm:$0x1] }
 0x495   :  { %14691 = vmatprep.mubr.msk.bf16.mxu1 %vm478_vm5, %v13461_v8  ;;  %v4481_v8 = vrot.slane %v15773_v25, 5  ;;  %v4486_v58 = vsel %vm19573_vm15, %v13175_v41, %v4485_v16  ;;  %v4494_v4 = vrot.slane %v4492_v13, 4  ;;  %v7593_v49 = vsel %vm19573_vm15, %v13428_v2, %v7592_v46  ;;  %v7327_v46 = vld [vmem:[#allocation2 + $0x15c] sm:$0xe] }
 0x496   :  { %v7600_v50 = vsel %vm19573_vm15, %v13429_v43, %v7599_v39  ;;  %v7608_v62 = vrot.slane %v7606_v52, 4  ;;  %v13176_v42 = vrot.slane %v4313_v10, 9  ;;  %v4495_v6 = vrot.slane %v15779_v31, 5  ;;  %v4315_v10 = vld [vmem:[#allocation2 + $0xb4] sm:$0xe] }
 0x497   :  { %v4482_v7 = vsel %vm19573_vm15, %v4480_v17, %v4481_v8  ;;  %v15778_v17 = vld [vmem:[#allocation2 + $0x160] sm:$0xf]  ;;  %v4501_v51 = vrot.slane %v4499_v28, 4  ;;  %v7609_v25 = vrot.slane %v15780_v15, 5  ;;  %v4513_v35 = vrot.slane %v19551_v27, 5 }
 0x498   :  { %v13210_v40 = vcombine.low %v4479_v54, %v4482_v7  ;;  %v7613_v3 = vrot.slane %v15778_v17, 5  ;;  %v4496_v39 = vsel %vm19573_vm15, %v4494_v4, %v4495_v6  ;;  %v4506_v2 = vrot.slane %v19539_v32, 5  ;;  %v15782_v27 = vld [vmem:[#allocation2 + $0x164] sm:$0x1]  ;;  %v15786_v6 = vld [vmem:[#allocation2 + $0xbc] sm:$0x1] }
 0x499   :  { %14464 = vmatmul.mubr.msk.bf16.gmra.mrb[80].mxu0 %vm478_vm5, %v13208_v5  ;;  %v7603_v5 = vsel %vm19573_vm15, %v7601_v55, %v7602_v45  ;;  %v15781_v55 = vld [vmem:[#allocation2 + $0xb0] sm:$0x1]  ;;  %v13430_v38 = vrot.slane %v7326_v19, 9  ;;  %v7610_v43 = vsel %vm19573_vm15, %v7608_v62, %v7609_v25  ;;  %v4493_v7 = vsel %vm19573_vm15, %v13176_v42, %v4492_v13  ;;  %v7328_v42 = vld [vmem:[#allocation2 + $0x168] sm:$0xe] }
 0x49a   :  { %14467 = vmatprep.mubr.msk.bf16.mxu0 %vm478_vm5, %v13209_v33  ;;  %v13211_v33 = vcombine.low %v4486_v58, %v4489_v47  ;;  %v13465_v16 = vcombine.low %v7600_v50, %v7603_v5  ;;  %v4502_v41 = vrot.slane %v15781_v55, 5  ;;  %v7615_v60 = vrot.slane %v7613_v3, 4  ;;  %v15784_v58 = vld [vmem:[#allocation2 + $0xe0] sm:$0x1]  ;;  %v15785_v50 = vld [vmem:[#allocation2 + $0x178] sm:$0xf] }
 0x49b   :  { %v13431_v45 = vrot.slane %v7327_v46, 9  ;;  %v7616_v57 = vrot.slane %v15782_v27, 5  ;;  %v13212_v47 = vcombine.low %v4493_v7, %v4496_v39  ;;  %v13179_v5 = vrot.slane %v4316_v36, 9  ;;  %v7329_v19 = vld [vmem:[#allocation2 + $0x174] sm:$0xe] }
 0x49c   :  { %14692 = vmatmul.mubr.msk.bf16.gmra.mrb[16].mxu1 %vm478_vm5, %v13462_v26  ;;  %v4314_v26 = vld [vmem:[#allocation2 + $0xa8] sm:$0xe]  ;;  %v4503_v22 = vsel %vm19573_vm15, %v4501_v51, %v4502_v41  ;;  %v4516_v4 = vrot.slane %v15784_v58, 5  ;;  %v4508_v17 = vrot.slane %v4506_v2, 4  ;;  %v13178_v31 = vrot.slane %v4315_v10, 9 }
 0x49d   :  { %14695 = vmatprep.mubr.msk.bf16.mxu1 %vm478_vm5, %v13463_v9  ;;  %v13464_v9 = vcombine.low %v7593_v49, %v7596_v34  ;;  %v13177_v8 = vrot.slane %v4314_v26, 9  ;;  %v15783_v34 = vld [vmem:[#allocation2 + $0x16c] sm:$0xf]  ;;  %v7617_v13 = vsel %vm19573_vm15, %v7615_v60, %v7616_v57  ;;  %v7607_v26 = vsel %vm19573_vm15, %v13430_v38, %v7606_v52  ;;  %v4317_v57 = vld [vmem:[#allocation2 + $0xe4] sm:$0xe] }
 0x49e   :  { %v7620_v54 = vrot.slane %v15783_v34, 5  ;;  %v13466_v62 = vcombine.low %v7607_v26, %v7610_v43  ;;  %v4509_v51 = vrot.slane %v15786_v6, 5  ;;  %v4514_v15 = vsel %vm19573_vm15, %v13179_v5, %v4513_v35  ;;  %v1146_v7 = vld [vmem:[#allocation2 + $0xcc] sm:$0x1]  ;;  %v15790_v34 = vld [vmem:[#allocation2 + $0x190] sm:$0xf] }
 0x49f   :  { %v4500_v32 = vsel %vm19573_vm15, %v13177_v8, %v4499_v28  ;;  %v7614_v28 = vsel %vm19573_vm15, %v13431_v45, %v7613_v3  ;;  %v4520_v46 = vrot.slane %v19557_v37, 5  ;;  %v13432_v39 = vrot.slane %v7328_v42, 9  ;;  %v15787_v8 = vld [vmem:[#allocation2 + $0x170] sm:$0x1]  ;;  %v15789_v37 = vld [vmem:[#allocation2 + $0x184] sm:$0xf] }
 0x4a0   :  { %v13213_v49 = vcombine.low %v4500_v32, %v4503_v22  ;;  %v4510_v3 = vsel %vm19573_vm15, %v4508_v17, %v4509_v51  ;;  %v7623_v55 = vrot.slane %v15787_v8, 5  ;;  %v4527_v41 = vrot.slane %v19567_v1, 5  ;;  %v4318_v10 = vld [vmem:[#allocation2 + $0xf0] sm:$0xe]  ;;  %v15792_v42 = vld [vmem:[#allocation2 + $0xf8] sm:$0x1] }
 0x4a1   :  { %14468 = vmatmul.mubr.msk.bf16.gmra.mrb[84].mxu0 %vm478_vm5, %v13210_v40  ;;  %v4515_v40 = vrot.slane %v4513_v35, 4  ;;  %v13433_v60 = vrot.slane %v7329_v19, 9  ;;  %v15788_v35 = vld [vmem:[#allocation2 + $0x17c] sm:$0x1]  ;;  %v4507_v38 = vsel %vm19573_vm15, %v13178_v31, %v4506_v2  ;;  %v7634_v27 = vrot.slane %v15789_v37, 5 }
 0x4a2   :  { %14471 = vmatprep.mubr.msk.bf16.mxu0 %vm478_vm5, %v13211_v33  ;;  %v7627_v33 = vrot.slane %v15785_v50, 5  ;;  %v7630_v36 = vrot.slane %v15788_v35, 5  ;;  %v13214_v45 = vcombine.low %v4507_v38, %v4510_v3  ;;  %v7641_v1 = vrot.slane %v15790_v34, 5  ;;  %v15791_v50 = vld [vmem:[#allocation2 + $0xec] sm:$0x1] }
 0x4a3   :  { %v4517_v52 = vsel %vm19573_vm15, %v4515_v40, %v4516_v4  ;;  %v4522_v32 = vrot.slane %v4520_v46, 4  ;;  %v7621_v5 = vsel %vm19573_vm15, %v13432_v39, %v7620_v54  ;;  %v4529_v2 = vrot.slane %v4527_v41, 4  ;;  %v15794_v3 = vld [vmem:[#allocation2 + $0x194] sm:$0x1]  ;;  %v4319_v38 = vld [vmem:[#allocation2 + $0xfc] sm:$0xe] }
 0x4a4   :  { %14696 = vmatmul.mubr.msk.bf16.gmra.mrb[20].mxu1 %vm478_vm5, %v13464_v9  ;;  %v13467_v9 = vcombine.low %v7614_v28, %v7617_v13  ;;  %v7629_v25 = vrot.slane %v7627_v33, 4  ;;  %v13215_v43 = vcombine.low %v4514_v15, %v4517_v52  ;;  %v1147_v40 = vsel %vm16094_vm2, 0, %v1146_v7  ;;  %v7330_v13 = vld [vmem:[#allocation2 + $0x180] sm:$0xe]  ;;  %v15796_v34 = vld [vmem:[#allocation2 + $0x104] sm:$0x1] }
 0x4a5   :  { %14699 = vmatprep.mubr.msk.bf16.mxu1 %vm478_vm5, %v13465_v16  ;;  %v7622_v16 = vrot.slane %v7620_v54, 4  ;;  %v7628_v4 = vsel %vm19573_vm15, %v13433_v60, %v7627_v33  ;;  %v4523_v17 = vrot.slane %v15791_v50, 5  ;;  %1148 = vst [vmem:[#allocation2 + $0xcc] sm:$0x1] %v1147_v40  ;;  %v7331_v54 = vld [vmem:[#allocation2 + $0x18c] sm:$0xe] }
 0x4a6   :  { %v13181_v28 = vrot.slane %v4318_v10, 9  ;;  %v4530_v31 = vrot.slane %v15792_v42, 5  ;;  %v7643_v6 = vrot.slane %v7641_v1, 4  ;;  %v4534_v33 = vrot.slane %v19577_v21, 5  ;;  %v15795_v60 = vld [vmem:[#allocation2 + $0x19c] sm:$0xf] }
 0x4a7   :  { %v7624_v22 = vsel %vm19573_vm15, %v7622_v16, %v7623_v55  ;;  %v4524_v51 = vsel %vm19573_vm15, %v4522_v32, %v4523_v17  ;;  %v15793_v16 = vld [vmem:[#allocation2 + $0x188] sm:$0x1]  ;;  %v4541_v52 = vrot.slane %v19586_v14, 5  ;;  %v7644_v39 = vrot.slane %v15794_v3, 5  ;;  %v15797_v40 = vld [vmem:[#allocation2 + $0x110] sm:$0x1] }
 0x4a8   :  { %v13468_v58 = vcombine.low %v7621_v5, %v7624_v22  ;;  %v7637_v19 = vrot.slane %v15793_v16, 5  ;;  %v4531_v15 = vsel %vm19573_vm15, %v4529_v2, %v4530_v31  ;;  %v7648_v35 = vrot.slane %v15795_v60, 5  ;;  %v4320_v22 = vld [vmem:[#allocation2 + $0x108] sm:$0xe]  ;;  %v4321_v31 = vld [vmem:[#allocation2 + $0x114] sm:$0xe] }
 0x4a9   :  { %14472 = vmatmul.mubr.msk.bf16.gmra.mrb[88].mxu0 %vm478_vm5, %v13212_v47  ;;  %v7631_v47 = vsel %vm19573_vm15, %v7629_v25, %v7630_v36  ;;  %v13435_v25 = vrot.slane %v7331_v54, 9  ;;  %v4528_v36 = vsel %vm19573_vm15, %v13181_v28, %v4527_v41  ;;  %v4536_v7 = vrot.slane %v4534_v33, 4 }
 0x4aa   :  { %14475 = vmatprep.mubr.msk.bf16.mxu0 %vm478_vm5, %v13213_v49  ;;  %v13180_v49 = vrot.slane %v4317_v57, 9  ;;  %v13469_v26 = vcombine.low %v7628_v4, %v7631_v47  ;;  %v13217_v14 = vcombine.low %v4528_v36, %v4531_v15  ;;  %v7332_v47 = vld [vmem:[#allocation2 + $0x198] sm:$0xe]  ;;  %v13182_v41 = vrot.slane %v4319_v38, 9 }
 0x4ab   :  { %v7642_v57 = vsel %vm19573_vm15, %v13435_v25, %v7641_v1  ;;  %v4537_v32 = vrot.slane %v15796_v34, 5  ;;  %v7650_v5 = vrot.slane %v7648_v35, 4  ;;  %v13183_v2 = vrot.slane %v4320_v22, 9  ;;  %v15580_v25 = vld [vmem:[#allocation2 + $0x18] sm:$0xff]   ;;  %v15802_v34 = vld [vmem:[#allocation2 + $0x140] sm:$0x1] }
 0x4ac   :  { %14700 = vmatmul.mubr.msk.bf16.gmra.mrb[24].mxu1 %vm478_vm5, %v13466_v62  ;;  %v7636_v62 = vrot.slane %v7634_v27, 4  ;;  %v4521_v8 = vsel %vm19573_vm15, %v13180_v49, %v4520_v46  ;;  %v4543_v46 = vrot.slane %v4541_v52, 4  ;;  %v4548_v4 = vrot.slane %v19598_v44, 5  ;;  %v4324_v22 = vld [vmem:[#allocation2 + $0x138] sm:$0xe] }
 0x4ad   :  { %14703 = vmatprep.mubr.msk.bf16.mxu1 %vm478_vm5, %v13467_v9  ;;  %v13434_v9 = vrot.slane %v7330_v13, 9  ;;  %v13216_v21 = vcombine.low %v4521_v8, %v4524_v51  ;;  %v13436_v1 = vrot.slane %v7332_v47, 9  ;;  %v15798_v13 = vld [vmem:[#allocation2 + $0x1a0] sm:$0x1]  ;;  %v4555_v17 = vrot.slane %v19603_v24, 5  ;;  %v15583_v47 = vld [vmem:[#allocation2 + $0x30] sm:$0xff]  }
 0x4ae   :  { %v7638_v55 = vsel %vm19573_vm15, %v7636_v62, %v7637_v19  ;;  %v7651_v49 = vrot.slane %v15798_v13, 5  ;;  %v4535_v62 = vsel %vm19573_vm15, %v13182_v41, %v4534_v33  ;;  %v4542_v42 = vsel %vm19573_vm15, %v13183_v2, %v4541_v52  ;;  %v15799_v19 = vld [vmem:[#allocation2 + $0x11c] sm:$0x1]  ;;  %v15800_v52 = vld [vmem:[#allocation2 + $0x128] sm:$0x1] }
 0x4af   :  { %v4550_v51 = vrot.slane %v4548_v4, 4  ;;  %v7649_v24 = vsel %vm19573_vm15, %v13436_v1, %v7648_v35  ;;  %v4557_v33 = vrot.slane %v4555_v17, 4  ;;  %v13184_v16 = vrot.slane %v4321_v31, 9 }
 0x4b0   :  { %v7652_v44 = vsel %vm19573_vm15, %v7650_v5, %v7651_v49  ;;  %v4551_v15 = vrot.slane %v15799_v19, 5  ;;  %v4569_v60 = vrot.slane %v19632_v48, 5  ;;  %v13187_v41 = vrot.slane %v4324_v22, 9  ;;  %v4326_v49 = vld [vmem:[#allocation2 + $0x150] sm:$0xe] }
 0x4b1   :  { %14476 = vmatmul.mubr.msk.bf16.gmra.mrb[92].mxu0 %vm478_vm5, %v13214_v45  ;;  %v7635_v45 = vsel %vm19573_vm15, %v13434_v9, %v7634_v27  ;;  %v4538_v27 = vsel %vm19573_vm15, %v4536_v7, %v4537_v32  ;;  %v4322_v9 = vld [vmem:[#allocation2 + $0x120] sm:$0xe]  ;;  %v13472_v18 = vcombine.low %v7649_v24, %v7652_v44  ;;  %v4549_v35 = vsel %vm19573_vm15, %v13184_v16, %v4548_v4  ;;  %v4327_v16 = vld [vmem:[#allocation2 + $0x15c] sm:$0xe] }
 0x4b2   :  { %14479 = vmatprep.mubr.msk.bf16.mxu0 %vm478_vm5, %v13215_v43  ;;  %v7645_v43 = vsel %vm19573_vm15, %v7643_v6, %v7644_v39  ;;  %v13470_v37 = vcombine.low %v7635_v45, %v7638_v55  ;;  %v13218_v28 = vcombine.low %v4535_v62, %v4538_v27  ;;  %v13185_v3 = vrot.slane %v4322_v9, 9  ;;  %v15582_v45 = vld [vmem:[#allocation2 + $0x24] sm:$0xff]  }
 0x4b3   :  { %v13471_v10 = vcombine.low %v7642_v57, %v7645_v43  ;;  %v4558_v39 = vrot.slane %v15800_v52, 5  ;;  %v4552_v8 = vsel %vm19573_vm15, %v4550_v51, %v4551_v15  ;;  %v4562_v55 = vrot.slane %v19627_v29, 5  ;;  %v4323_v43 = vld [vmem:[#allocation2 + $0x12c] sm:$0xe]  ;;  %v15601_v57 = vld [vmem:[%s23146_s3 + $0x78] sm:$0xff]   ;;  %v19970_v27 = vld [vmem:[%s23146_s3 + $0x80] sm:$0xff]  }
 0x4b4   :  { %14704 = vmatmul.mubr.msk.bf16.gmra.mrb[28].mxu1 %vm478_vm5, %v13468_v58  ;;  %v4544_v58 = vrot.slane %v15797_v40, 5  ;;  %v13220_v36 = vcombine.low %v4549_v35, %v4552_v8  ;;  %v4556_v38 = vsel %vm19573_vm15, %v13185_v3, %v4555_v17  ;;  %v4571_v29 = vrot.slane %v4569_v60, 4  ;;  %v15586_v3 = vld [vmem:[#allocation2 + $0x54] sm:$0xff]   ;;  %v15587_v8 = vld [vmem:[#allocation2 + $0x60] sm:$0xff]  }
 0x4b5   :  { %14707 = vmatprep.mubr.msk.bf16.mxu1 %vm478_vm5, %v13469_v26  ;;  %v1200_v26 = vld [vmem:[#allocation2 + $0x1a4] sm:$0x1]  ;;  %v4564_v7 = vrot.slane %v4562_v55, 4  ;;  %v4572_v32 = vrot.slane %v15802_v34, 5  ;;  %v4576_v5 = vrot.slane %v19646_v30, 5  ;;  %v4583_v40 = vrot.slane %v19651_v63, 5 }
 0x4b6   :  { %v4545_v50 = vsel %vm19573_vm15, %v4543_v46, %v4544_v58  ;;  %v1201_v54 = vsel %vm16094_vm2, 0, %v1200_v26  ;;  %v13186_v46 = vrot.slane %v4323_v43, 9  ;;  %v4325_v30 = vld [vmem:[#allocation2 + $0x144] sm:$0xe]  ;;  %v15803_v26 = vld [vmem:[#allocation2 + $0x14c] sm:$0x1] }
 0x4b7   :  { %1202 = vst [vmem:[#allocation2 + $0x1a4] sm:$0x1] %v1201_v54  ;;  %v13219_v6 = vcombine.low %v4542_v42, %v4545_v50  ;;  %v4573_v2 = vsel %vm19573_vm15, %v4571_v29, %v4572_v32  ;;  %v4578_v13 = vrot.slane %v4576_v5, 4  ;;  %v4585_v63 = vrot.slane %v4583_v40, 4  ;;  %v15584_v50 = vld [vmem:[#allocation2 + $0x3c] sm:$0xff]   ;;  %v15585_v54 = vld [vmem:[#allocation2 + $0x48] sm:$0xff]  }
 0x4b8   :  { %v4563_v58 = vsel %vm19573_vm15, %v13186_v46, %v4562_v55  ;;  %v13188_v17 = vrot.slane %v4325_v30, 9  ;;  %v4579_v62 = vrot.slane %v15803_v26, 5  ;;  %v13189_v44 = vrot.slane %v4326_v49, 9  ;;  %v4329_v29 = vld [vmem:[#allocation2 + $0x174] sm:$0xe]  ;;  %v15590_v49 = vld [vmem:[#allocation2 + $0x84] sm:$0xff]  }
 0x4b9   :  { %14480 = vmatmul.mubr.msk.bf16.gmra.mrb[96].mxu0 %vm478_vm5, %v13216_v21  ;;  %v4559_v21 = vsel %vm19573_vm15, %v4557_v33, %v4558_v39  ;;  %v4597_v9 = vrot.slane %v19669_v56, 5  ;;  %v13190_v52 = vrot.slane %v4327_v16, 9  ;;  %v15805_v39 = vld [vmem:[#allocation2 + $0x164] sm:$0x1]  ;;  %v4611_v43 = vrot.slane %v19687_v61, 5  ;;  %v15598_v16 = vld [vmem:[#allocation2 + $0xcc] sm:$0xff]  }
 0x4ba   :  { %14483 = vmatprep.mubr.msk.bf16.mxu0 %vm478_vm5, %v13217_v14  ;;  %v13221_v14 = vcombine.low %v4556_v38, %v4559_v21  ;;  %v4580_v31 = vsel %vm19573_vm15, %v4578_v13, %v4579_v62  ;;  %v4577_v24 = vsel %vm19573_vm15, %v13188_v17, %v4576_v5  ;;  %v4593_v56 = vrot.slane %v15805_v39, 5  ;;  %v15806_v21 = vld [vmem:[#allocation2 + $0x170] sm:$0x1]  ;;  %v15808_v32 = vld [vmem:[#allocation2 + $0x188] sm:$0x1]  ;;  %v15610_v39 = vld [vmem:[#allocation2 + $0x60] sm:$0xff]  }
 0x4bb   :  { %v13224_v33 = vcombine.low %v4577_v24, %v4580_v31  ;;  %v4331_v30 = vld [vmem:[#allocation2 + $0x18c] sm:$0xe]  ;;  %v15591_v17 = vld [vmem:[#allocation2 + $0x90] sm:$0xff]   ;;  %v15597_v31 = vld [vmem:[#allocation2 + $0x18] sm:$0xff]  }
 0x4bc   :  { %14708 = vmatmul.mubr.msk.bf16.gmra.mrb[32].mxu1 %vm478_vm5, %v13470_v37  ;;  %v15801_v37 = vld [vmem:[#allocation2 + $0x134] sm:$0x1] }
 0x4bd   :  { %14711 = vmatprep.mubr.msk.bf16.mxu1 %vm478_vm5, %v13471_v10  ;;  %v4565_v48 = vrot.slane %v15801_v37, 5  ;;  %v4330_v37 = vld [vmem:[#allocation2 + $0x180] sm:$0xe]  ;;  %v1256_v24 = vld [vmem:[#allocation2 + $0xd4] sm:$0x1] }
 0x4be   :  { %v13193_v34 = vrot.slane %v4330_v37, 9  ;;  %v8909_v37 = vld [vmem:[#allocation2 + $0x24] sm:$0xf] }
 0x4bf   :  { %v4566_v10 = vsel %vm19573_vm15, %v4564_v7, %v4565_v48  ;;  %v15588_v48 = vld [vmem:[#allocation2 + $0x6c] sm:$0xff]  }
 0x4c0   :  { %v13222_v4 = vcombine.low %v4563_v58, %v4566_v10  ;;  %v4614_v10 = vrot.slane %v15808_v32, 5  ;;  %v9030_v32 = vshll.u32 %v8909_v37, 16 }
 0x4c1   :  { %14484 = vmatmul.mubr.msk.bf16.gmra.mrb[100].mxu0 %vm478_vm5, %v13218_v28  ;;  %v15804_v28 = vld [vmem:[#allocation2 + $0x158] sm:$0x1] }
 0x4c2   :  { %14487 = vmatprep.mubr.msk.bf16.mxu0 %vm478_vm5, %v13219_v6  ;;  %v4586_v42 = vrot.slane %v15804_v28, 5  ;;  %v4590_v6 = vrot.slane %v19664_v12, 5  ;;  %v4599_v12 = vrot.slane %v4597_v9, 4  ;;  %v15592_v28 = vld [vmem:[#allocation2 + $0x9c] sm:$0xff]  }
 0x4c4   :  { %14712 = vmatmul.mubr.msk.bf16.gmra.mrb[36].mxu1 %vm478_vm5, %v13472_v18  ;;  %v4587_v51 = vsel %vm19573_vm15, %v4585_v63, %v4586_v42  ;;  %v4584_v18 = vsel %vm19573_vm15, %v13189_v44, %v4583_v40  ;;  %v4592_v15 = vrot.slane %v4590_v6, 4  ;;  %v15809_v63 = vld [vmem:[#allocation2 + $0x194] sm:$0x1]  ;;  %v15595_v44 = vld [vmem:[#allocation2 + $0xc] sm:$0xff]  }
 0x4c5   :  { %14719 = vmatprep.mubr.msk.bf16.mxu1 %vm478_vm5, %v15580_v25  ;;  %v13225_v19 = vcombine.low %v4584_v18, %v4587_v51  ;;  %v4328_v25 = vld [vmem:[#allocation2 + $0x168] sm:$0xe]  ;;  %v15594_v51 = vld [vmem:[#allocation2 + $0xb4] sm:$0xff]  }
 0x4c6   :  { %v13191_v55 = vrot.slane %v4328_v25, 9  ;;  %v4594_v35 = vsel %vm19573_vm15, %v4592_v15, %v4593_v56  ;;  %v15593_v42 = vld [vmem:[#allocation2 + $0xa8] sm:$0xff]   ;;  %v15602_v18 = vld [vmem:[#allocation2 + $0x30] sm:$0xff]  }
 0x4c7   :  { %v15600_v15 = vld [vmem:[#allocation2 + $0xf0] sm:$0xff]   ;;  %v15606_v25 = vld [vmem:[#allocation2 + $0x48] sm:$0xff]  }
 0x4c8   :  { %v4598_v22 = vsel %vm19573_vm15, %v13191_v55, %v4597_v9  ;;  %v15596_v9 = vld [vmem:[#allocation2 + $0xc0] sm:$0xff]   ;;  %v15612_v56 = vld [vmem:[#allocation2 + $0x6c] sm:$0xff]  }
 0x4c9   :  { %14488 = vmatmul.mubr.msk.bf16.gmra.mrb[104].mxu0 %vm478_vm5, %v13220_v36  ;;  %v4604_v36 = vrot.slane %v19682_v59, 5  ;;  %v4613_v59 = vrot.slane %v4611_v43, 4  ;;  %v15609_v55 = vld [vmem:[#allocation2 + $0x120] sm:$0xff]  }
 0x4ca   :  { %14491 = vmatprep.mubr.msk.bf16.mxu0 %vm478_vm5, %v13221_v14  ;;  %v4591_v14 = vsel %vm19573_vm15, %v13190_v52, %v4590_v6  ;;  %v15599_v6 = vld [vmem:[#allocation2 + $0x24] sm:$0xff]  }
 0x4cb   :  { %v13226_v7 = vcombine.low %v4591_v14, %v4594_v35  ;;  %v4606_v46 = vrot.slane %v4604_v36, 4  ;;  %v4615_v40 = vsel %vm19573_vm15, %v4613_v59, %v4614_v10  ;;  %v15605_v52 = vld [vmem:[#allocation2 + $0x108] sm:$0xff]   ;;  %v8907_v14 = vld [vmem:[#allocation2 + $0x1c] sm:$0xf]  ;;  %v15617_v59 = vld [vmem:[#allocation2 + $0x150] sm:$0xff]  }
 0x4cc   :  { %14720 = vmatmul.mubr.msk.bf16.vlgmr.msra.gmra.mrb[40].mxu1 %vm478_vm5, %v15582_v45  ;;  %v15611_v35 = vld [vmem:[#allocation2 + $0x12c] sm:$0xff]  }
 0x4cd   :  { %14784 = vmatpush3.bf16.msra.mxu1 %v19623_v53  ;;  %14723 = vmatprep.mubr.msk.bf16.mxu1 %vm478_vm5, %v15583_v47  ;;  %v4570_v53 = vsel %vm19573_vm15, %v13187_v41, %v4569_v60  ;;  %v4600_v60 = vrot.slane %v15806_v21, 5  ;;  %v15807_v47 = vld [vmem:[#allocation2 + $0x17c] sm:$0x1] }
 0x4ce   :  { %14785 = vmatprep.subr.bf16.mxu1 %v15601_v57  ;;  %v13223_v1 = vcombine.low %v4570_v53, %v4573_v2  ;;  %v4607_v61 = vrot.slane %v15807_v47, 5  ;;  %v15589_v41 = vld [vmem:[#allocation2 + $0x78] sm:$0xff]   ;;  %v4618_v2 = vrot.slane %v19704_v0, 5  ;;  %v4612_v53 = vsel %vm19573_vm15, %v13193_v34, %v4611_v43  ;;  %v15618_v43 = vld [vmem:[#allocation2 + $0x90] sm:$0xff]  }
 0x4cf   :  { %v4601_v38 = vsel %vm19573_vm15, %v4599_v12, %v4600_v60  ;;  %v13194_v0 = vrot.slane %v4331_v30, 9  ;;  %v15608_v12 = vld [vmem:[#allocation2 + $0x54] sm:$0xff]   ;;  %v15616_v60 = vld [vmem:[#allocation2 + $0x84] sm:$0xff]   ;;  %v9027_v34 = vshrl.u32 %v8909_v37, 16 }
 0x4d0   :  { %v13227_v45 = vcombine.low %v4598_v22, %v4601_v38  ;;  %v4608_v5 = vsel %vm19573_vm15, %v4606_v46, %v4607_v61  ;;  %v4620_v13 = vrot.slane %v4618_v2, 4  ;;  %v15614_v21 = vld [vmem:[#allocation2 + $0x78] sm:$0xff]   ;;  %v9016_v46 = vshrl.u32 %v8907_v14, 16  ;;  %v8913_v47 = vld [vmem:[#allocation2 + $0x34] sm:$0xf] }
 0x4d1   :  { %14492 = vmatmul.mubr.msk.bf16.gmra.mrb[108].mxu0 %vm478_vm5, %v13222_v4  ;;  %14786 = vmatpush3.bf16.msra.mxu1 %v15601_v57  ;;  %v13192_v57 = vrot.slane %v4329_v29, 9  ;;  %v4619_v62 = vsel %vm19573_vm15, %v13194_v0, %v4618_v2  ;;  %v8906_v38 = vld [vmem:[#allocation2 + $0x18] sm:$0xf]  ;;  %v15615_v29 = vld [vmem:[#allocation2 + $0x144] sm:$0xff]   ;;  %v9064_v30 = vshrl.u32 %v8913_v47, 16  ;;  %v15619_v0 = vld [vmem:[#allocation2 + $0x15c] sm:$0xff]  }
 0x4d2   :  { %14495 = vmatprep.mubr.msk.bf16.mxu0 %vm478_vm5, %v13223_v1  ;;  %14851 = vmatprep.subr.bf16.mxu1 %v19970_v27  ;;  %v13229_v1 = vcombine.low %v4612_v53, %v4615_v40  ;;  %v9006_v22 = vshll.u32 %v8906_v38, 16  ;;  %v9060_v53 = vshll.u32 %v8913_v47, 16  ;;  %v20078_v37 = vld [vmem:[#allocation2 + $0x44] sm:$0x1] }
 0x4d3   :  { %v4605_v58 = vsel %vm19573_vm15, %v13192_v57, %v4604_v36  ;;  %v15613_v36 = vld [vmem:[#allocation2 + $0x138] sm:$0xff]   ;;  %v8912_v57 = vld [vmem:[#allocation2 + $0x30] sm:$0xf] }
 0x4d4   :  { %14724 = vmatmul.mubr.msk.bf16.gmra.mrb[44].mxu1 %vm478_vm5, %v15584_v50  ;;  %v13228_v4 = vcombine.low %v4605_v58, %v4608_v5  ;;  %v4621_v50 = vrot.slane %v15809_v63, 5  ;;  %v9018_v5 = vrot.slane %v9016_v46, 4  ;;  %v9051_v58 = vshrl.u32 %v8912_v57, 16  ;;  %v8908_v63 = vld [vmem:[#allocation2 + $0x20] sm:$0x1] }
 0x4d5   :  { %14727 = vmatprep.mubr.msk.bf16.mxu1 %vm478_vm5, %v15585_v54  ;;  %v8919_v46 = vld [vmem:[#allocation2 + $0x4c] sm:$0xf] }
 0x4d6   :  { %v4622_v26 = vsel %vm19573_vm15, %v4620_v13, %v4621_v50  ;;  %v9029_v13 = vrot.slane %v9027_v34, 4 }
 0x4d7   :  { %v13230_v54 = vcombine.low %v4619_v62, %v4622_v26 }
 0x4d9   :  { %14496 = vmatmul.mubr.msk.bf16.gmra.mrb[112].mxu0 %vm478_vm5, %v13224_v33  ;;  %v1257_v33 = vsel %vm16104_vm4, 0, %v1256_v24  ;;  %v8916_v24 = vld [vmem:[#allocation2 + $0x40] sm:$0xf] }
 0x4da   :  { %14499 = vmatprep.mubr.msk.bf16.mxu0 %vm478_vm5, %v13225_v19  ;;  %1258 = vst [vmem:[#allocation2 + $0xd4] sm:$0x1] %v1257_v33  ;;  %v15604_v19 = vld [vmem:[#allocation2 + $0x3c] sm:$0xff]  }
 0x4dc   :  { %14728 = vmatmul.mubr.msk.bf16.gmra.mrb[48].mxu1 %vm478_vm5, %v15586_v3  ;;  %v15603_v3 = vld [vmem:[#allocation2 + $0xfc] sm:$0xff]  }
 0x4dd   :  { %14731 = vmatprep.mubr.msk.bf16.mxu1 %vm478_vm5, %v15587_v8  ;;  %v15607_v8 = vld [vmem:[#allocation2 + $0x114] sm:$0xff]  }
 0x4e1   :  { %14500 = vmatmul.mubr.msk.bf16.gmra.mrb[116].mxu0 %vm478_vm5, %v13226_v7  ;;  %v9003_v7 = vshrl.u32 %v8906_v38, 16 }
 0x4e2   :  { %14503 = vmatprep.mubr.msk.bf16.mxu0 %vm478_vm5, %v13227_v45  ;;  %v9012_v45 = vshll.u32 %v8907_v14, 16  ;;  %v15622_v14 = vld [vmem:[#allocation2 + $0x180] sm:$0xff]  }
 0x4e3   :  { %v9005_v61 = vrot.slane %v9003_v7, 4 }
 0x4e4   :  { %14732 = vmatmul.mubr.msk.bf16.gmra.mrb[52].mxu1 %vm478_vm5, %v15588_v48  ;;  %v8910_v48 = vld [vmem:[#allocation2 + $0x28] sm:$0xf]  ;;  %v20053_v10 = vrot.slane %v9012_v45, 5 }
 0x4e5   :  { %14735 = vmatprep.mubr.msk.bf16.mxu1 %vm478_vm5, %v15589_v41  ;;  %v9008_v41 = vrot.slane %v9006_v22, 5  ;;  %v9036_v2 = vshll.u32 %v8910_v48, 16  ;;  %v9040_v40 = vshrl.u32 %v8910_v48, 16 }
 0x4e6   :  { %v9019_v50 = vor.u32 %v9018_v5, %v20053_v10  ;;  %v9108_v5 = vshll.u32 %v8919_v46, 16 }
 0x4e7   :  { %v20056_v26 = vrot.slane %v9036_v2, 5  ;;  %v9042_v62 = vrot.slane %v9040_v40, 4  ;;  %v8921_v2 = vld [vmem:[#allocation2 + $0x54] sm:$0xf]  ;;  %v8922_v40 = vld [vmem:[#allocation2 + $0x58] sm:$0xf] }
 0x4e9   :  { %14504 = vmatmul.mubr.msk.bf16.gmra.mrb[120].mxu0 %vm478_vm5, %v13228_v4  ;;  %v9054_v4 = vshll.u32 %v8912_v57, 16 }
 0x4ea   :  { %14507 = vmatprep.mubr.msk.bf16.mxu0 %vm478_vm5, %v13229_v1  ;;  %v9009_v1 = vor.u32 %v9008_v41, %v9005_v61 }
 0x4ec   :  { %14736 = vmatmul.mubr.msk.bf16.gmra.mrb[56].mxu1 %vm478_vm5, %v15590_v49  ;;  %v8915_v49 = vld [vmem:[#allocation2 + $0x3c] sm:$0xf]  ;;  %v9010_v33 = vrot.slane %v9009_v1, 4  ;;  %v8920_v1 = vld [vmem:[#allocation2 + $0x50] sm:$0x1] }
 0x4ed   :  { %14739 = vmatprep.mubr.msk.bf16.mxu1 %vm478_vm5, %v15591_v17  ;;  %v9032_v17 = vrot.slane %v9030_v32, 5 }
 0x4ee   :  { %v9015_v38 = vsel %vm19112_vm12, %v9010_v33, %v20053_v10  ;;  %v15624_v33 = vld [vmem:[#allocation2 + $0x198] sm:$0xff]  }
 0x4f1   :  { %14508 = vmatmul.mubr.msk.bf16.gmra.mrb[124].mxu0 %vm478_vm5, %v13230_v54  ;;  %v15620_v54 = vld [vmem:[#allocation2 + $0x168] sm:$0xff]  }
 0x4f2   :  { %14515 = vmatprep.mubr.msk.bf16.mxu0 %vm478_vm5, %v15595_v44  ;;  %v9053_v44 = vrot.slane %v9051_v58, 4 }
 0x4f4   :  { %14740 = vmatmul.mubr.msk.bf16.gmra.mrb[60].mxu1 %vm478_vm5, %v15592_v28  ;;  %v9056_v28 = vrot.slane %v9054_v4, 5 }
 0x4f5   :  { %14743 = vmatprep.mubr.msk.bf16.mxu1 %vm478_vm5, %v15593_v42  ;;  %v20058_v42 = vrot.slane %v9060_v53, 5 }
 0x4f9   :  { %14516 = vmatmul.mubr.msk.bf16.vlgmr.msra.gmra.mrb[64].mxu0 %vm478_vm5, %v15597_v31  ;;  %v9066_v31 = vrot.slane %v9064_v30, 4  ;;  %v9094_v30 = vshll.u32 %v20078_v37, 16  ;;  %v8923_v37 = vld [vmem:[#allocation2 + $0x5c] sm:$0x1] }
 0x4fa   :  { %14519 = vmatprep.mubr.msk.bf16.mxu0 %vm478_vm5, %v15599_v6  ;;  %v9075_v6 = vshrl.u32 %v8915_v49, 16 }
 0x4fc   :  { %14744 = vmatmul.mubr.msk.bf16.gmra.mrb[0].mxu1 %vm478_vm5, %v15594_v51  ;;  %v9078_v51 = vshll.u32 %v8915_v49, 16  ;;  %v8925_v49 = vld [vmem:[#allocation2 + $0x64] sm:$0xf] }
 0x4fd   :  { %14747 = vmatprep.mubr.msk.bf16.mxu1 %vm478_vm5, %v15596_v9  ;;  %v9022_v9 = vshll.u32 %v8908_v63, 16 }
 0x501   :  { %14520 = vmatmul.mubr.msk.bf16.gmra.mrb[68].mxu0 %vm478_vm5, %v15602_v18  ;;  %v8911_v18 = vld [vmem:[#allocation2 + $0x2c] sm:$0x1] }
 0x502   :  { %14523 = vmatprep.mubr.msk.bf16.mxu0 %vm478_vm5, %v15604_v19  ;;  %v8914_v19 = vld [vmem:[#allocation2 + $0x38] sm:$0x1] }
 0x504   :  { %14748 = vmatmul.mubr.msk.bf16.gmra.mrb[4].mxu1 %vm478_vm5, %v15598_v16  ;;  %v9033_v16 = vor.u32 %v9032_v17, %v9029_v13  ;;  %v8924_v13 = vld [vmem:[#allocation2 + $0x60] sm:$0xf]  ;;  %v9112_v17 = vshrl.u32 %v8919_v46, 16  ;;  %v20116_v46 = vrot.slane %v9094_v30, 5  ;;  %v8931_v30 = vld [vmem:[#allocation2 + $0x7c] sm:$0xf] }
 0x505   :  { %14751 = vmatprep.mubr.msk.bf16.mxu1 %vm478_vm5, %v15600_v15  ;;  %v9020_v15 = vrot.slane %v9019_v50, 4 }
 0x509   :  { %14524 = vmatmul.mubr.msk.bf16.gmra.mrb[72].mxu0 %vm478_vm5, %v15606_v25  ;;  %v9043_v25 = vor.u32 %v9042_v62, %v20056_v26 }
 0x50a   :  { %14527 = vmatprep.mubr.msk.bf16.mxu0 %vm478_vm5, %v15608_v12  ;;  %v9057_v12 = vor.u32 %v9056_v28, %v9053_v44  ;;  %v9126_v44 = vshll.u32 %v8921_v2, 16  ;;  %v9132_v28 = vshll.u32 %v8922_v40, 16 }
 0x50b   :  { %v20071_v22 = vrot.slane %v9043_v25, 4  ;;  %v9114_v25 = vrot.slane %v9112_v17, 4 }
 0x50c   :  { %14752 = vmatmul.mubr.msk.bf16.gmra.mrb[8].mxu1 %vm478_vm5, %v15603_v3  ;;  %v9067_v3 = vor.u32 %v9066_v31, %v20058_v42  ;;  %v15623_v31 = vld [vmem:[#allocation2 + $0x18c] sm:$0xff]  }
 0x50d   :  { %14755 = vmatprep.mubr.msk.bf16.mxu1 %vm478_vm5, %v15605_v52  ;;  %v9077_v52 = vrot.slane %v9075_v6, 4  ;;  %v20106_v6 = vrot.slane %v9108_v5, 5  ;;  %v8930_v5 = vld [vmem:[#allocation2 + $0x78] sm:$0xf] }
 0x50e   :  { %v20075_v45 = vrot.slane %v9067_v3, 4  ;;  %v9195_v17 = vshrl.u32 %v8930_v5, 16 }
 0x511   :  { %14528 = vmatmul.mubr.msk.bf16.gmra.mrb[76].mxu0 %vm478_vm5, %v15610_v39  ;;  %v9080_v39 = vrot.slane %v9078_v51, 5  ;;  %v9136_v51 = vshrl.u32 %v8922_v40, 16 }
 0x512   :  { %14531 = vmatprep.mubr.msk.bf16.mxu0 %vm478_vm5, %v15612_v56  ;;  %v9084_v56 = vshll.u32 %v8916_v24, 16 }
 0x514   :  { %14756 = vmatmul.mubr.msk.bf16.gmra.mrb[12].mxu1 %vm478_vm5, %v15607_v8  ;;  %v9088_v8 = vshrl.u32 %v8916_v24, 16  ;;  %v20080_v48 = vrot.slane %v9084_v56, 5  ;;  %v9150_v24 = vshll.u32 %v8924_v13, 16 }
 0x515   :  { %14759 = vmatprep.mubr.msk.bf16.mxu1 %vm478_vm5, %v15609_v55  ;;  %v9024_v55 = vrot.slane %v9022_v9, 5  ;;  %v9147_v9 = vshrl.u32 %v8924_v13, 16 }
 0x516   :  { %v20082_v57 = vrot.slane %v9088_v8, 4  ;;  %v9128_v8 = vrot.slane %v9126_v44, 5  ;;  %v9204_v44 = vshll.u32 %v8931_v30, 16 }
 0x517   :  { %v9025_v7 = vsel %vm19112_vm12, %v9020_v15, %v9024_v55  ;;  %v20110_v55 = vrot.slane %v9132_v28, 5  ;;  %v9208_v28 = vshrl.u32 %v8931_v30, 16  ;;  %v8940_v30 = vld [vmem:[#allocation2 + $0xa0] sm:$0xf] }
 0x518   :  { %v20085_v32 = vcombine.low %v9015_v38, %v9025_v7  ;;  %v9091_v63 = vor.u32 %v20082_v57, %v20080_v48 }
 0x519   :  { %14532 = vmatmul.mubr.msk.bf16.gmra.mrb[80].mxu0 %vm478_vm5, %v15614_v21  ;;  %v9046_v21 = vshll.u32 %v8911_v18, 16  ;;  %v9156_v18 = vshll.u32 %v8925_v49, 16 }
 0x51a   :  { %14535 = vmatprep.mubr.msk.bf16.mxu0 %vm478_vm5, %v15616_v60  ;;  %v9070_v60 = vshll.u32 %v8914_v19, 16 }
 0x51b   :  { %v9048_v61 = vrot.slane %v9046_v21, 5  ;;  %v1310_v21 = vld [vmem:[#allocation2 + $0x1ac] sm:$0x1] }
 0x51c   :  { %14760 = vmatmul.mubr.msk.bf16.gmra.mrb[16].mxu1 %vm478_vm5, %v15611_v35  ;;  %v8918_v35 = vld [vmem:[#allocation2 + $0x48] sm:$0xf]  ;;  %v9072_v41 = vrot.slane %v9070_v60, 5  ;;  %v9138_v60 = vrot.slane %v9136_v51, 4  ;;  %v1311_v38 = vsel %vm16104_vm4, 0, %v1310_v21 }
 0x51d   :  { %14763 = vmatprep.mubr.msk.bf16.mxu1 %vm478_vm5, %v15613_v36  ;;  %v15621_v36 = vld [vmem:[#allocation2 + $0x174] sm:$0xff]   ;;  %v9099_v47 = vshrl.u32 %v8918_v35, 16  ;;  %v9102_v34 = vshll.u32 %v8918_v35, 16  ;;  %v9049_v58 = vsel %vm19112_vm12, %v20071_v22, %v9048_v61  ;;  %v9149_v35 = vrot.slane %v9147_v9, 4  ;;  %1312 = vst [vmem:[#allocation2 + $0x1ac] sm:$0x1] %v1311_v38 }
 0x51e   :  { %v9073_v53 = vsel %vm19112_vm12, %v20075_v45, %v9072_v41  ;;  %v20124_v61 = vrot.slane %v9091_v63, 4  ;;  %v9115_v41 = vor.u32 %v9114_v25, %v20106_v6  ;;  %v8932_v25 = vld [vmem:[#allocation2 + $0x80] sm:$0x1]  ;;  %v15627_v38 = vld [vmem:[%s23146_s3 + $0x88] sm:$0xff]  }
 0x51f   :  { %v9101_v50 = vrot.slane %v9099_v47, 4  ;;  %v9104_v62 = vrot.slane %v9102_v34, 5  ;;  %v8926_v34 = vld [vmem:[#allocation2 + $0x68] sm:$0x1] }
 0x520   :  { %v9166_v63 = vshll.u32 %v8926_v34, 16 }
 0x521   :  { %14536 = vmatmul.mubr.msk.bf16.gmra.mrb[84].mxu0 %vm478_vm5, %v15618_v43  ;;  %v20067_v43 = vrot.slane %v9033_v16, 4  ;;  %v9160_v16 = vshrl.u32 %v8925_v49, 16 }
 0x523   :  { %v9039_v10 = vsel %vm19112_vm12, %v20067_v43, %v20056_v26  ;;  %v8927_v26 = vld [vmem:[#allocation2 + $0x6c] sm:$0xf]  ;;  %v20114_v43 = vrot.slane %v9156_v18, 5 }
 0x524   :  { %14764 = vmatmul.mubr.msk.bf16.gmra.mrb[20].mxu1 %vm478_vm5, %v15615_v29  ;;  %v20073_v29 = vrot.slane %v9057_v12, 4  ;;  %v9171_v19 = vshrl.u32 %v8927_v26, 16  ;;  %v9174_v15 = vshll.u32 %v8927_v26, 16  ;;  %v9118_v12 = vshll.u32 %v8920_v1, 16 }
 0x525   :  { %14767 = vmatprep.mubr.msk.bf16.mxu1 %vm478_vm5, %v15617_v59  ;;  %v9081_v59 = vor.u32 %v9080_v39, %v9077_v52  ;;  %v9105_v39 = vor.u32 %v9104_v62, %v9101_v50  ;;  %v13582_v45 = vcombine.low %v9039_v10, %v9049_v58  ;;  %v9139_v58 = vor.u32 %v9138_v60, %v20110_v55 }
 0x526   :  { %v9063_v4 = vsel %vm19112_vm12, %v20073_v29, %v20058_v42  ;;  %v8928_v42 = vld [vmem:[#allocation2 + $0x70] sm:$0xf]  ;;  %v9173_v7 = vrot.slane %v9171_v19, 4  ;;  %v9176_v22 = vrot.slane %v9174_v15, 5  ;;  %v15625_v29 = vld [vmem:[#allocation2 + $0x1a4] sm:$0xff]   ;;  %v9120_v10 = vrot.slane %v9118_v12, 5 }
 0x527   :  { %v9180_v3 = vshll.u32 %v8928_v42, 16  ;;  %v9184_v52 = vshrl.u32 %v8928_v42, 16  ;;  %v13583_v47 = vcombine.low %v9063_v4, %v9073_v53  ;;  %v9142_v1 = vshll.u32 %v8923_v37, 16  ;;  %v8929_v53 = vld [vmem:[#allocation2 + $0x74] sm:$0x1] }
 0x528   :  { %v9177_v49 = vor.u32 %v9176_v22, %v9173_v7  ;;  %v9198_v26 = vshll.u32 %v8930_v5, 16  ;;  %v9097_v62 = vsel %vm19112_vm12, %v20124_v61, %v20116_v46  ;;  %v9140_v51 = vrot.slane %v9139_v58, 4  ;;  %v8935_v61 = vld [vmem:[#allocation2 + $0x8c] sm:$0x1]  ;;  %v8936_v5 = vld [vmem:[#allocation2 + $0x90] sm:$0xf] }
 0x529   :  { %v9186_v57 = vrot.slane %v9184_v52, 4  ;;  %v9190_v9 = vshll.u32 %v8929_v53, 16  ;;  %v9168_v19 = vrot.slane %v9166_v63, 5  ;;  %v9197_v12 = vrot.slane %v9195_v17, 4  ;;  %v8939_v58 = vld [vmem:[#allocation2 + $0x9c] sm:$0xf] }
 0x52a   :  { %v20140_v52 = vrot.slane %v9204_v44, 5  ;;  %v9238_v53 = vshll.u32 %v8935_v61, 16  ;;  %v9246_v63 = vshll.u32 %v8936_v5, 16  ;;  %v9276_v44 = vshll.u32 %v8940_v30, 16 }
 0x52c   :  { %14768 = vmatmul.mubr.msk.bf16.gmra.mrb[24].mxu1 %vm478_vm5, %v15619_v0  ;;  %v20102_v0 = vrot.slane %v9081_v59, 4  ;;  %v20118_v59 = vrot.slane %v9180_v3, 5  ;;  %v9200_v3 = vrot.slane %v9198_v26, 5 }
 0x52d   :  { %14771 = vmatprep.mubr.msk.bf16.mxu1 %vm478_vm5, %v15620_v54  ;;  %v9123_v54 = vshrl.u32 %v8921_v2, 16  ;;  %v9106_v2 = vrot.slane %v9105_v39, 4  ;;  %v9210_v39 = vrot.slane %v9208_v28, 4  ;;  %v9280_v28 = vshrl.u32 %v8940_v30, 16 }
 0x52e   :  { %v9087_v20 = vsel %vm19112_vm12, %v20102_v0, %v20080_v48  ;;  %v9187_v50 = vor.u32 %v9186_v57, %v20118_v59  ;;  %v9201_v46 = vor.u32 %v9200_v3, %v9197_v12  ;;  %v8942_v48 = vld [vmem:[#allocation2 + $0xa8] sm:$0xf] }
 0x52f   :  { %v9125_v56 = vrot.slane %v9123_v54, 4  ;;  %v9116_v54 = vrot.slane %v9115_v41, 4  ;;  %v9111_v42 = vsel %vm19112_vm12, %v9106_v2, %v20106_v6  ;;  %v8937_v2 = vld [vmem:[#allocation2 + $0x94] sm:$0xf] }
 0x530   :  { %v9188_v15 = vrot.slane %v9187_v50, 4  ;;  %v8943_v50 = vld [vmem:[#allocation2 + $0xac] sm:$0xf]  ;;  %v9252_v17 = vshll.u32 %v8937_v2, 16  ;;  %v9256_v26 = vshrl.u32 %v8937_v2, 16 }
 0x531   :  { %v9129_v40 = vor.u32 %v9128_v8, %v9125_v56  ;;  %v8934_v56 = vld [vmem:[#allocation2 + $0x88] sm:$0xf]  ;;  %v9121_v6 = vsel %vm19112_vm12, %v9116_v54, %v9120_v10  ;;  %v9270_v54 = vshll.u32 %v8939_v58, 16  ;;  %v8944_v2 = vld [vmem:[#allocation2 + $0xb0] sm:$0x1] }
 0x532   :  { %v9228_v37 = vshll.u32 %v8934_v56, 16  ;;  %v9232_v57 = vshrl.u32 %v8934_v56, 16  ;;  %v9258_v12 = vrot.slane %v9256_v26, 4  ;;  %v8938_v56 = vld [vmem:[#allocation2 + $0x98] sm:$0x1] }
 0x533   :  { %v9262_v61 = vshll.u32 %v8938_v56, 16 }
 0x534   :  { %14772 = vmatmul.mubr.msk.bf16.gmra.mrb[28].mxu1 %vm478_vm5, %v15621_v36  ;;  %v9152_v36 = vrot.slane %v9150_v24, 5  ;;  %v8933_v24 = vld [vmem:[#allocation2 + $0x84] sm:$0xf] }
 0x535   :  { %14775 = vmatprep.mubr.msk.bf16.mxu1 %vm478_vm5, %v15622_v14  ;;  %v9162_v14 = vrot.slane %v9160_v16, 4  ;;  %v9219_v8 = vshrl.u32 %v8933_v24, 16  ;;  %v9222_v21 = vshll.u32 %v8933_v24, 16  ;;  %v9300_v24 = vshll.u32 %v8943_v50, 16 }
 0x536   :  { %v9153_v13 = vor.u32 %v9152_v36, %v9149_v35  ;;  %v9192_v36 = vrot.slane %v9190_v9, 5 }
 0x537   :  { %v9163_v4 = vor.u32 %v9162_v14, %v20114_v43  ;;  %v9221_v41 = vrot.slane %v9219_v8, 4  ;;  %v9224_v34 = vrot.slane %v9222_v21, 5  ;;  %v20191_v8 = vrot.slane %v9276_v44, 5  ;;  %v8954_v44 = vld [vmem:[#allocation2 + $0xf0] sm:$0xf] }
 0x538   :  { %v9154_v18 = vrot.slane %v9153_v13, 4  ;;  %v20177_v13 = vrot.slane %v9228_v37, 5  ;;  %v9282_v21 = vrot.slane %v9280_v28, 4 }
 0x539   :  { %v9164_v16 = vrot.slane %v9163_v4, 4  ;;  %v9234_v4 = vrot.slane %v9232_v57, 4 }
 0x53a   :  { %v9159_v14 = vsel %vm19112_vm12, %v9154_v18, %v20114_v43  ;;  %v9211_v43 = vor.u32 %v9210_v39, %v20140_v52  ;;  %v9272_v39 = vrot.slane %v9270_v54, 5 }
 0x53b   :  { %v9169_v7 = vsel %vm19112_vm12, %v9164_v16, %v9168_v19  ;;  %v9235_v9 = vor.u32 %v9234_v4, %v20177_v13  ;;  %v9248_v19 = vrot.slane %v9246_v63, 5  ;;  %v9264_v63 = vrot.slane %v9262_v61, 5  ;;  %v8957_v61 = vld [vmem:[#allocation2 + $0xfc] sm:$0xf] }
 0x53c   :  { %14776 = vmatmul.mubr.msk.bf16.gmra.mrb[32].mxu1 %vm478_vm5, %v15623_v31  ;;  %v9130_v31 = vrot.slane %v9129_v40, 4  ;;  %v9212_v0 = vrot.slane %v9211_v43, 4 }
 0x53d   :  { %14779 = vmatprep.mubr.msk.bf16.mxu1 %vm478_vm5, %v15624_v33  ;;  %v9144_v33 = vrot.slane %v9142_v1, 5  ;;  %v9202_v1 = vrot.slane %v9201_v46, 4  ;;  %v20201_v57 = vrot.slane %v9235_v9, 4 }
 0x53e   :  { %v9135_v60 = vsel %vm19112_vm12, %v9130_v31, %v20110_v55  ;;  %v9214_v55 = vshll.u32 %v8932_v25, 16  ;;  %v9294_v31 = vshll.u32 %v8942_v48, 16  ;;  %v20189_v25 = vrot.slane %v9252_v17, 5 }
 0x53f   :  { %v9145_v35 = vsel %vm19112_vm12, %v9140_v51, %v9144_v33  ;;  %v9207_v51 = vsel %vm19112_vm12, %v9202_v1, %v20140_v52  ;;  %v9304_v33 = vshrl.u32 %v8943_v50, 16  ;;  %v8946_v52 = vld [vmem:[#allocation2 + $0xb8] sm:$0xf]  ;;  %v9310_v50 = vshll.u32 %v8944_v2, 16  ;;  %v20255_v2 = vld [vmem:[#allocation2 + $0x190] sm:$0xf] }
 0x540   :  { %v20171_v10 = vcombine.low %v9135_v60, %v9145_v35  ;;  %v9216_v40 = vrot.slane %v9214_v55, 5  ;;  %v9296_v60 = vrot.slane %v9294_v31, 5  ;;  %v8941_v35 = vld [vmem:[#allocation2 + $0xa4] sm:$0x1]  ;;  %v20195_v55 = vrot.slane %v9238_v53, 5 }
 0x541   :  { %v9328_v46 = vshrl.u32 %v8946_v52, 16 }
 0x542   :  { %v9217_v18 = vsel %vm19112_vm12, %v9212_v0, %v9216_v40 }
 0x543   :  { %v9330_v53 = vrot.slane %v9328_v46, 4 }
 0x544   :  { %14780 = vmatmul.mubr.msk.bf16.gmra.mrb[36].mxu1 %vm478_vm5, %v15625_v29  ;;  %v9193_v29 = vsel %vm19112_vm12, %v9188_v15, %v9192_v36  ;;  %v8945_v15 = vld [vmem:[#allocation2 + $0xb4] sm:$0xf]  ;;  %v20193_v36 = vrot.slane %v9300_v24, 5 }
 0x545   :  { %14787 = vmatprep.mubr.msk.bf16.mxu1 %vm478_vm5, %v20085_v32  ;;  %v9178_v32 = vrot.slane %v9177_v49, 4  ;;  %v9243_v49 = vshrl.u32 %v8936_v5, 16  ;;  %v9286_v5 = vshll.u32 %v8941_v35, 16 }
 0x547   :  { %v9183_v22 = vsel %vm19112_vm12, %v9178_v32, %v20118_v59  ;;  %v13585_v59 = vcombine.low %v9111_v42, %v9121_v6  ;;  %v9291_v42 = vshrl.u32 %v8942_v48, 16  ;;  %v9245_v32 = vrot.slane %v9243_v49, 4  ;;  %v8949_v48 = vld [vmem:[#allocation2 + $0xc4] sm:$0xf] }
 0x548   :  { %v9241_v49 = vsel %vm19112_vm12, %v20201_v57, %v20195_v55  ;;  %v9288_v54 = vrot.slane %v9286_v5, 5  ;;  %v9348_v31 = vshll.u32 %v8949_v48, 16  ;;  %v8958_v5 = vld [vmem:[#allocation2 + $0x100] sm:$0xf] }
 0x549   :  { %v9293_v6 = vrot.slane %v9291_v42, 4  ;;  %v9249_v43 = vor.u32 %v9248_v19, %v9245_v32  ;;  %v8947_v42 = vld [vmem:[#allocation2 + $0xbc] sm:$0x1]  ;;  %v9312_v19 = vrot.slane %v9310_v50, 5  ;;  %v9411_v50 = vshrl.u32 %v8957_v61, 16 }
 0x54a   :  { %v20234_v35 = vrot.slane %v9348_v31, 5 }
 0x54b   :  { %v9297_v40 = vor.u32 %v9296_v60, %v9293_v6  ;;  %v8955_v6 = vld [vmem:[#allocation2 + $0xf4] sm:$0xf] }
 0x54c   :  { %14788 = vmatmul.mubr.msk.bf16.vlgmr.msra.gmra.mrb[40].mxu1 %vm478_vm5, %v13582_v45  ;;  %v13584_v45 = vcombine.low %v9087_v20, %v9097_v62  ;;  %v9225_v20 = vor.u32 %v9224_v34, %v9221_v41  ;;  %v9267_v62 = vshrl.u32 %v8939_v58, 16  ;;  %v8948_v41 = vld [vmem:[#allocation2 + $0xc0] sm:$0xf]  ;;  %v9259_v34 = vor.u32 %v9258_v12, %v20189_v25 }
 0x54d   :  { %14852 = vmatpush3.bf16.msra.mxu1 %v19970_v27  ;;  %14791 = vmatprep.mubr.msk.bf16.mxu1 %vm478_vm5, %v13583_v47  ;;  %v20173_v27 = vcombine.low %v9159_v14, %v9169_v7  ;;  %v20175_v47 = vcombine.low %v9183_v22, %v9193_v29  ;;  %v9315_v14 = vshrl.u32 %v8945_v15, 16  ;;  %v9318_v7 = vshll.u32 %v8945_v15, 16  ;;  %v8950_v15 = vld [vmem:[#allocation2 + $0xc8] sm:$0x1] }
 0x54e   :  { %14853 = vmatprep.subr.bf16.mxu1 %v15627_v38  ;;  %v20187_v16 = vrot.slane %v9225_v20, 4  ;;  %v9269_v3 = vrot.slane %v9267_v62, 4  ;;  %v13589_v22 = vcombine.low %v9207_v51, %v9217_v18  ;;  %v9324_v29 = vshll.u32 %v8946_v52, 16 }
 0x54f   :  { %v9317_v30 = vrot.slane %v9315_v14, 4  ;;  %v9320_v1 = vrot.slane %v9318_v7, 5  ;;  %v9339_v0 = vshrl.u32 %v8948_v41, 16  ;;  %v9342_v20 = vshll.u32 %v8948_v41, 16 }
 0x550   :  { %v9231_v37 = vsel %vm19112_vm12, %v20187_v16, %v20177_v13  ;;  %v20210_v4 = vrot.slane %v9324_v29, 5  ;;  %v9260_v17 = vrot.slane %v9259_v34, 4  ;;  %v9352_v51 = vshrl.u32 %v8949_v48, 16  ;;  %v8952_v48 = vld [vmem:[#allocation2 + $0xd0] sm:$0xf] }
 0x551   :  { %14854 = vmatpush3.bf16.msra.mxu1 %v15627_v38  ;;  %v9306_v38 = vrot.slane %v9304_v33, 4  ;;  %v9321_v9 = vor.u32 %v9320_v1, %v9317_v30  ;;  %v9341_v33 = vrot.slane %v9339_v0, 4  ;;  %v9344_v18 = vrot.slane %v9342_v20, 5  ;;  %v20269_v30 = vld [vmem:[#allocation2 + $0x19c] sm:$0xf] }
 0x552   :  { %v9331_v24 = vor.u32 %v9330_v53, %v20210_v4  ;;  %v9387_v12 = vshrl.u32 %v8954_v44, 16  ;;  %v9358_v55 = vshll.u32 %v8950_v15, 16  ;;  %v9396_v46 = vshll.u32 %v8955_v6, 16  ;;  %v10361_v1 = vld [vmem:[#allocation2 + $0x18c] sm:$0xe] }
 0x553   :  { %v9307_v58 = vor.u32 %v9306_v38, %v20193_v36  ;;  %v9354_v38 = vrot.slane %v9352_v51, 4  ;;  %v9345_v7 = vor.u32 %v9344_v18, %v9341_v33  ;;  %v9376_v31 = vshrl.u32 %v8952_v48, 16 }
 0x554   :  { %14792 = vmatmul.mubr.msk.bf16.gmra.mrb[44].mxu1 %vm478_vm5, %v13584_v45  ;;  %v9273_v45 = vor.u32 %v9272_v39, %v9269_v3  ;;  %v9390_v3 = vshll.u32 %v8954_v44, 16  ;;  %v9265_v39 = vsel %vm19112_vm12, %v9260_v17, %v9264_v63  ;;  %v20239_v14 = vrot.slane %v9331_v24, 4 }
 0x555   :  { %14795 = vmatprep.mubr.msk.bf16.mxu1 %vm478_vm5, %v13585_v59  ;;  %v9283_v59 = vor.u32 %v9282_v21, %v20191_v8  ;;  %v9308_v28 = vrot.slane %v9307_v58, 4  ;;  %v9334_v21 = vshll.u32 %v8947_v42, 16  ;;  %v20241_v29 = vrot.slane %v9387_v12, 4 }
 0x556   :  { %v9274_v26 = vrot.slane %v9273_v45, 4  ;;  %v9355_v45 = vor.u32 %v9354_v38, %v20234_v35  ;;  %v20265_v16 = vrot.slane %v9358_v55, 5  ;;  %v20271_v53 = vrot.slane %v9345_v7, 4  ;;  %v8961_v7 = vld [vmem:[#allocation2 + $0x10c] sm:$0xf] }
 0x557   :  { %v9284_v62 = vrot.slane %v9283_v59, 4  ;;  %v9313_v60 = vsel %vm19112_vm12, %v9308_v28, %v9312_v19  ;;  %v20245_v57 = vrot.slane %v9334_v21, 5  ;;  %v8951_v59 = vld [vmem:[#allocation2 + $0xcc] sm:$0xf]  ;;  %v20275_v20 = vrot.slane %v9396_v46, 5 }
 0x558   :  { %v9279_v52 = vsel %vm19112_vm12, %v9274_v26, %v20191_v8  ;;  %v20237_v8 = vrot.slane %v9321_v9, 4  ;;  %v9414_v17 = vshll.u32 %v8957_v61, 16  ;;  %v10362_v26 = vld [vmem:[#allocation2 + $0x198] sm:$0xe]  ;;  %v13676_v44 = vrot.slane %v10361_v1, 9 }
 0x559   :  { %v9289_v56 = vsel %vm19112_vm12, %v9284_v62, %v9288_v54  ;;  %v9337_v13 = vsel %vm19112_vm12, %v20239_v14, %v20245_v57  ;;  %v9356_v62 = vrot.slane %v9355_v45, 4  ;;  %v9420_v54 = vshll.u32 %v8958_v5, 16  ;;  %v20281_v9 = vld [vmem:[#allocation2 + $0x1a0] sm:$0x1]  ;;  %v8959_v45 = vld [vmem:[#allocation2 + $0x104] sm:$0x1] }
 0x55a   :  { %v13592_v34 = vcombine.low %v9279_v52, %v9289_v56  ;;  %v9327_v58 = vsel %vm19112_vm12, %v20237_v8, %v20210_v4  ;;  %v9366_v28 = vshll.u32 %v8951_v59, 16  ;;  %v9372_v42 = vshll.u32 %v8952_v48, 16  ;;  %v8966_v14 = vld [vmem:[#allocation2 + $0x120] sm:$0xf]  ;;  %v8967_v8 = vld [vmem:[#allocation2 + $0x124] sm:$0xf] }
 0x55b   :  { %v9424_v51 = vshrl.u32 %v8958_v5, 16  ;;  %v13677_v18 = vrot.slane %v10362_v26, 9  ;;  %v9413_v12 = vrot.slane %v9411_v50, 4  ;;  %v9378_v38 = vrot.slane %v9376_v31, 4 }
 0x55c   :  { %14796 = vmatmul.mubr.msk.bf16.gmra.mrb[48].mxu1 %vm478_vm5, %v20171_v10  ;;  %v9250_v10 = vrot.slane %v9249_v43, 4  ;;  %v20247_v43 = vld [vmem:[#allocation2 + $0xf8] sm:$0x1]  ;;  %v9351_v61 = vsel %vm19112_vm12, %v20271_v53, %v20234_v35  ;;  %v9448_v50 = vshrl.u32 %v8961_v7, 16  ;;  %v9430_v26 = vshll.u32 %v8959_v45, 16 }
 0x55d   :  { %14799 = vmatprep.mubr.msk.bf16.mxu1 %vm478_vm5, %v20173_v27  ;;  %v9298_v27 = vrot.slane %v9297_v40, 4  ;;  %v9406_v63 = vshll.u32 %v20247_v43, 16  ;;  %v9426_v46 = vrot.slane %v9424_v51, 4 }
 0x55e   :  { %v9255_v32 = vsel %vm19112_vm12, %v9250_v10, %v20189_v25  ;;  %v9363_v10 = vshrl.u32 %v8951_v59, 16  ;;  %v9450_v4 = vrot.slane %v9448_v50, 4 }
 0x55f   :  { %v9303_v25 = vsel %vm19112_vm12, %v9298_v27, %v20193_v36  ;;  %v9400_v36 = vshrl.u32 %v8955_v6, 16  ;;  %v13591_v41 = vcombine.low %v9255_v32, %v9265_v39  ;;  %v10665_v27 = vrot.slane %v20255_v2, 5  ;;  %v8960_v39 = vld [vmem:[#allocation2 + $0x108] sm:$0xf] }
 0x560   :  { %v13593_v40 = vcombine.low %v9303_v25, %v9313_v60  ;;  %v10672_v32 = vrot.slane %v20269_v30, 5  ;;  %v9365_v19 = vrot.slane %v9363_v10, 4  ;;  %v10675_v6 = vrot.slane %v20281_v9, 5 }
 0x561   :  { %v10667_v24 = vrot.slane %v10665_v27, 4  ;;  %v20288_v52 = vsel %vm19573_vm15, %v13676_v44, %v10665_v27  ;;  %v9368_v25 = vrot.slane %v9366_v28, 5  ;;  %v20295_v60 = vrot.slane %v9372_v42, 5 }
 0x562   :  { %v10674_v21 = vrot.slane %v10672_v32, 4  ;;  %v9435_v1 = vshrl.u32 %v8960_v39, 16  ;;  %v9438_v48 = vshll.u32 %v8960_v39, 16  ;;  %v9486_v39 = vshll.u32 %v8966_v14, 16 }
 0x563   :  { %v9369_v10 = vor.u32 %v9368_v25, %v9365_v19  ;;  %v9379_v35 = vor.u32 %v9378_v38, %v20295_v60 }
 0x564   :  { %14800 = vmatmul.mubr.msk.bf16.gmra.mrb[52].mxu1 %vm478_vm5, %v20175_v47  ;;  %v20243_v47 = vrot.slane %v9390_v3, 5  ;;  %v9416_v3 = vrot.slane %v9414_v17, 5  ;;  %v20307_v43 = vsel %vm19573_vm15, %v10674_v21, %v10675_v6  ;;  %v9408_v17 = vrot.slane %v9406_v63, 5 }
 0x565   :  { %14803 = vmatprep.mubr.msk.bf16.mxu1 %vm478_vm5, %v13589_v22  ;;  %v13590_v22 = vcombine.low %v9231_v37, %v9241_v49  ;;  %v20267_v37 = vld [vmem:[#allocation2 + $0x194] sm:$0x1]  ;;  %v9402_v49 = vrot.slane %v9400_v36, 4  ;;  %v20303_v36 = vsel %vm19573_vm15, %v13677_v18, %v10672_v32  ;;  %v9437_v27 = vrot.slane %v9435_v1, 4 }
 0x566   :  { %v9393_v0 = vor.u32 %v20243_v47, %v20241_v29  ;;  %v10668_v33 = vrot.slane %v20267_v37, 5  ;;  %v8953_v29 = vld [vmem:[#allocation2 + $0xd4] sm:$0x1]  ;;  %v20299_v47 = vrot.slane %v9420_v54, 5  ;;  %v8964_v54 = vld [vmem:[#allocation2 + $0x118] sm:$0xf] }
 0x567   :  { %v9403_v15 = vor.u32 %v9402_v49, %v20275_v20  ;;  %v9444_v49 = vshll.u32 %v8961_v7, 16  ;;  %v9382_v53 = vshll.u32 %v8953_v29, 16  ;;  %v9440_v28 = vrot.slane %v9438_v48, 5  ;;  %v20360_v48 = vld [vmem:[#allocation2 + $0x130] sm:$0xf] }
 0x568   :  { %v20292_v56 = vsel %vm19573_vm15, %v10667_v24, %v10668_v33  ;;  %v9370_v57 = vrot.slane %v9369_v10, 4  ;;  %v9380_v31 = vrot.slane %v9379_v35, 4  ;;  %v9432_v24 = vrot.slane %v9430_v26, 5 }
 0x569   :  { %v9404_v5 = vrot.slane %v9403_v15, 4  ;;  %v20337_v42 = vrot.slane %v9444_v49, 5  ;;  %v9384_v51 = vrot.slane %v9382_v53, 5  ;;  %v9468_v32 = vshll.u32 %v8964_v54, 16 }
 0x56a   :  { %v9472_v19 = vshrl.u32 %v8964_v54, 16  ;;  %v9483_v15 = vshrl.u32 %v8966_v14, 16  ;;  %v9492_v21 = vshll.u32 %v8967_v8, 16  ;;  %v9496_v6 = vshrl.u32 %v8967_v8, 16  ;;  %v8972_v54 = vld [vmem:[#allocation2 + $0x138] sm:$0xf] }
 0x56b   :  { %v9409_v44 = vsel %vm19112_vm12, %v9404_v5, %v9408_v17  ;;  %v9375_v25 = vsel %vm19112_vm12, %v9370_v57, %v20295_v60  ;;  %v9385_v38 = vsel %vm19112_vm12, %v9380_v31, %v9384_v51  ;;  %v9441_v29 = vor.u32 %v9440_v28, %v9437_v27  ;;  %v20358_v60 = vld [vmem:[#allocation2 + $0x11c] sm:$0x1] }
 0x56c   :  { %14804 = vmatmul.mubr.msk.bf16.gmra.mrb[56].mxu1 %vm478_vm5, %v13590_v22  ;;  %v9361_v22 = vsel %vm19112_vm12, %v9356_v62, %v20265_v16  ;;  %v9417_v16 = vor.u32 %v9416_v3, %v9413_v12  ;;  %v8963_v62 = vld [vmem:[#allocation2 + $0x114] sm:$0xf]  ;;  %v20364_v35 = vrot.slane %v9468_v32, 5  ;;  %v9474_v53 = vrot.slane %v9472_v19, 4  ;;  %v20375_v8 = vld [vmem:[#allocation2 + $0x13c] sm:$0xf] }
 0x56d   :  { %14807 = vmatprep.mubr.msk.bf16.mxu1 %vm478_vm5, %v13591_v41  ;;  %v9394_v41 = vrot.slane %v9393_v0, 4  ;;  %v9427_v0 = vor.u32 %v9426_v46, %v20299_v47  ;;  %v9459_v33 = vshrl.u32 %v8963_v62, 16  ;;  %v9462_v18 = vshll.u32 %v8963_v62, 16 }
 0x56e   :  { %v9451_v46 = vor.u32 %v9450_v4, %v20337_v42  ;;  %v9485_v50 = vrot.slane %v9483_v15, 4  ;;  %v13596_v17 = vcombine.low %v9375_v25, %v9385_v38  ;;  %v9498_v26 = vrot.slane %v9496_v6, 4  ;;  %v20389_v6 = vld [vmem:[#allocation2 + $0x148] sm:$0xf] }
 0x56f   :  { %v9399_v63 = vsel %vm19112_vm12, %v9394_v41, %v20275_v20  ;;  %v8962_v20 = vld [vmem:[#allocation2 + $0x110] sm:$0x1]  ;;  %v9461_v1 = vrot.slane %v9459_v33, 4  ;;  %v9464_v10 = vrot.slane %v9462_v18, 5  ;;  %v9516_v28 = vshll.u32 %v20360_v48, 16 }
 0x570   :  { %v13597_v12 = vcombine.low %v9399_v63, %v9409_v44  ;;  %v9454_v5 = vshll.u32 %v8962_v20, 16  ;;  %v9520_v14 = vshrl.u32 %v20360_v48, 16  ;;  %v9475_v31 = vor.u32 %v9474_v53, %v20364_v35  ;;  %v8975_v18 = vld [vmem:[#allocation2 + $0x144] sm:$0xf] }
 0x571   :  { %v9465_v57 = vor.u32 %v9464_v10, %v9461_v1  ;;  %v9478_v51 = vshll.u32 %v20358_v60, 16  ;;  %v9531_v33 = vshrl.u32 %v8972_v54, 16  ;;  %v9534_v20 = vshll.u32 %v8972_v54, 16 }
 0x572   :  { %v9456_v27 = vrot.slane %v9454_v5, 5  ;;  %v20393_v38 = vrot.slane %v9516_v28, 5 }
 0x573   :  { %v9533_v53 = vrot.slane %v9531_v33, 4 }
 0x574   :  { %14808 = vmatmul.mubr.msk.bf16.gmra.mrb[60].mxu1 %vm478_vm5, %v13592_v34  ;;  %v13594_v34 = vcombine.low %v9327_v58, %v9337_v13  ;;  %v9418_v58 = vrot.slane %v9417_v16, 4  ;;  %v9428_v13 = vrot.slane %v9427_v0, 4  ;;  %v20366_v16 = vld [vmem:[#allocation2 + $0x128] sm:$0x1]  ;;  %v20368_v0 = vrot.slane %v9492_v21, 5 }
 0x575   :  { %14811 = vmatprep.mubr.msk.bf16.mxu1 %vm478_vm5, %v13593_v40  ;;  %v13595_v40 = vcombine.low %v9351_v61, %v9361_v22  ;;  %v8969_v61 = vld [vmem:[#allocation2 + $0x12c] sm:$0xf]  ;;  %v9502_v4 = vshll.u32 %v20366_v16, 16 }
 0x576   :  { %v9423_v41 = vsel %vm19112_vm12, %v9418_v58, %v20299_v47  ;;  %v9433_v45 = vsel %vm19112_vm12, %v9428_v13, %v9432_v24  ;;  %v9488_v47 = vrot.slane %v9486_v39, 5  ;;  %v9507_v63 = vshrl.u32 %v8969_v61, 16 }
 0x577   :  { %v9510_v62 = vshll.u32 %v8969_v61, 16  ;;  %v13598_v44 = vcombine.low %v9423_v41, %v9433_v45  ;;  %v9499_v24 = vor.u32 %v9498_v26, %v20368_v0  ;;  %v9476_v41 = vrot.slane %v9475_v31, 4  ;;  %v20411_v31 = vld [vmem:[#allocation2 + $0x140] sm:$0x1] }
 0x578   :  { %v9489_v13 = vor.u32 %v9488_v47, %v9485_v50  ;;  %v9509_v39 = vrot.slane %v9507_v63, 4  ;;  %v9480_v45 = vrot.slane %v9478_v51, 5  ;;  %v9504_v5 = vrot.slane %v9502_v4, 5 }
 0x579   :  { %v9512_v21 = vrot.slane %v9510_v62, 5  ;;  %v9500_v10 = vrot.slane %v9499_v24, 4  ;;  %v9536_v50 = vrot.slane %v9534_v20, 5  ;;  %v9555_v47 = vshrl.u32 %v8975_v18, 16  ;;  %v20422_v20 = vld [vmem:[#allocation2 + $0x154] sm:$0xf] }
 0x57a   :  { %v9490_v1 = vrot.slane %v9489_v13, 4  ;;  %v9558_v26 = vshll.u32 %v8975_v18, 16 }
 0x57b   :  { %v9513_v63 = vor.u32 %v9512_v21, %v9509_v39  ;;  %v9505_v4 = vsel %vm19112_vm12, %v9500_v10, %v9504_v5  ;;  %v9537_v33 = vor.u32 %v9536_v50, %v9533_v53  ;;  %v9592_v10 = vshrl.u32 %v20422_v20, 16 }
 0x57c   :  { %14812 = vmatmul.mubr.msk.bf16.gmra.mrb[0].mxu1 %vm478_vm5, %v13594_v34  ;;  %v20340_v3 = vpop.f32.mrb[88].mxu0  ;;  %v9442_v34 = vrot.slane %v9441_v29, 4  ;;  %v9522_v29 = vrot.slane %v9520_v14, 4  ;;  %v9495_v51 = vsel %vm19112_vm12, %v9490_v1, %v20368_v0  ;;  %v9588_v1 = vshll.u32 %v20422_v20, 16 }
 0x57d   :  { %24120 = vst [vmem:[#allocation18_spill] sm:$0xff] %v20340_v3  ;;  %14815 = vmatprep.mubr.msk.bf16.mxu1 %vm478_vm5, %v13595_v40  ;;  %v20348_v7 = vpop.f32.mrb[89].mxu0  ;;  %v9452_v40 = vrot.slane %v9451_v46, 4  ;;  %v9544_v46 = vshrl.u32 %v20375_v8, 16  ;;  %v9514_v21 = vrot.slane %v9513_v63, 4  ;;  %v13601_v50 = vcombine.low %v9495_v51, %v9505_v4 }
 0x57e   :  { %24121 = vst [vmem:[#allocation20_spill] sm:$0xff] %v20348_v7  ;;  %v20351_v22 = vpop.f32.mrb[90].mxu0  ;;  %v9447_v32 = vsel %vm19112_vm12, %v9442_v34, %v20337_v42  ;;  %v9466_v42 = vrot.slane %v9465_v57, 4  ;;  %v9564_v34 = vshll.u32 %v20389_v6, 16  ;;  %v9523_v62 = vor.u32 %v9522_v29, %v20393_v38  ;;  %v8984_v51 = vld [vmem:[#allocation2 + $0x168] sm:$0xf] }
 0x57f   :  { %24122 = vst [vmem:[#allocation87_spill] sm:$0xff] %v20351_v22  ;;  %v20362_v49 = vpop.f32.mrb[91].mxu0  ;;  %v9457_v19 = vsel %vm19112_vm12, %v9452_v40, %v9456_v27  ;;  %v9568_v40 = vshrl.u32 %v20389_v6, 16  ;;  %v9546_v27 = vrot.slane %v9544_v46, 4  ;;  %v9481_v57 = vsel %vm19112_vm12, %v9476_v41, %v9480_v45  ;;  %v10345_v7 = vld [vmem:[#allocation2 + $0xb4] sm:$0xe] }
 0x580   :  { %24123 = vst [vmem:[#allocation17_spill] sm:$0xff] %v20362_v49  ;;  %v13599_v28 = vcombine.low %v9447_v32, %v9457_v19  ;;  %v9471_v14 = vsel %vm19112_vm12, %v9466_v42, %v20364_v35  ;;  %v8978_v35 = vld [vmem:[#allocation2 + $0x150] sm:$0xf]  ;;  %v9560_v32 = vrot.slane %v9558_v26, 5  ;;  %v20427_v19 = vrot.slane %v9564_v34, 5 }
 0x581   :  { %v9570_v0 = vrot.slane %v9568_v40, 4  ;;  %v9524_v29 = vrot.slane %v9523_v62, 4  ;;  %v9550_v46 = vshll.u32 %v20411_v31, 16  ;;  %v20433_v42 = vld [vmem:[#allocation2 + $0x14c] sm:$0x1]  ;;  %v9579_v45 = vshrl.u32 %v8978_v35, 16 }
 0x582   :  { %v9582_v5 = vshll.u32 %v8978_v35, 16  ;;  %v13600_v53 = vcombine.low %v9471_v14, %v9481_v57  ;;  %v9538_v26 = vrot.slane %v9537_v33, 4  ;;  %v9574_v63 = vshll.u32 %v20433_v42, 16  ;;  %v8981_v62 = vld [vmem:[#allocation2 + $0x15c] sm:$0xf] }
 0x583   :  { %v9571_v40 = vor.u32 %v9570_v0, %v20427_v19  ;;  %v9552_v14 = vrot.slane %v9550_v46, 5  ;;  %v20448_v57 = vld [vmem:[#allocation2 + $0x158] sm:$0x1]  ;;  %v9581_v4 = vrot.slane %v9579_v45, 4  ;;  %v20450_v33 = vrot.slane %v9588_v1, 5 }
 0x584   :  { %14816 = vmatmul.mubr.msk.bf16.gmra.mrb[4].mxu1 %vm478_vm5, %v13596_v17  ;;  %v20378_v58 = vpop.f32.mrb[92].mxu0  ;;  %v20399_v17 = vld [vmem:[#allocation2 + $0x134] sm:$0x1]  ;;  %v9630_v55 = vshll.u32 %v8984_v51, 16 }
 0x585   :  { %24124 = vst [vmem:[#allocation19_spill] sm:$0xff] %v20378_v58  ;;  %14819 = vmatprep.mubr.msk.bf16.mxu1 %vm478_vm5, %v13597_v12  ;;  %v20387_v15 = vpop.f32.mrb[93].mxu0  ;;  %v9540_v12 = vshll.u32 %v20375_v8, 16  ;;  %v9526_v24 = vshll.u32 %v20399_v17, 16  ;;  %v9572_v1 = vrot.slane %v9571_v40, 4 }
 0x586   :  { %24125 = vst [vmem:[#allocation22_spill] sm:$0xff] %v20387_v15  ;;  %v20391_v25 = vpop.f32.mrb[94].mxu0 }
 0x587   :  { %24126 = vst [vmem:[#allocation45_spill] sm:$0xff] %v20391_v25  ;;  %v20397_v61 = vpop.f32.mrb[95].mxu0  ;;  %v20404_v54 = vrot.slane %v9540_v12, 5 }
 0x588   :  { %24127 = vst [vmem:[#allocation46_spill] sm:$0xff] %v20397_v61 }
 0x589   :  { %v9547_v12 = vor.u32 %v9546_v27, %v20404_v54  ;;  %v20441_v27 = vld [vmem:[#allocation2 + $0x160] sm:$0xf]  ;;  %v9543_v46 = vsel %vm19112_vm12, %v9538_v26, %v20404_v54  ;;  %v9598_v26 = vshll.u32 %v20448_v57, 16 }
 0x58b   :  { %v9548_v59 = vrot.slane %v9547_v12, 4  ;;  %v9616_v12 = vshrl.u32 %v20441_v27, 16 }
 0x58c   :  { %14820 = vmatmul.mubr.msk.bf16.gmra.mrb[8].mxu1 %vm478_vm5, %v13598_v44  ;;  %v20419_v13 = vpop.f32.mrb[96].mxu0  ;;  %v9557_v44 = vrot.slane %v9555_v47, 4  ;;  %v9528_v47 = vrot.slane %v9526_v24, 5  ;;  %v9584_v24 = vrot.slane %v9582_v5, 5 }
 0x58d   :  { %24128 = vst [vmem:[#allocation47_spill] sm:$0xff] %v20419_v13  ;;  %14823 = vmatprep.mubr.msk.bf16.mxu1 %vm478_vm5, %v13599_v28  ;;  %v20425_v18 = vpop.f32.mrb[97].mxu0  ;;  %v9519_v28 = vsel %vm19112_vm12, %v9514_v21, %v20393_v38  ;;  %v9603_v38 = vshrl.u32 %v8981_v62, 16  ;;  %v9606_v21 = vshll.u32 %v8981_v62, 16  ;;  %v20517_v13 = vld [vmem:[#allocation2 + $0x17c] sm:$0x1] }
 0x58e   :  { %24129 = vst [vmem:[#allocation48_spill] sm:$0xff] %v20425_v18  ;;  %v20429_v39 = vpop.f32.mrb[98].mxu0  ;;  %v9561_v34 = vor.u32 %v9560_v32, %v9557_v44  ;;  %v9529_v35 = vsel %vm19112_vm12, %v9524_v29, %v9528_v47  ;;  %v9594_v44 = vrot.slane %v9592_v10, 4  ;;  %v20452_v32 = vld [vmem:[#allocation2 + $0x16c] sm:$0xf]  ;;  %v9612_v29 = vshll.u32 %v20441_v27, 16 }
 0x58f   :  { %24130 = vst [vmem:[#allocation49_spill] sm:$0xff] %v20429_v39  ;;  %v20435_v41 = vpop.f32.mrb[99].mxu0  ;;  %v9576_v10 = vrot.slane %v9574_v63, 5  ;;  %v9627_v47 = vshrl.u32 %v8984_v51, 16  ;;  %v9636_v62 = vshll.u32 %v20452_v32, 16  ;;  %v9585_v39 = vor.u32 %v9584_v24, %v9581_v4 }
 0x590   :  { %24131 = vst [vmem:[#allocation50_spill] sm:$0xff] %v20435_v41  ;;  %v9562_v5 = vrot.slane %v9561_v34, 4  ;;  %v9595_v54 = vor.u32 %v9594_v44, %v20450_v33  ;;  %v9605_v34 = vrot.slane %v9603_v38, 4  ;;  %v9608_v40 = vrot.slane %v9606_v21, 5  ;;  %v20484_v18 = vld [vmem:[#allocation2 + $0x178] sm:$0xf] }
 0x591   :  { %v20475_v63 = vrot.slane %v9612_v29, 5  ;;  %v13602_v51 = vcombine.low %v9519_v28, %v9529_v35  ;;  %v9632_v4 = vrot.slane %v9630_v55, 5  ;;  %v20482_v24 = vrot.slane %v9636_v62, 5  ;;  %v8990_v28 = vld [vmem:[#allocation2 + $0x180] sm:$0xf] }
 0x592   :  { %v9586_v21 = vrot.slane %v9585_v39, 4  ;;  %v9600_v29 = vrot.slane %v9598_v26, 5  ;;  %v9596_v35 = vrot.slane %v9595_v54, 4  ;;  %v9660_v62 = vshll.u32 %v20484_v18, 16 }
 0x594   :  { %14824 = vmatmul.mubr.msk.bf16.gmra.mrb[12].mxu1 %vm478_vm5, %v13600_v53  ;;  %v20455_v0 = vpop.f32.mrb[100].mxu0 }
 0x595   :  { %24132 = vst [vmem:[#allocation24_spill] sm:$0xff] %v20455_v0  ;;  %14827 = vmatprep.mubr.msk.bf16.mxu1 %vm478_vm5, %v13601_v50  ;;  %v20463_v45 = vpop.f32.mrb[101].mxu0  ;;  %v9640_v0 = vshrl.u32 %v20452_v32, 16  ;;  %v9553_v50 = vsel %vm19112_vm12, %v9548_v59, %v9552_v14  ;;  %v9577_v59 = vsel %vm19112_vm12, %v9572_v1, %v9576_v10  ;;  %v8987_v14 = vld [vmem:[#allocation2 + $0x174] sm:$0xf]  ;;  %v9609_v1 = vor.u32 %v9608_v40, %v9605_v34 }
 0x596   :  { %24133 = vst [vmem:[#allocation51_spill] sm:$0xff] %v20463_v45  ;;  %v20465_v53 = vpop.f32.mrb[102].mxu0  ;;  %v9567_v45 = vsel %vm19112_vm12, %v9562_v5, %v20427_v19  ;;  %v13603_v38 = vcombine.low %v9543_v46, %v9553_v50  ;;  %v20492_v10 = vld [vmem:[#allocation2 + $0x170] sm:$0x1]  ;;  %v9651_v46 = vshrl.u32 %v8987_v14, 16  ;;  %v9678_v34 = vshll.u32 %v8990_v28, 16 }
 0x597   :  { %24134 = vst [vmem:[#allocation52_spill] sm:$0xff] %v20465_v53  ;;  %v20471_v41 = vpop.f32.mrb[103].mxu0  ;;  %v9618_v53 = vrot.slane %v9616_v12, 4  ;;  %v9642_v44 = vrot.slane %v9640_v0, 4  ;;  %v20486_v12 = vld [vmem:[#allocation2 + $0x164] sm:$0x1]  ;;  %v13604_v19 = vcombine.low %v9567_v45, %v9577_v59  ;;  %v9591_v40 = vsel %vm19112_vm12, %v9586_v21, %v20450_v33 }
 0x598   :  { %24135 = vst [vmem:[#allocation53_spill] sm:$0xff] %v20471_v41  ;;  %v9629_v41 = vrot.slane %v9627_v47, 4  ;;  %v20494_v0 = vld [vmem:[#allocation2 + $0x184] sm:$0xf]  ;;  %v9654_v47 = vshll.u32 %v8987_v14, 16  ;;  %v9664_v45 = vshrl.u32 %v20484_v18, 16 }
 0x599   :  { %v9619_v55 = vor.u32 %v9618_v53, %v20475_v63  ;;  %v9643_v26 = vor.u32 %v9642_v44, %v20482_v24  ;;  %v9675_v53 = vshrl.u32 %v8990_v28, 16  ;;  %v9622_v59 = vshll.u32 %v20486_v12, 16 }
 0x59a   :  { %v9633_v54 = vor.u32 %v9632_v4, %v9629_v41  ;;  %v9684_v14 = vshll.u32 %v20494_v0, 16  ;;  %v9610_v41 = vrot.slane %v9609_v1, 4  ;;  %v9646_v44 = vshll.u32 %v20492_v10, 16 }
 0x59b   :  { %v9620_v4 = vrot.slane %v9619_v55, 4  ;;  %v9653_v28 = vrot.slane %v9651_v46, 4  ;;  %v9666_v33 = vrot.slane %v9664_v45, 4  ;;  %v9677_v61 = vrot.slane %v9675_v53, 4 }
 0x59c   :  { %14828 = vmatmul.mubr.msk.bf16.gmra.mrb[16].mxu1 %vm478_vm5, %v13602_v51  ;;  %v20489_v5 = vpop.f32.mrb[104].mxu0  ;;  %v9634_v21 = vrot.slane %v9633_v54, 4  ;;  %v9680_v25 = vrot.slane %v9678_v34, 5  ;;  %v9624_v58 = vrot.slane %v9622_v59, 5  ;;  %v20519_v49 = vrot.slane %v9684_v14, 5 }
 0x59d   :  { %24136 = vst [vmem:[#allocation54_spill] sm:$0xff] %v20489_v5  ;;  %14831 = vmatprep.mubr.msk.bf16.mxu1 %vm478_vm5, %v13603_v38  ;;  %v20497_v39 = vpop.f32.mrb[105].mxu0  ;;  %v9688_v38 = vshrl.u32 %v20494_v0, 16  ;;  %v20515_v5 = vrot.slane %v9660_v62, 5  ;;  %v9615_v1 = vsel %vm19112_vm12, %v9610_v41, %v20475_v63  ;;  %v9648_v55 = vrot.slane %v9646_v44, 5 }
 0x59e   :  { %24137 = vst [vmem:[#allocation101_spill] sm:$0xff] %v20497_v39  ;;  %v20501_v50 = vpop.f32.mrb[106].mxu0  ;;  %v9656_v39 = vrot.slane %v9654_v47, 5  ;;  %v9625_v47 = vsel %vm19112_vm12, %v9620_v4, %v9624_v58  ;;  %v9670_v54 = vshll.u32 %v20517_v13, 16  ;;  %v9639_v63 = vsel %vm19112_vm12, %v9634_v21, %v20482_v24 }
 0x59f   :  { %24138 = vst [vmem:[#allocation55_spill] sm:$0xff] %v20501_v50  ;;  %v20507_v51 = vpop.f32.mrb[107].mxu0  ;;  %v9601_v50 = vsel %vm19112_vm12, %v9596_v35, %v9600_v29  ;;  %v9690_v29 = vrot.slane %v9688_v38, 4  ;;  %v8993_v35 = vld [vmem:[#allocation2 + $0x18c] sm:$0xf]  ;;  %v9681_v58 = vor.u32 %v9680_v25, %v9677_v61  ;;  %v9708_v14 = vshll.u32 %v20255_v2, 16 }
 0x5a0   :  { %24139 = vst [vmem:[#allocation57_spill] sm:$0xff] %v20507_v51  ;;  %v9644_v51 = vrot.slane %v9643_v26, 4  ;;  %v13605_v15 = vcombine.low %v9591_v40, %v9601_v50  ;;  %v9657_v45 = vor.u32 %v9656_v39, %v9653_v28  ;;  %v9667_v50 = vor.u32 %v9666_v33, %v20515_v5 }
 0x5a1   :  { %v9699_v34 = vshrl.u32 %v8993_v35, 16  ;;  %v9691_v39 = vor.u32 %v9690_v29, %v20519_v49  ;;  %v9702_v59 = vshll.u32 %v8993_v35, 16  ;;  %v9712_v38 = vshrl.u32 %v20255_v2, 16  ;;  %v8999_v35 = vld [vmem:[#allocation2 + $0x1a4] sm:$0xf] }
 0x5a2   :  { %v9649_v26 = vsel %vm19112_vm12, %v9644_v51, %v9648_v55  ;;  %v9732_v4 = vshll.u32 %v20269_v30, 16  ;;  %v9736_v51 = vshrl.u32 %v20269_v30, 16  ;;  %v9658_v44 = vrot.slane %v9657_v45, 4 }
 0x5a3   :  { %v9668_v28 = vrot.slane %v9667_v50, 4  ;;  %v9672_v33 = vrot.slane %v9670_v54, 5  ;;  %v13606_v61 = vcombine.low %v9615_v1, %v9625_v47  ;;  %v13607_v21 = vcombine.low %v9639_v63, %v9649_v26 }
 0x5a4   :  { %14832 = vmatmul.mubr.msk.bf16.gmra.mrb[20].mxu1 %vm478_vm5, %v13604_v19  ;;  %v20525_v46 = vpop.f32.mrb[108].mxu0  ;;  %v8996_v19 = vld [vmem:[#allocation2 + $0x198] sm:$0xf]  ;;  %v9682_v55 = vrot.slane %v9681_v58, 4  ;;  %v9701_v29 = vrot.slane %v9699_v34, 4  ;;  %v9704_v2 = vrot.slane %v9702_v59, 5  ;;  %v9663_v34 = vsel %vm19112_vm12, %v9658_v44, %v20515_v5 }
 0x5a5   :  { %24140 = vst [vmem:[#allocation6_spill] sm:$0xff] %v20525_v46  ;;  %14835 = vmatprep.mubr.msk.bf16.mxu1 %vm478_vm5, %v13605_v15  ;;  %v20530_v62 = vpop.f32.mrb[109].mxu0  ;;  %v20541_v15 = vld [vmem:[#allocation2 + $0x188] sm:$0x1]  ;;  %v9723_v41 = vshrl.u32 %v8996_v19, 16  ;;  %v9726_v24 = vshll.u32 %v8996_v19, 16 }
 0x5a6   :  { %24141 = vst [vmem:[#allocation84_spill] sm:$0xff] %v20530_v62  ;;  %v20539_v53 = vpop.f32.mrb[110].mxu0  ;;  %v9694_v25 = vshll.u32 %v20541_v15, 16  ;;  %v9710_v62 = vrot.slane %v9708_v14, 5  ;;  %v9714_v19 = vrot.slane %v9712_v38, 4  ;;  %v9734_v50 = vrot.slane %v9732_v4, 5 }
 0x5a7   :  { %24142 = vst [vmem:[#allocation58_spill] sm:$0xff] %v20539_v53  ;;  %v20543_v40 = vpop.f32.mrb[111].mxu0  ;;  %v9692_v53 = vrot.slane %v9691_v39, 4  ;;  %v9725_v30 = vrot.slane %v9723_v41, 4  ;;  %v9728_v45 = vrot.slane %v9726_v24, 5  ;;  %v9738_v54 = vrot.slane %v9736_v51, 4 }
 0x5a8   :  { %24143 = vst [vmem:[#allocation29_spill] sm:$0xff] %v20543_v40  ;;  %v20551_v40 = vld [vmem:[#allocation2 + $0x1a8] sm:$0xf]  ;;  %v9747_v47 = vshrl.u32 %v8999_v35, 16  ;;  %v9750_v63 = vshll.u32 %v8999_v35, 16  ;;  %v9696_v39 = vrot.slane %v9694_v25, 5  ;;  %v9673_v14 = vsel %vm19112_vm12, %v9668_v28, %v9672_v33 }
 0x5a9   :  { %v9756_v26 = vshll.u32 %v20551_v40, 16  ;;  %v9760_v58 = vshrl.u32 %v20551_v40, 16  ;;  %v9705_v41 = vor.u32 %v9704_v2, %v9701_v29  ;;  %v9715_v24 = vor.u32 %v9714_v19, %v9710_v62  ;;  %v20577_v29 = vld [vmem:[#allocation2 + $0x1ac] sm:$0x1] }
 0x5aa   :  { %v9718_v4 = vshll.u32 %v20267_v37, 16  ;;  %v9687_v51 = vsel %vm19112_vm12, %v9682_v55, %v20519_v49  ;;  %v9729_v5 = vor.u32 %v9728_v45, %v9725_v30  ;;  %v9739_v44 = vor.u32 %v9738_v54, %v9734_v50 }
 0x5ab   :  { %v9749_v25 = vrot.slane %v9747_v47, 4  ;;  %v9758_v35 = vrot.slane %v9756_v26, 5  ;;  %v13608_v28 = vcombine.low %v9663_v34, %v9673_v14  ;;  %v9742_v33 = vshll.u32 %v20281_v9, 16 }
 0x5ac   :  { %14836 = vmatmul.mubr.msk.bf16.gmra.mrb[24].mxu1 %vm478_vm5, %v13606_v61  ;;  %v20554_v46 = vpop.f32.mrb[112].mxu0  ;;  %v9697_v61 = vsel %vm19112_vm12, %v9692_v53, %v9696_v39  ;;  %v9706_v37 = vrot.slane %v9705_v41, 4  ;;  %v9716_v19 = vrot.slane %v9715_v24, 4  ;;  %v9730_v49 = vrot.slane %v9729_v5, 4 }
 0x5ad   :  { %24144 = vst [vmem:[#allocation60_spill] sm:$0xff] %v20554_v46  ;;  %14839 = vmatprep.mubr.msk.bf16.mxu1 %vm478_vm5, %v13607_v21  ;;  %v20557_v1 = vpop.f32.mrb[113].mxu0  ;;  %v9752_v21 = vrot.slane %v9750_v63, 5  ;;  %v13609_v2 = vcombine.low %v9687_v51, %v9697_v61  ;;  %v9740_v55 = vrot.slane %v9739_v44, 4  ;;  %v9720_v53 = vrot.slane %v9718_v4, 5 }
 0x5ae   :  { %24145 = vst [vmem:[#allocation41_spill] sm:$0xff] %v20557_v1  ;;  %v20564_v59 = vpop.f32.mrb[114].mxu0  ;;  %v9766_v9 = vshll.u32 %v20577_v29, 16  ;;  %v9744_v47 = vrot.slane %v9742_v33, 5  ;;  %v9711_v26 = vsel %vm19112_vm12, %v9706_v37, %v9710_v62  ;;  %v9735_v39 = vsel %vm19112_vm12, %v9730_v49, %v9734_v50  ;;  %v10332_v44 = vld [vmem:[#allocation2 + $0x18] sm:$0xe] }
 0x5af   :  { %24146 = vst [vmem:[#allocation89_spill] sm:$0xff] %v20564_v59  ;;  %v20568_v38 = vpop.f32.mrb[115].mxu0  ;;  %v9762_v59 = vrot.slane %v9760_v58, 4  ;;  %v9753_v45 = vor.u32 %v9752_v21, %v9749_v25  ;;  %v9721_v58 = vsel %vm19112_vm12, %v9716_v19, %v9720_v53  ;;  %v13647_v33 = vrot.slane %v10332_v44, 9  ;;  %v15815_v44 = vld [vmem:[#allocation2 + $0x38] sm:$0x1] }
 0x5b0   :  { %24147 = vst [vmem:[#allocation43_spill] sm:$0xff] %v20568_v38  ;;  %v9745_v14 = vsel %vm19112_vm12, %v9740_v55, %v9744_v47  ;;  %v9768_v51 = vrot.slane %v9766_v9, 5  ;;  %v13610_v61 = vcombine.low %v9711_v26, %v9721_v58  ;;  %v15812_v55 = vld [vmem:[#allocation2 + $0x28] sm:$0xf]  ;;  %v15813_v9 = vld [vmem:[#allocation2 + $0x34] sm:$0xf] }
 0x5b1   :  { %v9763_v54 = vor.u32 %v9762_v59, %v9758_v35  ;;  %v15810_v59 = vld [vmem:[#allocation2 + $0x1c] sm:$0xf]  ;;  %v9754_v24 = vrot.slane %v9753_v45, 4  ;;  %v13611_v5 = vcombine.low %v9735_v39, %v9745_v14  ;;  %v10469_v53 = vrot.slane %v15812_v55, 5  ;;  %v10333_v47 = vld [vmem:[#allocation2 + $0x24] sm:$0xe] }
 0x5b2   :  { %v10462_v41 = vrot.slane %v15810_v59, 5  ;;  %v10334_v39 = vld [vmem:[#allocation2 + $0x30] sm:$0xe]  ;;  %v15817_v55 = vld [vmem:[#allocation2 + $0x4c] sm:$0xf] }
 0x5b3   :  { %v9764_v4 = vrot.slane %v9763_v54, 4  ;;  %v9759_v50 = vsel %vm19112_vm12, %v9754_v24, %v9758_v35  ;;  %v10476_v35 = vrot.slane %v15813_v9, 5  ;;  %v10471_v58 = vrot.slane %v10469_v53, 4 }
 0x5b4   :  { %14840 = vmatmul.mubr.msk.bf16.gmra.mrb[28].mxu1 %vm478_vm5, %v13608_v28  ;;  %v20580_v38 = vpop.f32.mrb[116].mxu0  ;;  %v10464_v62 = vrot.slane %v10462_v41, 4  ;;  %v10463_v11 = vsel %vm19573_vm15, %v13647_v33, %v10462_v41  ;;  %v13648_v24 = vrot.slane %v10333_v47, 9  ;;  %v15816_v33 = vld [vmem:[#allocation2 + $0x40] sm:$0xf] }
 0x5b5   :  { %24148 = vst [vmem:[#allocation91_spill] sm:$0xff] %v20580_v38  ;;  %14843 = vmatprep.mubr.msk.bf16.mxu1 %vm478_vm5, %v13609_v2  ;;  %v20583_v30 = vpop.f32.mrb[117].mxu0  ;;  %v9769_v21 = vsel %vm19112_vm12, %v9764_v4, %v9768_v51  ;;  %v15811_v2 = vld [vmem:[#allocation2 + $0x20] sm:$0x1]  ;;  %v10478_v14 = vrot.slane %v10476_v35, 4 }
 0x5b6   :  { %24149 = vst [vmem:[#allocation14_spill] sm:$0xff] %v20583_v30  ;;  %v20586_v63 = vpop.f32.mrb[118].mxu0  ;;  %v10465_v37 = vrot.slane %v15811_v2, 5  ;;  %v13612_v45 = vcombine.low %v9759_v50, %v9769_v21  ;;  %v15814_v4 = vld [vmem:[#allocation2 + $0x2c] sm:$0x1]  ;;  %v10483_v2 = vrot.slane %v15816_v33, 5 }
 0x5b7   :  { %24150 = vst [vmem:[#allocation93_spill] sm:$0xff] %v20586_v63  ;;  %v20592_v34 = vpop.f32.mrb[119].mxu0  ;;  %v10472_v51 = vrot.slane %v15814_v4, 5  ;;  %v10335_v47 = vld [vmem:[#allocation2 + $0x3c] sm:$0xe] }
 0x5b8   :  { %24151 = vst [vmem:[#allocation95_spill] sm:$0xff] %v20592_v34  ;;  %v10466_v54 = vsel %vm19573_vm15, %v10464_v62, %v10465_v37  ;;  %v10479_v62 = vrot.slane %v15815_v44, 5  ;;  %v15818_v44 = vld [vmem:[#allocation2 + $0x44] sm:$0x1]  ;;  %v10343_v38 = vld [vmem:[#allocation2 + $0x9c] sm:$0xe] }
 0x5b9   :  { %v13683_v26 = vcombine.low %v10463_v11, %v10466_v54  ;;  %v10473_v50 = vsel %vm19573_vm15, %v10471_v58, %v10472_v51  ;;  %v10470_v54 = vsel %vm19573_vm15, %v13648_v24, %v10469_v53  ;;  %v10336_v58 = vld [vmem:[#allocation2 + $0x48] sm:$0xe]  ;;  %v15819_v24 = vld [vmem:[#allocation2 + $0x50] sm:$0x1] }
 0x5ba   :  { %v10480_v37 = vsel %vm19573_vm15, %v10478_v14, %v10479_v62  ;;  %v13684_v9 = vcombine.low %v10470_v54, %v10473_v50  ;;  %v13650_v14 = vrot.slane %v10335_v47, 9  ;;  %v10486_v62 = vrot.slane %v15818_v44, 5 }
 0x5bb   :  { %v13651_v53 = vrot.slane %v10336_v58, 9  ;;  %v10493_v50 = vrot.slane %v15819_v24, 5  ;;  %v10337_v24 = vld [vmem:[#allocation2 + $0x54] sm:$0xe] }
 0x5bc   :  { %14844 = vmatmul.mubr.msk.bf16.gmra.mrb[32].mxu1 %vm478_vm5, %v13610_v61  ;;  %v20599_v25 = vpop.f32.mrb[120].mxu0 }
 0x5bd   :  { %24152 = vst [vmem:[#allocation97_spill] sm:$0xff] %v20599_v25  ;;  %14847 = vmatprep.mubr.msk.bf16.mxu1 %vm478_vm5, %v13611_v5  ;;  %v20606_v28 = vpop.f32.mrb[121].mxu0  ;;  %v13649_v5 = vrot.slane %v10334_v39, 9  ;;  %v10485_v39 = vrot.slane %v10483_v2, 4  ;;  %v10341_v25 = vld [vmem:[#allocation2 + $0x84] sm:$0xe] }
 0x5be   :  { %24153 = vst [vmem:[#allocation99_spill] sm:$0xff] %v20606_v28  ;;  %v20608_v19 = vpop.f32.mrb[122].mxu0 }
 0x5bf   :  { %24154 = vst [vmem:[#allocation83_spill] sm:$0xff] %v20608_v19  ;;  %v20610_v49 = vpop.f32.mrb[123].mxu0  ;;  %v10477_v11 = vsel %vm19573_vm15, %v13649_v5, %v10476_v35  ;;  %v10487_v5 = vsel %vm19573_vm15, %v10485_v39, %v10486_v62  ;;  %v10338_v39 = vld [vmem:[#allocation2 + $0x60] sm:$0xe] }
 0x5c0   :  { %24155 = vst [vmem:[#allocation23_spill] sm:$0xff] %v20610_v49 }
 0x5c4   :  { %14848 = vmatmul.mubr.msk.bf16.gmra.mrb[36].mxu1 %vm478_vm5, %v13612_v45  ;;  %v20617_v59 = vpop.f32.mrb[124].mxu0  ;;  %v10490_v45 = vrot.slane %v15817_v55, 5  ;;  %v15820_v55 = vld [vmem:[#allocation2 + $0x58] sm:$0xf] }
 0x5c5   :  { %24156 = vst [vmem:[#allocation59_spill] sm:$0xff] %v20617_v59  ;;  %14855 = vmatprep.mubr.msk.bf16.mxu1 %vm478_vm5, %v13683_v26  ;;  %v20620_v61 = vpop.f32.mrb[125].mxu0  ;;  %v13685_v26 = vcombine.low %v10477_v11, %v10480_v37  ;;  %v10497_v54 = vrot.slane %v15820_v55, 5  ;;  %v15821_v11 = vld [vmem:[#allocation2 + $0x64] sm:$0xf] }
 0x5c6   :  { %24157 = vst [vmem:[#allocation85_spill] sm:$0xff] %v20620_v61  ;;  %v20622_v41 = vpop.f32.mrb[126].mxu0  ;;  %v10492_v4 = vrot.slane %v10490_v45, 4  ;;  %v10504_v47 = vrot.slane %v15821_v11, 5  ;;  %v10491_v44 = vsel %vm19573_vm15, %v13651_v53, %v10490_v45  ;;  %v10339_v59 = vld [vmem:[#allocation2 + $0x6c] sm:$0xe] }
 0x5c7   :  { %24158 = vst [vmem:[#allocation61_spill] sm:$0xff] %v20622_v41  ;;  %v20626_v21 = vpop.f32.mrb[127].mxu0  ;;  %v10499_v41 = vrot.slane %v10497_v54, 4 }
 0x5c8   :  { %24159 = vst [vmem:[#allocation56_spill] sm:$0xff] %v20626_v21  ;;  %v10506_v62 = vrot.slane %v10504_v47, 4 }
 0x5cc   :  { %14856 = vmatmul.mubr.msk.bf16.vlgmr.msra.gmra.mrb[40].mxu1 %vm478_vm5, %v13684_v9  ;;  %v20635_v51 = vpop.f32.mrb[64].mxu0  ;;  %v10494_v9 = vsel %vm19573_vm15, %v10492_v4, %v10493_v50  ;;  %v13652_v4 = vrot.slane %v10337_v24, 9  ;;  %v15822_v50 = vld [vmem:[#allocation2 + $0x5c] sm:$0x1] }
 0x5cd   :  { %14859 = vmatprep.mubr.msk.bf16.mxu1 %vm478_vm5, %v13685_v26  ;;  %v20638_v33 = vpop.f32.mrb[65].mxu0  ;;  %v10484_v26 = vsel %vm19573_vm15, %v13650_v14, %v10483_v2  ;;  %v13687_v21 = vcombine.low %v10491_v44, %v10494_v9  ;;  %v10500_v11 = vrot.slane %v15822_v50, 5  ;;  %v13653_v2 = vrot.slane %v10338_v39, 9  ;;  %v15823_v14 = vld [vmem:[#allocation2 + $0x68] sm:$0x1] }
 0x5ce   :  { %v20640_v35 = vpop.f32.mrb[66].mxu0  ;;  %v13686_v58 = vcombine.low %v10484_v26, %v10487_v5  ;;  %v10507_v5 = vrot.slane %v15823_v14, 5  ;;  %v15824_v26 = vld [vmem:[#allocation2 + $0x70] sm:$0xf]  ;;  %v15825_v44 = vld [vmem:[#allocation2 + $0x7c] sm:$0xf]  ;;  %v10498_v50 = vsel %vm19573_vm15, %v13652_v4, %v10497_v54 }
 0x5cf   :  { %v20644_v37 = vpop.f32.mrb[67].mxu0  ;;  %v10501_v53 = vsel %vm19573_vm15, %v10499_v41, %v10500_v11  ;;  %v10518_v24 = vrot.slane %v15825_v44, 5  ;;  %v10505_v14 = vsel %vm19573_vm15, %v13653_v2, %v10504_v47  ;;  %v10340_v41 = vld [vmem:[#allocation2 + $0x78] sm:$0xe]  ;;  %v15827_v4 = vld [vmem:[#allocation2 + $0x80] sm:$0x1] }
 0x5d0   :  { %v13688_v39 = vcombine.low %v10498_v50, %v10501_v53  ;;  %v13655_v54 = vrot.slane %v10340_v41, 9  ;;  %v10521_v53 = vrot.slane %v15827_v4, 5  ;;  %v15828_v50 = vld [vmem:[#allocation2 + $0x88] sm:$0xf] }
 0x5d1   :  { %v10520_v11 = vrot.slane %v10518_v24, 4 }
 0x5d2   :  { %v10519_v4 = vsel %vm19573_vm15, %v13655_v54, %v10518_v24 }
 0x5d4   :  { %14860 = vmatmul.mubr.msk.bf16.gmra.mrb[44].mxu1 %vm478_vm5, %v13686_v58  ;;  %v20653_v55 = vpop.f32.mrb[68].mxu0  ;;  %v10511_v58 = vrot.slane %v15824_v26, 5 }
 0x5d5   :  { %14863 = vmatprep.mubr.msk.bf16.mxu1 %vm478_vm5, %v13687_v21  ;;  %v20656_v61 = vpop.f32.mrb[69].mxu0  ;;  %v10508_v21 = vsel %vm19573_vm15, %v10506_v62, %v10507_v5  ;;  %v13654_v62 = vrot.slane %v10339_v59, 9  ;;  %v15826_v5 = vld [vmem:[#allocation2 + $0x74] sm:$0x1] }
 0x5d6   :  { %v20658_v45 = vpop.f32.mrb[70].mxu0  ;;  %v13689_v49 = vcombine.low %v10505_v14, %v10508_v21  ;;  %v10513_v19 = vrot.slane %v10511_v58, 4  ;;  %v10514_v44 = vrot.slane %v15826_v5, 5  ;;  %v15829_v59 = vld [vmem:[#allocation2 + $0x94] sm:$0xf] }
 0x5d7   :  { %v20662_v9 = vpop.f32.mrb[71].mxu0  ;;  %v10532_v14 = vrot.slane %v15829_v59, 5  ;;  %v10512_v5 = vsel %vm19573_vm15, %v13654_v62, %v10511_v58  ;;  %v15831_v62 = vld [vmem:[#allocation2 + $0x98] sm:$0x1] }
 0x5d8   :  { %v10515_v2 = vsel %vm19573_vm15, %v10513_v19, %v10514_v44  ;;  %v10342_v19 = vld [vmem:[#allocation2 + $0x90] sm:$0xe] }
 0x5d9   :  { %v13690_v41 = vcombine.low %v10512_v5, %v10515_v2  ;;  %v10534_v44 = vrot.slane %v10532_v14, 4  ;;  %v13657_v58 = vrot.slane %v10342_v19, 9  ;;  %v10535_v2 = vrot.slane %v15831_v62, 5  ;;  %v15832_v5 = vld [vmem:[#allocation2 + $0xa0] sm:$0xf] }
 0x5db   :  { %v10533_v62 = vsel %vm19573_vm15, %v13657_v58, %v10532_v14 }
 0x5dc   :  { %14864 = vmatmul.mubr.msk.bf16.gmra.mrb[48].mxu1 %vm478_vm5, %v13688_v39  ;;  %v20671_v26 = vpop.f32.mrb[72].mxu0  ;;  %v10525_v39 = vrot.slane %v15828_v50, 5 }
 0x5dd   :  { %14867 = vmatprep.mubr.msk.bf16.mxu1 %vm478_vm5, %v13689_v49  ;;  %v20674_v28 = vpop.f32.mrb[73].mxu0  ;;  %v10522_v49 = vsel %vm19573_vm15, %v10520_v11, %v10521_v53  ;;  %v13656_v11 = vrot.slane %v10341_v25, 9  ;;  %v15830_v53 = vld [vmem:[#allocation2 + $0x8c] sm:$0x1] }
 0x5de   :  { %v20676_v47 = vpop.f32.mrb[74].mxu0  ;;  %v13691_v34 = vcombine.low %v10519_v4, %v10522_v49  ;;  %v10527_v63 = vrot.slane %v10525_v39, 4  ;;  %v10528_v59 = vrot.slane %v15830_v53, 5  ;;  %v15833_v25 = vld [vmem:[#allocation2 + $0xac] sm:$0xf] }
 0x5df   :  { %v20680_v21 = vpop.f32.mrb[75].mxu0  ;;  %v10546_v4 = vrot.slane %v15833_v25, 5  ;;  %v10526_v53 = vsel %vm19573_vm15, %v13656_v11, %v10525_v39  ;;  %v15835_v11 = vld [vmem:[#allocation2 + $0xb0] sm:$0x1] }
 0x5e0   :  { %v10529_v54 = vsel %vm19573_vm15, %v10527_v63, %v10528_v59  ;;  %v10344_v63 = vld [vmem:[#allocation2 + $0xa8] sm:$0xe] }
 0x5e1   :  { %v13692_v19 = vcombine.low %v10526_v53, %v10529_v54  ;;  %v10548_v59 = vrot.slane %v10546_v4, 4  ;;  %v13659_v39 = vrot.slane %v10344_v63, 9  ;;  %v10549_v54 = vrot.slane %v15835_v11, 5  ;;  %v15836_v53 = vld [vmem:[#allocation2 + $0xb8] sm:$0xf] }
 0x5e3   :  { %v10547_v11 = vsel %vm19573_vm15, %v13659_v39, %v10546_v4  ;;  %v15840_v4 = vld [vmem:[#allocation2 + $0xc8] sm:$0x1] }
 0x5e4   :  { %14868 = vmatmul.mubr.msk.bf16.gmra.mrb[52].mxu1 %vm478_vm5, %v13690_v41  ;;  %v20689_v50 = vpop.f32.mrb[76].mxu0  ;;  %v10539_v41 = vrot.slane %v15832_v5, 5  ;;  %v10563_v39 = vrot.slane %v15840_v4, 5 }
 0x5e5   :  { %14871 = vmatprep.mubr.msk.bf16.mxu1 %vm478_vm5, %v13691_v34  ;;  %v20692_v30 = vpop.f32.mrb[77].mxu0  ;;  %v10536_v34 = vsel %vm19573_vm15, %v10534_v44, %v10535_v2  ;;  %v13658_v44 = vrot.slane %v10343_v38, 9  ;;  %v15834_v2 = vld [vmem:[#allocation2 + $0xa4] sm:$0x1] }
 0x5e6   :  { %v20694_v24 = vpop.f32.mrb[78].mxu0  ;;  %v13693_v1 = vcombine.low %v10533_v62, %v10536_v34  ;;  %v10541_v46 = vrot.slane %v10539_v41, 4  ;;  %v10542_v25 = vrot.slane %v15834_v2, 5  ;;  %v15837_v38 = vld [vmem:[#allocation2 + $0xc4] sm:$0xf] }
 0x5e7   :  { %v20698_v49 = vpop.f32.mrb[79].mxu0  ;;  %v10560_v62 = vrot.slane %v15837_v38, 5  ;;  %v10540_v2 = vsel %vm19573_vm15, %v13658_v44, %v10539_v41  ;;  %v15839_v41 = vld [vmem:[#allocation2 + $0xd0] sm:$0xf] }
 0x5e8   :  { %v10543_v58 = vsel %vm19573_vm15, %v10541_v46, %v10542_v25  ;;  %v10346_v46 = vld [vmem:[#allocation2 + $0xc0] sm:$0xe]  ;;  %v10567_v44 = vrot.slane %v15839_v41, 5 }
 0x5e9   :  { %v13694_v63 = vcombine.low %v10540_v2, %v10543_v58  ;;  %v10562_v25 = vrot.slane %v10560_v62, 4  ;;  %v13661_v58 = vrot.slane %v10346_v46, 9  ;;  %v10347_v2 = vld [vmem:[#allocation2 + $0xcc] sm:$0xe] }
 0x5ea   :  { %v13662_v41 = vrot.slane %v10347_v2, 9  ;;  %v10569_v46 = vrot.slane %v10567_v44, 4 }
 0x5ec   :  { %14872 = vmatmul.mubr.msk.bf16.gmra.mrb[56].mxu1 %vm478_vm5, %v13692_v19  ;;  %v20707_v5 = vpop.f32.mrb[80].mxu0  ;;  %v10553_v19 = vrot.slane %v15836_v53, 5 }
 0x5ed   :  { %24160 = vst [vmem:[#allocation62_spill] sm:$0xff] %v20707_v5  ;;  %14875 = vmatprep.mubr.msk.bf16.mxu1 %vm478_vm5, %v13693_v1  ;;  %v20710_v22 = vpop.f32.mrb[81].mxu0  ;;  %v10550_v1 = vsel %vm19573_vm15, %v10548_v59, %v10549_v54  ;;  %v13660_v59 = vrot.slane %v10345_v7, 9  ;;  %v15838_v54 = vld [vmem:[#allocation2 + $0xbc] sm:$0x1] }
 0x5ee   :  { %24161 = vst [vmem:[#allocation25_spill] sm:$0xff] %v20710_v22  ;;  %v20712_v14 = vpop.f32.mrb[82].mxu0  ;;  %v13695_v3 = vcombine.low %v10547_v11, %v10550_v1  ;;  %v10556_v38 = vrot.slane %v15838_v54, 5  ;;  %v15841_v7 = vld [vmem:[#allocation2 + $0xf4] sm:$0xf] }
 0x5ef   :  { %24162 = vst [vmem:[#allocation64_spill] sm:$0xff] %v20712_v14  ;;  %v20716_v34 = vpop.f32.mrb[83].mxu0  ;;  %v10555_v14 = vrot.slane %v10553_v19, 4  ;;  %v10574_v54 = vrot.slane %v15841_v7, 5  ;;  %v10350_v7 = vld [vmem:[#allocation2 + $0x108] sm:$0xe] }
 0x5f0   :  { %24163 = vst [vmem:[#allocation26_spill] sm:$0xff] %v20716_v34 }
 0x5f4   :  { %14876 = vmatmul.mubr.msk.bf16.gmra.mrb[60].mxu1 %vm478_vm5, %v13694_v63  ;;  %v20725_v53 = vpop.f32.mrb[84].mxu0  ;;  %v10557_v63 = vsel %vm19573_vm15, %v10555_v14, %v10556_v38  ;;  %v10348_v14 = vld [vmem:[#allocation2 + $0xf0] sm:$0xe]  ;;  %v10576_v38 = vrot.slane %v10574_v54, 4 }
 0x5f5   :  { %24164 = vst [vmem:[#allocation65_spill] sm:$0xff] %v20725_v53  ;;  %14879 = vmatprep.mubr.msk.bf16.mxu1 %vm478_vm5, %v13695_v3  ;;  %v20728_v34 = vpop.f32.mrb[85].mxu0  ;;  %v10564_v3 = vsel %vm19573_vm15, %v10562_v25, %v10563_v39  ;;  %v15842_v53 = vld [vmem:[#allocation2 + $0xd4] sm:$0x1]  ;;  %v10568_v25 = vsel %vm19573_vm15, %v13662_v41, %v10567_v44  ;;  %v15843_v39 = vld [vmem:[#allocation2 + $0xf8] sm:$0x1] }
 0x5f6   :  { %24165 = vst [vmem:[#allocation30_spill] sm:$0xff] %v20728_v34  ;;  %v20730_v1 = vpop.f32.mrb[86].mxu0  ;;  %v10554_v34 = vsel %vm19573_vm15, %v13660_v59, %v10553_v19  ;;  %v10570_v4 = vrot.slane %v15842_v53, 5  ;;  %v13663_v59 = vrot.slane %v10348_v14, 9  ;;  %v10577_v53 = vrot.slane %v15843_v39, 5 }
 0x5f7   :  { %24166 = vst [vmem:[#allocation66_spill] sm:$0xff] %v20730_v1  ;;  %v20734_v11 = vpop.f32.mrb[87].mxu0  ;;  %v13696_v22 = vcombine.low %v10554_v34, %v10557_v63  ;;  %v10561_v1 = vsel %vm19573_vm15, %v13661_v58, %v10560_v62  ;;  %v15844_v34 = vld [vmem:[#allocation2 + $0x100] sm:$0xf]  ;;  %v15845_v58 = vld [vmem:[#allocation2 + $0x10c] sm:$0xf] }
 0x5f8   :  { %v13697_v5 = vcombine.low %v10561_v1, %v10564_v3  ;;  %v10571_v19 = vsel %vm19573_vm15, %v10569_v46, %v10570_v4  ;;  %v10581_v2 = vrot.slane %v15844_v34, 5  ;;  %v10578_v62 = vsel %vm19573_vm15, %v10576_v38, %v10577_v53  ;;  %v10349_v1 = vld [vmem:[#allocation2 + $0xfc] sm:$0xe]  ;;  %v15846_v4 = vld [vmem:[#allocation2 + $0x104] sm:$0x1] }
 0x5f9   :  { %v13698_v63 = vcombine.low %v10568_v25, %v10571_v19  ;;  %v13664_v46 = vrot.slane %v10349_v1, 9  ;;  %v10584_v14 = vrot.slane %v15846_v4, 5  ;;  %v13665_v25 = vrot.slane %v10350_v7, 9  ;;  %v15847_v19 = vld [vmem:[#allocation2 + $0x110] sm:$0x1] }
 0x5fa   :  { %v10583_v44 = vrot.slane %v10581_v2, 4  ;;  %v10591_v38 = vrot.slane %v15847_v19, 5  ;;  %v15848_v53 = vld [vmem:[#allocation2 + $0x118] sm:$0xf]  ;;  %v15849_v34 = vld [vmem:[#allocation2 + $0x124] sm:$0xf] }
 0x5fb   :  { %v10351_v1 = vld [vmem:[#allocation2 + $0x114] sm:$0xe]  ;;  %v10352_v4 = vld [vmem:[#allocation2 + $0x120] sm:$0xe] }
 0x5fc   :  { %14880 = vmatmul.mubr.msk.bf16.gmra.mrb[0].mxu1 %vm478_vm5, %v13696_v22  ;;  %v10588_v22 = vrot.slane %v15845_v58, 5  ;;  %v10585_v39 = vsel %vm19573_vm15, %v10583_v44, %v10584_v14  ;;  %v13666_v14 = vrot.slane %v10351_v1, 9  ;;  %v13667_v19 = vrot.slane %v10352_v4, 9 }
 0x5fd   :  { %14883 = vmatprep.mubr.msk.bf16.mxu1 %vm478_vm5, %v13697_v5  ;;  %v10575_v5 = vsel %vm19573_vm15, %v13663_v59, %v10574_v54  ;;  %v10595_v54 = vrot.slane %v15848_v53, 5  ;;  %v10619_v1 = vrot.slane %v20411_v31, 5 }
 0x5fe   :  { %v13699_v3 = vcombine.low %v10575_v5, %v10578_v62  ;;  %v10590_v41 = vrot.slane %v10588_v22, 4  ;;  %v10602_v62 = vrot.slane %v15849_v34, 5  ;;  %v10589_v5 = vsel %vm19573_vm15, %v13665_v25, %v10588_v22 }
 0x5ff   :  { %v10597_v7 = vrot.slane %v10595_v54, 4  ;;  %v10609_v22 = vrot.slane %v20360_v48, 5  ;;  %v10616_v25 = vrot.slane %v20375_v8, 5 }
 0x600   :  { %v10592_v59 = vsel %vm19573_vm15, %v10590_v41, %v10591_v38  ;;  %v10604_v44 = vrot.slane %v10602_v62, 4  ;;  %v10598_v41 = vrot.slane %v20358_v60, 5  ;;  %v10605_v38 = vrot.slane %v20366_v16, 5 }
 0x601   :  { %v10603_v60 = vsel %vm19573_vm15, %v13667_v19, %v10602_v62  ;;  %v10611_v16 = vrot.slane %v10609_v22, 4  ;;  %v10623_v62 = vrot.slane %v20389_v6, 5  ;;  %v10356_v19 = vld [vmem:[#allocation2 + $0x150] sm:$0xe] }
 0x603   :  { %v10625_v31 = vrot.slane %v10623_v62, 4 }
 0x604   :  { %14884 = vmatmul.mubr.msk.bf16.gmra.mrb[4].mxu1 %vm478_vm5, %v13698_v63  ;;  %v10582_v63 = vsel %vm19573_vm15, %v13664_v46, %v10581_v2  ;;  %v10599_v2 = vsel %vm19573_vm15, %v10597_v7, %v10598_v41  ;;  %v10606_v46 = vsel %vm19573_vm15, %v10604_v44, %v10605_v38  ;;  %v10630_v7 = vrot.slane %v20422_v20, 5 }
 0x605   :  { %14887 = vmatprep.mubr.msk.bf16.mxu1 %vm478_vm5, %v13699_v3  ;;  %v13700_v58 = vcombine.low %v10582_v63, %v10585_v39  ;;  %v13701_v3 = vcombine.low %v10589_v5, %v10592_v59  ;;  %v10596_v39 = vsel %vm19573_vm15, %v13666_v14, %v10595_v54  ;;  %v10353_v59 = vld [vmem:[#allocation2 + $0x12c] sm:$0xe]  ;;  %v13703_v34 = vcombine.low %v10603_v60, %v10606_v46  ;;  %v10354_v63 = vld [vmem:[#allocation2 + $0x138] sm:$0xe]  ;;  %v10355_v14 = vld [vmem:[#allocation2 + $0x144] sm:$0xe] }
 0x606   :  { %v13702_v53 = vcombine.low %v10596_v39, %v10599_v2  ;;  %v13668_v48 = vrot.slane %v10353_v59, 9  ;;  %v10612_v5 = vrot.slane %v20399_v17, 5  ;;  %v13669_v8 = vrot.slane %v10354_v63, 9  ;;  %v10358_v63 = vld [vmem:[#allocation2 + $0x168] sm:$0xe] }
 0x607   :  { %v10632_v38 = vrot.slane %v10630_v7, 4  ;;  %v13670_v6 = vrot.slane %v10355_v14, 9  ;;  %v10626_v2 = vrot.slane %v20433_v42, 5  ;;  %v13671_v20 = vrot.slane %v10356_v19, 9 }
 0x608   :  { %v10613_v54 = vsel %vm19573_vm15, %v10611_v16, %v10612_v5  ;;  %v10610_v4 = vsel %vm19573_vm15, %v13668_v48, %v10609_v22  ;;  %v10617_v17 = vsel %vm19573_vm15, %v13669_v8, %v10616_v25  ;;  %v10633_v46 = vrot.slane %v20448_v57, 5 }
 0x609   :  { %v13704_v44 = vcombine.low %v10610_v4, %v10613_v54  ;;  %v10627_v22 = vsel %vm19573_vm15, %v10625_v31, %v10626_v2  ;;  %v10624_v60 = vsel %vm19573_vm15, %v13670_v6, %v10623_v62  ;;  %v10631_v42 = vsel %vm19573_vm15, %v13671_v20, %v10630_v7  ;;  %v10359_v4 = vld [vmem:[#allocation2 + $0x174] sm:$0xe] }
 0x60a   :  { %v10634_v39 = vsel %vm19573_vm15, %v10632_v38, %v10633_v46  ;;  %v13706_v59 = vcombine.low %v10624_v60, %v10627_v22  ;;  %v10640_v48 = vrot.slane %v20486_v12, 5  ;;  %v10647_v5 = vrot.slane %v20492_v10, 5 }
 0x60b   :  { %v13707_v16 = vcombine.low %v10631_v42, %v10634_v39  ;;  %v10658_v62 = vrot.slane %v20494_v0, 5  ;;  %v10661_v31 = vrot.slane %v20541_v15, 5  ;;  %v10363_v15 = vld [vmem:[#allocation2 + $0x1a4] sm:$0xe]  ;;  %v10682_v39 = vrot.slane %v20577_v29, 5 }
 0x60c   :  { %14888 = vmatmul.mubr.msk.bf16.gmra.mrb[8].mxu1 %vm478_vm5, %v13700_v58  ;;  %v10618_v58 = vrot.slane %v10616_v25, 4  ;;  %v10637_v25 = vrot.slane %v20441_v27, 5  ;;  %v13678_v22 = vrot.slane %v10363_v15, 9  ;;  %v24168_v60 = vcombine.low %v20303_v36, %v20307_v43 }
 0x60d   :  { %14891 = vmatprep.mubr.msk.bf16.mxu1 %vm478_vm5, %v13701_v3  ;;  %v10660_v14 = vrot.slane %v10658_v62, 4 }
 0x60e   :  { %v10620_v3 = vsel %vm19573_vm15, %v10618_v58, %v10619_v1  ;;  %v10639_v57 = vrot.slane %v10637_v25, 4  ;;  %v10651_v1 = vrot.slane %v20484_v18, 5  ;;  %v13674_v18 = vrot.slane %v10359_v4, 9 }
 0x60f   :  { %v13705_v41 = vcombine.low %v10617_v17, %v10620_v3  ;;  %v10360_v17 = vld [vmem:[#allocation2 + $0x180] sm:$0xe]  ;;  %v10662_v38 = vsel %vm19573_vm15, %v10660_v14, %v10661_v31 }
 0x610   :  { %v10641_v8 = vsel %vm19573_vm15, %v10639_v57, %v10640_v48  ;;  %v10653_v10 = vrot.slane %v10651_v1, 4  ;;  %v13675_v0 = vrot.slane %v10360_v17, 9  ;;  %v10652_v6 = vsel %vm19573_vm15, %v13674_v18, %v10651_v1 }
 0x612   :  { %v10659_v20 = vsel %vm19573_vm15, %v13675_v0, %v10658_v62 }
 0x613   :  { %v13711_v46 = vcombine.low %v10659_v20, %v10662_v38 }
 0x614   :  { %14892 = vmatmul.mubr.msk.bf16.gmra.mrb[12].mxu1 %vm478_vm5, %v13702_v53  ;;  %v10644_v53 = vrot.slane %v20452_v32, 5  ;;  %v13673_v32 = vrot.slane %v10358_v63, 9 }
 0x615   :  { %14895 = vmatprep.mubr.msk.bf16.mxu1 %vm478_vm5, %v13703_v34  ;;  %v10357_v34 = vld [vmem:[#allocation2 + $0x15c] sm:$0xe] }
 0x616   :  { %v10646_v58 = vrot.slane %v10644_v53, 4  ;;  %v13672_v27 = vrot.slane %v10357_v34, 9  ;;  %v10645_v12 = vsel %vm19573_vm15, %v13673_v32, %v10644_v53  ;;  %v24167_v53 = vcombine.low %v20288_v52, %v20292_v56 }
 0x618   :  { %v10648_v54 = vsel %vm19573_vm15, %v10646_v58, %v10647_v5  ;;  %v10638_v3 = vsel %vm19573_vm15, %v13672_v27, %v10637_v25 }
 0x619   :  { %v13708_v7 = vcombine.low %v10638_v3, %v10641_v8 }
 0x61c   :  { %14896 = vmatmul.mubr.msk.bf16.gmra.mrb[16].mxu1 %vm478_vm5, %v13704_v44  ;;  %v13709_v44 = vcombine.low %v10645_v12, %v10648_v54 }
 0x61d   :  { %14899 = vmatprep.mubr.msk.bf16.mxu1 %vm478_vm5, %v13705_v41  ;;  %v10654_v41 = vrot.slane %v20517_v13, 5  ;;  %v10679_v13 = vrot.slane %v20551_v40, 5 }
 0x61f   :  { %v10655_v19 = vsel %vm19573_vm15, %v10653_v10, %v10654_v41  ;;  %v10681_v25 = vrot.slane %v10679_v13, 4 }
 0x620   :  { %v13710_v2 = vcombine.low %v10652_v6, %v10655_v19 }
 0x621   :  { %v10683_v40 = vsel %vm19573_vm15, %v10681_v25, %v10682_v39 }
 0x624   :  { %14900 = vmatmul.mubr.msk.bf16.gmra.mrb[20].mxu1 %vm478_vm5, %v13706_v59  ;;  %v10680_v59 = vsel %vm19573_vm15, %v13678_v22, %v10679_v13 }
 0x625   :  { %14903 = vmatprep.mubr.msk.bf16.mxu1 %vm478_vm5, %v13707_v16  ;;  %v13714_v42 = vcombine.low %v10680_v59, %v10683_v40 }
 0x62c   :  { %14904 = vmatmul.mubr.msk.bf16.gmra.mrb[24].mxu1 %vm478_vm5, %v13708_v7 }
 0x62d   :  { %14907 = vmatprep.mubr.msk.bf16.mxu1 %vm478_vm5, %v13709_v44 }
 0x634   :  { %14908 = vmatmul.mubr.msk.bf16.gmra.mrb[28].mxu1 %vm478_vm5, %v13710_v2 }
 0x635   :  { %14911 = vmatprep.mubr.msk.bf16.mxu1 %vm478_vm5, %v13711_v46 }
 0x63c   :  { %14912 = vmatmul.mubr.msk.bf16.gmra.mrb[32].mxu1 %vm478_vm5, %v24167_v53 }
 0x63d   :  { %14915 = vmatprep.mubr.msk.bf16.mxu1 %vm478_vm5, %v24168_v60 }
 0x644   :  { %14916 = vmatmul.mubr.msk.bf16.gmra.mrb[36].mxu1 %vm478_vm5, %v13714_v42 }
 0x69f   :  { %v14857_v29 = vpop.f32.mrb[40].mxu1 }
 0x6a0   :  { %v20848_v34 = vadd.f32 %v14857_v29, %v20635_v51  ;;  %v10927_v52 = vpop.f32.mrb[41].mxu1 }
 0x6a1   :  { %v20851_v56 = vadd.f32 %v10927_v52, %v20638_v33  ;;  %v14858_v36 = vpop.f32.mrb[42].mxu1  ;;  %v24169_v52 = vld [vmem:[#allocation62_spill] sm:$0xff] }
 0x6a2   :  { %v20854_v43 = vadd.f32 %v14858_v36, %v20640_v35  ;;  %v10930_v16 = vpop.f32.mrb[43].mxu1  ;;  %v11250_v58 = vsel %vm478_vm5, %v20848_v34, 0.0 }
 0x6a3   :  { %v20857_v57 = vadd.f32 %v10930_v16, %v20644_v37  ;;  %v11247_v23 = vsel %vm478_vm5, %v20851_v56, 0.0 }
 0x6a4   :  { %v11252_v37 = vsel %vm478_vm5, %v20854_v43, 0.0 }
 0x6a5   :  { %v11248_v63 = vsel %vm478_vm5, %v20857_v57, 0.0 }
 0x6a6   :  { %v11249_v51 = vadd.f32 %v11248_v63, %v11247_v23  ;;  %v24170_v23 = vld [vmem:[#allocation25_spill] sm:$0xff] }
 0x6a7   :  { %v14861_v33 = vpop.f32.mrb[44].mxu1 }
 0x6a8   :  { %v11251_v27 = vadd.f32 %v11250_v58, %v11249_v51  ;;  %v20866_v48 = vadd.f32 %v14861_v33, %v20653_v55  ;;  %v10943_v35 = vpop.f32.mrb[45].mxu1  ;;  %v24171_v58 = vld [vmem:[#allocation64_spill] sm:$0xff] }
 0x6a9   :  { %v20871_v32 = vadd.f32 %v10943_v35, %v20656_v61  ;;  %v14862_v5 = vpop.f32.mrb[46].mxu1 }
 0x6aa   :  { %v11253_v8 = vadd.f32 %v11252_v37, %v11251_v27  ;;  %v20874_v1 = vadd.f32 %v14862_v5, %v20658_v45  ;;  %v10946_v54 = vpop.f32.mrb[47].mxu1  ;;  %v11258_v61 = vsel %vm478_vm5, %v20866_v48, 0.0  ;;  %v24172_v37 = vld [vmem:[#allocation26_spill] sm:$0xff] }
 0x6ab   :  { %v11254_v62 = vsel %vm478_vm5, %v20871_v32, 0.0  ;;  %v20879_v3 = vadd.f32 %v10946_v54, %v20662_v9 }
 0x6ac   :  { %v11255_v55 = vadd.f32 %v11254_v62, %v11253_v8  ;;  %v11260_v17 = vsel %vm478_vm5, %v20874_v1, 0.0 }
 0x6ad   :  { %v11256_v7 = vsel %vm478_vm5, %v20879_v3, 0.0 }
 0x6ae   :  { %v11257_v12 = vadd.f32 %v11256_v7, %v11255_v55 }
 0x6af   :  { %v14865_v4 = vpop.f32.mrb[48].mxu1 }
 0x6b0   :  { %v11259_v44 = vadd.f32 %v11258_v61, %v11257_v12  ;;  %v20886_v45 = vadd.f32 %v14865_v4, %v20671_v26  ;;  %v10959_v10 = vpop.f32.mrb[49].mxu1  ;;  %v24173_v61 = vld [vmem:[#allocation65_spill] sm:$0xff] }
 0x6b1   :  { %v20891_v9 = vadd.f32 %v10959_v10, %v20674_v28  ;;  %v14866_v14 = vpop.f32.mrb[50].mxu1 }
 0x6b2   :  { %v11261_v18 = vadd.f32 %v11260_v17, %v11259_v44  ;;  %v20894_v41 = vadd.f32 %v14866_v14, %v20676_v47  ;;  %v10962_v0 = vpop.f32.mrb[51].mxu1  ;;  %v11266_v28 = vsel %vm478_vm5, %v20886_v45, 0.0  ;;  %v24174_v17 = vld [vmem:[#allocation30_spill] sm:$0xff] }
 0x6b3   :  { %v11262_v31 = vsel %vm478_vm5, %v20891_v9, 0.0  ;;  %v20899_v19 = vadd.f32 %v10962_v0, %v20680_v21 }
 0x6b4   :  { %v11263_v26 = vadd.f32 %v11262_v31, %v11261_v18  ;;  %v11268_v13 = vsel %vm478_vm5, %v20894_v41, 0.0  ;;  %v24175_v31 = vld [vmem:[#allocation66_spill] sm:$0xff] }
 0x6b5   :  { %v11264_v38 = vsel %vm478_vm5, %v20899_v19, 0.0 }
 0x6b6   :  { %v11265_v6 = vadd.f32 %v11264_v38, %v11263_v26 }
 0x6b7   :  { %v14869_v2 = vpop.f32.mrb[52].mxu1 }
 0x6b8   :  { %v11267_v20 = vadd.f32 %v11266_v28, %v11265_v6  ;;  %v20906_v47 = vadd.f32 %v14869_v2, %v20689_v50  ;;  %v10975_v46 = vpop.f32.mrb[53].mxu1 }
 0x6b9   :  { %v20911_v21 = vadd.f32 %v10975_v46, %v20692_v30  ;;  %v14870_v15 = vpop.f32.mrb[54].mxu1 }
 0x6ba   :  { %v11269_v22 = vadd.f32 %v11268_v13, %v11267_v20  ;;  %v20914_v25 = vadd.f32 %v14870_v15, %v20694_v24  ;;  %v10978_v39 = vpop.f32.mrb[55].mxu1  ;;  %v11274_v30 = vsel %vm478_vm5, %v20906_v47, 0.0 }
 0x6bb   :  { %v11270_v53 = vsel %vm478_vm5, %v20911_v21, 0.0  ;;  %v20919_v60 = vadd.f32 %v10978_v39, %v20698_v49  ;;  %v24176_v39 = vld [vmem:[#allocation18_spill] sm:$0xff] }
 0x6bc   :  { %v11271_v50 = vadd.f32 %v11270_v53, %v11269_v22  ;;  %v11276_v16 = vsel %vm478_vm5, %v20914_v25, 0.0 }
 0x6bd   :  { %v11272_v59 = vsel %vm478_vm5, %v20919_v60, 0.0 }
 0x6be   :  { %v11273_v40 = vadd.f32 %v11272_v59, %v11271_v50 }
 0x6bf   :  { %v14873_v42 = vpop.f32.mrb[56].mxu1 }
 0x6c0   :  { %v11275_v29 = vadd.f32 %v11274_v30, %v11273_v40  ;;  %v20926_v24 = vadd.f32 %v14873_v42, %v24169_v52  ;;  %v10991_v36 = vpop.f32.mrb[57].mxu1  ;;  %v24177_v40 = vld [vmem:[#allocation20_spill] sm:$0xff] }
 0x6c1   :  { %v20931_v49 = vadd.f32 %v10991_v36, %v24170_v23  ;;  %v14874_v63 = vpop.f32.mrb[58].mxu1  ;;  %v24179_v23 = vld [vmem:[#allocation17_spill] sm:$0xff] }
 0x6c2   :  { %v11277_v51 = vadd.f32 %v11276_v16, %v11275_v29  ;;  %v20934_v33 = vadd.f32 %v14874_v63, %v24171_v58  ;;  %v10994_v27 = vpop.f32.mrb[59].mxu1  ;;  %v11282_v55 = vsel %vm478_vm5, %v20926_v24, 0.0  ;;  %v24178_v29 = vld [vmem:[#allocation87_spill] sm:$0xff] }
 0x6c3   :  { %v11278_v35 = vsel %vm478_vm5, %v20931_v49, 0.0  ;;  %v20939_v5 = vadd.f32 %v10994_v27, %v24172_v37 }
 0x6c4   :  { %v11279_v8 = vadd.f32 %v11278_v35, %v11277_v51  ;;  %v11284_v10 = vsel %vm478_vm5, %v20934_v33, 0.0 }
 0x6c5   :  { %v11280_v54 = vsel %vm478_vm5, %v20939_v5, 0.0 }
 0x6c6   :  { %v11281_v62 = vadd.f32 %v11280_v54, %v11279_v8  ;;  %v24180_v54 = vld [vmem:[#allocation19_spill] sm:$0xff] }
 0x6c7   :  { %v14877_v7 = vpop.f32.mrb[60].mxu1 }
 0x6c8   :  { %v11283_v12 = vadd.f32 %v11282_v55, %v11281_v62  ;;  %v20946_v4 = vadd.f32 %v14877_v7, %v24173_v61  ;;  %v11007_v44 = vpop.f32.mrb[61].mxu1 }
 0x6c9   :  { %v20951_v14 = vadd.f32 %v11007_v44, %v24174_v17  ;;  %v14878_v18 = vpop.f32.mrb[62].mxu1  ;;  %v24183_v17 = vld [vmem:[#allocation45_spill] sm:$0xff] }
 0x6ca   :  { %v11285_v0 = vadd.f32 %v11284_v10, %v11283_v12  ;;  %v20954_v26 = vadd.f32 %v14878_v18, %v24175_v31  ;;  %v11010_v38 = vpop.f32.mrb[63].mxu1  ;;  %v11290_v13 = vsel %vm478_vm5, %v20946_v4, 0.0  ;;  %v24182_v12 = vld [vmem:[#allocation22_spill] sm:$0xff] }
 0x6cb   :  { %v11286_v6 = vsel %vm478_vm5, %v20951_v14, 0.0  ;;  %v20959_v28 = vadd.f32 %v11010_v38, %v20734_v11  ;;  %v24185_v38 = vld [vmem:[#allocation46_spill] sm:$0xff] }
 0x6cc   :  { %v11287_v2 = vadd.f32 %v11286_v6, %v11285_v0  ;;  %v11292_v59 = vsel %vm478_vm5, %v20954_v26, 0.0 }
 0x6cd   :  { %v11288_v20 = vsel %vm478_vm5, %v20959_v28, 0.0 }
 0x6ce   :  { %v11289_v46 = vadd.f32 %v11288_v20, %v11287_v2 }
 0x6cf   :  { %v14881_v15 = vpop.f32.mrb[0].mxu1 }
 0x6d0   :  { %v11291_v22 = vadd.f32 %v11290_v13, %v11289_v46  ;;  %v20966_v53 = vadd.f32 %v14881_v15, %v24176_v39  ;;  %v11023_v50 = vpop.f32.mrb[1].mxu1  ;;  %v24187_v39 = vld [vmem:[#allocation47_spill] sm:$0xff] }
 0x6d1   :  { %v20971_v11 = vadd.f32 %v11023_v50, %v24177_v40  ;;  %v14882_v30 = vpop.f32.mrb[2].mxu1 }
 0x6d2   :  { %v11293_v42 = vadd.f32 %v11292_v59, %v11291_v22  ;;  %v20974_v52 = vadd.f32 %v14882_v30, %v24178_v29  ;;  %v11026_v36 = vpop.f32.mrb[3].mxu1  ;;  %v11298_v35 = vsel %vm478_vm5, %v20966_v53, 0.0  ;;  %v24189_v30 = vld [vmem:[#allocation48_spill] sm:$0xff] }
 0x6d3   :  { %v11294_v16 = vsel %vm478_vm5, %v20971_v11, 0.0  ;;  %v20979_v63 = vadd.f32 %v11026_v36, %v24179_v23 }
 0x6d4   :  { %v11295_v51 = vadd.f32 %v11294_v16, %v11293_v42  ;;  %v11300_v7 = vsel %vm478_vm5, %v20974_v52, 0.0  ;;  %v24191_v16 = vld [vmem:[#allocation49_spill] sm:$0xff] }
 0x6d5   :  { %v11296_v58 = vsel %vm478_vm5, %v20979_v63, 0.0 }
 0x6d6   :  { %v11297_v27 = vadd.f32 %v11296_v58, %v11295_v51 }
 0x6d7   :  { %v14885_v37 = vpop.f32.mrb[4].mxu1 }
 0x6d8   :  { %v11299_v8 = vadd.f32 %v11298_v35, %v11297_v27  ;;  %v20986_v62 = vadd.f32 %v14885_v37, %v24180_v54  ;;  %v11039_v55 = vpop.f32.mrb[5].mxu1  ;;  %v24193_v27 = vld [vmem:[#allocation50_spill] sm:$0xff] }
 0x6d9   :  { %v20991_v61 = vadd.f32 %v11039_v55, %v24182_v12  ;;  %v14886_v44 = vpop.f32.mrb[6].mxu1 }
 0x6da   :  { %24181 = vst [vmem:[#allocation63_spill] sm:$0xff] %v20986_v62  ;;  %v11301_v10 = vadd.f32 %v11300_v7, %v11299_v8  ;;  %v20994_v18 = vadd.f32 %v14886_v44, %v24183_v17  ;;  %v11042_v0 = vpop.f32.mrb[7].mxu1  ;;  %v11306_v13 = vsel %vm478_vm5, %v20986_v62, 0.0  ;;  %v24195_v44 = vld [vmem:[#allocation24_spill] sm:$0xff] }
 0x6db   :  { %v11302_v31 = vsel %vm478_vm5, %v20991_v61, 0.0  ;;  %v20999_v6 = vadd.f32 %v11042_v0, %v24185_v38 }
 0x6dc   :  { %24184 = vst [vmem:[#allocation67_spill] sm:$0xff] %v20994_v18  ;;  %v11303_v2 = vadd.f32 %v11302_v31, %v11301_v10  ;;  %v11308_v40 = vsel %vm478_vm5, %v20994_v18, 0.0  ;;  %v24197_v31 = vld [vmem:[#allocation51_spill] sm:$0xff] }
 0x6dd   :  { %24186 = vst [vmem:[#allocation27_spill] sm:$0xff] %v20999_v6  ;;  %v11304_v20 = vsel %vm478_vm5, %v20999_v6, 0.0 }
 0x6de   :  { %v11305_v46 = vadd.f32 %v11304_v20, %v11303_v2 }
 0x6df   :  { %v14889_v15 = vpop.f32.mrb[8].mxu1 }
 0x6e0   :  { %v11307_v22 = vadd.f32 %v11306_v13, %v11305_v46  ;;  %v21006_v50 = vadd.f32 %v14889_v15, %v24187_v39  ;;  %v11055_v59 = vpop.f32.mrb[9].mxu1  ;;  %v24199_v46 = vld [vmem:[#allocation52_spill] sm:$0xff]  ;;  %v24201_v39 = vld [vmem:[#allocation53_spill] sm:$0xff] }
 0x6e1   :  { %v21011_v42 = vadd.f32 %v11055_v59, %v24189_v30  ;;  %v14890_v29 = vpop.f32.mrb[10].mxu1 }
 0x6e2   :  { %24188 = vst [vmem:[#allocation68_spill] sm:$0xff] %v21006_v50  ;;  %v11309_v36 = vadd.f32 %v11308_v40, %v11307_v22  ;;  %v21014_v23 = vadd.f32 %v14890_v29, %v24191_v16  ;;  %v11058_v51 = vpop.f32.mrb[11].mxu1  ;;  %v11314_v55 = vsel %vm478_vm5, %v21006_v50, 0.0  ;;  %v24230_v50 = vld [vmem:[#allocation59_spill] sm:$0xff] }
 0x6e3   :  { %24190 = vst [vmem:[#allocation8_spill] sm:$0xff] %v21011_v42  ;;  %v11310_v58 = vsel %vm478_vm5, %v21011_v42, 0.0  ;;  %v21019_v35 = vadd.f32 %v11058_v51, %v24193_v27  ;;  %v24232_v42 = vld [vmem:[#allocation61_spill] sm:$0xff] }
 0x6e4   :  { %24192 = vst [vmem:[#allocation69_spill] sm:$0xff] %v21014_v23  ;;  %v11311_v37 = vadd.f32 %v11310_v58, %v11309_v36  ;;  %v11316_v0 = vsel %vm478_vm5, %v21014_v23, 0.0  ;;  %v24203_v58 = vld [vmem:[#allocation54_spill] sm:$0xff] }
 0x6e5   :  { %24194 = vst [vmem:[#allocation10_spill] sm:$0xff] %v21019_v35  ;;  %v11312_v8 = vsel %vm478_vm5, %v21019_v35, 0.0 }
 0x6e6   :  { %v11313_v54 = vadd.f32 %v11312_v8, %v11311_v37 }
 0x6e7   :  { %v14893_v7 = vpop.f32.mrb[12].mxu1 }
 0x6e8   :  { %v11315_v12 = vadd.f32 %v11314_v55, %v11313_v54  ;;  %v21026_v10 = vadd.f32 %v14893_v7, %v24195_v44  ;;  %v11071_v17 = vpop.f32.mrb[13].mxu1  ;;  %v24205_v54 = vld [vmem:[#allocation101_spill] sm:$0xff]  ;;  %v24207_v44 = vld [vmem:[#allocation55_spill] sm:$0xff] }
 0x6e9   :  { %v21031_v38 = vadd.f32 %v11071_v17, %v24197_v31  ;;  %v14894_v2 = vpop.f32.mrb[14].mxu1 }
 0x6ea   :  { %24196 = vst [vmem:[#allocation70_spill] sm:$0xff] %v21026_v10  ;;  %v11317_v20 = vadd.f32 %v11316_v0, %v11315_v12  ;;  %v21034_v13 = vadd.f32 %v14894_v2, %v24199_v46  ;;  %v11074_v15 = vpop.f32.mrb[15].mxu1  ;;  %v11322_v36 = vsel %vm478_vm5, %v21026_v10, 0.0  ;;  %v24209_v2 = vld [vmem:[#allocation57_spill] sm:$0xff] }
 0x6eb   :  { %24198 = vst [vmem:[#allocation12_spill] sm:$0xff] %v21031_v38  ;;  %v11318_v22 = vsel %vm478_vm5, %v21031_v38, 0.0  ;;  %v21039_v59 = vadd.f32 %v11074_v15, %v24201_v39  ;;  %v24226_v10 = vld [vmem:[#allocation97_spill] sm:$0xff]  ;;  %v24228_v38 = vld [vmem:[#allocation83_spill] sm:$0xff] }
 0x6ec   :  { %24200 = vst [vmem:[#allocation71_spill] sm:$0xff] %v21034_v13  ;;  %v11319_v40 = vadd.f32 %v11318_v22, %v11317_v20  ;;  %v11324_v8 = vsel %vm478_vm5, %v21034_v13, 0.0 }
 0x6ed   :  { %24202 = vst [vmem:[#allocation11_spill] sm:$0xff] %v21039_v59  ;;  %v11320_v30 = vsel %vm478_vm5, %v21039_v59, 0.0 }
 0x6ee   :  { %v11321_v29 = vadd.f32 %v11320_v30, %v11319_v40 }
 0x6ef   :  { %v14897_v16 = vpop.f32.mrb[16].mxu1 }
 0x6f0   :  { %v11323_v51 = vadd.f32 %v11322_v36, %v11321_v29  ;;  %v21046_v27 = vadd.f32 %v14897_v16, %v24203_v58  ;;  %v11087_v37 = vpop.f32.mrb[17].mxu1  ;;  %v24211_v29 = vld [vmem:[#allocation6_spill] sm:$0xff]  ;;  %v24213_v58 = vld [vmem:[#allocation84_spill] sm:$0xff] }
 0x6f1   :  { %v21051_v55 = vadd.f32 %v11087_v37, %v24205_v54  ;;  %v14898_v7 = vpop.f32.mrb[18].mxu1 }
 0x6f2   :  { %24204 = vst [vmem:[#allocation72_spill] sm:$0xff] %v21046_v27  ;;  %v11325_v12 = vadd.f32 %v11324_v8, %v11323_v51  ;;  %v21054_v17 = vadd.f32 %v14898_v7, %v24207_v44  ;;  %v11090_v0 = vpop.f32.mrb[19].mxu1  ;;  %v11330_v39 = vsel %vm478_vm5, %v21046_v27, 0.0  ;;  %v24215_v7 = vld [vmem:[#allocation58_spill] sm:$0xff] }
 0x6f3   :  { %24206 = vst [vmem:[#allocation28_spill] sm:$0xff] %v21051_v55  ;;  %v11326_v31 = vsel %vm478_vm5, %v21051_v55, 0.0  ;;  %v21059_v20 = vadd.f32 %v11090_v0, %v24209_v2 }
 0x6f4   :  { %24208 = vst [vmem:[#allocation73_spill] sm:$0xff] %v21054_v17  ;;  %v11327_v46 = vadd.f32 %v11326_v31, %v11325_v12  ;;  %v11332_v51 = vsel %vm478_vm5, %v21054_v17, 0.0  ;;  %v24217_v31 = vld [vmem:[#allocation29_spill] sm:$0xff] }
 0x6f5   :  { %24210 = vst [vmem:[#allocation31_spill] sm:$0xff] %v21059_v20  ;;  %v11328_v15 = vsel %vm478_vm5, %v21059_v20, 0.0 }
 0x6f6   :  { %v11329_v22 = vadd.f32 %v11328_v15, %v11327_v46 }
 0x6f7   :  { %v14901_v40 = vpop.f32.mrb[20].mxu1 }
 0x6f8   :  { %v11331_v30 = vadd.f32 %v11330_v39, %v11329_v22  ;;  %v21066_v36 = vadd.f32 %v14901_v40, %v24211_v29  ;;  %v11103_v16 = vpop.f32.mrb[21].mxu1  ;;  %v24218_v29 = vld [vmem:[#allocation60_spill] sm:$0xff] }
 0x6f9   :  { %v21071_v37 = vadd.f32 %v11103_v16, %v24213_v58  ;;  %v14902_v8 = vpop.f32.mrb[22].mxu1 }
 0x6fa   :  { %24212 = vst [vmem:[#allocation75_spill] sm:$0xff] %v21066_v36  ;;  %v11333_v54 = vadd.f32 %v11332_v51, %v11331_v30  ;;  %v21074_v12 = vadd.f32 %v14902_v8, %v24215_v7  ;;  %v11106_v44 = vpop.f32.mrb[23].mxu1  ;;  %v11338_v39 = vsel %vm478_vm5, %v21066_v36, 0.0  ;;  %v24219_v8 = vld [vmem:[#allocation41_spill] sm:$0xff] }
 0x6fb   :  { %24214 = vst [vmem:[#allocation32_spill] sm:$0xff] %v21071_v37  ;;  %v11334_v0 = vsel %vm478_vm5, %v21071_v37, 0.0  ;;  %v21079_v2 = vadd.f32 %v11106_v44, %v24217_v31  ;;  %v24223_v37 = vld [vmem:[#allocation14_spill] sm:$0xff] }
 0x6fc   :  { %24216 = vst [vmem:[#allocation76_spill] sm:$0xff] %v21074_v12  ;;  %v11335_v46 = vadd.f32 %v11334_v0, %v11333_v54  ;;  %v11340_v58 = vsel %vm478_vm5, %v21074_v12, 0.0  ;;  %v24220_v0 = vld [vmem:[#allocation89_spill] sm:$0xff] }
 0x6fd   :  { %v11336_v15 = vsel %vm478_vm5, %v21079_v2, 0.0 }
 0x6fe   :  { %v11337_v22 = vadd.f32 %v11336_v15, %v11335_v46 }
 0x6ff   :  { %v14905_v40 = vpop.f32.mrb[24].mxu1 }
 0x700   :  { %v11339_v30 = vadd.f32 %v11338_v39, %v11337_v22  ;;  %v21086_v16 = vadd.f32 %v14905_v40, %v24218_v29  ;;  %v11119_v51 = vpop.f32.mrb[25].mxu1  ;;  %v24221_v22 = vld [vmem:[#allocation43_spill] sm:$0xff] }
 0x701   :  { %v21091_v7 = vadd.f32 %v11119_v51, %v24219_v8  ;;  %v14906_v54 = vpop.f32.mrb[26].mxu1 }
 0x702   :  { %v11341_v44 = vadd.f32 %v11340_v58, %v11339_v30  ;;  %v21094_v31 = vadd.f32 %v14906_v54, %v24220_v0  ;;  %v11122_v46 = vpop.f32.mrb[27].mxu1  ;;  %v11346_v51 = vsel %vm478_vm5, %v21086_v16, 0.0  ;;  %v24222_v58 = vld [vmem:[#allocation91_spill] sm:$0xff] }
 0x703   :  { %v11342_v15 = vsel %vm478_vm5, %v21091_v7, 0.0  ;;  %v21099_v39 = vadd.f32 %v11122_v46, %v24221_v22 }
 0x704   :  { %v11343_v40 = vadd.f32 %v11342_v15, %v11341_v44  ;;  %v11348_v36 = vsel %vm478_vm5, %v21094_v31, 0.0  ;;  %v24224_v15 = vld [vmem:[#allocation93_spill] sm:$0xff] }
 0x705   :  { %v11344_v29 = vsel %vm478_vm5, %v21099_v39, 0.0 }
 0x706   :  { %v11345_v12 = vadd.f32 %v11344_v29, %v11343_v40  ;;  %v24225_v29 = vld [vmem:[#allocation95_spill] sm:$0xff] }
 0x707   :  { %v14909_v8 = vpop.f32.mrb[28].mxu1 }
 0x708   :  { %v11347_v30 = vadd.f32 %v11346_v51, %v11345_v12  ;;  %v21106_v54 = vadd.f32 %v14909_v8, %v24222_v58  ;;  %v11135_v0 = vpop.f32.mrb[29].mxu1 }
 0x709   :  { %v15044_v46 = vadd.f32 %v11135_v0, %v24223_v37  ;;  %v14910_v22 = vpop.f32.mrb[30].mxu1 }
 0x70a   :  { %v11349_v44 = vadd.f32 %v11348_v36, %v11347_v30  ;;  %v15045_v17 = vadd.f32 %v14910_v22, %v24224_v15  ;;  %v11138_v27 = vpop.f32.mrb[31].mxu1  ;;  %v11354_v8 = vsel %vm478_vm5, %v21106_v54, 0.0  ;;  %v24227_v30 = vld [vmem:[#allocation99_spill] sm:$0xff] }
 0x70b   :  { %v11350_v40 = vsel %vm478_vm5, %v15044_v46, 0.0  ;;  %v15046_v20 = vadd.f32 %v11138_v27, %v24225_v29 }
 0x70c   :  { %v11351_v55 = vadd.f32 %v11350_v40, %v11349_v44  ;;  %v11356_v36 = vsel %vm478_vm5, %v15045_v17, 0.0 }
 0x70d   :  { %v11352_v12 = vsel %vm478_vm5, %v15046_v20, 0.0 }
 0x70e   :  { %v11353_v51 = vadd.f32 %v11352_v12, %v11351_v55  ;;  %v24229_v55 = vld [vmem:[#allocation23_spill] sm:$0xff] }
 0x70f   :  { %v14913_v58 = vpop.f32.mrb[32].mxu1 }
 0x710   :  { %v11355_v13 = vadd.f32 %v11354_v8, %v11353_v51  ;;  %v15047_v37 = vadd.f32 %v14913_v58, %v24226_v10  ;;  %v11151_v0 = vpop.f32.mrb[33].mxu1 }
 0x711   :  { %v15048_v22 = vadd.f32 %v11151_v0, %v24227_v30  ;;  %v14914_v15 = vpop.f32.mrb[34].mxu1 }
 0x712   :  { %v11357_v59 = vadd.f32 %v11356_v36, %v11355_v13  ;;  %v15049_v27 = vadd.f32 %v14914_v15, %v24228_v38  ;;  %v11154_v44 = vpop.f32.mrb[35].mxu1  ;;  %v11362_v10 = vsel %vm478_vm5, %v15047_v37, 0.0  ;;  %v24231_v36 = vld [vmem:[#allocation85_spill] sm:$0xff] }
 0x713   :  { %v11358_v40 = vsel %vm478_vm5, %v15048_v22, 0.0  ;;  %v15050_v29 = vadd.f32 %v11154_v44, %v24229_v55 }
 0x714   :  { %v11359_v12 = vadd.f32 %v11358_v40, %v11357_v59  ;;  %v11364_v13 = vsel %vm478_vm5, %v15049_v27, 0.0  ;;  %v24233_v40 = vld [vmem:[#allocation56_spill] sm:$0xff] }
 0x715   :  { %v11360_v23 = vsel %vm478_vm5, %v15050_v29, 0.0 }
 0x716   :  { %v11361_v51 = vadd.f32 %v11360_v23, %v11359_v12 }
 0x717   :  { %v14917_v8 = vpop.f32.mrb[36].mxu1 }
 0x718   :  { %v11363_v58 = vadd.f32 %v11362_v10, %v11361_v51  ;;  %v15051_v35 = vadd.f32 %v14917_v8, %v24230_v50  ;;  %v11167_v0 = vpop.f32.mrb[37].mxu1 }
 0x719   :  { %v15052_v38 = vadd.f32 %v11167_v0, %v24231_v36  ;;  %v14918_v30 = vpop.f32.mrb[38].mxu1 }
 0x71a   :  { %v11365_v15 = vadd.f32 %v11364_v13, %v11363_v58  ;;  %v15053_v18 = vadd.f32 %v14918_v30, %v24232_v42  ;;  %v11170_v44 = vpop.f32.mrb[39].mxu1  ;;  %v11370_v50 = vsel %vm478_vm5, %v15051_v35, 0.0 }
 0x71b   :  { %v11366_v59 = vsel %vm478_vm5, %v15052_v38, 0.0  ;;  %v15054_v23 = vadd.f32 %v11170_v44, %v24233_v40 }
 0x71c   :  { %v11367_v55 = vadd.f32 %v11366_v59, %v11365_v15  ;;  %v11372_v8 = vsel %vm478_vm5, %v15053_v18, 0.0 }
 0x71d   :  { %v11368_v12 = vsel %vm478_vm5, %v15054_v23, 0.0 }
 0x71e   :  { %v11369_v51 = vadd.f32 %v11368_v12, %v11367_v55 }
 0x720   :  { %v11371_v10 = vadd.f32 %v11370_v50, %v11369_v51 }
 0x722   :  { %v11373_v62 = vadd.f32 %v11372_v8, %v11371_v10 }
 0x724   :  { %v11374_v0 = vrot.slane %v11373_v62, 4 }
 0x726   :  { %v11375_v36 = vadd.f32 %v11374_v0, %v11373_v62 }
 0x728   :  { %v11376_v58 = vrot.slane %v11375_v36, 2 }
 0x72a   :  { %v11377_v13 = vadd.f32 %v11376_v58, %v11375_v36 }
 0x72c   :  { %v11378_v42 = vrot.slane %v11377_v13, 1 }
 0x72e   :  { %v11379_v30 = vadd.f32 %v11378_v42, %v11377_v13 }
 0x730   :  { %v21134_v6 = vmul.f32 0.001953125, %v11379_v30 }
 0x732   :  { %v21138_v15 = vsub.f32 %v21079_v2, %v21134_v6  ;;  %v21142_v44 = vsub.f32 %v21091_v7, %v21134_v6  ;;  %v21146_v59 = vsub.f32 %v21099_v39, %v21134_v6  ;;  %v21150_v62 = vsub.f32 %v21086_v16, %v21134_v6 }
 0x733   :  { %v21154_v40 = vsub.f32 %v21094_v31, %v21134_v6  ;;  %v21157_v55 = vsub.f32 %v15044_v46, %v21134_v6  ;;  %v21160_v2 = vsub.f32 %v15046_v20, %v21134_v6  ;;  %v21164_v7 = vsub.f32 %v21106_v54, %v21134_v6 }
 0x734   :  { %v21167_v39 = vsub.f32 %v15045_v17, %v21134_v6  ;;  %v21170_v16 = vsub.f32 %v15048_v22, %v21134_v6  ;;  %v21173_v12 = vsub.f32 %v15050_v29, %v21134_v6  ;;  %v21176_v31 = vsub.f32 %v15047_v37, %v21134_v6 }
 0x735   :  { %v21179_v46 = vsub.f32 %v15049_v27, %v21134_v6  ;;  %v21182_v20 = vsub.f32 %v15052_v38, %v21134_v6  ;;  %v21185_v54 = vsub.f32 %v15054_v23, %v21134_v6  ;;  %v21188_v17 = vsub.f32 %v15051_v35, %v21134_v6 }
 0x736   :  { %v21191_v22 = vsub.f32 %v15053_v18, %v21134_v6  ;;  %v21195_v29 = vsub.f32 %v20851_v56, %v21134_v6  ;;  %v21199_v37 = vsub.f32 %v20857_v57, %v21134_v6  ;;  %v21203_v27 = vsub.f32 %v20848_v34, %v21134_v6 }
 0x737   :  { %24234 = vst [vmem:[#allocation33_spill] sm:$0xff] %v21182_v20  ;;  %24235 = vst [vmem:[#allocation77_spill] sm:$0xff] %v21185_v54  ;;  %v21207_v38 = vsub.f32 %v20854_v43, %v21134_v6  ;;  %v21215_v56 = vsub.f32 %v20871_v32, %v21134_v6  ;;  %v21221_v34 = vsub.f32 %v20879_v3, %v21134_v6 }
 0x738   :  { %24236 = vst [vmem:[#allocation34_spill] sm:$0xff] %v21188_v17  ;;  %v11445_v18 = vmul.f32 %v21195_v29, %v21195_v29  ;;  %v11446_v35 = vmul.f32 %v21199_v37, %v21199_v37  ;;  %v11447_v57 = vmul.f32 %v21203_v27, %v21203_v27  ;;  %v21229_v10 = vsub.f32 %v20866_v48, %v21134_v6 }
 0x739   :  { %v11448_v43 = vmul.f32 %v21207_v38, %v21207_v38  ;;  %v11449_v32 = vmul.f32 %v21215_v56, %v21215_v56  ;;  %v21236_v3 = vsub.f32 %v20874_v1, %v21134_v6  ;;  %v11450_v36 = vmul.f32 %v21221_v34, %v21221_v34 }
 0x73a   :  { %v11509_v23 = vsel %vm478_vm5, %v11445_v18, 0.0  ;;  %v11510_v51 = vsel %vm478_vm5, %v11446_v35, 0.0  ;;  %v11512_v8 = vsel %vm478_vm5, %v11447_v57, 0.0  ;;  %v21243_v48 = vsub.f32 %v20891_v9, %v21134_v6 }
 0x73b   :  { %v11511_v50 = vadd.f32 %v11510_v51, %v11509_v23  ;;  %v11514_v58 = vsel %vm478_vm5, %v11448_v43, 0.0  ;;  %v11451_v42 = vmul.f32 %v21229_v10, %v21229_v10  ;;  %v11516_v30 = vsel %vm478_vm5, %v11449_v32, 0.0 }
 0x73c   :  { %v21250_v1 = vsub.f32 %v20899_v19, %v21134_v6  ;;  %v11452_v35 = vmul.f32 %v21236_v3, %v21236_v3  ;;  %v11518_v57 = vsel %vm478_vm5, %v11450_v36, 0.0  ;;  %v21257_v9 = vsub.f32 %v20886_v45, %v21134_v6 }
 0x73d   :  { %v11513_v0 = vadd.f32 %v11512_v8, %v11511_v50  ;;  %v11453_v23 = vmul.f32 %v21243_v48, %v21243_v48  ;;  %v11520_v51 = vsel %vm478_vm5, %v11451_v42, 0.0  ;;  %v21264_v19 = vsub.f32 %v20894_v41, %v21134_v6 }
 0x73e   :  { %v11454_v32 = vmul.f32 %v21250_v1, %v21250_v1  ;;  %v11522_v8 = vsel %vm478_vm5, %v11452_v35, 0.0  ;;  %v21271_v45 = vsub.f32 %v20911_v21, %v21134_v6  ;;  %v11455_v36 = vmul.f32 %v21257_v9, %v21257_v9 }
 0x73f   :  { %v11515_v13 = vadd.f32 %v11514_v58, %v11513_v0  ;;  %v11524_v58 = vsel %vm478_vm5, %v11453_v23, 0.0  ;;  %v21278_v41 = vsub.f32 %v20919_v60, %v21134_v6  ;;  %v11456_v42 = vmul.f32 %v21264_v19, %v21264_v19 }
 0x740   :  { %v21285_v21 = vsub.f32 %v20906_v47, %v21134_v6  ;;  %v11457_v35 = vmul.f32 %v21271_v45, %v21271_v45  ;;  %v21292_v60 = vsub.f32 %v20914_v25, %v21134_v6  ;;  %v21299_v47 = vsub.f32 %v20931_v49, %v21134_v6 }
 0x741   :  { %v11517_v18 = vadd.f32 %v11516_v30, %v11515_v13  ;;  %v11526_v30 = vsel %vm478_vm5, %v11454_v32, 0.0  ;;  %v11458_v23 = vmul.f32 %v21278_v41, %v21278_v41  ;;  %v21306_v25 = vsub.f32 %v20939_v5, %v21134_v6 }
 0x742   :  { %v11459_v32 = vmul.f32 %v21285_v21, %v21285_v21  ;;  %v21313_v49 = vsub.f32 %v20926_v24, %v21134_v6  ;;  %v21320_v5 = vsub.f32 %v20934_v33, %v21134_v6  ;;  %v21327_v24 = vsub.f32 %v20951_v14, %v21134_v6 }
 0x743   :  { %v11519_v43 = vadd.f32 %v11518_v57, %v11517_v18  ;;  %v11528_v57 = vsel %vm478_vm5, %v11455_v36, 0.0  ;;  %v11460_v36 = vmul.f32 %v21292_v60, %v21292_v60  ;;  %v21334_v33 = vsub.f32 %v20959_v28, %v21134_v6 }
 0x744   :  { %v21341_v14 = vsub.f32 %v20946_v4, %v21134_v6  ;;  %v21348_v28 = vsub.f32 %v20954_v26, %v21134_v6  ;;  %v21355_v4 = vsub.f32 %v20971_v11, %v21134_v6  ;;  %v21362_v26 = vsub.f32 %v20979_v63, %v21134_v6 }
 0x745   :  { %v11521_v50 = vadd.f32 %v11520_v51, %v11519_v43  ;;  %v11530_v51 = vsel %vm478_vm5, %v11456_v42, 0.0  ;;  %v11461_v42 = vmul.f32 %v21299_v47, %v21299_v47  ;;  %v21369_v11 = vsub.f32 %v20966_v53, %v21134_v6 }
 0x746   :  { %v21376_v63 = vsub.f32 %v20974_v52, %v21134_v6  ;;  %v21383_v53 = vsub.f32 %v20991_v61, %v21134_v6 }
 0x747   :  { %v11523_v0 = vadd.f32 %v11522_v8, %v11521_v50  ;;  %v11532_v8 = vsel %vm478_vm5, %v11457_v35, 0.0  ;;  %v11462_v35 = vmul.f32 %v21306_v25, %v21306_v25 }
 0x749   :  { %v11525_v13 = vadd.f32 %v11524_v58, %v11523_v0  ;;  %v11534_v58 = vsel %vm478_vm5, %v11458_v23, 0.0  ;;  %v11463_v23 = vmul.f32 %v21313_v49, %v21313_v49 }
 0x74b   :  { %v11527_v18 = vadd.f32 %v11526_v30, %v11525_v13  ;;  %v11536_v30 = vsel %vm478_vm5, %v11459_v32, 0.0  ;;  %v11464_v32 = vmul.f32 %v21320_v5, %v21320_v5 }
 0x74d   :  { %v11529_v43 = vadd.f32 %v11528_v57, %v11527_v18  ;;  %v11538_v57 = vsel %vm478_vm5, %v11460_v36, 0.0  ;;  %v11465_v36 = vmul.f32 %v21327_v24, %v21327_v24 }
 0x74f   :  { %v11531_v50 = vadd.f32 %v11530_v51, %v11529_v43  ;;  %v11540_v51 = vsel %vm478_vm5, %v11461_v42, 0.0  ;;  %v11466_v42 = vmul.f32 %v21334_v33, %v21334_v33 }
 0x751   :  { %v11533_v0 = vadd.f32 %v11532_v8, %v11531_v50  ;;  %v11542_v8 = vsel %vm478_vm5, %v11462_v35, 0.0  ;;  %v11467_v35 = vmul.f32 %v21341_v14, %v21341_v14 }
 0x753   :  { %v11535_v13 = vadd.f32 %v11534_v58, %v11533_v0  ;;  %v11544_v58 = vsel %vm478_vm5, %v11463_v23, 0.0  ;;  %v11468_v23 = vmul.f32 %v21348_v28, %v21348_v28 }
 0x755   :  { %v11537_v18 = vadd.f32 %v11536_v30, %v11535_v13  ;;  %v11546_v30 = vsel %vm478_vm5, %v11464_v32, 0.0  ;;  %v11469_v32 = vmul.f32 %v21355_v4, %v21355_v4 }
 0x757   :  { %v11539_v43 = vadd.f32 %v11538_v57, %v11537_v18  ;;  %v11548_v57 = vsel %vm478_vm5, %v11465_v36, 0.0  ;;  %v11470_v36 = vmul.f32 %v21362_v26, %v21362_v26 }
 0x759   :  { %v11541_v50 = vadd.f32 %v11540_v51, %v11539_v43  ;;  %v11550_v51 = vsel %vm478_vm5, %v11466_v42, 0.0  ;;  %v11471_v42 = vmul.f32 %v21369_v11, %v21369_v11 }
 0x75b   :  { %v11543_v0 = vadd.f32 %v11542_v8, %v11541_v50  ;;  %v11552_v8 = vsel %vm478_vm5, %v11467_v35, 0.0  ;;  %v24237_v35 = vld [vmem:[#allocation27_spill] sm:$0xff] }
 0x75c   :  { %v21390_v52 = vsub.f32 %v24237_v35, %v21134_v6 }
 0x75d   :  { %v11545_v13 = vadd.f32 %v11544_v58, %v11543_v0  ;;  %v11554_v58 = vsel %vm478_vm5, %v11468_v23, 0.0 }
 0x75e   :  { %24238 = vst [vmem:[#allocation78_spill] sm:$0xff] %v21390_v52 }
 0x75f   :  { %v11547_v18 = vadd.f32 %v11546_v30, %v11545_v13  ;;  %v11556_v30 = vsel %vm478_vm5, %v11469_v32, 0.0  ;;  %v11560_v32 = vsel %vm478_vm5, %v11471_v42, 0.0 }
 0x761   :  { %v11549_v43 = vadd.f32 %v11548_v57, %v11547_v18  ;;  %v11472_v57 = vmul.f32 %v21376_v63, %v21376_v63 }
 0x763   :  { %v11551_v50 = vadd.f32 %v11550_v51, %v11549_v43  ;;  %v11558_v43 = vsel %vm478_vm5, %v11470_v36, 0.0  ;;  %v24239_v51 = vld [vmem:[#allocation63_spill] sm:$0xff]  ;;  %v11562_v36 = vsel %vm478_vm5, %v11472_v57, 0.0 }
 0x764   :  { %v21397_v61 = vsub.f32 %v24239_v51, %v21134_v6  ;;  %v24245_v51 = vld [vmem:[#allocation10_spill] sm:$0xff] }
 0x765   :  { %v11553_v0 = vadd.f32 %v11552_v8, %v11551_v50  ;;  %v11473_v50 = vmul.f32 %v21383_v53, %v21383_v53 }
 0x766   :  { %24240 = vst [vmem:[#allocation35_spill] sm:$0xff] %v21397_v61 }
 0x767   :  { %v11555_v13 = vadd.f32 %v11554_v58, %v11553_v0  ;;  %v24241_v0 = vld [vmem:[#allocation67_spill] sm:$0xff]  ;;  %v11564_v42 = vsel %vm478_vm5, %v11473_v50, 0.0 }
 0x768   :  { %v21404_v58 = vsub.f32 %v24241_v0, %v21134_v6 }
 0x769   :  { %v11557_v18 = vadd.f32 %v11556_v30, %v11555_v13  ;;  %v11474_v13 = vmul.f32 %v21390_v52, %v21390_v52 }
 0x76a   :  { %24242 = vst [vmem:[#allocation79_spill] sm:$0xff] %v21404_v58  ;;  %v11476_v0 = vmul.f32 %v21404_v58, %v21404_v58 }
 0x76b   :  { %v11559_v23 = vadd.f32 %v11558_v43, %v11557_v18  ;;  %v24243_v18 = vld [vmem:[#allocation8_spill] sm:$0xff]  ;;  %v11475_v43 = vmul.f32 %v21397_v61, %v21397_v61  ;;  %v11566_v57 = vsel %vm478_vm5, %v11474_v13, 0.0 }
 0x76c   :  { %v21411_v35 = vsub.f32 %v24243_v18, %v21134_v6  ;;  %v11570_v13 = vsel %vm478_vm5, %v11476_v0, 0.0 }
 0x76d   :  { %v11561_v8 = vadd.f32 %v11560_v32, %v11559_v23  ;;  %v21418_v32 = vsub.f32 %v24245_v51, %v21134_v6  ;;  %v11568_v50 = vsel %vm478_vm5, %v11475_v43, 0.0 }
 0x76e   :  { %24244 = vst [vmem:[#allocation36_spill] sm:$0xff] %v21411_v35  ;;  %v11477_v61 = vmul.f32 %v21411_v35, %v21411_v35 }
 0x76f   :  { %v11563_v30 = vadd.f32 %v11562_v36, %v11561_v8  ;;  %24246 = vst [vmem:[#allocation80_spill] sm:$0xff] %v21418_v32  ;;  %v24247_v36 = vld [vmem:[#allocation68_spill] sm:$0xff]  ;;  %v11478_v58 = vmul.f32 %v21418_v32, %v21418_v32 }
 0x770   :  { %v21425_v18 = vsub.f32 %v24247_v36, %v21134_v6  ;;  %v11572_v43 = vsel %vm478_vm5, %v11477_v61, 0.0 }
 0x771   :  { %v11565_v23 = vadd.f32 %v11564_v42, %v11563_v30  ;;  %v24249_v42 = vld [vmem:[#allocation69_spill] sm:$0xff]  ;;  %v11574_v0 = vsel %vm478_vm5, %v11478_v58, 0.0 }
 0x772   :  { %24248 = vst [vmem:[#allocation74_spill] sm:$0xff] %v21425_v18  ;;  %v21432_v51 = vsub.f32 %v24249_v42, %v21134_v6  ;;  %v11479_v35 = vmul.f32 %v21425_v18, %v21425_v18 }
 0x773   :  { %v11567_v8 = vadd.f32 %v11566_v57, %v11565_v23  ;;  %v24251_v57 = vld [vmem:[#allocation12_spill] sm:$0xff] }
 0x774   :  { %24250 = vst [vmem:[#allocation82_spill] sm:$0xff] %v21432_v51  ;;  %v21439_v36 = vsub.f32 %v24251_v57, %v21134_v6  ;;  %v11480_v32 = vmul.f32 %v21432_v51, %v21432_v51  ;;  %v11576_v61 = vsel %vm478_vm5, %v11479_v35, 0.0 }
 0x775   :  { %v11569_v30 = vadd.f32 %v11568_v50, %v11567_v8  ;;  %v24253_v50 = vld [vmem:[#allocation11_spill] sm:$0xff] }
 0x776   :  { %24252 = vst [vmem:[#allocation37_spill] sm:$0xff] %v21439_v36  ;;  %v21446_v42 = vsub.f32 %v24253_v50, %v21134_v6  ;;  %v11481_v18 = vmul.f32 %v21439_v36, %v21439_v36  ;;  %v11578_v58 = vsel %vm478_vm5, %v11480_v32, 0.0 }
 0x777   :  { %v11571_v23 = vadd.f32 %v11570_v13, %v11569_v30  ;;  %v24255_v13 = vld [vmem:[#allocation70_spill] sm:$0xff] }
 0x778   :  { %24254 = vst [vmem:[#allocation44_spill] sm:$0xff] %v21446_v42  ;;  %v21453_v57 = vsub.f32 %v24255_v13, %v21134_v6  ;;  %v11482_v51 = vmul.f32 %v21446_v42, %v21446_v42  ;;  %v11580_v35 = vsel %vm478_vm5, %v11481_v18, 0.0 }
 0x779   :  { %v11573_v8 = vadd.f32 %v11572_v43, %v11571_v23  ;;  %v24257_v43 = vld [vmem:[#allocation71_spill] sm:$0xff] }
 0x77a   :  { %24256 = vst [vmem:[#allocation38_spill] sm:$0xff] %v21453_v57  ;;  %v21460_v50 = vsub.f32 %v24257_v43, %v21134_v6  ;;  %v11483_v36 = vmul.f32 %v21453_v57, %v21453_v57  ;;  %v11582_v32 = vsel %vm478_vm5, %v11482_v51, 0.0 }
 0x77b   :  { %v11575_v30 = vadd.f32 %v11574_v0, %v11573_v8  ;;  %v24259_v0 = vld [vmem:[#allocation28_spill] sm:$0xff] }
 0x77c   :  { %24258 = vst [vmem:[#allocation86_spill] sm:$0xff] %v21460_v50  ;;  %v21467_v13 = vsub.f32 %v24259_v0, %v21134_v6  ;;  %v11484_v42 = vmul.f32 %v21460_v50, %v21460_v50  ;;  %v11584_v18 = vsel %vm478_vm5, %v11483_v36, 0.0 }
 0x77d   :  { %v11577_v23 = vadd.f32 %v11576_v61, %v11575_v30  ;;  %v24261_v61 = vld [vmem:[#allocation31_spill] sm:$0xff] }
 0x77e   :  { %24260 = vst [vmem:[#allocation39_spill] sm:$0xff] %v21467_v13  ;;  %v21474_v43 = vsub.f32 %v24261_v61, %v21134_v6  ;;  %v11485_v57 = vmul.f32 %v21467_v13, %v21467_v13  ;;  %v11586_v51 = vsel %vm478_vm5, %v11484_v42, 0.0 }
 0x77f   :  { %v11579_v8 = vadd.f32 %v11578_v58, %v11577_v23  ;;  %v24263_v58 = vld [vmem:[#allocation72_spill] sm:$0xff] }
 0x780   :  { %24262 = vst [vmem:[#allocation88_spill] sm:$0xff] %v21474_v43  ;;  %v21481_v0 = vsub.f32 %v24263_v58, %v21134_v6  ;;  %v11486_v50 = vmul.f32 %v21474_v43, %v21474_v43  ;;  %v11588_v36 = vsel %vm478_vm5, %v11485_v57, 0.0 }
 0x781   :  { %v11581_v30 = vadd.f32 %v11580_v35, %v11579_v8  ;;  %v24265_v35 = vld [vmem:[#allocation73_spill] sm:$0xff] }
 0x782   :  { %24264 = vst [vmem:[#allocation40_spill] sm:$0xff] %v21481_v0  ;;  %v21488_v61 = vsub.f32 %v24265_v35, %v21134_v6  ;;  %v11487_v13 = vmul.f32 %v21481_v0, %v21481_v0 }
 0x783   :  { %v11583_v23 = vadd.f32 %v11582_v32, %v11581_v30  ;;  %v24266_v32 = vld [vmem:[#allocation32_spill] sm:$0xff] }
 0x784   :  { %v21495_v58 = vsub.f32 %v24266_v32, %v21134_v6  ;;  %v11488_v42 = vmul.f32 %v21488_v61, %v21488_v61  ;;  %v24268_v32 = vld [vmem:[#allocation75_spill] sm:$0xff]  ;;  %v11592_v43 = vsel %vm478_vm5, %v11487_v13, 0.0 }
 0x785   :  { %v11585_v8 = vadd.f32 %v11584_v18, %v11583_v23  ;;  %v15628_v23 = vld [vmem:[%s23148_s5] sm:$0xff]   ;;  %v15629_v18 = vld [vmem:[%s23148_s5 + $0x8] sm:$0xff]   ;;  %v21511_v57 = vsub.f32 %v24268_v32, %v21134_v6 }
 0x786   :  { %24267 = vst [vmem:[#allocation90_spill] sm:$0xff] %v21495_v58  ;;  %14919 = vmatprep.subr.bf16.mxu0 %v15628_v23  ;;  %v11489_v0 = vmul.f32 %v21495_v58, %v21495_v58 }
 0x787   :  { %v11587_v30 = vadd.f32 %v11586_v51, %v11585_v8  ;;  %v11590_v8 = vsel %vm478_vm5, %v11486_v50, 0.0  ;;  %14920 = vmatpush3.bf16.msra.mxu0 %v15628_v23  ;;  %v11490_v50 = vmul.f32 %v21138_v15, %v21138_v15  ;;  %v11594_v23 = vsel %vm478_vm5, %v11488_v42, 0.0 }
 0x788   :  { %14921 = vmatprep.subr.bf16.mxu0 %v15629_v18  ;;  %v11596_v32 = vsel %vm478_vm5, %v11489_v0, 0.0  ;;  %v11495_v0 = vmul.f32 %v21150_v62, %v21150_v62 }
 0x789   :  { %v11589_v35 = vadd.f32 %v11588_v36, %v11587_v30  ;;  %v24269_v30 = vld [vmem:[#allocation76_spill] sm:$0xff] }
 0x78a   :  { %v21518_v36 = vsub.f32 %v24269_v30, %v21134_v6 }
 0x78b   :  { %v11591_v51 = vadd.f32 %v11590_v8, %v11589_v35  ;;  %14922 = vmatpush3.bf16.msra.mxu0 %v15629_v18  ;;  %v11491_v8 = vmul.f32 %v21511_v57, %v21511_v57 }
 0x78c   :  { %v11492_v13 = vmul.f32 %v21518_v36, %v21518_v36 }
 0x78d   :  { %v11593_v52 = vadd.f32 %v11592_v43, %v11591_v51  ;;  %v11598_v43 = vsel %vm478_vm5, %v11490_v50, 0.0  ;;  %v11493_v51 = vmul.f32 %v21142_v44, %v21142_v44  ;;  %v11600_v30 = vsel %vm478_vm5, %v11491_v8, 0.0 }
 0x78e   :  { %v11602_v18 = vsel %vm478_vm5, %v11492_v13, 0.0  ;;  %v11497_v8 = vmul.f32 %v21157_v55, %v21157_v55  ;;  %v11498_v13 = vmul.f32 %v21160_v2, %v21160_v2 }
 0x78f   :  { %v11595_v35 = vadd.f32 %v11594_v23, %v11593_v52  ;;  %v11494_v52 = vmul.f32 %v21146_v59, %v21146_v59 }
 0x791   :  { %v11597_v58 = vadd.f32 %v11596_v32, %v11595_v35  ;;  %v11604_v35 = vsel %vm478_vm5, %v11493_v51, 0.0  ;;  %v11606_v50 = vsel %vm478_vm5, %v11494_v52, 0.0  ;;  %v11499_v51 = vmul.f32 %v21164_v7, %v21164_v7 }
 0x792   :  { %v11500_v52 = vmul.f32 %v21167_v39, %v21167_v39 }
 0x793   :  { %v11599_v6 = vadd.f32 %v11598_v43, %v11597_v58  ;;  %v11496_v58 = vmul.f32 %v21154_v40, %v21154_v40 }
 0x795   :  { %v11601_v42 = vadd.f32 %v11600_v30, %v11599_v6  ;;  %v11608_v6 = vsel %vm478_vm5, %v11495_v0, 0.0  ;;  %v11501_v0 = vmul.f32 %v21170_v16, %v21170_v16 }
 0x797   :  { %v11603_v23 = vadd.f32 %v11602_v18, %v11601_v42  ;;  %v11610_v42 = vsel %vm478_vm5, %v11496_v58, 0.0  ;;  %v11502_v58 = vmul.f32 %v21173_v12, %v21173_v12 }
 0x799   :  { %v11605_v32 = vadd.f32 %v11604_v35, %v11603_v23  ;;  %v11612_v23 = vsel %vm478_vm5, %v11497_v8, 0.0  ;;  %v11620_v8 = vsel %vm478_vm5, %v11501_v0, 0.0  ;;  %v11506_v0 = vmul.f32 %v21185_v54, %v21185_v54 }
 0x79b   :  { %v11607_v43 = vadd.f32 %v11606_v50, %v11605_v32  ;;  %v11614_v32 = vsel %vm478_vm5, %v11498_v13, 0.0  ;;  %v11622_v13 = vsel %vm478_vm5, %v11502_v58, 0.0  ;;  %v11507_v58 = vmul.f32 %v21188_v17, %v21188_v17 }
 0x79d   :  { %v11609_v30 = vadd.f32 %v11608_v6, %v11607_v43  ;;  %v11616_v43 = vsel %vm478_vm5, %v11499_v51, 0.0 }
 0x79f   :  { %v11611_v18 = vadd.f32 %v11610_v42, %v11609_v30  ;;  %v11618_v30 = vsel %vm478_vm5, %v11500_v52, 0.0 }
 0x7a1   :  { %v11613_v35 = vadd.f32 %v11612_v23, %v11611_v18  ;;  %v11503_v23 = vmul.f32 %v21176_v31, %v21176_v31 }
 0x7a3   :  { %v11615_v50 = vadd.f32 %v11614_v32, %v11613_v35  ;;  %v11504_v32 = vmul.f32 %v21179_v46, %v21179_v46  ;;  %v11624_v51 = vsel %vm478_vm5, %v11503_v23, 0.0  ;;  %v11508_v23 = vmul.f32 %v21191_v22, %v21191_v22 }
 0x7a5   :  { %v11617_v6 = vadd.f32 %v11616_v43, %v11615_v50  ;;  %v11505_v43 = vmul.f32 %v21182_v20, %v21182_v20  ;;  %v11626_v52 = vsel %vm478_vm5, %v11504_v32, 0.0  ;;  %v11634_v32 = vsel %vm478_vm5, %v11508_v23, 0.0 }
 0x7a7   :  { %v11619_v42 = vadd.f32 %v11618_v30, %v11617_v6  ;;  %v11628_v30 = vsel %vm478_vm5, %v11505_v43, 0.0 }
 0x7a9   :  { %v11621_v18 = vadd.f32 %v11620_v8, %v11619_v42  ;;  %v11630_v8 = vsel %vm478_vm5, %v11506_v0, 0.0 }
 0x7ab   :  { %v11623_v35 = vadd.f32 %v11622_v13, %v11621_v18  ;;  %v11632_v13 = vsel %vm478_vm5, %v11507_v58, 0.0  ;;  %v24270_v58 = vld [vmem:[#allocation21_spill] sm:$0xff] }
 0x7ad   :  { %v11625_v50 = vadd.f32 %v11624_v51, %v11623_v35 }
 0x7af   :  { %v11627_v6 = vadd.f32 %v11626_v52, %v11625_v50 }
 0x7b1   :  { %v11629_v42 = vadd.f32 %v11628_v30, %v11627_v6 }
 0x7b3   :  { %v11631_v18 = vadd.f32 %v11630_v8, %v11629_v42  ;;  %v11246_v42 = vld [vmem:[%s23147_s4] sm:$0x1] }
 0x7b5   :  { %v11633_v35 = vadd.f32 %v11632_v13, %v11631_v18 }
 0x7b7   :  { %v11635_v51 = vadd.f32 %v11634_v32, %v11633_v35 }
 0x7b9   :  { %v11636_v50 = vrot.slane %v11635_v51, 4 }
 0x7bb   :  { %v11637_v52 = vadd.f32 %v11636_v50, %v11635_v51 }
 0x7bd   :  { %v11638_v20 = vrot.slane %v11637_v52, 2 }
 0x7bf   :  { %v11639_v43 = vadd.f32 %v11638_v20, %v11637_v52 }
 0x7c1   :  { %v11640_v6 = vrot.slane %v11639_v43, 1 }
 0x7c3   :  { %v11641_v30 = vadd.f32 %v11640_v6, %v11639_v43 }
 0x7c5   :  { %v11642_v54 = vmul.f32 0.001953125, %v11641_v30 }
 0x7c7   :  { %v11643_v17 = vadd.f32 1e-05, %v11642_v54 }
 0x7c9   :  { %15632 = vrsqrt.f32 %v11643_v17 }
 0x7d3   :  { %v15633_v0 = vpop.eup %15632 }
 0x7d4   :  { %v11645_v8 = vmul.f32 %v15633_v0, %v11246_v42 }
 0x7d6   :  { %v21583_v18 = vrot.slane %v11645_v8, %v24270_v58 }
 0x7d8   :  { %v11652_v23 = vmul.f32 %v21583_v18, %v21195_v29  ;;  %v11653_v20 = vmul.f32 %v21583_v18, %v21199_v37  ;;  %v11654_v13 = vmul.f32 %v21583_v18, %v21203_v27  ;;  %v11655_v54 = vmul.f32 %v21583_v18, %v21207_v38 }
 0x7d9   :  { %v11656_v17 = vmul.f32 %v21583_v18, %v21215_v56  ;;  %v11657_v35 = vmul.f32 %v21583_v18, %v21221_v34  ;;  %v11658_v27 = vmul.f32 %v21583_v18, %v21229_v10  ;;  %v11659_v38 = vmul.f32 %v21583_v18, %v21236_v3 }
 0x7da   :  { %v11716_v32 = vmax.f32 %v11652_v23, 0.0  ;;  %v11717_v51 = vmax.f32 %v11653_v20, 0.0  ;;  %v11718_v50 = vmax.f32 %v11654_v13, 0.0  ;;  %v11719_v52 = vmax.f32 %v11655_v54, 0.0 }
 0x7db   :  { %v11720_v29 = vmax.f32 %v11656_v17, 0.0  ;;  %v11721_v43 = vmax.f32 %v11657_v35, 0.0  ;;  %v11660_v56 = vmul.f32 %v21583_v18, %v21243_v48  ;;  %v11661_v34 = vmul.f32 %v21583_v18, %v21250_v1 }
 0x7dc   :  { %v11780_v6 = vmin.f32 %v11716_v32, 6.0  ;;  %v11781_v37 = vmin.f32 %v11717_v51, 6.0  ;;  %v11782_v30 = vmin.f32 %v11718_v50, 6.0  ;;  %v11783_v0 = vmin.f32 %v11719_v52, 6.0 }
 0x7dd   :  { %v11784_v42 = vmin.f32 %v11720_v29, 6.0  ;;  %v11785_v8 = vmin.f32 %v11721_v43, 6.0  ;;  %v11722_v13 = vmax.f32 %v11658_v27, 0.0  ;;  %v11723_v54 = vmax.f32 %v11659_v38, 0.0 }
 0x7de   :  { %v11845_v23 = vpack.c.bf16 %v11783_v0, %v11782_v30  ;;  %v11844_v20 = vpack.c.bf16 %v11781_v37, %v11780_v6  ;;  %v11724_v17 = vmax.f32 %v11660_v56, 0.0  ;;  %v11725_v35 = vmax.f32 %v11661_v34, 0.0 }
 0x7df   :  { %v11846_v10 = vpack.c.bf16 %v11785_v8, %v11784_v42  ;;  %v11662_v3 = vmul.f32 %v21583_v18, %v21257_v9  ;;  %v11663_v48 = vmul.f32 %v21583_v18, %v21264_v19  ;;  %v11786_v1 = vmin.f32 %v11722_v13, 6.0 }
 0x7e0   :  { %14923 = vmatprep.mubr.msk.bf16.mxu0 %vm478_vm5, %v11844_v20  ;;  %v11787_v32 = vmin.f32 %v11723_v54, 6.0  ;;  %v11664_v51 = vmul.f32 %v21583_v18, %v21271_v45  ;;  %v11665_v50 = vmul.f32 %v21583_v18, %v21278_v41  ;;  %v11788_v52 = vmin.f32 %v11724_v17, 6.0 }
 0x7e1   :  { %14924 = vmatmul.mubr.msk.bf16.vlgmr.msra.gmra.mrb[128].mxu0 %vm478_vm5, %v11845_v23  ;;  %v11789_v29 = vmin.f32 %v11725_v35, 6.0  ;;  %v11726_v43 = vmax.f32 %v11662_v3, 0.0  ;;  %v11727_v6 = vmax.f32 %v11663_v48, 0.0  ;;  %v11666_v9 = vmul.f32 %v21583_v18, %v21285_v21 }
 0x7e2   :  { %14927 = vmatprep.mubr.msk.bf16.mxu0 %vm478_vm5, %v11846_v10  ;;  %v11847_v37 = vpack.c.bf16 %v11787_v32, %v11786_v1  ;;  %v11728_v30 = vmax.f32 %v11664_v51, 0.0  ;;  %v11729_v0 = vmax.f32 %v11665_v50, 0.0  ;;  %v11667_v19 = vmul.f32 %v21583_v18, %v21292_v60 }
 0x7e3   :  { %v11848_v27 = vpack.c.bf16 %v11789_v29, %v11788_v52  ;;  %v11790_v45 = vmin.f32 %v11726_v43, 6.0  ;;  %v11791_v41 = vmin.f32 %v11727_v6, 6.0  ;;  %v11668_v38 = vmul.f32 %v21583_v18, %v21299_v47 }
 0x7e4   :  { %v11669_v56 = vmul.f32 %v21583_v18, %v21306_v25  ;;  %v11792_v34 = vmin.f32 %v11728_v30, 6.0  ;;  %v11793_v42 = vmin.f32 %v11729_v0, 6.0  ;;  %v11730_v8 = vmax.f32 %v11666_v9, 0.0 }
 0x7e5   :  { %v11731_v23 = vmax.f32 %v11667_v19, 0.0  ;;  %v11849_v20 = vpack.c.bf16 %v11791_v41, %v11790_v45  ;;  %v11732_v13 = vmax.f32 %v11668_v38, 0.0  ;;  %v11670_v21 = vmul.f32 %v21583_v18, %v21313_v49 }
 0x7e6   :  { %v11733_v54 = vmax.f32 %v11669_v56, 0.0  ;;  %v11850_v17 = vpack.c.bf16 %v11793_v42, %v11792_v34  ;;  %v11671_v60 = vmul.f32 %v21583_v18, %v21320_v5  ;;  %v11794_v47 = vmin.f32 %v11730_v8, 6.0  ;;  %v24271_v56 = vld [vmem:[#allocation78_spill] sm:$0xff] }
 0x7e7   :  { %v11795_v25 = vmin.f32 %v11731_v23, 6.0  ;;  %v11672_v35 = vmul.f32 %v21583_v18, %v21327_v24  ;;  %v11673_v10 = vmul.f32 %v21583_v18, %v21334_v33  ;;  %v11796_v3 = vmin.f32 %v11732_v13, 6.0 }
 0x7e8   :  { %v11797_v48 = vmin.f32 %v11733_v54, 6.0  ;;  %v11734_v1 = vmax.f32 %v11670_v21, 0.0  ;;  %v11735_v32 = vmax.f32 %v11671_v60, 0.0  ;;  %v11674_v49 = vmul.f32 %v21583_v18, %v21341_v14  ;;  %v24273_v60 = vld [vmem:[#allocation79_spill] sm:$0xff] }
 0x7e9   :  { %14928 = vmatmul.mubr.msk.bf16.gmra.mrb[132].mxu0 %vm478_vm5, %v11847_v37  ;;  %v11851_v51 = vpack.c.bf16 %v11795_v25, %v11794_v47  ;;  %v11736_v50 = vmax.f32 %v11672_v35, 0.0  ;;  %v11737_v52 = vmax.f32 %v11673_v10, 0.0  ;;  %v11675_v5 = vmul.f32 %v21583_v18, %v21348_v28  ;;  %v24274_v35 = vld [vmem:[#allocation36_spill] sm:$0xff] }
 0x7ea   :  { %14931 = vmatprep.mubr.msk.bf16.mxu0 %vm478_vm5, %v11848_v27  ;;  %v11852_v29 = vpack.c.bf16 %v11797_v48, %v11796_v3  ;;  %v11798_v24 = vmin.f32 %v11734_v1, 6.0  ;;  %v11799_v33 = vmin.f32 %v11735_v32, 6.0  ;;  %v11676_v43 = vmul.f32 %v21583_v18, %v21355_v4  ;;  %v24275_v3 = vld [vmem:[#allocation80_spill] sm:$0xff] }
 0x7eb   :  { %v11677_v6 = vmul.f32 %v21583_v18, %v21362_v26  ;;  %v11800_v37 = vmin.f32 %v11736_v50, 6.0  ;;  %v11801_v30 = vmin.f32 %v11737_v52, 6.0  ;;  %v11738_v0 = vmax.f32 %v11674_v49, 0.0 }
 0x7ec   :  { %v11739_v27 = vmax.f32 %v11675_v5, 0.0  ;;  %v11853_v9 = vpack.c.bf16 %v11799_v33, %v11798_v24  ;;  %v11740_v19 = vmax.f32 %v11676_v43, 0.0  ;;  %v11678_v14 = vmul.f32 %v21583_v18, %v21369_v11  ;;  %v24272_v11 = vld [vmem:[#allocation35_spill] sm:$0xff]  ;;  %v24276_v24 = vld [vmem:[#allocation74_spill] sm:$0xff] }
 0x7ed   :  { %v11741_v45 = vmax.f32 %v11677_v6, 0.0  ;;  %v11854_v41 = vpack.c.bf16 %v11801_v30, %v11800_v37  ;;  %v11679_v28 = vmul.f32 %v21583_v18, %v21376_v63  ;;  %v11802_v4 = vmin.f32 %v11738_v0, 6.0  ;;  %v24277_v43 = vld [vmem:[#allocation82_spill] sm:$0xff]  ;;  %v24278_v0 = vld [vmem:[#allocation37_spill] sm:$0xff] }
 0x7ee   :  { %v11803_v26 = vmin.f32 %v11739_v27, 6.0  ;;  %v11680_v38 = vmul.f32 %v21583_v18, %v21383_v53  ;;  %v11681_v34 = vmul.f32 %v21583_v18, %v24271_v56  ;;  %v11804_v42 = vmin.f32 %v11740_v19, 6.0 }
 0x7ef   :  { %v11805_v8 = vmin.f32 %v11741_v45, 6.0  ;;  %v11742_v23 = vmax.f32 %v11678_v14, 0.0  ;;  %v11682_v63 = vmul.f32 %v21583_v18, %v24272_v11  ;;  %v11683_v53 = vmul.f32 %v21583_v18, %v24273_v60 }
 0x7f0   :  { %v11855_v13 = vpack.c.bf16 %v11803_v26, %v11802_v4  ;;  %v11744_v54 = vmax.f32 %v11680_v38, 0.0  ;;  %v11684_v10 = vmul.f32 %v21583_v18, %v24274_v35  ;;  %v11685_v48 = vmul.f32 %v21583_v18, %v24275_v3 }
 0x7f1   :  { %14932 = vmatmul.mubr.msk.bf16.gmra.mrb[136].mxu0 %vm478_vm5, %v11849_v20  ;;  %v11743_v20 = vmax.f32 %v11679_v28, 0.0  ;;  %v11856_v21 = vpack.c.bf16 %v11805_v8, %v11804_v42  ;;  %v11806_v47 = vmin.f32 %v11742_v23, 6.0  ;;  %v11747_v50 = vmax.f32 %v11683_v53, 0.0  ;;  %v24281_v8 = vld [vmem:[#allocation86_spill] sm:$0xff] }
 0x7f2   :  { %14935 = vmatprep.mubr.msk.bf16.mxu0 %vm478_vm5, %v11850_v17  ;;  %v11745_v17 = vmax.f32 %v11681_v34, 0.0  ;;  %v11808_v1 = vmin.f32 %v11744_v54, 6.0  ;;  %v11749_v49 = vmax.f32 %v11685_v48, 0.0  ;;  %v11686_v33 = vmul.f32 %v21583_v18, %v24276_v24  ;;  %v24280_v34 = vld [vmem:[#allocation38_spill] sm:$0xff]  ;;  %v24282_v54 = vld [vmem:[#allocation39_spill] sm:$0xff]  ;;  %v24284_v48 = vld [vmem:[#allocation40_spill] sm:$0xff] }
 0x7f3   :  { %v11807_v25 = vmin.f32 %v11743_v20, 6.0  ;;  %v11687_v6 = vmul.f32 %v21583_v18, %v24277_v43  ;;  %v11811_v30 = vmin.f32 %v11747_v50, 6.0  ;;  %v11688_v27 = vmul.f32 %v21583_v18, %v24278_v0 }
 0x7f4   :  { %v11809_v32 = vmin.f32 %v11745_v17, 6.0  ;;  %v11750_v14 = vmax.f32 %v11686_v33, 0.0  ;;  %v11690_v42 = vmul.f32 %v21583_v18, %v24280_v34  ;;  %v11691_v23 = vmul.f32 %v21583_v18, %v24281_v8 }
 0x7f5   :  { %v11857_v52 = vpack.c.bf16 %v11807_v25, %v11806_v47  ;;  %v11751_v28 = vmax.f32 %v11687_v6, 0.0  ;;  %v11752_v26 = vmax.f32 %v11688_v27, 0.0  ;;  %v11692_v17 = vmul.f32 %v21583_v18, %v24282_v54 }
 0x7f6   :  { %v11858_v5 = vpack.c.bf16 %v11809_v32, %v11808_v1  ;;  %v11814_v20 = vmin.f32 %v11750_v14, 6.0  ;;  %v11754_v53 = vmax.f32 %v11690_v42, 0.0  ;;  %v11755_v47 = vmax.f32 %v11691_v23, 0.0 }
 0x7f7   :  { %v11756_v35 = vmax.f32 %v11692_v17, 0.0  ;;  %v11694_v1 = vmul.f32 %v21583_v18, %v24284_v48  ;;  %v11695_v32 = vmul.f32 %v21583_v18, %v21488_v61  ;;  %v11698_v61 = vmul.f32 %v21583_v18, %v21511_v57 }
 0x7f8   :  { %v11819_v50 = vmin.f32 %v11755_v47, 6.0  ;;  %v11699_v27 = vmul.f32 %v21583_v18, %v21518_v36  ;;  %v11702_v57 = vmul.f32 %v21583_v18, %v21150_v62  ;;  %v11704_v42 = vmul.f32 %v21583_v18, %v21157_v55 }
 0x7f9   :  { %14936 = vmatmul.mubr.msk.bf16.gmra.mrb[140].mxu0 %vm478_vm5, %v11851_v51  ;;  %v11746_v51 = vmax.f32 %v11682_v63, 0.0  ;;  %v11816_v63 = vmin.f32 %v11752_v26, 6.0  ;;  %v11758_v33 = vmax.f32 %v11694_v1, 0.0  ;;  %v11759_v43 = vmax.f32 %v11695_v32, 0.0 }
 0x7fa   :  { %14939 = vmatprep.mubr.msk.bf16.mxu0 %vm478_vm5, %v11852_v29  ;;  %v11748_v29 = vmax.f32 %v11684_v10, 0.0  ;;  %v11705_v8 = vmul.f32 %v21583_v18, %v21160_v2  ;;  %v11706_v62 = vmul.f32 %v21583_v18, %v21164_v7  ;;  %v11710_v7 = vmul.f32 %v21583_v18, %v21176_v31  ;;  %v24288_v31 = vld [vmem:[#allocation34_spill] sm:$0xff] }
 0x7fb   :  { %v11810_v37 = vmin.f32 %v11746_v51, 6.0  ;;  %v11818_v51 = vmin.f32 %v11754_v53, 6.0  ;;  %v11709_v53 = vmul.f32 %v21583_v18, %v21173_v12 }
 0x7fc   :  { %v11812_v45 = vmin.f32 %v11748_v29, 6.0 }
 0x7fd   :  { %v11859_v4 = vpack.c.bf16 %v11811_v30, %v11810_v37  ;;  %v11863_v6 = vpack.c.bf16 %v11819_v50, %v11818_v51  ;;  %v11773_v1 = vmax.f32 %v11709_v53, 0.0  ;;  %v24286_v51 = vld [vmem:[#allocation77_spill] sm:$0xff] }
 0x7fe   :  { %v11713_v50 = vmul.f32 %v21583_v18, %v24286_v51 }
 0x801   :  { %14940 = vmatmul.mubr.msk.bf16.gmra.mrb[144].mxu0 %vm478_vm5, %v11853_v9  ;;  %v24279_v9 = vld [vmem:[#allocation44_spill] sm:$0xff] }
 0x802   :  { %14943 = vmatprep.mubr.msk.bf16.mxu0 %vm478_vm5, %v11854_v41  ;;  %v11689_v19 = vmul.f32 %v21583_v18, %v24279_v9  ;;  %v11813_v41 = vmin.f32 %v11749_v49, 6.0  ;;  %v11697_v49 = vmul.f32 %v21583_v18, %v21138_v15  ;;  %v11822_v9 = vmin.f32 %v11758_v33, 6.0 }
 0x803   :  { %v11823_v15 = vmin.f32 %v11759_v43, 6.0 }
 0x804   :  { %v11753_v38 = vmax.f32 %v11689_v19, 0.0  ;;  %v11860_v56 = vpack.c.bf16 %v11813_v41, %v11812_v45  ;;  %v11761_v30 = vmax.f32 %v11697_v49, 0.0  ;;  %v11700_v19 = vmul.f32 %v21583_v18, %v21142_v44 }
 0x805   :  { %v11701_v45 = vmul.f32 %v21583_v18, %v21146_v59  ;;  %v11865_v26 = vpack.c.bf16 %v11823_v15, %v11822_v9  ;;  %v11703_v44 = vmul.f32 %v21583_v18, %v21154_v40  ;;  %v11707_v40 = vmul.f32 %v21583_v18, %v21167_v39 }
 0x806   :  { %v11817_v60 = vmin.f32 %v11753_v38, 6.0  ;;  %v11825_v14 = vmin.f32 %v11761_v30, 6.0  ;;  %v11764_v38 = vmax.f32 %v11700_v19, 0.0  ;;  %v11711_v39 = vmul.f32 %v21583_v18, %v21179_v46 }
 0x807   :  { %v11767_v54 = vmax.f32 %v11703_v44, 0.0  ;;  %v11714_v46 = vmul.f32 %v21583_v18, %v24288_v31 }
 0x808   :  { %v11862_v3 = vpack.c.bf16 %v11817_v60, %v11816_v63  ;;  %v11828_v23 = vmin.f32 %v11764_v38, 6.0  ;;  %v11708_v60 = vmul.f32 %v21583_v18, %v21170_v16  ;;  %v11775_v33 = vmax.f32 %v11711_v39, 0.0 }
 0x809   :  { %14944 = vmatmul.mubr.msk.bf16.gmra.mrb[148].mxu0 %vm478_vm5, %v11855_v13  ;;  %v11815_v13 = vmin.f32 %v11751_v28, 6.0  ;;  %v11762_v28 = vmax.f32 %v11698_v61, 0.0  ;;  %v11831_v2 = vmin.f32 %v11767_v54, 6.0  ;;  %v11778_v19 = vmax.f32 %v11714_v46, 0.0 }
 0x80a   :  { %14947 = vmatprep.mubr.msk.bf16.mxu0 %vm478_vm5, %v11856_v21  ;;  %v24283_v21 = vld [vmem:[#allocation88_spill] sm:$0xff]  ;;  %v11772_v48 = vmax.f32 %v11708_v60, 0.0 }
 0x80b   :  { %v11693_v11 = vmul.f32 %v21583_v18, %v24283_v21  ;;  %v11861_v25 = vpack.c.bf16 %v11815_v13, %v11814_v20  ;;  %v11826_v36 = vmin.f32 %v11762_v28, 6.0  ;;  %v11766_v13 = vmax.f32 %v11702_v57, 0.0 }
 0x80c   :  { %v11768_v21 = vmax.f32 %v11704_v42, 0.0  ;;  %v11836_v49 = vmin.f32 %v11772_v48, 6.0  ;;  %v11842_v28 = vmin.f32 %v11778_v19, 6.0 }
 0x80d   :  { %v11757_v10 = vmax.f32 %v11693_v11, 0.0  ;;  %v11769_v11 = vmax.f32 %v11705_v8, 0.0  ;;  %v11830_v55 = vmin.f32 %v11766_v13, 6.0 }
 0x80e   :  { %v11832_v47 = vmin.f32 %v11768_v21, 6.0 }
 0x80f   :  { %v11821_v24 = vmin.f32 %v11757_v10, 6.0  ;;  %v11771_v10 = vmax.f32 %v11707_v40, 0.0 }
 0x811   :  { %14948 = vmatmul.mubr.msk.bf16.gmra.mrb[152].mxu0 %vm478_vm5, %v11857_v52  ;;  %v24285_v52 = vld [vmem:[#allocation90_spill] sm:$0xff]  ;;  %v11835_v12 = vmin.f32 %v11771_v10, 6.0 }
 0x812   :  { %14951 = vmatprep.mubr.msk.bf16.mxu0 %vm478_vm5, %v11858_v5  ;;  %v11696_v29 = vmul.f32 %v21583_v18, %v24285_v52  ;;  %v11820_v5 = vmin.f32 %v11756_v35, 6.0  ;;  %v11770_v35 = vmax.f32 %v11706_v62, 0.0  ;;  %v24287_v52 = vld [vmem:[#allocation33_spill] sm:$0xff] }
 0x814   :  { %v11760_v37 = vmax.f32 %v11696_v29, 0.0  ;;  %v11864_v0 = vpack.c.bf16 %v11821_v24, %v11820_v5  ;;  %v11834_v16 = vmin.f32 %v11770_v35, 6.0  ;;  %v11712_v29 = vmul.f32 %v21583_v18, %v24287_v52 }
 0x815   :  { %v11837_v5 = vmin.f32 %v11773_v1, 6.0  ;;  %v11774_v24 = vmax.f32 %v11710_v7, 0.0 }
 0x816   :  { %v11824_v41 = vmin.f32 %v11760_v37, 6.0  ;;  %v11871_v43 = vpack.c.bf16 %v11835_v12, %v11834_v16  ;;  %v11776_v37 = vmax.f32 %v11712_v29, 0.0 }
 0x817   :  { %v11872_v30 = vpack.c.bf16 %v11837_v5, %v11836_v49  ;;  %v11838_v61 = vmin.f32 %v11774_v24, 6.0 }
 0x818   :  { %v11866_v34 = vpack.c.bf16 %v11825_v14, %v11824_v41  ;;  %v11840_v15 = vmin.f32 %v11776_v37, 6.0 }
 0x819   :  { %14952 = vmatmul.mubr.msk.bf16.gmra.mrb[156].mxu0 %vm478_vm5, %v11859_v4  ;;  %v11763_v4 = vmax.f32 %v11699_v27, 0.0  ;;  %v11839_v27 = vmin.f32 %v11775_v33, 6.0 }
 0x81a   :  { %14955 = vmatprep.mubr.msk.bf16.mxu0 %vm478_vm5, %v11860_v56  ;;  %v11765_v56 = vmax.f32 %v11701_v45, 0.0 }
 0x81b   :  { %v11827_v59 = vmin.f32 %v11763_v4, 6.0  ;;  %v11873_v41 = vpack.c.bf16 %v11839_v27, %v11838_v61 }
 0x81c   :  { %v11829_v20 = vmin.f32 %v11765_v56, 6.0 }
 0x81d   :  { %v11867_v17 = vpack.c.bf16 %v11827_v59, %v11826_v36 }
 0x81e   :  { %v11868_v63 = vpack.c.bf16 %v11829_v20, %v11828_v23 }
 0x821   :  { %14956 = vmatmul.mubr.msk.bf16.gmra.mrb[160].mxu0 %vm478_vm5, %v11861_v25  ;;  %v11833_v25 = vmin.f32 %v11769_v11, 6.0 }
 0x822   :  { %14959 = vmatprep.mubr.msk.bf16.mxu0 %vm478_vm5, %v11862_v3  ;;  %v11869_v3 = vpack.c.bf16 %v11831_v2, %v11830_v55 }
 0x823   :  { %v11870_v32 = vpack.c.bf16 %v11833_v25, %v11832_v47 }
 0x829   :  { %14960 = vmatmul.mubr.msk.bf16.gmra.mrb[164].mxu0 %vm478_vm5, %v11863_v6  ;;  %v11777_v6 = vmax.f32 %v11713_v50, 0.0 }
 0x82a   :  { %14963 = vmatprep.mubr.msk.bf16.mxu0 %vm478_vm5, %v11864_v0  ;;  %v11715_v0 = vmul.f32 %v21583_v18, %v21191_v22 }
 0x82b   :  { %v11841_v9 = vmin.f32 %v11777_v6, 6.0 }
 0x82c   :  { %v11779_v45 = vmax.f32 %v11715_v0, 0.0 }
 0x82d   :  { %v11874_v14 = vpack.c.bf16 %v11841_v9, %v11840_v15 }
 0x82e   :  { %v11843_v4 = vmin.f32 %v11779_v45, 6.0 }
 0x831   :  { %14964 = vmatmul.mubr.msk.bf16.gmra.mrb[168].mxu0 %vm478_vm5, %v11865_v26  ;;  %v11875_v26 = vpack.c.bf16 %v11843_v4, %v11842_v28 }
 0x832   :  { %14967 = vmatprep.mubr.msk.bf16.mxu0 %vm478_vm5, %v11866_v34 }
 0x839   :  { %14968 = vmatmul.mubr.msk.bf16.gmra.mrb[172].mxu0 %vm478_vm5, %v11867_v17 }
 0x83a   :  { %14971 = vmatprep.mubr.msk.bf16.mxu0 %vm478_vm5, %v11868_v63 }
 0x841   :  { %14972 = vmatmul.mubr.msk.bf16.gmra.mrb[176].mxu0 %vm478_vm5, %v11869_v3 }
 0x842   :  { %14975 = vmatprep.mubr.msk.bf16.mxu0 %vm478_vm5, %v11870_v32 }
 0x849   :  { %14976 = vmatmul.mubr.msk.bf16.gmra.mrb[180].mxu0 %vm478_vm5, %v11871_v43 }
 0x84a   :  { %14979 = vmatprep.mubr.msk.bf16.mxu0 %vm478_vm5, %v11872_v30 }
 0x851   :  { %14980 = vmatmul.mubr.msk.bf16.gmra.mrb[184].mxu0 %vm478_vm5, %v11873_v41 }
 0x852   :  { %14983 = vmatprep.mubr.msk.bf16.mxu0 %vm478_vm5, %v11874_v14 }
 0x859   :  { %14984 = vmatmul.mubr.msk.bf16.gmra.mrb[188].mxu0 %vm478_vm5, %v11875_v26 }
 0x8b4   :  { %v21745_v38 = vpop.f32.mrb[128].mxu0 }
 0x8b5   :  { %v21747_v22 = vpop.f32.mrb[129].mxu0 }
 0x8b6   :  { %v21749_v18 = vpop.f32.mrb[130].mxu0 }
 0x8b7   :  { %v21751_v56 = vpop.f32.mrb[131].mxu0 }
 0x8b8   :  { %v12278_v34 = vadd.f32 %v21751_v56, %v21747_v22 }
 0x8ba   :  { %v12279_v57 = vadd.f32 %v21745_v38, %v12278_v34 }
 0x8bc   :  { %v21756_v44 = vpop.f32.mrb[132].mxu0  ;;  %v12280_v36 = vadd.f32 %v21749_v18, %v12279_v57 }
 0x8bd   :  { %v21759_v59 = vpop.f32.mrb[133].mxu0 }
 0x8be   :  { %v12281_v42 = vadd.f32 %v12280_v36, %v21759_v59  ;;  %v21762_v8 = vpop.f32.mrb[134].mxu0 }
 0x8bf   :  { %v21764_v23 = vpop.f32.mrb[135].mxu0 }
 0x8c0   :  { %v12282_v20 = vadd.f32 %v12281_v42, %v21764_v23 }
 0x8c2   :  { %v12283_v13 = vadd.f32 %v21756_v44, %v12282_v20 }
 0x8c4   :  { %v21768_v54 = vpop.f32.mrb[136].mxu0  ;;  %v12284_v17 = vadd.f32 %v21762_v8, %v12283_v13 }
 0x8c5   :  { %v21771_v21 = vpop.f32.mrb[137].mxu0 }
 0x8c6   :  { %v12285_v11 = vadd.f32 %v12284_v17, %v21771_v21  ;;  %v21774_v63 = vpop.f32.mrb[138].mxu0 }
 0x8c7   :  { %v21776_v62 = vpop.f32.mrb[139].mxu0 }
 0x8c8   :  { %v12286_v40 = vadd.f32 %v12285_v11, %v21776_v62 }
 0x8ca   :  { %v12287_v55 = vadd.f32 %v21768_v54, %v12286_v40 }
 0x8cc   :  { %v21780_v2 = vpop.f32.mrb[140].mxu0  ;;  %v12288_v60 = vadd.f32 %v21774_v63, %v12287_v55 }
 0x8cd   :  { %v21783_v53 = vpop.f32.mrb[141].mxu0 }
 0x8ce   :  { %v12289_v47 = vadd.f32 %v12288_v60, %v21783_v53  ;;  %v21786_v25 = vpop.f32.mrb[142].mxu0 }
 0x8cf   :  { %v21788_v35 = vpop.f32.mrb[143].mxu0 }
 0x8d0   :  { %v12290_v10 = vadd.f32 %v12289_v47, %v21788_v35 }
 0x8d2   :  { %v12291_v3 = vadd.f32 %v21780_v2, %v12290_v10 }
 0x8d4   :  { %v21792_v48 = vpop.f32.mrb[144].mxu0  ;;  %v12292_v1 = vadd.f32 %v21786_v25, %v12291_v3 }
 0x8d5   :  { %v21795_v32 = vpop.f32.mrb[145].mxu0 }
 0x8d6   :  { %v12293_v7 = vadd.f32 %v12292_v1, %v21795_v32  ;;  %v21798_v39 = vpop.f32.mrb[146].mxu0 }
 0x8d7   :  { %v21800_v16 = vpop.f32.mrb[147].mxu0 }
 0x8d8   :  { %v12294_v12 = vadd.f32 %v12293_v7, %v21800_v16 }
 0x8da   :  { %v12295_v51 = vadd.f32 %v21792_v48, %v12294_v12 }
 0x8dc   :  { %v21804_v50 = vpop.f32.mrb[148].mxu0  ;;  %v12296_v52 = vadd.f32 %v21798_v39, %v12295_v51 }
 0x8dd   :  { %v21807_v29 = vpop.f32.mrb[149].mxu0 }
 0x8de   :  { %v12297_v49 = vadd.f32 %v12296_v52, %v21807_v29  ;;  %v21810_v5 = vpop.f32.mrb[150].mxu0 }
 0x8df   :  { %v21812_v24 = vpop.f32.mrb[151].mxu0 }
 0x8e0   :  { %v12298_v33 = vadd.f32 %v12297_v49, %v21812_v24 }
 0x8e2   :  { %v12299_v43 = vadd.f32 %v21804_v50, %v12298_v33 }
 0x8e4   :  { %v21816_v6 = vpop.f32.mrb[152].mxu0  ;;  %v12300_v37 = vadd.f32 %v21810_v5, %v12299_v43 }
 0x8e5   :  { %v21819_v30 = vpop.f32.mrb[153].mxu0 }
 0x8e6   :  { %v12301_v31 = vadd.f32 %v12300_v37, %v21819_v30  ;;  %v21822_v46 = vpop.f32.mrb[154].mxu0 }
 0x8e7   :  { %v21824_v0 = vpop.f32.mrb[155].mxu0 }
 0x8e8   :  { %v12302_v61 = vadd.f32 %v12301_v31, %v21824_v0 }
 0x8ea   :  { %v12303_v27 = vadd.f32 %v21816_v6, %v12302_v61 }
 0x8ec   :  { %v21828_v9 = vpop.f32.mrb[156].mxu0  ;;  %v12304_v15 = vadd.f32 %v21822_v46, %v12303_v27 }
 0x8ed   :  { %v21831_v19 = vpop.f32.mrb[157].mxu0 }
 0x8ee   :  { %v12305_v45 = vadd.f32 %v12304_v15, %v21831_v19  ;;  %v21834_v41 = vpop.f32.mrb[158].mxu0 }
 0x8ef   :  { %v21836_v14 = vpop.f32.mrb[159].mxu0 }
 0x8f0   :  { %v12306_v28 = vadd.f32 %v12305_v45, %v21836_v14 }
 0x8f2   :  { %v12307_v4 = vadd.f32 %v21828_v9, %v12306_v28 }
 0x8f4   :  { %v21840_v26 = vpop.f32.mrb[160].mxu0  ;;  %v12308_v34 = vadd.f32 %v21834_v41, %v12307_v4 }
 0x8f5   :  { %v21843_v57 = vpop.f32.mrb[161].mxu0 }
 0x8f6   :  { %v12309_v36 = vadd.f32 %v12308_v34, %v21843_v57  ;;  %v21846_v42 = vpop.f32.mrb[162].mxu0 }
 0x8f7   :  { %v21848_v20 = vpop.f32.mrb[163].mxu0 }
 0x8f8   :  { %v12310_v13 = vadd.f32 %v12309_v36, %v21848_v20 }
 0x8fa   :  { %v12311_v17 = vadd.f32 %v21840_v26, %v12310_v13 }
 0x8fc   :  { %v21852_v11 = vpop.f32.mrb[164].mxu0  ;;  %v12312_v40 = vadd.f32 %v21846_v42, %v12311_v17 }
 0x8fd   :  { %v21855_v55 = vpop.f32.mrb[165].mxu0 }
 0x8fe   :  { %v12313_v60 = vadd.f32 %v12312_v40, %v21855_v55  ;;  %v21858_v47 = vpop.f32.mrb[166].mxu0 }
 0x8ff   :  { %v21860_v10 = vpop.f32.mrb[167].mxu0 }
 0x900   :  { %v12314_v3 = vadd.f32 %v12313_v60, %v21860_v10 }
 0x902   :  { %v12315_v1 = vadd.f32 %v21852_v11, %v12314_v3 }
 0x904   :  { %v21864_v7 = vpop.f32.mrb[168].mxu0  ;;  %v12316_v12 = vadd.f32 %v21858_v47, %v12315_v1 }
 0x905   :  { %v21867_v51 = vpop.f32.mrb[169].mxu0 }
 0x906   :  { %v12317_v52 = vadd.f32 %v12316_v12, %v21867_v51  ;;  %v21870_v49 = vpop.f32.mrb[170].mxu0 }
 0x907   :  { %v21872_v33 = vpop.f32.mrb[171].mxu0 }
 0x908   :  { %v12318_v43 = vadd.f32 %v12317_v52, %v21872_v33 }
 0x90a   :  { %v12319_v37 = vadd.f32 %v21864_v7, %v12318_v43 }
 0x90c   :  { %v21876_v31 = vpop.f32.mrb[172].mxu0  ;;  %v12320_v61 = vadd.f32 %v21870_v49, %v12319_v37 }
 0x90d   :  { %v21879_v27 = vpop.f32.mrb[173].mxu0 }
 0x90e   :  { %v12321_v15 = vadd.f32 %v12320_v61, %v21879_v27  ;;  %v21882_v45 = vpop.f32.mrb[174].mxu0 }
 0x90f   :  { %v21884_v28 = vpop.f32.mrb[175].mxu0 }
 0x910   :  { %v12322_v4 = vadd.f32 %v12321_v15, %v21884_v28 }
 0x912   :  { %v12323_v34 = vadd.f32 %v21876_v31, %v12322_v4 }
 0x914   :  { %v21888_v36 = vpop.f32.mrb[176].mxu0  ;;  %v12324_v13 = vadd.f32 %v21882_v45, %v12323_v34 }
 0x915   :  { %24289 = vst [vmem:[#allocation42_spill] sm:$0xff] %v21888_v36  ;;  %v21891_v17 = vpop.f32.mrb[177].mxu0 }
 0x916   :  { %24290 = vst [vmem:[#allocation92_spill] sm:$0xff] %v21891_v17  ;;  %v12325_v40 = vadd.f32 %v12324_v13, %v21891_v17  ;;  %v21894_v60 = vpop.f32.mrb[178].mxu0 }
 0x917   :  { %24291 = vst [vmem:[#allocation9_spill] sm:$0xff] %v21894_v60  ;;  %v21896_v3 = vpop.f32.mrb[179].mxu0 }
 0x918   :  { %24292 = vst [vmem:[#allocation94_spill] sm:$0xff] %v21896_v3  ;;  %v12326_v1 = vadd.f32 %v12325_v40, %v21896_v3 }
 0x91a   :  { %v12327_v12 = vadd.f32 %v21888_v36, %v12326_v1 }
 0x91c   :  { %v21900_v52 = vpop.f32.mrb[180].mxu0  ;;  %v12328_v43 = vadd.f32 %v21894_v60, %v12327_v12 }
 0x91d   :  { %24293 = vst [vmem:[#allocation16_spill] sm:$0xff] %v21900_v52  ;;  %v21903_v37 = vpop.f32.mrb[181].mxu0 }
 0x91e   :  { %24294 = vst [vmem:[#allocation96_spill] sm:$0xff] %v21903_v37  ;;  %v12329_v61 = vadd.f32 %v12328_v43, %v21903_v37  ;;  %v21906_v15 = vpop.f32.mrb[182].mxu0 }
 0x91f   :  { %24295 = vst [vmem:[#allocation13_spill] sm:$0xff] %v21906_v15  ;;  %v21908_v4 = vpop.f32.mrb[183].mxu0 }
 0x920   :  { %24296 = vst [vmem:[#allocation98_spill] sm:$0xff] %v21908_v4  ;;  %v12330_v34 = vadd.f32 %v12329_v61, %v21908_v4 }
 0x922   :  { %v12331_v13 = vadd.f32 %v21900_v52, %v12330_v34 }
 0x924   :  { %v21912_v58 = vpop.f32.mrb[184].mxu0  ;;  %v12332_v40 = vadd.f32 %v21906_v15, %v12331_v13 }
 0x925   :  { %24297 = vst [vmem:[#allocation81_spill] sm:$0xff] %v21912_v58  ;;  %v21915_v1 = vpop.f32.mrb[185].mxu0 }
 0x926   :  { %24298 = vst [vmem:[#allocation100_spill] sm:$0xff] %v21915_v1  ;;  %v12333_v12 = vadd.f32 %v12332_v40, %v21915_v1  ;;  %v21918_v60 = vpop.f32.mrb[186].mxu0 }
 0x927   :  { %24299 = vst [vmem:[#allocation15_spill] sm:$0xff] %v21918_v60  ;;  %v21920_v36 = vpop.f32.mrb[187].mxu0 }
 0x928   :  { %24300 = vst [vmem:[#allocation7_spill] sm:$0xff] %v21920_v36  ;;  %v12334_v43 = vadd.f32 %v12333_v12, %v21920_v36 }
 0x92a   :  { %v12335_v37 = vadd.f32 %v21912_v58, %v12334_v43 }
 0x92c   :  { %v21924_v3 = vpop.f32.mrb[188].mxu0  ;;  %v12336_v61 = vadd.f32 %v21918_v60, %v12335_v37 }
 0x92d   :  { %v21927_v34 = vpop.f32.mrb[189].mxu0 }
 0x92e   :  { %24301 = vst [vmem:[#allocation62_spill] sm:$0xff] %v21927_v34  ;;  %v12337_v13 = vadd.f32 %v12336_v61, %v21927_v34  ;;  %v21930_v15 = vpop.f32.mrb[190].mxu0 }
 0x92f   :  { %v21932_v52 = vpop.f32.mrb[191].mxu0 }
 0x930   :  { %v12338_v40 = vadd.f32 %v12337_v13, %v21932_v52 }
 0x932   :  { %v12339_v1 = vadd.f32 %v21924_v3, %v12338_v40  ;;  %v24315_v40 = vld [vmem:[#allocation9_spill] sm:$0xff] }
 0x934   :  { %v12340_v12 = vadd.f32 %v21930_v15, %v12339_v1  ;;  %v24313_v1 = vld [vmem:[#allocation42_spill] sm:$0xff] }
 0x936   :  { %v12341_v36 = vrot.slane %v12340_v12, 4 }
 0x938   :  { %v12342_v43 = vadd.f32 %v12341_v36, %v12340_v12  ;;  %v24317_v12 = vld [vmem:[#allocation96_spill] sm:$0xff] }
 0x93a   :  { %v12343_v58 = vrot.slane %v12342_v43, 2 }
 0x93c   :  { %v12344_v4 = vadd.f32 %v12343_v58, %v12342_v43  ;;  %v24319_v43 = vld [vmem:[#allocation98_spill] sm:$0xff] }
 0x93e   :  { %v12345_v17 = vrot.slane %v12344_v4, 1 }
 0x940   :  { %v12346_v37 = vadd.f32 %v12345_v17, %v12344_v4  ;;  %v24309_v17 = vld [vmem:[#allocation92_spill] sm:$0xff]  ;;  %v24311_v4 = vld [vmem:[#allocation94_spill] sm:$0xff] }
 0x942   :  { %v21937_v60 = vmul.f32 0.001953125, %v12346_v37 }
 0x944   :  { %v21941_v61 = vsub.f32 %v21747_v22, %v21937_v60  ;;  %v21945_v34 = vsub.f32 %v21751_v56, %v21937_v60  ;;  %v21949_v13 = vsub.f32 %v21745_v38, %v21937_v60  ;;  %v21953_v36 = vsub.f32 %v21749_v18, %v21937_v60 }
 0x945   :  { %v21957_v58 = vsub.f32 %v21759_v59, %v21937_v60  ;;  %v21961_v22 = vsub.f32 %v21764_v23, %v21937_v60  ;;  %v21965_v56 = vsub.f32 %v21756_v44, %v21937_v60  ;;  %v21969_v38 = vsub.f32 %v21762_v8, %v21937_v60 }
 0x946   :  { %24302 = vst [vmem:[#allocation25_spill] sm:$0xff] %v21941_v61  ;;  %24303 = vst [vmem:[#allocation64_spill] sm:$0xff] %v21945_v34  ;;  %v21973_v18 = vsub.f32 %v21771_v21, %v21937_v60  ;;  %v21977_v59 = vsub.f32 %v21776_v62, %v21937_v60  ;;  %v21981_v23 = vsub.f32 %v21768_v54, %v21937_v60 }
 0x947   :  { %24304 = vst [vmem:[#allocation26_spill] sm:$0xff] %v21949_v13  ;;  %v21985_v44 = vsub.f32 %v21774_v63, %v21937_v60  ;;  %v21989_v8 = vsub.f32 %v21783_v53, %v21937_v60  ;;  %v21993_v21 = vsub.f32 %v21788_v35, %v21937_v60  ;;  %v21997_v62 = vsub.f32 %v21780_v2, %v21937_v60 }
 0x948   :  { %v22001_v54 = vsub.f32 %v21786_v25, %v21937_v60  ;;  %v22005_v63 = vsub.f32 %v21795_v32, %v21937_v60  ;;  %v22009_v53 = vsub.f32 %v21800_v16, %v21937_v60  ;;  %v22013_v35 = vsub.f32 %v21792_v48, %v21937_v60 }
 0x949   :  { %v22017_v2 = vsub.f32 %v21798_v39, %v21937_v60  ;;  %v22021_v25 = vsub.f32 %v21807_v29, %v21937_v60  ;;  %v22025_v32 = vsub.f32 %v21812_v24, %v21937_v60  ;;  %v22029_v16 = vsub.f32 %v21804_v50, %v21937_v60 }
 0x94a   :  { %v22033_v48 = vsub.f32 %v21810_v5, %v21937_v60  ;;  %v22037_v39 = vsub.f32 %v21819_v30, %v21937_v60  ;;  %v22041_v29 = vsub.f32 %v21824_v0, %v21937_v60  ;;  %v22045_v24 = vsub.f32 %v21816_v6, %v21937_v60 }
 0x94b   :  { %v22049_v50 = vsub.f32 %v21822_v46, %v21937_v60  ;;  %v22053_v5 = vsub.f32 %v21831_v19, %v21937_v60  ;;  %v22057_v30 = vsub.f32 %v21836_v14, %v21937_v60  ;;  %v22061_v0 = vsub.f32 %v21828_v9, %v21937_v60 }
 0x94c   :  { %v22065_v6 = vsub.f32 %v21834_v41, %v21937_v60  ;;  %v22069_v46 = vsub.f32 %v21843_v57, %v21937_v60  ;;  %v22073_v19 = vsub.f32 %v21848_v20, %v21937_v60  ;;  %v22077_v14 = vsub.f32 %v21840_v26, %v21937_v60 }
 0x94d   :  { %v22081_v9 = vsub.f32 %v21846_v42, %v21937_v60  ;;  %v22085_v41 = vsub.f32 %v21855_v55, %v21937_v60  ;;  %v22089_v57 = vsub.f32 %v21860_v10, %v21937_v60  ;;  %v22093_v20 = vsub.f32 %v21852_v11, %v21937_v60 }
 0x94e   :  { %v22097_v26 = vsub.f32 %v21858_v47, %v21937_v60  ;;  %v22101_v42 = vsub.f32 %v21867_v51, %v21937_v60  ;;  %v22105_v55 = vsub.f32 %v21872_v33, %v21937_v60  ;;  %v22109_v10 = vsub.f32 %v21864_v7, %v21937_v60 }
 0x94f   :  { %v22113_v11 = vsub.f32 %v21870_v49, %v21937_v60  ;;  %v22117_v47 = vsub.f32 %v21879_v27, %v21937_v60  ;;  %v22121_v51 = vsub.f32 %v21884_v28, %v21937_v60  ;;  %v22125_v33 = vsub.f32 %v21876_v31, %v21937_v60 }
 0x950   :  { %v22129_v7 = vsub.f32 %v21882_v45, %v21937_v60  ;;  %v22133_v49 = vsub.f32 %v24309_v17, %v21937_v60  ;;  %v22137_v27 = vsub.f32 %v24311_v4, %v21937_v60  ;;  %v22141_v28 = vsub.f32 %v24313_v1, %v21937_v60  ;;  %v24321_v17 = vld [vmem:[#allocation16_spill] sm:$0xff] }
 0x951   :  { %24305 = vst [vmem:[#allocation65_spill] sm:$0xff] %v22117_v47  ;;  %24306 = vst [vmem:[#allocation30_spill] sm:$0xff] %v22121_v51  ;;  %v22145_v31 = vsub.f32 %v24315_v40, %v21937_v60  ;;  %v22149_v45 = vsub.f32 %v24317_v12, %v21937_v60  ;;  %v22153_v37 = vsub.f32 %v24319_v43, %v21937_v60 }
 0x952   :  { %24307 = vst [vmem:[#allocation66_spill] sm:$0xff] %v22125_v33  ;;  %24308 = vst [vmem:[#allocation18_spill] sm:$0xff] %v22129_v7  ;;  %v22157_v4 = vsub.f32 %v24321_v17, %v21937_v60 }
 0x953   :  { %24310 = vst [vmem:[#allocation20_spill] sm:$0xff] %v22133_v49  ;;  %24312 = vst [vmem:[#allocation87_spill] sm:$0xff] %v22137_v27  ;;  %v24323_v27 = vld [vmem:[#allocation13_spill] sm:$0xff] }
 0x954   :  { %24314 = vst [vmem:[#allocation17_spill] sm:$0xff] %v22141_v28  ;;  %24316 = vst [vmem:[#allocation19_spill] sm:$0xff] %v22145_v31  ;;  %v22161_v1 = vsub.f32 %v24323_v27, %v21937_v60  ;;  %v24325_v28 = vld [vmem:[#allocation100_spill] sm:$0xff]  ;;  %v24327_v31 = vld [vmem:[#allocation7_spill] sm:$0xff] }
 0x955   :  { %24318 = vst [vmem:[#allocation22_spill] sm:$0xff] %v22149_v45  ;;  %24320 = vst [vmem:[#allocation45_spill] sm:$0xff] %v22153_v37  ;;  %v22165_v40 = vsub.f32 %v24325_v28, %v21937_v60  ;;  %v22169_v12 = vsub.f32 %v24327_v31, %v21937_v60  ;;  %v24329_v45 = vld [vmem:[#allocation81_spill] sm:$0xff]  ;;  %v24331_v37 = vld [vmem:[#allocation15_spill] sm:$0xff]  ;;  %v22185_v28 = vsub.f32 %v21932_v52, %v21937_v60 }
 0x956   :  { %24322 = vst [vmem:[#allocation46_spill] sm:$0xff] %v22157_v4  ;;  %24324 = vst [vmem:[#allocation47_spill] sm:$0xff] %v22161_v1  ;;  %v22173_v43 = vsub.f32 %v24329_v45, %v21937_v60  ;;  %v22177_v17 = vsub.f32 %v24331_v37, %v21937_v60  ;;  %v24333_v4 = vld [vmem:[#allocation62_spill] sm:$0xff]  ;;  %v22189_v31 = vsub.f32 %v21924_v3, %v21937_v60 }
 0x957   :  { %24326 = vst [vmem:[#allocation48_spill] sm:$0xff] %v22165_v40  ;;  %24328 = vst [vmem:[#allocation49_spill] sm:$0xff] %v22169_v12  ;;  %v22181_v27 = vsub.f32 %v24333_v4, %v21937_v60  ;;  %v22193_v45 = vsub.f32 %v21930_v15, %v21937_v60  ;;  %v12412_v37 = vmul.f32 %v21941_v61, %v21941_v61 }
 0x958   :  { %24330 = vst [vmem:[#allocation50_spill] sm:$0xff] %v22173_v43  ;;  %24332 = vst [vmem:[#allocation24_spill] sm:$0xff] %v22177_v17  ;;  %v12413_v17 = vmul.f32 %v21945_v34, %v21945_v34  ;;  %v12414_v4 = vmul.f32 %v21949_v13, %v21949_v13  ;;  %v12415_v52 = vmul.f32 %v21953_v36, %v21953_v36 }
 0x959   :  { %24334 = vst [vmem:[#allocation51_spill] sm:$0xff] %v22181_v27  ;;  %24335 = vst [vmem:[#allocation52_spill] sm:$0xff] %v22185_v28  ;;  %v12416_v3 = vmul.f32 %v21957_v58, %v21957_v58  ;;  %v12417_v60 = vmul.f32 %v21961_v22, %v21961_v22  ;;  %v12418_v61 = vmul.f32 %v21965_v56, %v21965_v56 }
 0x95a   :  { %24336 = vst [vmem:[#allocation53_spill] sm:$0xff] %v22189_v31  ;;  %v12476_v27 = vadd.f32 %v12413_v17, %v12412_v37  ;;  %v12419_v13 = vmul.f32 %v21969_v38, %v21969_v38  ;;  %v12420_v37 = vmul.f32 %v21973_v18, %v21973_v18 }
 0x95c   :  { %v12477_v28 = vadd.f32 %v12476_v27, %v12414_v4  ;;  %v12421_v4 = vmul.f32 %v21977_v59, %v21977_v59 }
 0x95e   :  { %v12478_v31 = vadd.f32 %v12477_v28, %v12415_v52  ;;  %v12422_v52 = vmul.f32 %v21981_v23, %v21981_v23 }
 0x960   :  { %v12479_v15 = vadd.f32 %v12478_v31, %v12416_v3  ;;  %v12423_v3 = vmul.f32 %v21985_v44, %v21985_v44 }
 0x962   :  { %v12480_v34 = vadd.f32 %v12479_v15, %v12417_v60  ;;  %v12424_v15 = vmul.f32 %v21989_v8, %v21989_v8 }
 0x964   :  { %v12481_v17 = vadd.f32 %v12480_v34, %v12418_v61  ;;  %v12425_v61 = vmul.f32 %v21993_v21, %v21993_v21 }
 0x966   :  { %v12482_v27 = vadd.f32 %v12481_v17, %v12419_v13  ;;  %v12426_v17 = vmul.f32 %v21997_v62, %v21997_v62 }
 0x968   :  { %v12483_v28 = vadd.f32 %v12482_v27, %v12420_v37  ;;  %v12427_v27 = vmul.f32 %v22001_v54, %v22001_v54 }
 0x96a   :  { %v12484_v31 = vadd.f32 %v12483_v28, %v12421_v4  ;;  %v12428_v28 = vmul.f32 %v22005_v63, %v22005_v63 }
 0x96c   :  { %v12485_v60 = vadd.f32 %v12484_v31, %v12422_v52  ;;  %v12429_v31 = vmul.f32 %v22009_v53, %v22009_v53 }
 0x96e   :  { %v12486_v34 = vadd.f32 %v12485_v60, %v12423_v3  ;;  %v12430_v60 = vmul.f32 %v22013_v35, %v22013_v35 }
 0x970   :  { %v12487_v13 = vadd.f32 %v12486_v34, %v12424_v15  ;;  %v12431_v34 = vmul.f32 %v22017_v2, %v22017_v2 }
 0x972   :  { %v12488_v37 = vadd.f32 %v12487_v13, %v12425_v61  ;;  %v12432_v13 = vmul.f32 %v22021_v25, %v22021_v25 }
 0x974   :  { %v12489_v4 = vadd.f32 %v12488_v37, %v12426_v17  ;;  %v12433_v37 = vmul.f32 %v22025_v32, %v22025_v32 }
 0x976   :  { %v12490_v52 = vadd.f32 %v12489_v4, %v12427_v27  ;;  %v12434_v4 = vmul.f32 %v22029_v16, %v22029_v16 }
 0x978   :  { %v12491_v3 = vadd.f32 %v12490_v52, %v12428_v28  ;;  %v12435_v52 = vmul.f32 %v22033_v48, %v22033_v48 }
 0x97a   :  { %v12492_v15 = vadd.f32 %v12491_v3, %v12429_v31  ;;  %v12436_v3 = vmul.f32 %v22037_v39, %v22037_v39 }
 0x97c   :  { %v12493_v61 = vadd.f32 %v12492_v15, %v12430_v60  ;;  %v12437_v15 = vmul.f32 %v22041_v29, %v22041_v29 }
 0x97e   :  { %v12494_v17 = vadd.f32 %v12493_v61, %v12431_v34  ;;  %v12438_v61 = vmul.f32 %v22045_v24, %v22045_v24 }
 0x980   :  { %v12495_v27 = vadd.f32 %v12494_v17, %v12432_v13  ;;  %v12439_v17 = vmul.f32 %v22049_v50, %v22049_v50 }
 0x982   :  { %v12496_v28 = vadd.f32 %v12495_v27, %v12433_v37  ;;  %v12440_v27 = vmul.f32 %v22053_v5, %v22053_v5 }
 0x984   :  { %v12497_v31 = vadd.f32 %v12496_v28, %v12434_v4  ;;  %v12441_v28 = vmul.f32 %v22057_v30, %v22057_v30 }
 0x986   :  { %v12498_v60 = vadd.f32 %v12497_v31, %v12435_v52  ;;  %v12442_v31 = vmul.f32 %v22061_v0, %v22061_v0 }
 0x988   :  { %v12499_v34 = vadd.f32 %v12498_v60, %v12436_v3  ;;  %v12443_v60 = vmul.f32 %v22065_v6, %v22065_v6 }
 0x98a   :  { %v12500_v13 = vadd.f32 %v12499_v34, %v12437_v15  ;;  %v12444_v34 = vmul.f32 %v22069_v46, %v22069_v46 }
 0x98c   :  { %v12501_v37 = vadd.f32 %v12500_v13, %v12438_v61  ;;  %v12445_v13 = vmul.f32 %v22073_v19, %v22073_v19 }
 0x98e   :  { %v12502_v4 = vadd.f32 %v12501_v37, %v12439_v17  ;;  %v12446_v37 = vmul.f32 %v22077_v14, %v22077_v14 }
 0x990   :  { %v12503_v52 = vadd.f32 %v12502_v4, %v12440_v27  ;;  %v12447_v4 = vmul.f32 %v22081_v9, %v22081_v9 }
 0x992   :  { %v12504_v3 = vadd.f32 %v12503_v52, %v12441_v28  ;;  %v12448_v52 = vmul.f32 %v22085_v41, %v22085_v41 }
 0x994   :  { %v12505_v15 = vadd.f32 %v12504_v3, %v12442_v31  ;;  %v12449_v3 = vmul.f32 %v22089_v57, %v22089_v57 }
 0x996   :  { %v12506_v61 = vadd.f32 %v12505_v15, %v12443_v60  ;;  %v12450_v15 = vmul.f32 %v22093_v20, %v22093_v20 }
 0x998   :  { %v12507_v17 = vadd.f32 %v12506_v61, %v12444_v34  ;;  %v12451_v61 = vmul.f32 %v22097_v26, %v22097_v26 }
 0x99a   :  { %v12508_v27 = vadd.f32 %v12507_v17, %v12445_v13  ;;  %v12452_v17 = vmul.f32 %v22101_v42, %v22101_v42 }
 0x99c   :  { %v12509_v28 = vadd.f32 %v12508_v27, %v12446_v37  ;;  %v12453_v27 = vmul.f32 %v22105_v55, %v22105_v55 }
 0x99e   :  { %v12510_v31 = vadd.f32 %v12509_v28, %v12447_v4  ;;  %v12454_v28 = vmul.f32 %v22109_v10, %v22109_v10 }
 0x9a0   :  { %v12511_v60 = vadd.f32 %v12510_v31, %v12448_v52  ;;  %v12455_v31 = vmul.f32 %v22113_v11, %v22113_v11 }
 0x9a2   :  { %v12512_v34 = vadd.f32 %v12511_v60, %v12449_v3  ;;  %v12456_v60 = vmul.f32 %v22117_v47, %v22117_v47 }
 0x9a4   :  { %v12513_v13 = vadd.f32 %v12512_v34, %v12450_v15  ;;  %v12457_v34 = vmul.f32 %v22121_v51, %v22121_v51 }
 0x9a6   :  { %v12514_v37 = vadd.f32 %v12513_v13, %v12451_v61  ;;  %v12458_v13 = vmul.f32 %v22125_v33, %v22125_v33 }
 0x9a8   :  { %v12515_v4 = vadd.f32 %v12514_v37, %v12452_v17  ;;  %v12459_v37 = vmul.f32 %v22129_v7, %v22129_v7 }
 0x9aa   :  { %v12516_v52 = vadd.f32 %v12515_v4, %v12453_v27  ;;  %v12460_v4 = vmul.f32 %v22133_v49, %v22133_v49 }
 0x9ac   :  { %v12517_v3 = vadd.f32 %v12516_v52, %v12454_v28  ;;  %v24337_v52 = vld [vmem:[#allocation87_spill] sm:$0xff] }
 0x9ad   :  { %v12461_v47 = vmul.f32 %v24337_v52, %v24337_v52 }
 0x9ae   :  { %v12518_v15 = vadd.f32 %v12517_v3, %v12455_v31  ;;  %v24338_v3 = vld [vmem:[#allocation17_spill] sm:$0xff] }
 0x9af   :  { %v12462_v51 = vmul.f32 %v24338_v3, %v24338_v3 }
 0x9b0   :  { %v12519_v61 = vadd.f32 %v12518_v15, %v12456_v60  ;;  %v24339_v15 = vld [vmem:[#allocation19_spill] sm:$0xff] }
 0x9b1   :  { %v12463_v33 = vmul.f32 %v24339_v15, %v24339_v15 }
 0x9b2   :  { %v12520_v17 = vadd.f32 %v12519_v61, %v12457_v34  ;;  %v24340_v61 = vld [vmem:[#allocation22_spill] sm:$0xff] }
 0x9b3   :  { %v12464_v7 = vmul.f32 %v24340_v61, %v24340_v61 }
 0x9b4   :  { %v12521_v27 = vadd.f32 %v12520_v17, %v12458_v13  ;;  %v24341_v17 = vld [vmem:[#allocation45_spill] sm:$0xff] }
 0x9b5   :  { %v12465_v49 = vmul.f32 %v24341_v17, %v24341_v17 }
 0x9b6   :  { %v12522_v28 = vadd.f32 %v12521_v27, %v12459_v37  ;;  %v24342_v27 = vld [vmem:[#allocation46_spill] sm:$0xff] }
 0x9b7   :  { %v12466_v52 = vmul.f32 %v24342_v27, %v24342_v27 }
 0x9b8   :  { %v12523_v31 = vadd.f32 %v12522_v28, %v12460_v4  ;;  %v12467_v28 = vmul.f32 %v22161_v1, %v22161_v1 }
 0x9ba   :  { %v12524_v60 = vadd.f32 %v12523_v31, %v12461_v47  ;;  %v12468_v31 = vmul.f32 %v22165_v40, %v22165_v40 }
 0x9bc   :  { %v12525_v34 = vadd.f32 %v12524_v60, %v12462_v51  ;;  %v12469_v60 = vmul.f32 %v22169_v12, %v22169_v12 }
 0x9be   :  { %v12526_v13 = vadd.f32 %v12525_v34, %v12463_v33  ;;  %v12470_v34 = vmul.f32 %v22173_v43, %v22173_v43 }
 0x9c0   :  { %v12527_v37 = vadd.f32 %v12526_v13, %v12464_v7  ;;  %v24343_v13 = vld [vmem:[#allocation24_spill] sm:$0xff] }
 0x9c1   :  { %v12471_v27 = vmul.f32 %v24343_v13, %v24343_v13 }
 0x9c2   :  { %v12528_v4 = vadd.f32 %v12527_v37, %v12465_v49  ;;  %v24344_v37 = vld [vmem:[#allocation51_spill] sm:$0xff] }
 0x9c3   :  { %v12472_v1 = vmul.f32 %v24344_v37, %v24344_v37 }
 0x9c4   :  { %v12529_v47 = vadd.f32 %v12528_v4, %v12466_v52  ;;  %v24345_v4 = vld [vmem:[#allocation52_spill] sm:$0xff] }
 0x9c5   :  { %v12473_v40 = vmul.f32 %v24345_v4, %v24345_v4 }
 0x9c6   :  { %v12530_v51 = vadd.f32 %v12529_v47, %v12467_v28  ;;  %v24346_v47 = vld [vmem:[#allocation53_spill] sm:$0xff] }
 0x9c7   :  { %v12474_v12 = vmul.f32 %v24346_v47, %v24346_v47 }
 0x9c8   :  { %v12531_v33 = vadd.f32 %v12530_v51, %v12468_v31  ;;  %v12475_v51 = vmul.f32 %v22193_v45, %v22193_v45 }
 0x9ca   :  { %v12532_v7 = vadd.f32 %v12531_v33, %v12469_v60 }
 0x9cc   :  { %v12533_v49 = vadd.f32 %v12532_v7, %v12470_v34 }
 0x9ce   :  { %v12534_v52 = vadd.f32 %v12533_v49, %v12471_v27 }
 0x9d0   :  { %v12535_v28 = vadd.f32 %v12534_v52, %v12472_v1  ;;  %v12277_v1 = vld [vmem:[%s23149_s6] sm:$0x1] }
 0x9d2   :  { %v12536_v31 = vadd.f32 %v12535_v28, %v12473_v40  ;;  %v24347_v28 = vld [vmem:[#allocation21_spill] sm:$0xff] }
 0x9d4   :  { %v12537_v60 = vadd.f32 %v12536_v31, %v12474_v12  ;;  %v12680_v12 = vld [vmem:[%s23143_s0 + $0x1e8] sm:$0xff] }
 0x9d6   :  { %v12538_v33 = vadd.f32 %v12537_v60, %v12475_v51  ;;  %v24350_v51 = vld [vmem:[#allocation26_spill] sm:$0xff] }
 0x9d8   :  { %v12539_v43 = vrot.slane %v12538_v33, 4 }
 0x9da   :  { %v12540_v13 = vadd.f32 %v12539_v43, %v12538_v33 }
 0x9dc   :  { %v12541_v34 = vrot.slane %v12540_v13, 2 }
 0x9de   :  { %v12542_v7 = vadd.f32 %v12541_v34, %v12540_v13 }
 0x9e0   :  { %v12543_v17 = vrot.slane %v12542_v7, 1 }
 0x9e2   :  { %v12544_v37 = vadd.f32 %v12543_v17, %v12542_v7  ;;  %v24348_v17 = vld [vmem:[#allocation25_spill] sm:$0xff] }
 0x9e4   :  { %v12545_v27 = vmul.f32 0.001953125, %v12544_v37  ;;  %v24349_v37 = vld [vmem:[#allocation64_spill] sm:$0xff] }
 0x9e6   :  { %v12546_v49 = vadd.f32 1e-05, %v12545_v27 }
 0x9e8   :  { %15634 = vrsqrt.f32 %v12546_v49 }
 0x9f2   :  { %v15635_v52 = vpop.eup %15634 }
 0x9f3   :  { %v12548_v40 = vmul.f32 %v15635_v52, %v12277_v1 }
 0x9f5   :  { %v22327_v47 = vrot.slane %v12548_v40, %v24347_v28  ;;  %v24360_v40 = vld [vmem:[#allocation65_spill] sm:$0xff]  ;;  %v24362_v28 = vld [vmem:[#allocation30_spill] sm:$0xff] }
 0x9f7   :  { %v12616_v43 = vmul.f32 %v22327_v47, %v24345_v4  ;;  %v22336_v13 = vmul.f32 %v22327_v47, %v24348_v17  ;;  %v22340_v31 = vmul.f32 %v22327_v47, %v24349_v37  ;;  %v22344_v60 = vmul.f32 %v22327_v47, %v24350_v51  ;;  %v24366_v37 = vld [vmem:[#allocation18_spill] sm:$0xff] }
 0x9f8   :  { %v22348_v33 = vmul.f32 %v22327_v47, %v21953_v36  ;;  %v22352_v34 = vmul.f32 %v22327_v47, %v21957_v58  ;;  %v22356_v4 = vmul.f32 %v22327_v47, %v21961_v22  ;;  %v22360_v7 = vmul.f32 %v22327_v47, %v21965_v56 }
 0x9f9   :  { %v12744_v27 = vadd.f32 %v12680_v12, %v12616_v43  ;;  %v22364_v49 = vmul.f32 %v22327_v47, %v21969_v38  ;;  %v22368_v36 = vmul.f32 %v22327_v47, %v21973_v18  ;;  %v22372_v58 = vmul.f32 %v22327_v47, %v21977_v59  ;;  %v24364_v43 = vld [vmem:[#allocation66_spill] sm:$0xff] }
 0x9fa   :  { %v22376_v22 = vmul.f32 %v22327_v47, %v21981_v23  ;;  %v22380_v56 = vmul.f32 %v22327_v47, %v21985_v44  ;;  %v22384_v38 = vmul.f32 %v22327_v47, %v21989_v8  ;;  %v22388_v18 = vmul.f32 %v22327_v47, %v21993_v21 }
 0x9fb   :  { %v12808_v1 = vmax.f32 %v12744_v27, 0.0  ;;  %v22392_v59 = vmul.f32 %v22327_v47, %v21997_v62  ;;  %v22396_v23 = vmul.f32 %v22327_v47, %v22001_v54  ;;  %v22400_v44 = vmul.f32 %v22327_v47, %v22005_v63  ;;  %v12625_v27 = vld [vmem:[%s23143_s0 + $0x30] sm:$0xff] }
 0x9fc   :  { %v22404_v8 = vmul.f32 %v22327_v47, %v22009_v53  ;;  %v22408_v21 = vmul.f32 %v22327_v47, %v22013_v35  ;;  %v22412_v62 = vmul.f32 %v22327_v47, %v22017_v2  ;;  %v22416_v54 = vmul.f32 %v22327_v47, %v22021_v25 }
 0x9fd   :  { %v12872_v52 = vmin.f32 %v12808_v1, 6.0  ;;  %v22420_v63 = vmul.f32 %v22327_v47, %v22025_v32  ;;  %v22424_v53 = vmul.f32 %v22327_v47, %v22029_v16  ;;  %v22428_v35 = vmul.f32 %v22327_v47, %v22033_v48  ;;  %v12623_v1 = vld [vmem:[%s23143_s0 + $0x20] sm:$0xff] }
 0x9fe   :  { %v22432_v2 = vmul.f32 %v22327_v47, %v22037_v39  ;;  %v22436_v25 = vmul.f32 %v22327_v47, %v22041_v29  ;;  %v22440_v32 = vmul.f32 %v22327_v47, %v22045_v24  ;;  %v22444_v16 = vmul.f32 %v22327_v47, %v22049_v50 }
 0x9ff   :  { %12936 = vst [vmem:[#allocation3 + $0x1e8] sm:$0xff] %v12872_v52  ;;  %v22448_v48 = vmul.f32 %v22327_v47, %v22053_v5  ;;  %v22452_v39 = vmul.f32 %v22327_v47, %v22057_v30  ;;  %v22456_v29 = vmul.f32 %v22327_v47, %v22061_v0  ;;  %v22460_v24 = vmul.f32 %v22327_v47, %v22065_v6  ;;  %v12626_v52 = vld [vmem:[%s23143_s0 + $0x38] sm:$0xff] }
 0xa00   :  { %v22464_v50 = vmul.f32 %v22327_v47, %v22069_v46  ;;  %v22468_v5 = vmul.f32 %v22327_v47, %v22073_v19  ;;  %v22472_v30 = vmul.f32 %v22327_v47, %v22077_v14  ;;  %v22476_v0 = vmul.f32 %v22327_v47, %v22081_v9 }
 0xa01   :  { %v22480_v6 = vmul.f32 %v22327_v47, %v22085_v41  ;;  %v22484_v46 = vmul.f32 %v22327_v47, %v22089_v57  ;;  %v22488_v19 = vmul.f32 %v22327_v47, %v22093_v20  ;;  %v22492_v14 = vmul.f32 %v22327_v47, %v22097_v26  ;;  %v12621_v26 = vld [vmem:[%s23143_s0 + $0x10] sm:$0xff] }
 0xa02   :  { %24351 = vst [vmem:[#allocation54_spill] sm:$0xff] %v22476_v0  ;;  %v22496_v9 = vmul.f32 %v22327_v47, %v22101_v42  ;;  %v22500_v41 = vmul.f32 %v22327_v47, %v22105_v55  ;;  %v22504_v57 = vmul.f32 %v22327_v47, %v22109_v10  ;;  %v22508_v20 = vmul.f32 %v22327_v47, %v22113_v11  ;;  %v12619_v42 = vld [vmem:[%s23143_s0] sm:$0xff]  ;;  %v12622_v55 = vld [vmem:[%s23143_s0 + $0x18] sm:$0xff]  ;;  %v12620_v10 = vld [vmem:[%s23143_s0 + $0x8] sm:$0xff] }
 0xa03   :  { %24352 = vst [vmem:[#allocation101_spill] sm:$0xff] %v22480_v6  ;;  %24353 = vst [vmem:[#allocation55_spill] sm:$0xff] %v22484_v46  ;;  %v22524_v11 = vmul.f32 %v22327_v47, %v24360_v40  ;;  %v22528_v12 = vmul.f32 %v22327_v47, %v24362_v28  ;;  %v22532_v17 = vmul.f32 %v22327_v47, %v24364_v43  ;;  %v12624_v40 = vld [vmem:[%s23143_s0 + $0x28] sm:$0xff]  ;;  %v24368_v28 = vld [vmem:[#allocation20_spill] sm:$0xff] }
 0xa04   :  { %24354 = vst [vmem:[#allocation57_spill] sm:$0xff] %v22488_v19  ;;  %24355 = vst [vmem:[#allocation6_spill] sm:$0xff] %v22492_v14  ;;  %v22536_v51 = vmul.f32 %v22327_v47, %v24366_v37  ;;  %v22552_v43 = vmul.f32 %v22327_v47, %v24368_v28  ;;  %v24370_v37 = vld [vmem:[#allocation87_spill] sm:$0xff]  ;;  %v12627_v28 = vld [vmem:[%s23143_s0 + $0x40] sm:$0xff]  ;;  %v22647_v6 = vadd.f32 %v12619_v42, %v22336_v13 }
 0xa05   :  { %24356 = vst [vmem:[#allocation84_spill] sm:$0xff] %v22496_v9  ;;  %24357 = vst [vmem:[#allocation58_spill] sm:$0xff] %v22500_v41  ;;  %v12633_v41 = vld [vmem:[%s23143_s0 + $0x70] sm:$0xff]  ;;  %v24387_v14 = vld [vmem:[#allocation24_spill] sm:$0xff]  ;;  %v22665_v13 = vadd.f32 %v12621_v26, %v22344_v60  ;;  %v22668_v42 = vadd.f32 %v12622_v55, %v22348_v33  ;;  %v22686_v33 = vadd.f32 %v12624_v40, %v22356_v4 }
 0xa06   :  { %24358 = vst [vmem:[#allocation29_spill] sm:$0xff] %v22504_v57  ;;  %24359 = vst [vmem:[#allocation60_spill] sm:$0xff] %v22508_v20  ;;  %v24379_v20 = vld [vmem:[#allocation47_spill] sm:$0xff]  ;;  %v22620_v19 = vmul.f32 %v22327_v47, %v24387_v14  ;;  %v12637_v46 = vld [vmem:[%s23143_s0 + $0x90] sm:$0xff]  ;;  %v22692_v26 = vadd.f32 %v12626_v52, %v22364_v49  ;;  %v22695_v55 = vadd.f32 %v12627_v28, %v22368_v36 }
 0xa07   :  { %24361 = vst [vmem:[#allocation41_spill] sm:$0xff] %v22524_v11  ;;  %24363 = vst [vmem:[#allocation89_spill] sm:$0xff] %v22528_v12  ;;  %v22564_v12 = vmul.f32 %v22327_v47, %v24339_v15  ;;  %v12629_v11 = vld [vmem:[%s23143_s0 + $0x50] sm:$0xff]  ;;  %v22580_v15 = vmul.f32 %v22327_v47, %v24340_v61  ;;  %v22592_v57 = vmul.f32 %v22327_v47, %v24379_v20  ;;  %v12631_v61 = vld [vmem:[%s23143_s0 + $0x60] sm:$0xff] }
 0xa08   :  { %24365 = vst [vmem:[#allocation43_spill] sm:$0xff] %v22532_v17  ;;  %24367 = vst [vmem:[#allocation91_spill] sm:$0xff] %v22536_v51  ;;  %v22556_v51 = vmul.f32 %v22327_v47, %v24370_v37  ;;  %v22560_v17 = vmul.f32 %v22327_v47, %v24338_v3  ;;  %v12630_v37 = vld [vmem:[%s23143_s0 + $0x58] sm:$0xff]  ;;  %v12628_v3 = vld [vmem:[%s23143_s0 + $0x48] sm:$0xff]  ;;  %v22713_v36 = vadd.f32 %v12629_v11, %v22376_v22 }
 0xa09   :  { %24369 = vst [vmem:[#allocation14_spill] sm:$0xff] %v22552_v43  ;;  %24373 = vst [vmem:[#allocation97_spill] sm:$0xff] %v22564_v12  ;;  %v24375_v12 = vld [vmem:[#allocation45_spill] sm:$0xff]  ;;  %v12641_v0 = vld [vmem:[%s23143_s0 + $0xb0] sm:$0xff]  ;;  %v22710_v49 = vadd.f32 %v12628_v3, %v22372_v58  ;;  %v22719_v52 = vadd.f32 %v12631_v61, %v22384_v38  ;;  %v22737_v38 = vadd.f32 %v12633_v41, %v22392_v59 }
 0xa0a   :  { %24371 = vst [vmem:[#allocation93_spill] sm:$0xff] %v22556_v51  ;;  %24372 = vst [vmem:[#allocation95_spill] sm:$0xff] %v22560_v17  ;;  %v22584_v17 = vmul.f32 %v22327_v47, %v24375_v12  ;;  %v24377_v51 = vld [vmem:[#allocation46_spill] sm:$0xff]  ;;  %v12634_v12 = vld [vmem:[%s23143_s0 + $0x78] sm:$0xff] }
 0xa0b   :  { %24374 = vst [vmem:[#allocation99_spill] sm:$0xff] %v22580_v15  ;;  %v22588_v43 = vmul.f32 %v22327_v47, %v24377_v51  ;;  %24380 = vst [vmem:[#allocation59_spill] sm:$0xff] %v22592_v57  ;;  %v12632_v51 = vld [vmem:[%s23143_s0 + $0x68] sm:$0xff]  ;;  %v24385_v15 = vld [vmem:[#allocation50_spill] sm:$0xff]  ;;  %v22740_v11 = vadd.f32 %v12634_v12, %v22396_v23 }
 0xa0c   :  { %24376 = vst [vmem:[#allocation83_spill] sm:$0xff] %v22584_v17  ;;  %v24383_v57 = vld [vmem:[#allocation49_spill] sm:$0xff]  ;;  %v22616_v9 = vmul.f32 %v22327_v47, %v24385_v15  ;;  %24388 = vst [vmem:[#allocation27_spill] sm:$0xff] %v22620_v19  ;;  %v12650_v4 = vld [vmem:[%s23143_s0 + $0xf8] sm:$0xff] }
 0xa0d   :  { %24378 = vst [vmem:[#allocation23_spill] sm:$0xff] %v22588_v43  ;;  %v24381_v43 = vld [vmem:[#allocation48_spill] sm:$0xff]  ;;  %v22612_v17 = vmul.f32 %v22327_v47, %v24383_v57  ;;  %v12638_v57 = vld [vmem:[%s23143_s0 + $0x98] sm:$0xff]  ;;  %v12636_v15 = vld [vmem:[%s23143_s0 + $0x88] sm:$0xff] }
 0xa0e   :  { %v22608_v20 = vmul.f32 %v22327_v47, %v24381_v43  ;;  %24386 = vst [vmem:[#allocation56_spill] sm:$0xff] %v22616_v9  ;;  %v12635_v43 = vld [vmem:[%s23143_s0 + $0x80] sm:$0xff]  ;;  %v24389_v9 = vld [vmem:[#allocation51_spill] sm:$0xff]  ;;  %v24390_v19 = vld [vmem:[#allocation53_spill] sm:$0xff]  ;;  %v22758_v23 = vadd.f32 %v12636_v15, %v22404_v8  ;;  %v22764_v41 = vadd.f32 %v12638_v57, %v22412_v62  ;;  %v22782_v62 = vadd.f32 %v12641_v0, %v22424_v53 }
 0xa0f   :  { %24384 = vst [vmem:[#allocation61_spill] sm:$0xff] %v22612_v17  ;;  %v22636_v14 = vmul.f32 %v22327_v47, %v24389_v9  ;;  %v22640_v17 = vmul.f32 %v22327_v47, %v24390_v19  ;;  %24393 = vst [vmem:[#allocation8_spill] sm:$0xff] %v22647_v6  ;;  %v12639_v9 = vld [vmem:[%s23143_s0 + $0xa0] sm:$0xff]  ;;  %v12642_v19 = vld [vmem:[%s23143_s0 + $0xb8] sm:$0xff]  ;;  %v22671_v6 = vadd.f32 %v12623_v1, %v22352_v34 }
 0xa10   :  { %24382 = vst [vmem:[#allocation85_spill] sm:$0xff] %v22608_v20  ;;  %v22644_v20 = vmul.f32 %v22327_v47, %v22193_v45  ;;  %v12640_v45 = vld [vmem:[%s23143_s0 + $0xa8] sm:$0xff]  ;;  %v22662_v47 = vadd.f32 %v12620_v10, %v22340_v31  ;;  %v12646_v31 = vld [vmem:[%s23143_s0 + $0xd8] sm:$0xff]  ;;  %v22689_v34 = vadd.f32 %v12625_v27, %v22360_v7  ;;  %v12649_v10 = vld [vmem:[%s23143_s0 + $0xf0] sm:$0xff]  ;;  %v22716_v27 = vadd.f32 %v12630_v37, %v22380_v56 }
 0xa11   :  { %24391 = vst [vmem:[#allocation63_spill] sm:$0xff] %v22640_v17  ;;  %v12643_v17 = vld [vmem:[%s23143_s0 + $0xc0] sm:$0xff]  ;;  %v12644_v60 = vld [vmem:[%s23143_s0 + $0xc8] sm:$0xff]  ;;  %v12653_v40 = vld [vmem:[%s23143_s0 + $0x110] sm:$0xff]  ;;  %v22734_v56 = vadd.f32 %v12632_v51, %v22388_v18  ;;  %v22743_v37 = vadd.f32 %v12635_v43, %v22400_v44  ;;  %v22761_v44 = vadd.f32 %v12637_v46, %v22408_v21  ;;  %v22767_v12 = vadd.f32 %v12639_v9, %v22416_v54 }
 0xa12   :  { %24392 = vst [vmem:[#allocation67_spill] sm:$0xff] %v22644_v20  ;;  %v12645_v20 = vld [vmem:[%s23143_s0 + $0xd0] sm:$0xff]  ;;  %v12647_v1 = vld [vmem:[%s23143_s0 + $0xe0] sm:$0xff]  ;;  %v12648_v7 = vld [vmem:[%s23143_s0 + $0xe8] sm:$0xff]  ;;  %v22779_v21 = vadd.f32 %v12640_v45, %v22420_v63  ;;  %v22785_v54 = vadd.f32 %v12642_v19, %v22428_v35  ;;  %v22788_v46 = vadd.f32 %v12643_v17, %v22432_v2  ;;  %v22800_v53 = vadd.f32 %v12644_v60, %v22436_v25 }
 0xa13   :  { %v12651_v28 = vld [vmem:[%s23143_s0 + $0x100] sm:$0xff]  ;;  %v12654_v58 = vld [vmem:[%s23143_s0 + $0x118] sm:$0xff]  ;;  %v12652_v22 = vld [vmem:[%s23143_s0 + $0x108] sm:$0xff]  ;;  %v22803_v35 = vadd.f32 %v12645_v20, %v22440_v32  ;;  %v22806_v2 = vadd.f32 %v12646_v31, %v22444_v16  ;;  %v22809_v0 = vadd.f32 %v12647_v1, %v22448_v48  ;;  %v22821_v32 = vadd.f32 %v12648_v7, %v22452_v39 }
 0xa14   :  { %v12657_v3 = vld [vmem:[%s23143_s0 + $0x130] sm:$0xff]  ;;  %v12655_v61 = vld [vmem:[%s23143_s0 + $0x120] sm:$0xff]  ;;  %v12658_v18 = vld [vmem:[%s23143_s0 + $0x138] sm:$0xff]  ;;  %v22824_v16 = vadd.f32 %v12649_v10, %v22456_v29  ;;  %v22827_v48 = vadd.f32 %v12650_v4, %v22460_v24  ;;  %v22830_v20 = vadd.f32 %v12651_v28, %v22464_v50  ;;  %v22842_v29 = vadd.f32 %v12652_v22, %v22468_v5 }
 0xa15   :  { %v12656_v59 = vld [vmem:[%s23143_s0 + $0x128] sm:$0xff]  ;;  %v12661_v51 = vld [vmem:[%s23143_s0 + $0x150] sm:$0xff]  ;;  %v12659_v43 = vld [vmem:[%s23143_s0 + $0x140] sm:$0xff]  ;;  %24394 = vst [vmem:[#allocation10_spill] sm:$0xff] %v22821_v32  ;;  %v22845_v24 = vadd.f32 %v12653_v40, %v22472_v30 }
 0xa16   :  { %v12662_v8 = vld [vmem:[%s23143_s0 + $0x158] sm:$0xff]  ;;  %v12660_v57 = vld [vmem:[%s23143_s0 + $0x148] sm:$0xff]  ;;  %v12665_v15 = vld [vmem:[%s23143_s0 + $0x170] sm:$0xff]  ;;  %24395 = vst [vmem:[#allocation68_spill] sm:$0xff] %v22824_v16 }
 0xa17   :  { %v12663_v63 = vld [vmem:[%s23143_s0 + $0x160] sm:$0xff]  ;;  %v12666_v17 = vld [vmem:[%s23143_s0 + $0x178] sm:$0xff]  ;;  %v12664_v9 = vld [vmem:[%s23143_s0 + $0x168] sm:$0xff]  ;;  %24396 = vst [vmem:[#allocation69_spill] sm:$0xff] %v22827_v48 }
 0xa18   :  { %v12669_v25 = vld [vmem:[%s23143_s0 + $0x190] sm:$0xff]  ;;  %24397 = vst [vmem:[#allocation12_spill] sm:$0xff] %v22830_v20  ;;  %v12667_v19 = vld [vmem:[%s23143_s0 + $0x180] sm:$0xff]  ;;  %v12670_v45 = vld [vmem:[%s23143_s0 + $0x198] sm:$0xff] }
 0xa19   :  { %v12668_v39 = vld [vmem:[%s23143_s0 + $0x188] sm:$0xff]  ;;  %24398 = vst [vmem:[#allocation11_spill] sm:$0xff] %v22842_v29  ;;  %24399 = vst [vmem:[#allocation70_spill] sm:$0xff] %v22845_v24  ;;  %v24400_v50 = vld [vmem:[#allocation54_spill] sm:$0xff] }
 0xa1a   :  { %v22848_v31 = vadd.f32 %v12654_v58, %v24400_v50  ;;  %v24402_v60 = vld [vmem:[#allocation101_spill] sm:$0xff]  ;;  %v12673_v1 = vld [vmem:[%s23143_s0 + $0x1b0] sm:$0xff]  ;;  %v12671_v4 = vld [vmem:[%s23143_s0 + $0x1a0] sm:$0xff] }
 0xa1b   :  { %v22851_v10 = vadd.f32 %v12655_v61, %v24402_v60  ;;  %v12674_v5 = vld [vmem:[%s23143_s0 + $0x1b8] sm:$0xff]  ;;  %v24406_v40 = vld [vmem:[#allocation57_spill] sm:$0xff]  ;;  %v24408_v58 = vld [vmem:[#allocation6_spill] sm:$0xff] }
 0xa1c   :  { %24401 = vst [vmem:[#allocation71_spill] sm:$0xff] %v22848_v31  ;;  %v24404_v30 = vld [vmem:[#allocation55_spill] sm:$0xff]  ;;  %v22866_v28 = vadd.f32 %v12657_v3, %v24406_v40  ;;  %v22869_v22 = vadd.f32 %v12658_v18, %v24408_v58  ;;  %v24410_v61 = vld [vmem:[#allocation84_spill] sm:$0xff]  ;;  %v12672_v60 = vld [vmem:[%s23143_s0 + $0x1a8] sm:$0xff] }
 0xa1d   :  { %24403 = vst [vmem:[#allocation28_spill] sm:$0xff] %v22851_v10  ;;  %v22863_v7 = vadd.f32 %v12656_v59, %v24404_v30  ;;  %v22872_v50 = vadd.f32 %v12659_v43, %v24410_v61  ;;  %v12677_v10 = vld [vmem:[%s23143_s0 + $0x1d0] sm:$0xff]  ;;  %v12675_v59 = vld [vmem:[%s23143_s0 + $0x1c0] sm:$0xff]  ;;  %v24414_v18 = vld [vmem:[#allocation29_spill] sm:$0xff] }
 0xa1e   :  { %24407 = vst [vmem:[#allocation72_spill] sm:$0xff] %v22866_v28  ;;  %24409 = vst [vmem:[#allocation73_spill] sm:$0xff] %v22869_v22  ;;  %v24412_v3 = vld [vmem:[#allocation58_spill] sm:$0xff]  ;;  %v22887_v40 = vadd.f32 %v12661_v51, %v24414_v18  ;;  %v24416_v43 = vld [vmem:[#allocation60_spill] sm:$0xff] }
 0xa1f   :  { %24405 = vst [vmem:[#allocation31_spill] sm:$0xff] %v22863_v7  ;;  %24411 = vst [vmem:[#allocation32_spill] sm:$0xff] %v22872_v50  ;;  %v22884_v30 = vadd.f32 %v12660_v57, %v24412_v3  ;;  %v22890_v58 = vadd.f32 %v12662_v8, %v24416_v43  ;;  %v24418_v61 = vld [vmem:[#allocation41_spill] sm:$0xff]  ;;  %v12678_v22 = vld [vmem:[%s23143_s0 + $0x1d8] sm:$0xff] }
 0xa20   :  { %24415 = vst [vmem:[#allocation76_spill] sm:$0xff] %v22887_v40  ;;  %v22893_v50 = vadd.f32 %v12663_v63, %v24418_v61  ;;  %v12676_v28 = vld [vmem:[%s23143_s0 + $0x1c8] sm:$0xff]  ;;  %v12679_v57 = vld [vmem:[%s23143_s0 + $0x1e0] sm:$0xff]  ;;  %v24422_v8 = vld [vmem:[#allocation43_spill] sm:$0xff] }
 0xa21   :  { %24413 = vst [vmem:[#allocation75_spill] sm:$0xff] %v22884_v30  ;;  %24417 = vst [vmem:[#allocation78_spill] sm:$0xff] %v22890_v58  ;;  %v24420_v51 = vld [vmem:[#allocation89_spill] sm:$0xff]  ;;  %v22908_v18 = vadd.f32 %v12665_v15, %v24422_v8  ;;  %v24424_v63 = vld [vmem:[#allocation91_spill] sm:$0xff] }
 0xa22   :  { %24419 = vst [vmem:[#allocation35_spill] sm:$0xff] %v22893_v50  ;;  %v22905_v3 = vadd.f32 %v12664_v9, %v24420_v51  ;;  %v22911_v43 = vadd.f32 %v12666_v17, %v24424_v63  ;;  %v24426_v61 = vld [vmem:[#allocation14_spill] sm:$0xff]  ;;  %v12682_v40 = vld [vmem:[%s23143_s0 + $0x1f8] sm:$0xff]  ;;  %v24428_v30 = vld [vmem:[#allocation93_spill] sm:$0xff] }
 0xa23   :  { %24423 = vst [vmem:[#allocation36_spill] sm:$0xff] %v22908_v18  ;;  %v22914_v50 = vadd.f32 %v12667_v19, %v24426_v61  ;;  %v12681_v58 = vld [vmem:[%s23143_s0 + $0x1f0] sm:$0xff]  ;;  %v22923_v9 = vadd.f32 %v12668_v39, %v24428_v30  ;;  %v24429_v51 = vld [vmem:[#allocation95_spill] sm:$0xff]  ;;  %v24430_v8 = vld [vmem:[#allocation97_spill] sm:$0xff]  ;;  %s15875_s0 = smov [#allocation3]  }
 0xa24   :  { %24421 = vst [vmem:[#allocation79_spill] sm:$0xff] %v22905_v3  ;;  %24425 = vst [vmem:[#allocation80_spill] sm:$0xff] %v22911_v43  ;;  %v22926_v15 = vadd.f32 %v12669_v25, %v24429_v51  ;;  %v22929_v17 = vadd.f32 %v12670_v45, %v24430_v8  ;;  %v24431_v63 = vld [vmem:[#allocation99_spill] sm:$0xff]  ;;  %v24439_v39 = vld [vmem:[#allocation85_spill] sm:$0xff]  ;;  %s12944_s16 = sshll.u32 %s15875_s0, 4  ;;  %s12945_s16 = int_to_ptr.vmem [resolvable:$true] %s12944_s16 }
 0xa25   :  { %24427 = vst [vmem:[#allocation74_spill] sm:$0xff] %v22914_v50  ;;  %v22932_v19 = vadd.f32 %v12671_v4, %v24431_v63  ;;  %v24433_v61 = vld [vmem:[#allocation83_spill] sm:$0xff]  ;;  %v22944_v30 = vadd.f32 %v12675_v59, %v24439_v39  ;;  %v24441_v25 = vld [vmem:[#allocation61_spill] sm:$0xff]  ;;  %v24443_v45 = vld [vmem:[#allocation56_spill] sm:$0xff]  ;;  %v12749_v39 = vmax.f32 %v22665_v13, 0.0  ;;  %s15850_s17 = scalar_lea.vmem %s12945_s16, 8192  ;;  %p15855_p1 = scmp.lt.s32.totalorder %s12945_s16, %s12945_s16 }
 0xa26   :  { %v22935_v50 = vadd.f32 %v12672_v60, %v24433_v61  ;;  %v24435_v43 = vld [vmem:[#allocation23_spill] sm:$0xff]  ;;  %v22947_v51 = vadd.f32 %v12676_v28, %v24441_v25  ;;  %v22950_v8 = vadd.f32 %v12677_v10, %v24443_v45  ;;  %v22956_v60 = vadd.f32 %v12679_v57, %v22636_v14  ;;  %v24447_v59 = vld [vmem:[#allocation8_spill] sm:$0xff]  ;;  %p15851_p0 = scmp.ne.s32.totalorder %s12945_s16, %s15850_s17  ;;  %p15856_p2 = scmp.lt.s32.totalorder %s15850_s17, %s15850_s17 }
 0xa27   :  { %24432 = vst [vmem:[#allocation82_spill] sm:$0xff] %v22932_v19  ;;  %v22938_v18 = vadd.f32 %v12673_v1, %v24435_v43  ;;  %v24437_v3 = vld [vmem:[#allocation59_spill] sm:$0xff]  ;;  %24440 = vst [vmem:[#allocation86_spill] sm:$0xff] %v22944_v30  ;;  %v12747_v61 = vmax.f32 %v24447_v59, 0.0  ;;  %v12748_v28 = vmax.f32 %v22662_v47, 0.0  ;;  %v12750_v10 = vmax.f32 %v22668_v42, 0.0 }
 0xa28   :  { %24434 = vst [vmem:[#allocation37_spill] sm:$0xff] %v22935_v50  ;;  %v22941_v7 = vadd.f32 %v12674_v5, %v24437_v3  ;;  %24442 = vst [vmem:[#allocation39_spill] sm:$0xff] %v22947_v51  ;;  %v24444_v4 = vld [vmem:[#allocation27_spill] sm:$0xff]  ;;  %v12752_v25 = vmax.f32 %v22686_v33, 0.0  ;;  %v12753_v14 = vmax.f32 %v22689_v34, 0.0  ;;  %v12755_v57 = vmax.f32 %v22695_v55, 0.0  ;;  %p15857_p3 = por %p15856_p2, %p15855_p1 }
 0xa29   :  { %24436 = vst [vmem:[#allocation44_spill] sm:$0xff] %v22938_v18  ;;  %v22953_v63 = vadd.f32 %v12678_v22, %v24444_v4  ;;  %v24445_v1 = vld [vmem:[#allocation63_spill] sm:$0xff]  ;;  %v12751_v22 = vmax.f32 %v22671_v6, 0.0  ;;  %v12757_v45 = vmax.f32 %v22713_v36, 0.0  ;;  %v24450_v13 = vld [vmem:[#allocation72_spill] sm:$0xff]  ;;  %v24451_v47 = vld [vmem:[#allocation73_spill] sm:$0xff] }
 0xa2a   :  { %24438 = vst [vmem:[#allocation38_spill] sm:$0xff] %v22941_v7  ;;  %v22959_v43 = vadd.f32 %v12681_v58, %v24445_v1  ;;  %v24446_v5 = vld [vmem:[#allocation67_spill] sm:$0xff]  ;;  %v12754_v58 = vmax.f32 %v22692_v26, 0.0  ;;  %v24452_v32 = vld [vmem:[#allocation32_spill] sm:$0xff]  ;;  %v24455_v20 = vld [vmem:[#allocation78_spill] sm:$0xff]  ;;  %v12805_v55 = vmax.f32 %v22950_v8, 0.0  ;;  %p15858_p4 = pnand %p15857_p3, %p15851_p0 }
 0xa2b   :  { %v22962_v3 = vadd.f32 %v12682_v40, %v24446_v5  ;;  %v12756_v40 = vmax.f32 %v22710_v49, 0.0  ;;  %v24453_v16 = vld [vmem:[#allocation75_spill] sm:$0xff]  ;;  %v24454_v48 = vld [vmem:[#allocation76_spill] sm:$0xff]  ;;  %v12811_v19 = vmin.f32 %v12747_v61, 6.0  ;;  %v12812_v5 = vmin.f32 %v12748_v28, 6.0 }
 0xa2c   :  { %v24456_v29 = vld [vmem:[#allocation35_spill] sm:$0xff]  ;;  %v24458_v31 = vld [vmem:[#allocation36_spill] sm:$0xff]  ;;  %v24460_v42 = vld [vmem:[#allocation74_spill] sm:$0xff]  ;;  %v12813_v50 = vmin.f32 %v12749_v39, 6.0  ;;  %v12814_v59 = vmin.f32 %v12750_v10, 6.0  ;;  %v12815_v18 = vmin.f32 %v12751_v22, 6.0 }
 0xa2d   :  { %v24457_v24 = vld [vmem:[#allocation79_spill] sm:$0xff]  ;;  %v24459_v6 = vld [vmem:[#allocation80_spill] sm:$0xff]  ;;  %v12816_v33 = vmin.f32 %v12752_v25, 6.0  ;;  %v12817_v7 = vmin.f32 %v12753_v14, 6.0  ;;  %v12818_v34 = vmin.f32 %v12754_v58, 6.0  ;;  %v12819_v30 = vmin.f32 %v12755_v57, 6.0 }
 0xa2e   :  { %v12820_v26 = vmin.f32 %v12756_v40, 6.0  ;;  %v12821_v51 = vmin.f32 %v12757_v45, 6.0  ;;  %12875 = vst [vmem:[#allocation3] sm:$0xff] %v12811_v19  ;;  %12876 = vst [vmem:[#allocation3 + $0x8] sm:$0xff] %v12812_v5  ;;  %v24461_v36 = vmax.f32 %v22716_v27, 0.0  ;;  %v24462_v4 = vmax.f32 %v22719_v52, 0.0 }
 0xa2f   :  { %12877 = vst [vmem:[#allocation3 + $0x10] sm:$0xff] %v12813_v50  ;;  %v24463_v61 = vmax.f32 %v22734_v56, 0.0  ;;  %v24464_v39 = vmax.f32 %v22737_v38, 0.0  ;;  %12878 = vst [vmem:[#allocation3 + $0x18] sm:$0xff] %v12814_v59  ;;  %v24465_v19 = vmax.f32 %v22740_v11, 0.0  ;;  %v24466_v50 = vmax.f32 %v22743_v37, 0.0 }
 0xa30   :  { %v12822_v49 = vmin.f32 %v24461_v36, 6.0  ;;  %v12823_v1 = vmin.f32 %v24462_v4, 6.0  ;;  %12879 = vst [vmem:[#allocation3 + $0x20] sm:$0xff] %v12815_v18  ;;  %12880 = vst [vmem:[#allocation3 + $0x28] sm:$0xff] %v12816_v33  ;;  %v24467_v25 = vmax.f32 %v22758_v23, 0.0  ;;  %v24468_v14 = vmax.f32 %v22761_v44, 0.0 }
 0xa31   :  { %v12824_v28 = vmin.f32 %v24463_v61, 6.0  ;;  %v12825_v10 = vmin.f32 %v24464_v39, 6.0  ;;  %12881 = vst [vmem:[#allocation3 + $0x30] sm:$0xff] %v12817_v7  ;;  %v12826_v22 = vmin.f32 %v24465_v19, 6.0  ;;  %v12827_v27 = vmin.f32 %v24466_v50, 6.0  ;;  %12882 = vst [vmem:[#allocation3 + $0x38] sm:$0xff] %v12818_v34 }
 0xa32   :  { %v12828_v52 = vmin.f32 %v24467_v25, 6.0  ;;  %v12829_v56 = vmin.f32 %v24468_v14, 6.0  ;;  %12883 = vst [vmem:[#allocation3 + $0x40] sm:$0xff] %v12819_v30  ;;  %12884 = vst [vmem:[#allocation3 + $0x48] sm:$0xff] %v12820_v26  ;;  %v24469_v38 = vmax.f32 %v22764_v41, 0.0  ;;  %v24470_v7 = vmax.f32 %v22767_v12, 0.0 }
 0xa33   :  { %12885 = vst [vmem:[#allocation3 + $0x50] sm:$0xff] %v12821_v51  ;;  %v24471_v58 = vmax.f32 %v22779_v21, 0.0  ;;  %v24472_v57 = vmax.f32 %v22782_v62, 0.0  ;;  %12886 = vst [vmem:[#allocation3 + $0x58] sm:$0xff] %v12822_v49  ;;  %v24473_v44 = vmax.f32 %v22785_v54, 0.0  ;;  %v24474_v51 = vmax.f32 %v22788_v46, 0.0 }
 0xa34   :  { %v12830_v18 = vmin.f32 %v24469_v38, 6.0  ;;  %v12831_v11 = vmin.f32 %v24470_v7, 6.0  ;;  %12887 = vst [vmem:[#allocation3 + $0x60] sm:$0xff] %v12823_v1  ;;  %12888 = vst [vmem:[#allocation3 + $0x68] sm:$0xff] %v12824_v28  ;;  %v24475_v40 = vmax.f32 %v22800_v53, 0.0  ;;  %v24476_v45 = vmax.f32 %v22803_v35, 0.0 }
 0xa35   :  { %v12832_v37 = vmin.f32 %v24471_v58, 6.0  ;;  %v12833_v23 = vmin.f32 %v24472_v57, 6.0  ;;  %12889 = vst [vmem:[#allocation3 + $0x70] sm:$0xff] %v12825_v10  ;;  %v12834_v30 = vmin.f32 %v24473_v44, 6.0  ;;  %v12835_v41 = vmin.f32 %v24474_v51, 6.0  ;;  %12890 = vst [vmem:[#allocation3 + $0x78] sm:$0xff] %v12826_v22 }
 0xa36   :  { %v12836_v12 = vmin.f32 %v24475_v40, 6.0  ;;  %v12837_v21 = vmin.f32 %v24476_v45, 6.0  ;;  %12891 = vst [vmem:[#allocation3 + $0x80] sm:$0xff] %v12827_v27  ;;  %12892 = vst [vmem:[#allocation3 + $0x88] sm:$0xff] %v12828_v52  ;;  %v24477_v62 = vmax.f32 %v22806_v2, 0.0  ;;  %v24478_v34 = vmax.f32 %v22809_v0, 0.0 }
 0xa37   :  { %12893 = vst [vmem:[#allocation3 + $0x90] sm:$0xff] %v12829_v56  ;;  %v24479_v26 = vld [vmem:[#allocation10_spill] sm:$0xff]  ;;  %v24481_v36 = vld [vmem:[#allocation68_spill] sm:$0xff]  ;;  %12894 = vst [vmem:[#allocation3 + $0x98] sm:$0xff] %v12830_v18  ;;  %v24503_v45 = vmax.f32 %v24456_v29, 0.0 }
 0xa38   :  { %v12838_v33 = vmin.f32 %v24477_v62, 6.0  ;;  %v12839_v54 = vmin.f32 %v24478_v34, 6.0  ;;  %v24480_v49 = vmax.f32 %v24479_v26, 0.0  ;;  %v24482_v4 = vmax.f32 %v24481_v36, 0.0  ;;  %12895 = vst [vmem:[#allocation3 + $0xa0] sm:$0xff] %v12831_v11  ;;  %12896 = vst [vmem:[#allocation3 + $0xa8] sm:$0xff] %v12832_v37 }
 0xa39   :  { %12897 = vst [vmem:[#allocation3 + $0xb0] sm:$0xff] %v12833_v23  ;;  %v24483_v35 = vld [vmem:[#allocation69_spill] sm:$0xff]  ;;  %v24485_v59 = vld [vmem:[#allocation12_spill] sm:$0xff]  ;;  %v24487_v28 = vld [vmem:[#allocation11_spill] sm:$0xff]  ;;  %v24497_v11 = vmax.f32 %v24450_v13, 0.0  ;;  %v24498_v37 = vmax.f32 %v24451_v47, 0.0 }
 0xa3a   :  { %v12840_v46 = vmin.f32 %v24480_v49, 6.0  ;;  %v12841_v53 = vmin.f32 %v24482_v4, 6.0  ;;  %v24484_v1 = vmax.f32 %v24483_v35, 0.0  ;;  %v24486_v61 = vmax.f32 %v24485_v59, 0.0  ;;  %v24489_v10 = vld [vmem:[#allocation70_spill] sm:$0xff]  ;;  %12898 = vst [vmem:[#allocation3 + $0xb8] sm:$0xff] %v12834_v30 }
 0xa3b   :  { %v24488_v39 = vmax.f32 %v24487_v28, 0.0  ;;  %v24490_v19 = vmax.f32 %v24489_v10, 0.0  ;;  %12899 = vst [vmem:[#allocation3 + $0xc0] sm:$0xff] %v12835_v41  ;;  %12900 = vst [vmem:[#allocation3 + $0xc8] sm:$0xff] %v12836_v12  ;;  %v24491_v50 = vld [vmem:[#allocation71_spill] sm:$0xff]  ;;  %v24493_v52 = vld [vmem:[#allocation28_spill] sm:$0xff] }
 0xa3c   :  { %v12842_v5 = vmin.f32 %v24484_v1, 6.0  ;;  %v12843_v2 = vmin.f32 %v24486_v61, 6.0  ;;  %12901 = vst [vmem:[#allocation3 + $0xd0] sm:$0xff] %v12837_v21  ;;  %v24492_v27 = vmax.f32 %v24491_v50, 0.0  ;;  %v24494_v14 = vmax.f32 %v24493_v52, 0.0  ;;  %v24495_v38 = vld [vmem:[#allocation31_spill] sm:$0xff] }
 0xa3d   :  { %v12844_v0 = vmin.f32 %v24488_v39, 6.0  ;;  %v12845_v22 = vmin.f32 %v24490_v19, 6.0  ;;  %v24496_v18 = vmax.f32 %v24495_v38, 0.0  ;;  %v12849_v58 = vmin.f32 %v24497_v11, 6.0  ;;  %12902 = vst [vmem:[#allocation3 + $0xd8] sm:$0xff] %v12838_v33  ;;  %12903 = vst [vmem:[#allocation3 + $0xe0] sm:$0xff] %v12839_v54 }
 0xa3e   :  { %v12846_v25 = vmin.f32 %v24492_v27, 6.0  ;;  %v12847_v56 = vmin.f32 %v24494_v14, 6.0  ;;  %12904 = vst [vmem:[#allocation3 + $0xe8] sm:$0xff] %v12840_v46  ;;  %12905 = vst [vmem:[#allocation3 + $0xf0] sm:$0xff] %v12841_v53  ;;  %v12850_v57 = vmin.f32 %v24498_v37, 6.0  ;;  %v24499_v23 = vmax.f32 %v24452_v32, 0.0 }
 0xa3f   :  { %v12848_v7 = vmin.f32 %v24496_v18, 6.0  ;;  %v24500_v30 = vmax.f32 %v24453_v16, 0.0  ;;  %v24501_v41 = vmax.f32 %v24454_v48, 0.0  ;;  %12906 = vst [vmem:[#allocation3 + $0xf8] sm:$0xff] %v12842_v5  ;;  %12907 = vst [vmem:[#allocation3 + $0x100] sm:$0xff] %v12843_v2  ;;  %v24502_v13 = vmax.f32 %v24455_v20, 0.0 }
 0xa40   :  { %v12851_v44 = vmin.f32 %v24499_v23, 6.0  ;;  %12908 = vst [vmem:[#allocation3 + $0x108] sm:$0xff] %v12844_v0  ;;  %12909 = vst [vmem:[#allocation3 + $0x110] sm:$0xff] %v12845_v22  ;;  %v12855_v47 = vmin.f32 %v24503_v45, 6.0  ;;  %v24504_v21 = vmax.f32 %v24457_v24, 0.0  ;;  %v24505_v62 = vmax.f32 %v24458_v31, 0.0 }
 0xa41   :  { %v12852_v51 = vmin.f32 %v24500_v30, 6.0  ;;  %v12853_v40 = vmin.f32 %v24501_v41, 6.0  ;;  %v12854_v12 = vmin.f32 %v24502_v13, 6.0  ;;  %12910 = vst [vmem:[#allocation3 + $0x118] sm:$0xff] %v12846_v25  ;;  %12911 = vst [vmem:[#allocation3 + $0x120] sm:$0xff] %v12847_v56  ;;  %v24506_v48 = vmax.f32 %v24459_v6, 0.0 }
 0xa42   :  { %v12856_v32 = vmin.f32 %v24504_v21, 6.0  ;;  %v12857_v16 = vmin.f32 %v24505_v62, 6.0  ;;  %12912 = vst [vmem:[#allocation3 + $0x128] sm:$0xff] %v12848_v7  ;;  %12913 = vst [vmem:[#allocation3 + $0x130] sm:$0xff] %v12849_v58  ;;  %v24507_v34 = vmax.f32 %v24460_v42, 0.0  ;;  %v24508_v54 = vmax.f32 %v22923_v9, 0.0 }
 0xa43   :  { %v12858_v33 = vmin.f32 %v24506_v48, 6.0  ;;  %v24509_v26 = vmax.f32 %v22926_v15, 0.0  ;;  %12914 = vst [vmem:[#allocation3 + $0x138] sm:$0xff] %v12850_v57  ;;  %12915 = vst [vmem:[#allocation3 + $0x140] sm:$0xff] %v12851_v44  ;;  %v24510_v31 = vmax.f32 %v22929_v17, 0.0  ;;  %v24511_v6 = vld [vmem:[#allocation82_spill] sm:$0xff] }
 0xa44   :  { %v12859_v20 = vmin.f32 %v24507_v34, 6.0  ;;  %v12860_v29 = vmin.f32 %v24508_v54, 6.0  ;;  %12916 = vst [vmem:[#allocation3 + $0x148] sm:$0xff] %v12852_v51  ;;  %12917 = vst [vmem:[#allocation3 + $0x150] sm:$0xff] %v12853_v40  ;;  %v24512_v46 = vmax.f32 %v24511_v6, 0.0  ;;  %v24513_v42 = vld [vmem:[#allocation37_spill] sm:$0xff] }
 0xa45   :  { %v12861_v24 = vmin.f32 %v24509_v26, 6.0  ;;  %v12862_v49 = vmin.f32 %v24510_v31, 6.0  ;;  %v24514_v4 = vmax.f32 %v24513_v42, 0.0  ;;  %v24515_v9 = vld [vmem:[#allocation44_spill] sm:$0xff]  ;;  %12918 = vst [vmem:[#allocation3 + $0x158] sm:$0xff] %v12854_v12  ;;  %12919 = vst [vmem:[#allocation3 + $0x160] sm:$0xff] %v12855_v47 }
 0xa46   :  { %v12863_v36 = vmin.f32 %v24512_v46, 6.0  ;;  %v24516_v35 = vmax.f32 %v24515_v9, 0.0  ;;  %12920 = vst [vmem:[#allocation3 + $0x168] sm:$0xff] %v12856_v32  ;;  %12921 = vst [vmem:[#allocation3 + $0x170] sm:$0xff] %v12857_v16  ;;  %v24517_v15 = vld [vmem:[#allocation38_spill] sm:$0xff]  ;;  %v24521_v28 = vld [vmem:[#allocation39_spill] sm:$0xff] }
 0xa47   :  { %v12864_v53 = vmin.f32 %v24514_v4, 6.0  ;;  %v24518_v5 = vmax.f32 %v24517_v15, 0.0  ;;  %v24519_v61 = vld [vmem:[#allocation86_spill] sm:$0xff]  ;;  %v24522_v39 = vmax.f32 %v24521_v28, 0.0  ;;  %v12869_v10 = vmin.f32 %v12805_v55, 6.0  ;;  %12922 = vst [vmem:[#allocation3 + $0x178] sm:$0xff] %v12858_v33 }
 0xa48   :  { %v12865_v1 = vmin.f32 %v24516_v35, 6.0  ;;  %v24520_v2 = vmax.f32 %v24519_v61, 0.0  ;;  %12923 = vst [vmem:[#allocation3 + $0x180] sm:$0xff] %v12859_v20  ;;  %12924 = vst [vmem:[#allocation3 + $0x188] sm:$0xff] %v12860_v29  ;;  %v24523_v19 = vmax.f32 %v22953_v63, 0.0  ;;  %v24524_v50 = vmax.f32 %v22956_v60, 0.0 }
 0xa49   :  { %v12866_v59 = vmin.f32 %v24518_v5, 6.0  ;;  %v12868_v0 = vmin.f32 %v24522_v39, 6.0  ;;  %12925 = vst [vmem:[#allocation3 + $0x190] sm:$0xff] %v12861_v24  ;;  %v24525_v25 = vmax.f32 %v22959_v43, 0.0  ;;  %v24526_v14 = vmax.f32 %v22962_v3, 0.0  ;;  %12926 = vst [vmem:[#allocation3 + $0x198] sm:$0xff] %v12862_v49 }
 0xa4a   :  { %v12867_v17 = vmin.f32 %v24520_v2, 6.0  ;;  %v12870_v22 = vmin.f32 %v24523_v19, 6.0  ;;  %v12871_v27 = vmin.f32 %v24524_v50, 6.0  ;;  %12927 = vst [vmem:[#allocation3 + $0x1a0] sm:$0xff] %v12863_v36  ;;  %12928 = vst [vmem:[#allocation3 + $0x1a8] sm:$0xff] %v12864_v53 }
 0xa4b   :  { %v12873_v52 = vmin.f32 %v24525_v25, 6.0  ;;  %v12874_v56 = vmin.f32 %v24526_v14, 6.0  ;;  %12929 = vst [vmem:[#allocation3 + $0x1b0] sm:$0xff] %v12865_v1  ;;  %12930 = vst [vmem:[#allocation3 + $0x1b8] sm:$0xff] %v12866_v59 }
 0xa4c   :  { %12931 = vst [vmem:[#allocation3 + $0x1c0] sm:$0xff] %v12867_v17  ;;  %12932 = vst [vmem:[#allocation3 + $0x1c8] sm:$0xff] %v12868_v0 }
 0xa4d   :  { %12933 = vst [vmem:[#allocation3 + $0x1d0] sm:$0xff] %v12869_v10  ;;  %12934 = vst [vmem:[#allocation3 + $0x1d8] sm:$0xff] %v12870_v22 }
 0xa4e   :  { %12935 = vst [vmem:[#allocation3 + $0x1e0] sm:$0xff] %v12871_v27  ;;  %12937 = vst [vmem:[#allocation3 + $0x1f0] sm:$0xff] %v12873_v52 }
 0xa4f   :  { %12938 = vst [vmem:[#allocation3 + $0x1f8] sm:$0xff] %v12874_v56 }
 0xa50   :  { %15861 = shalt.err (!%p15858_p4)
}
 0xa51   :  { %s15862_s20 = scalar_lea.hbm %s23150_s7, 8192 }
 0xa52   :  { %p15863_p5 = scmp.ne.s32.totalorder %s23150_s7, %s15862_s20  ;;  %p15866_p6 = scmp.lt.u32.totalorder %s15862_s20, %s23150_s7 }
 0xa54   :  { %p15868_p7 = pnand %p15866_p6, %p15863_p5 }
 0xa56   :  { %15871 = shalt.err (!%p15868_p7)
}
 0xa57   :  { %s15876_s3 = smov 128   ;;  %s15877_s25 = smov 8  }
 0xa58   :  { %12950 = dma.vmem_to_hbm [thread:$0]  %s12945_s16, 8192, %s23150_s7, [#allocation4], %s15876_s3, %s15876_s3, %s15877_s25  }
 0xa59   :  { %15872 = dma.done.wait [#allocation4], 8192  }
 0xa5a   :  { %15873 = vsyncadd [#allocation4], 4294959104 }
 0xa5b   :  { %12954 = vsyncpa [#allocation4], 1 }

</bundles_post_ra>
